<compile_context>
chip_gen: v7x
topology: tpu7x:2x2x1
jax: 0.10.0
libtpu: 0.0.40
codegen_flags: <defaults>
</compile_context>

<pallas_src>
import math

import jax
import jax.numpy as jnp
from jax import lax
from jax.experimental import pallas as pl
from jax.experimental.pallas import tpu as pltpu

EPS = 1e-5
LANE = 128


def _round_up(x, m):
    return (x + m - 1) // m * m


def _vmem_spec():
    # whole array, VMEM resident, no pipeline buffering
    return pl.BlockSpec(memory_space=pltpu.MemorySpace.VMEM)


def _make_kernel(N, H, W, Cp, Pp, has_downsample):
    M = N * H * W
    Hp, Wp = H + 4, W + 4          # padding=2 per side for the dilated conv
    inv_m = 1.0 / M

    def bn(y, gamma, beta):
        # training-mode batch norm on (M, C): one traversal producing sum and
        # sum-of-squares; biased variance, clamped at 0 before rsqrt; applied
        # as a fused scale/shift (2 elementwise ops instead of 3).
        s = jnp.sum(y, axis=0, keepdims=True)
        ss = jnp.sum(y * y, axis=0, keepdims=True)
        mean = s * inv_m
        var = jnp.maximum(ss * inv_m - mean * mean, 0.0)
        scale = lax.rsqrt(var + EPS) * gamma
        shift = beta - mean * scale
        return y * scale + shift

    def body(x_ref, w1_ref, g1_ref, b1_ref, w2_ref, g2_ref, b2_ref,
             w3_ref, g3_ref, b3_ref, out_ref, pad_ref, slab_ref,
             wd_ref=None, gd_ref=None, bd_ref=None):
        x2d = x_ref[...].reshape(M, Cp)            # bf16, lane-dense (Cp%128==0)

        # ---- downsample branch first; stash into out_ref so the residual
        # ---- doesn't stay live as a (M,Pp) f32 temporary ----
        if has_downsample:
            yd = jnp.dot(x2d, wd_ref[...], preferred_element_type=jnp.float32)
            yd = bn(yd, gd_ref[...], bd_ref[...])
            out_ref[...] = yd.reshape(N, H, W, Pp)

        # ---- conv1 (1x1, no bias) + BN1 + ReLU : one MXU matmul ----
        y1 = jnp.dot(x2d, w1_ref[...], preferred_element_type=jnp.float32)
        y1 = jnp.maximum(bn(y1, g1_ref[...], b1_ref[...]), 0.0)

        # ---- conv2 (3x3, dilation=2, padding=2, stride=1) + BN2 + ReLU ----
        # zero only the 2-wide halo strips; write y1 straight into the interior
        zrow = jnp.zeros((N, 2, Wp, Pp), jnp.bfloat16)
        pad_ref[:, 0:2, :, :] = zrow
        pad_ref[:, H + 2:Hp, :, :] = zrow
        zcol = jnp.zeros((N, H, 2, Pp), jnp.bfloat16)
        pad_ref[:, 2:2 + H, 0:2, :] = zcol
        pad_ref[:, 2:2 + H, W + 2:Wp, :] = zcol
        pad_ref[:, 2:2 + H, 2:2 + W, :] = (
            y1.astype(jnp.bfloat16).reshape(N, H, W, Pp))

        # im2col slab (M, 9*Pp): one deep-K MXU matmul instead of 9 shallow ones
        for k in range(9):
            ky, kx = k // 3, k % 3
            tap = pad_ref[:, 2 * ky:2 * ky + H, 2 * kx:2 * kx + W, :]
            slab_ref[:, k * Pp:(k + 1) * Pp] = tap.reshape(M, Pp)
        y2 = jnp.dot(slab_ref[...], w2_ref[...],
                     preferred_element_type=jnp.float32)
        y2 = jnp.maximum(bn(y2, g2_ref[...], b2_ref[...]), 0.0)

        # ---- conv3 (1x1) + BN3, residual add, final ReLU ----
        y3 = jnp.dot(y2.astype(jnp.bfloat16), w3_ref[...],
                     preferred_element_type=jnp.float32)
        y3 = bn(y3, g3_ref[...], b3_ref[...])

        if has_downsample:
            res = out_ref[...].reshape(M, Pp)
        else:
            # identity shortcut: re-read the bf16 input instead of round-
            # tripping an f32 copy through out_ref (Cp == Pp in this case)
            res = x2d.astype(jnp.float32)
        out_ref[...] = jnp.maximum(y3 + res, 0.0).reshape(N, H, W, Pp)

    if has_downsample:
        def kernel(x_ref, w1_ref, g1_ref, b1_ref, w2_ref, g2_ref, b2_ref,
                   w3_ref, g3_ref, b3_ref, wd_ref, gd_ref, bd_ref,
                   out_ref, pad_ref, slab_ref):
            body(x_ref, w1_ref, g1_ref, b1_ref, w2_ref, g2_ref, b2_ref,
                 w3_ref, g3_ref, b3_ref, out_ref, pad_ref, slab_ref,
                 wd_ref=wd_ref, gd_ref=gd_ref, bd_ref=bd_ref)
    else:
        def kernel(x_ref, w1_ref, g1_ref, b1_ref, w2_ref, g2_ref, b2_ref,
                   w3_ref, g3_ref, b3_ref, out_ref, pad_ref, slab_ref):
            body(x_ref, w1_ref, g1_ref, b1_ref, w2_ref, g2_ref, b2_ref,
                 w3_ref, g3_ref, b3_ref, out_ref, pad_ref, slab_ref)
    return kernel


def detnet_pallas(x_nchw, params, *, stride=1, block_type='A'):
    """Forward pass of the DetNet block. Input/output NCHW, f32."""
    # TODO(synk): stride > 1 (strided dilated conv + strided downsample) not
    # implemented; only the module's default stride=1 configuration is covered.
    assert stride == 1
    N, Cin, H, W = x_nchw.shape
    P = params['w1'].shape[1]
    has_downsample = (stride != 1) or (Cin != P) or (block_type == 'B')

    Cp = _round_up(Cin, LANE)
    Pp = _round_up(P, LANE)
    M = N * H * W
    if not has_downsample:
        assert Cp == Pp  # identity shortcut implies Cin == planes

    # NCHW -> NHWC, channels zero-padded to a 128-lane multiple, bf16 operands.
    # (If this block sits in a chain of DetNet blocks, keep the whole chain in
    #  NHWC and transpose once at the ends; kept NCHW here to match the module.)
    x = jnp.transpose(x_nchw, (0, 2, 3, 1)).astype(jnp.float32)
    x = jnp.pad(x, ((0, 0), (0, 0), (0, 0), (0, Cp - Cin))).astype(jnp.bfloat16)

    def pad_w(w, r, c):
        return jnp.pad(w, ((0, r - w.shape[0]),
                           (0, c - w.shape[1]))).astype(jnp.bfloat16)

    def pad_gb(g, b):
        pw = ((0, 0), (0, Pp - P))
        return (jnp.pad(g, pw, constant_values=1.0).astype(jnp.float32),
                jnp.pad(b, pw).astype(jnp.float32))

    w1 = pad_w(params['w1'], Cp, Pp)
    w3 = pad_w(params['w3'], Pp, Pp)
    # pre-pack the dilated 3x3 as (9*Pp, Pp) for the single im2col matmul
    w2 = jnp.pad(params['w2'],
                 ((0, 0), (0, 0), (0, Pp - P), (0, Pp - P))
                 ).reshape(9 * Pp, Pp).astype(jnp.bfloat16)
    g1, b1 = pad_gb(params['g1'], params['b1'])
    g2, b2 = pad_gb(params['g2'], params['b2'])
    g3, b3 = pad_gb(params['g3'], params['b3'])

    args = [x, w1, g1, b1, w2, g2, b2, w3, g3, b3]
    if has_downsample:
        wd = pad_w(params['wd'], Cp, Pp)
        gd, bd = pad_gb(params['gd'], params['bd'])
        args += [wd, gd, bd]

    out_nhwc = pl.pallas_call(
        _make_kernel(N, H, W, Cp, Pp, has_downsample),
        out_shape=jax.ShapeDtypeStruct((N, H, W, Pp), jnp.float32),
        in_specs=[_vmem_spec() for _ in args],
        out_specs=_vmem_spec(),
        scratch_shapes=[
            pltpu.VMEM((N, H + 4, W + 4, Pp), jnp.bfloat16),   # padded y1
            pltpu.VMEM((M, 9 * Pp), jnp.bfloat16),             # im2col slab
        ],
        compiler_params=pltpu.CompilerParams(
            vmem_limit_bytes=32 * 1024 * 1024),
    )(*args)

    out = out_nhwc[..., :P]                     # drop lane padding
    return jnp.transpose(out, (0, 3, 1, 2))     # -> NCHW


def init_params(key, in_planes, planes):
    """Deterministic synthetic init (PyTorch-like fan-in uniform for convs,
    gamma=1 / beta=0 for BN). Conv weights stored as (Cin, Cout) for 1x1 and
    (kh, kw, Cin, Cout) for the 3x3."""
    k1, k2, k3, kd = jax.random.split(key, 4)

    def conv_w(k, shape, fan_in):
        bound = 1.0 / math.sqrt(fan_in)
        return jax.random.uniform(k, shape, jnp.float32, -bound, bound)

    P, C = planes, in_planes
    return {
        'w1': conv_w(k1, (C, P), C),
        'g1': jnp.ones((1, P), jnp.float32), 'b1': jnp.zeros((1, P), jnp.float32),
        'w2': conv_w(k2, (3, 3, P, P), 9 * P),
        'g2': jnp.ones((1, P), jnp.float32), 'b2': jnp.zeros((1, P), jnp.float32),
        'w3': conv_w(k3, (P, P), P),
        'g3': jnp.ones((1, P), jnp.float32), 'b3': jnp.zeros((1, P), jnp.float32),
        'wd': conv_w(kd, (C, P), C),
        'gd': jnp.ones((1, P), jnp.float32), 'bd': jnp.zeros((1, P), jnp.float32),
    }


def detnet_ref(x_nchw, params, *, block_type='A'):
    """Plain-JAX reference (same training-mode BN semantics, f32 HIGHEST)."""
    def bn(y, g, b):
        mean = jnp.mean(y, axis=(0, 1, 2), keepdims=True)
        var = jnp.mean(y * y, axis=(0, 1, 2), keepdims=True) - mean * mean
        return (y - mean) * lax.rsqrt(var + EPS) * g.reshape(1, 1, 1, -1) \
            + b.reshape(1, 1, 1, -1)

    dn = ('NHWC', 'HWIO', 'NHWC')
    x = jnp.transpose(x_nchw, (0, 2, 3, 1)).astype(jnp.float32)
    Cin = x.shape[-1]
    P = params['w1'].shape[1]

    y1 = lax.conv_general_dilated(x, params['w1'].reshape(1, 1, Cin, P),
                                  (1, 1), 'VALID', dimension_numbers=dn,
                                  precision=lax.Precision.HIGHEST)
    y1 = jax.nn.relu(bn(y1, params['g1'], params['b1']))
    y2 = lax.conv_general_dilated(y1, params['w2'], (1, 1),
                                  ((2, 2), (2, 2)), rhs_dilation=(2, 2),
                                  dimension_numbers=dn,
                                  precision=lax.Precision.HIGHEST)
    y2 = jax.nn.relu(bn(y2, params['g2'], params['b2']))
    y3 = lax.conv_general_dilated(y2, params['w3'].reshape(1, 1, P, P),
                                  (1, 1), 'VALID', dimension_numbers=dn,
                                  precision=lax.Precision.HIGHEST)
    y3 = bn(y3, params['g3'], params['b3'])
    if (Cin != P) or (block_type == 'B'):
        yd = lax.conv_general_dilated(x, params['wd'].reshape(1, 1, Cin, P),
                                      (1, 1), 'VALID', dimension_numbers=dn,
                                      precision=lax.Precision.HIGHEST)
        yd = bn(yd, params['gd'], params['bd'])
    else:
        yd = x
    out = jax.nn.relu(y3 + yd)
    return jnp.transpose(out, (0, 3, 1, 2))


if __name__ == "__main__":
    key = jax.random.PRNGKey(0)
    kx1, kp1, kx2, kp2 = jax.random.split(key, 4)

    # Tolerance: kernel uses bf16 MXU operands (f32 accumulate / f32 BN),
    # reference is full f32 HIGHEST.
    RTOL = ATOL = 5e-2

    # Case 1: in_planes != planes -> downsample conv+BN branch active.
    N, Cin, H, W, P = 2, 4, 16, 16, 8
    x1 = jax.random.normal(kx1, (N, Cin, H, W), jnp.float32)
    params1 = init_params(kp1, Cin, P)
    out1 = jax.block_until_ready(detnet_pallas(x1, params1, stride=1,
                                               block_type='A'))
    assert out1.shape == (N, P, H, W)
    ref1 = detnet_ref(x1, params1, block_type='A')
    err1 = float(jnp.max(jnp.abs(out1 - ref1)))
    assert jnp.allclose(out1, ref1, rtol=RTOL, atol=ATOL), f"max abs err {err1}"

    # Case 2: in_planes == planes, block_type 'A' -> identity residual path
    # (wd/gd/bd are not passed into the kernel at all).
    x2 = jax.random.normal(kx2, (N, P, H, W), jnp.float32)
    params2 = init_params(kp2, P, P)
    out2 = jax.block_until_ready(detnet_pallas(x2, params2, stride=1,
                                               block_type='A'))
    assert out2.shape == (N, P, H, W)
    ref2 = detnet_ref(x2, params2, block_type='A')
    err2 = float(jnp.max(jnp.abs(out2 - ref2)))
    assert jnp.allclose(out2, ref2, rtol=RTOL, atol=ATOL), f"max abs err {err2}"

    print("KERNEL_OK")
</pallas_src>

<mosaic_0001>
module attributes {stable_mosaic.version = 11 : i64} {
  func.func @kernel(%arg0: memref<2x16x16x128xbf16, #tpu.memory_space<vmem>>, %arg1: memref<128x128xbf16, #tpu.memory_space<vmem>>, %arg2: memref<1x128xf32, #tpu.memory_space<vmem>>, %arg3: memref<1x128xf32, #tpu.memory_space<vmem>>, %arg4: memref<1152x128xbf16, #tpu.memory_space<vmem>>, %arg5: memref<1x128xf32, #tpu.memory_space<vmem>>, %arg6: memref<1x128xf32, #tpu.memory_space<vmem>>, %arg7: memref<128x128xbf16, #tpu.memory_space<vmem>>, %arg8: memref<1x128xf32, #tpu.memory_space<vmem>>, %arg9: memref<1x128xf32, #tpu.memory_space<vmem>>, %arg10: memref<128x128xbf16, #tpu.memory_space<vmem>>, %arg11: memref<1x128xf32, #tpu.memory_space<vmem>>, %arg12: memref<1x128xf32, #tpu.memory_space<vmem>>, %arg13: memref<2x16x16x128xf32, #tpu.memory_space<vmem>>, %arg14: memref<2x20x20x128xbf16, #tpu.memory_space<vmem>>, %arg15: memref<512x1152xbf16, #tpu.memory_space<vmem>>) attributes {dimension_semantics = [], scalar_prefetch = 0 : i64, scratch_operands = 2 : i64, tpu.core_type = #tpu.core_type<tc>} {
    %c0 = arith.constant 0 : index
    %c0_0 = arith.constant 0 : index
    %c0_1 = arith.constant 0 : index
    %c0_2 = arith.constant 0 : index
    %0 = vector.load %arg0[%c0, %c0_0, %c0_1, %c0_2] : memref<2x16x16x128xbf16, #tpu.memory_space<vmem>>, vector<2x16x16x128xbf16>
    %1 = vector.shape_cast %0 : vector<2x16x16x128xbf16> to vector<512x128xbf16>
    %c0_3 = arith.constant 0 : index
    %c0_4 = arith.constant 0 : index
    %2 = vector.load %arg10[%c0_3, %c0_4] : memref<128x128xbf16, #tpu.memory_space<vmem>>, vector<128x128xbf16>
    %cst = arith.constant dense<0.000000e+00> : vector<512x128xf32>
    %3 = tpu.matmul %1, %2, %cst {dimension_numbers = #tpu.dot_dimension_numbers<[1], [0], [0], [1], [0, 0, 1, 1], [], []>} : vector<512x128xbf16>, vector<128x128xbf16>, vector<512x128xf32> -> vector<512x128xf32>
    %c0_5 = arith.constant 0 : index
    %c0_6 = arith.constant 0 : index
    %4 = vector.load %arg11[%c0_5, %c0_6] : memref<1x128xf32, #tpu.memory_space<vmem>>, vector<1x128xf32>
    %c0_7 = arith.constant 0 : index
    %c0_8 = arith.constant 0 : index
    %5 = vector.load %arg12[%c0_7, %c0_8] : memref<1x128xf32, #tpu.memory_space<vmem>>, vector<1x128xf32>
    %cst_9 = arith.constant dense<0.000000e+00> : vector<128xf32>
    %6 = vector.multi_reduction <add>, %3, %cst_9 [0] : vector<512x128xf32> to vector<128xf32>
    %7 = vector.shape_cast %6 : vector<128xf32> to vector<1x128xf32>
    %8 = arith.mulf %3, %3 : vector<512x128xf32>
    %cst_10 = arith.constant dense<0.000000e+00> : vector<128xf32>
    %9 = vector.multi_reduction <add>, %8, %cst_10 [0] : vector<512x128xf32> to vector<128xf32>
    %10 = vector.shape_cast %9 : vector<128xf32> to vector<1x128xf32>
    %cst_11 = arith.constant 0.001953125 : f32
    %11 = vector.broadcast %cst_11 : f32 to vector<1x128xf32>
    %12 = arith.mulf %7, %11 : vector<1x128xf32>
    %cst_12 = arith.constant 0.001953125 : f32
    %13 = vector.broadcast %cst_12 : f32 to vector<1x128xf32>
    %14 = arith.mulf %10, %13 : vector<1x128xf32>
    %15 = arith.mulf %12, %12 : vector<1x128xf32>
    %16 = arith.subf %14, %15 : vector<1x128xf32>
    %cst_13 = arith.constant 0.000000e+00 : f32
    %17 = vector.broadcast %cst_13 : f32 to vector<1x128xf32>
    %18 = arith.maximumf %16, %17 : vector<1x128xf32>
    %cst_14 = arith.constant 9.99999974E-6 : f32
    %19 = vector.broadcast %cst_14 : f32 to vector<1x128xf32>
    %20 = arith.addf %18, %19 : vector<1x128xf32>
    %21 = math.rsqrt %20 : vector<1x128xf32>
    %22 = arith.mulf %21, %4 : vector<1x128xf32>
    %23 = arith.mulf %12, %22 : vector<1x128xf32>
    %24 = arith.subf %5, %23 : vector<1x128xf32>
    %25 = vector.broadcast %22 : vector<1x128xf32> to vector<512x128xf32>
    %26 = arith.mulf %3, %25 : vector<512x128xf32>
    %27 = vector.broadcast %24 : vector<1x128xf32> to vector<512x128xf32>
    %28 = arith.addf %26, %27 : vector<512x128xf32>
    %29 = vector.shape_cast %28 : vector<512x128xf32> to vector<2x16x16x128xf32>
    %c0_15 = arith.constant 0 : index
    %c0_16 = arith.constant 0 : index
    %c0_17 = arith.constant 0 : index
    %c0_18 = arith.constant 0 : index
    %30 = vector.load %arg13[%c0_15, %c0_16, %c0_17, %c0_18] : memref<2x16x16x128xf32, #tpu.memory_space<vmem>>, vector<2x16x16x128xf32>
    tpu.vector_store %arg13[%c0_15, %c0_16, %c0_17, %c0_18], %29 {strides = array<i32>} : memref<2x16x16x128xf32, #tpu.memory_space<vmem>>, vector<2x16x16x128xf32>,
    %c0_19 = arith.constant 0 : index
    %c0_20 = arith.constant 0 : index
    %31 = vector.load %arg1[%c0_19, %c0_20] : memref<128x128xbf16, #tpu.memory_space<vmem>>, vector<128x128xbf16>
    %cst_21 = arith.constant dense<0.000000e+00> : vector<512x128xf32>
    %32 = tpu.matmul %1, %31, %cst_21 {dimension_numbers = #tpu.dot_dimension_numbers<[1], [0], [0], [1], [0, 0, 1, 1], [], []>} : vector<512x128xbf16>, vector<128x128xbf16>, vector<512x128xf32> -> vector<512x128xf32>
    %c0_22 = arith.constant 0 : index
    %c0_23 = arith.constant 0 : index
    %33 = vector.load %arg2[%c0_22, %c0_23] : memref<1x128xf32, #tpu.memory_space<vmem>>, vector<1x128xf32>
    %c0_24 = arith.constant 0 : index
    %c0_25 = arith.constant 0 : index
    %34 = vector.load %arg3[%c0_24, %c0_25] : memref<1x128xf32, #tpu.memory_space<vmem>>, vector<1x128xf32>
    %cst_26 = arith.constant dense<0.000000e+00> : vector<128xf32>
    %35 = vector.multi_reduction <add>, %32, %cst_26 [0] : vector<512x128xf32> to vector<128xf32>
    %36 = vector.shape_cast %35 : vector<128xf32> to vector<1x128xf32>
    %37 = arith.mulf %32, %32 : vector<512x128xf32>
    %cst_27 = arith.constant dense<0.000000e+00> : vector<128xf32>
    %38 = vector.multi_reduction <add>, %37, %cst_27 [0] : vector<512x128xf32> to vector<128xf32>
    %39 = vector.shape_cast %38 : vector<128xf32> to vector<1x128xf32>
    %cst_28 = arith.constant 0.001953125 : f32
    %40 = vector.broadcast %cst_28 : f32 to vector<1x128xf32>
    %41 = arith.mulf %36, %40 : vector<1x128xf32>
    %cst_29 = arith.constant 0.001953125 : f32
    %42 = vector.broadcast %cst_29 : f32 to vector<1x128xf32>
    %43 = arith.mulf %39, %42 : vector<1x128xf32>
    %44 = arith.mulf %41, %41 : vector<1x128xf32>
    %45 = arith.subf %43, %44 : vector<1x128xf32>
    %cst_30 = arith.constant 0.000000e+00 : f32
    %46 = vector.broadcast %cst_30 : f32 to vector<1x128xf32>
    %47 = arith.maximumf %45, %46 : vector<1x128xf32>
    %cst_31 = arith.constant 9.99999974E-6 : f32
    %48 = vector.broadcast %cst_31 : f32 to vector<1x128xf32>
    %49 = arith.addf %47, %48 : vector<1x128xf32>
    %50 = math.rsqrt %49 : vector<1x128xf32>
    %51 = arith.mulf %50, %33 : vector<1x128xf32>
    %52 = arith.mulf %41, %51 : vector<1x128xf32>
    %53 = arith.subf %34, %52 : vector<1x128xf32>
    %54 = vector.broadcast %51 : vector<1x128xf32> to vector<512x128xf32>
    %55 = arith.mulf %32, %54 : vector<512x128xf32>
    %56 = vector.broadcast %53 : vector<1x128xf32> to vector<512x128xf32>
    %57 = arith.addf %55, %56 : vector<512x128xf32>
    %cst_32 = arith.constant 0.000000e+00 : f32
    %58 = vector.broadcast %cst_32 : f32 to vector<512x128xf32>
    %59 = arith.maximumf %57, %58 : vector<512x128xf32>
    %cst_33 = arith.constant 0.000000e+00 : bf16
    %60 = vector.broadcast %cst_33 : bf16 to vector<2x2x20x128xbf16>
    %c0_34 = arith.constant 0 : index
    %c0_35 = arith.constant 0 : index
    %c0_36 = arith.constant 0 : index
    %c0_37 = arith.constant 0 : index
    %61 = vector.load %arg14[%c0_34, %c0_35, %c0_36, %c0_37] : memref<2x20x20x128xbf16, #tpu.memory_space<vmem>>, vector<2x2x20x128xbf16>
    tpu.vector_store %arg14[%c0_34, %c0_35, %c0_36, %c0_37], %60 {strides = array<i32>} : memref<2x20x20x128xbf16, #tpu.memory_space<vmem>>, vector<2x2x20x128xbf16>,
    %c0_38 = arith.constant 0 : index
    %c18 = arith.constant 18 : index
    %c0_39 = arith.constant 0 : index
    %c0_40 = arith.constant 0 : index
    %62 = vector.load %arg14[%c0_38, %c18, %c0_39, %c0_40] : memref<2x20x20x128xbf16, #tpu.memory_space<vmem>>, vector<2x2x20x128xbf16>
    tpu.vector_store %arg14[%c0_38, %c18, %c0_39, %c0_40], %60 {strides = array<i32>} : memref<2x20x20x128xbf16, #tpu.memory_space<vmem>>, vector<2x2x20x128xbf16>,
    %cst_41 = arith.constant 0.000000e+00 : bf16
    %63 = vector.broadcast %cst_41 : bf16 to vector<2x16x2x128xbf16>
    %c0_42 = arith.constant 0 : index
    %c2 = arith.constant 2 : index
    %c0_43 = arith.constant 0 : index
    %c0_44 = arith.constant 0 : index
    %64 = vector.load %arg14[%c0_42, %c2, %c0_43, %c0_44] : memref<2x20x20x128xbf16, #tpu.memory_space<vmem>>, vector<2x16x2x128xbf16>
    tpu.vector_store %arg14[%c0_42, %c2, %c0_43, %c0_44], %63 {strides = array<i32>} : memref<2x20x20x128xbf16, #tpu.memory_space<vmem>>, vector<2x16x2x128xbf16>,
    %c0_45 = arith.constant 0 : index
    %c2_46 = arith.constant 2 : index
    %c18_47 = arith.constant 18 : index
    %c0_48 = arith.constant 0 : index
    %65 = vector.load %arg14[%c0_45, %c2_46, %c18_47, %c0_48] : memref<2x20x20x128xbf16, #tpu.memory_space<vmem>>, vector<2x16x2x128xbf16>
    tpu.vector_store %arg14[%c0_45, %c2_46, %c18_47, %c0_48], %63 {strides = array<i32>} : memref<2x20x20x128xbf16, #tpu.memory_space<vmem>>, vector<2x16x2x128xbf16>,
    %66 = arith.truncf %59 : vector<512x128xf32> to vector<512x128xbf16>
    %67 = vector.shape_cast %66 : vector<512x128xbf16> to vector<2x16x16x128xbf16>
    %c0_49 = arith.constant 0 : index
    %c2_50 = arith.constant 2 : index
    %c2_51 = arith.constant 2 : index
    %c0_52 = arith.constant 0 : index
    %68 = vector.load %arg14[%c0_49, %c2_50, %c2_51, %c0_52] : memref<2x20x20x128xbf16, #tpu.memory_space<vmem>>, vector<2x16x16x128xbf16>
    tpu.vector_store %arg14[%c0_49, %c2_50, %c2_51, %c0_52], %67 {strides = array<i32>} : memref<2x20x20x128xbf16, #tpu.memory_space<vmem>>, vector<2x16x16x128xbf16>,
    %c0_53 = arith.constant 0 : index
    %c0_54 = arith.constant 0 : index
    %c0_55 = arith.constant 0 : index
    %c0_56 = arith.constant 0 : index
    %69 = vector.load %arg14[%c0_53, %c0_54, %c0_55, %c0_56] : memref<2x20x20x128xbf16, #tpu.memory_space<vmem>>, vector<2x16x16x128xbf16>
    %70 = vector.shape_cast %69 : vector<2x16x16x128xbf16> to vector<512x128xbf16>
    %c0_57 = arith.constant 0 : index
    %c0_58 = arith.constant 0 : index
    %71 = vector.load %arg15[%c0_57, %c0_58] : memref<512x1152xbf16, #tpu.memory_space<vmem>>, vector<512x128xbf16>
    tpu.vector_store %arg15[%c0_57, %c0_58], %70 {strides = array<i32>} : memref<512x1152xbf16, #tpu.memory_space<vmem>>, vector<512x128xbf16>,
    %c0_59 = arith.constant 0 : index
    %c0_60 = arith.constant 0 : index
    %c2_61 = arith.constant 2 : index
    %c0_62 = arith.constant 0 : index
    %72 = vector.load %arg14[%c0_59, %c0_60, %c2_61, %c0_62] : memref<2x20x20x128xbf16, #tpu.memory_space<vmem>>, vector<2x16x16x128xbf16>
    %73 = vector.shape_cast %72 : vector<2x16x16x128xbf16> to vector<512x128xbf16>
    %c0_63 = arith.constant 0 : index
    %c128 = arith.constant 128 : index
    %74 = vector.load %arg15[%c0_63, %c128] : memref<512x1152xbf16, #tpu.memory_space<vmem>>, vector<512x128xbf16>
    tpu.vector_store %arg15[%c0_63, %c128], %73 {strides = array<i32>} : memref<512x1152xbf16, #tpu.memory_space<vmem>>, vector<512x128xbf16>,
    %c0_64 = arith.constant 0 : index
    %c0_65 = arith.constant 0 : index
    %c4 = arith.constant 4 : index
    %c0_66 = arith.constant 0 : index
    %75 = vector.load %arg14[%c0_64, %c0_65, %c4, %c0_66] : memref<2x20x20x128xbf16, #tpu.memory_space<vmem>>, vector<2x16x16x128xbf16>
    %76 = vector.shape_cast %75 : vector<2x16x16x128xbf16> to vector<512x128xbf16>
    %c0_67 = arith.constant 0 : index
    %c256 = arith.constant 256 : index
    %77 = vector.load %arg15[%c0_67, %c256] : memref<512x1152xbf16, #tpu.memory_space<vmem>>, vector<512x128xbf16>
    tpu.vector_store %arg15[%c0_67, %c256], %76 {strides = array<i32>} : memref<512x1152xbf16, #tpu.memory_space<vmem>>, vector<512x128xbf16>,
    %c0_68 = arith.constant 0 : index
    %c2_69 = arith.constant 2 : index
    %c0_70 = arith.constant 0 : index
    %c0_71 = arith.constant 0 : index
    %78 = vector.load %arg14[%c0_68, %c2_69, %c0_70, %c0_71] : memref<2x20x20x128xbf16, #tpu.memory_space<vmem>>, vector<2x16x16x128xbf16>
    %79 = vector.shape_cast %78 : vector<2x16x16x128xbf16> to vector<512x128xbf16>
    %c0_72 = arith.constant 0 : index
    %c384 = arith.constant 384 : index
    %80 = vector.load %arg15[%c0_72, %c384] : memref<512x1152xbf16, #tpu.memory_space<vmem>>, vector<512x128xbf16>
    tpu.vector_store %arg15[%c0_72, %c384], %79 {strides = array<i32>} : memref<512x1152xbf16, #tpu.memory_space<vmem>>, vector<512x128xbf16>,
    %c0_73 = arith.constant 0 : index
    %c2_74 = arith.constant 2 : index
    %c2_75 = arith.constant 2 : index
    %c0_76 = arith.constant 0 : index
    %81 = vector.load %arg14[%c0_73, %c2_74, %c2_75, %c0_76] : memref<2x20x20x128xbf16, #tpu.memory_space<vmem>>, vector<2x16x16x128xbf16>
    %82 = vector.shape_cast %81 : vector<2x16x16x128xbf16> to vector<512x128xbf16>
    %c0_77 = arith.constant 0 : index
    %c512 = arith.constant 512 : index
    %83 = vector.load %arg15[%c0_77, %c512] : memref<512x1152xbf16, #tpu.memory_space<vmem>>, vector<512x128xbf16>
    tpu.vector_store %arg15[%c0_77, %c512], %82 {strides = array<i32>} : memref<512x1152xbf16, #tpu.memory_space<vmem>>, vector<512x128xbf16>,
    %c0_78 = arith.constant 0 : index
    %c2_79 = arith.constant 2 : index
    %c4_80 = arith.constant 4 : index
    %c0_81 = arith.constant 0 : index
    %84 = vector.load %arg14[%c0_78, %c2_79, %c4_80, %c0_81] : memref<2x20x20x128xbf16, #tpu.memory_space<vmem>>, vector<2x16x16x128xbf16>
    %85 = vector.shape_cast %84 : vector<2x16x16x128xbf16> to vector<512x128xbf16>
    %c0_82 = arith.constant 0 : index
    %c640 = arith.constant 640 : index
    %86 = vector.load %arg15[%c0_82, %c640] : memref<512x1152xbf16, #tpu.memory_space<vmem>>, vector<512x128xbf16>
    tpu.vector_store %arg15[%c0_82, %c640], %85 {strides = array<i32>} : memref<512x1152xbf16, #tpu.memory_space<vmem>>, vector<512x128xbf16>,
    %c0_83 = arith.constant 0 : index
    %c4_84 = arith.constant 4 : index
    %c0_85 = arith.constant 0 : index
    %c0_86 = arith.constant 0 : index
    %87 = vector.load %arg14[%c0_83, %c4_84, %c0_85, %c0_86] : memref<2x20x20x128xbf16, #tpu.memory_space<vmem>>, vector<2x16x16x128xbf16>
    %88 = vector.shape_cast %87 : vector<2x16x16x128xbf16> to vector<512x128xbf16>
    %c0_87 = arith.constant 0 : index
    %c768 = arith.constant 768 : index
    %89 = vector.load %arg15[%c0_87, %c768] : memref<512x1152xbf16, #tpu.memory_space<vmem>>, vector<512x128xbf16>
    tpu.vector_store %arg15[%c0_87, %c768], %88 {strides = array<i32>} : memref<512x1152xbf16, #tpu.memory_space<vmem>>, vector<512x128xbf16>,
    %c0_88 = arith.constant 0 : index
    %c4_89 = arith.constant 4 : index
    %c2_90 = arith.constant 2 : index
    %c0_91 = arith.constant 0 : index
    %90 = vector.load %arg14[%c0_88, %c4_89, %c2_90, %c0_91] : memref<2x20x20x128xbf16, #tpu.memory_space<vmem>>, vector<2x16x16x128xbf16>
    %91 = vector.shape_cast %90 : vector<2x16x16x128xbf16> to vector<512x128xbf16>
    %c0_92 = arith.constant 0 : index
    %c896 = arith.constant 896 : index
    %92 = vector.load %arg15[%c0_92, %c896] : memref<512x1152xbf16, #tpu.memory_space<vmem>>, vector<512x128xbf16>
    tpu.vector_store %arg15[%c0_92, %c896], %91 {strides = array<i32>} : memref<512x1152xbf16, #tpu.memory_space<vmem>>, vector<512x128xbf16>,
    %c0_93 = arith.constant 0 : index
    %c4_94 = arith.constant 4 : index
    %c4_95 = arith.constant 4 : index
    %c0_96 = arith.constant 0 : index
    %93 = vector.load %arg14[%c0_93, %c4_94, %c4_95, %c0_96] : memref<2x20x20x128xbf16, #tpu.memory_space<vmem>>, vector<2x16x16x128xbf16>
    %94 = vector.shape_cast %93 : vector<2x16x16x128xbf16> to vector<512x128xbf16>
    %c0_97 = arith.constant 0 : index
    %c1024 = arith.constant 1024 : index
    %95 = vector.load %arg15[%c0_97, %c1024] : memref<512x1152xbf16, #tpu.memory_space<vmem>>, vector<512x128xbf16>
    tpu.vector_store %arg15[%c0_97, %c1024], %94 {strides = array<i32>} : memref<512x1152xbf16, #tpu.memory_space<vmem>>, vector<512x128xbf16>,
    %c0_98 = arith.constant 0 : index
    %c0_99 = arith.constant 0 : index
    %96 = vector.load %arg15[%c0_98, %c0_99] : memref<512x1152xbf16, #tpu.memory_space<vmem>>, vector<512x1152xbf16>
    %c0_100 = arith.constant 0 : index
    %c0_101 = arith.constant 0 : index
    %97 = vector.load %arg4[%c0_100, %c0_101] : memref<1152x128xbf16, #tpu.memory_space<vmem>>, vector<1152x128xbf16>
    %cst_102 = arith.constant dense<0.000000e+00> : vector<512x128xf32>
    %98 = tpu.matmul %96, %97, %cst_102 {dimension_numbers = #tpu.dot_dimension_numbers<[1], [0], [0], [1], [0, 0, 1, 1], [], []>} : vector<512x1152xbf16>, vector<1152x128xbf16>, vector<512x128xf32> -> vector<512x128xf32>
    %c0_103 = arith.constant 0 : index
    %c0_104 = arith.constant 0 : index
    %99 = vector.load %arg5[%c0_103, %c0_104] : memref<1x128xf32, #tpu.memory_space<vmem>>, vector<1x128xf32>
    %c0_105 = arith.constant 0 : index
    %c0_106 = arith.constant 0 : index
    %100 = vector.load %arg6[%c0_105, %c0_106] : memref<1x128xf32, #tpu.memory_space<vmem>>, vector<1x128xf32>
    %cst_107 = arith.constant dense<0.000000e+00> : vector<128xf32>
    %101 = vector.multi_reduction <add>, %98, %cst_107 [0] : vector<512x128xf32> to vector<128xf32>
    %102 = vector.shape_cast %101 : vector<128xf32> to vector<1x128xf32>
    %103 = arith.mulf %98, %98 : vector<512x128xf32>
    %cst_108 = arith.constant dense<0.000000e+00> : vector<128xf32>
    %104 = vector.multi_reduction <add>, %103, %cst_108 [0] : vector<512x128xf32> to vector<128xf32>
    %105 = vector.shape_cast %104 : vector<128xf32> to vector<1x128xf32>
    %cst_109 = arith.constant 0.001953125 : f32
    %106 = vector.broadcast %cst_109 : f32 to vector<1x128xf32>
    %107 = arith.mulf %102, %106 : vector<1x128xf32>
    %cst_110 = arith.constant 0.001953125 : f32
    %108 = vector.broadcast %cst_110 : f32 to vector<1x128xf32>
    %109 = arith.mulf %105, %108 : vector<1x128xf32>
    %110 = arith.mulf %107, %107 : vector<1x128xf32>
    %111 = arith.subf %109, %110 : vector<1x128xf32>
    %cst_111 = arith.constant 0.000000e+00 : f32
    %112 = vector.broadcast %cst_111 : f32 to vector<1x128xf32>
    %113 = arith.maximumf %111, %112 : vector<1x128xf32>
    %cst_112 = arith.constant 9.99999974E-6 : f32
    %114 = vector.broadcast %cst_112 : f32 to vector<1x128xf32>
    %115 = arith.addf %113, %114 : vector<1x128xf32>
    %116 = math.rsqrt %115 : vector<1x128xf32>
    %117 = arith.mulf %116, %99 : vector<1x128xf32>
    %118 = arith.mulf %107, %117 : vector<1x128xf32>
    %119 = arith.subf %100, %118 : vector<1x128xf32>
    %120 = vector.broadcast %117 : vector<1x128xf32> to vector<512x128xf32>
    %121 = arith.mulf %98, %120 : vector<512x128xf32>
    %122 = vector.broadcast %119 : vector<1x128xf32> to vector<512x128xf32>
    %123 = arith.addf %121, %122 : vector<512x128xf32>
    %cst_113 = arith.constant 0.000000e+00 : f32
    %124 = vector.broadcast %cst_113 : f32 to vector<512x128xf32>
    %125 = arith.maximumf %123, %124 : vector<512x128xf32>
    %126 = arith.truncf %125 : vector<512x128xf32> to vector<512x128xbf16>
    %c0_114 = arith.constant 0 : index
    %c0_115 = arith.constant 0 : index
    %127 = vector.load %arg7[%c0_114, %c0_115] : memref<128x128xbf16, #tpu.memory_space<vmem>>, vector<128x128xbf16>
    %cst_116 = arith.constant dense<0.000000e+00> : vector<512x128xf32>
    %128 = tpu.matmul %126, %127, %cst_116 {dimension_numbers = #tpu.dot_dimension_numbers<[1], [0], [0], [1], [0, 0, 1, 1], [], []>} : vector<512x128xbf16>, vector<128x128xbf16>, vector<512x128xf32> -> vector<512x128xf32>
    %c0_117 = arith.constant 0 : index
    %c0_118 = arith.constant 0 : index
    %129 = vector.load %arg8[%c0_117, %c0_118] : memref<1x128xf32, #tpu.memory_space<vmem>>, vector<1x128xf32>
    %c0_119 = arith.constant 0 : index
    %c0_120 = arith.constant 0 : index
    %130 = vector.load %arg9[%c0_119, %c0_120] : memref<1x128xf32, #tpu.memory_space<vmem>>, vector<1x128xf32>
    %cst_121 = arith.constant dense<0.000000e+00> : vector<128xf32>
    %131 = vector.multi_reduction <add>, %128, %cst_121 [0] : vector<512x128xf32> to vector<128xf32>
    %132 = vector.shape_cast %131 : vector<128xf32> to vector<1x128xf32>
    %133 = arith.mulf %128, %128 : vector<512x128xf32>
    %cst_122 = arith.constant dense<0.000000e+00> : vector<128xf32>
    %134 = vector.multi_reduction <add>, %133, %cst_122 [0] : vector<512x128xf32> to vector<128xf32>
    %135 = vector.shape_cast %134 : vector<128xf32> to vector<1x128xf32>
    %cst_123 = arith.constant 0.001953125 : f32
    %136 = vector.broadcast %cst_123 : f32 to vector<1x128xf32>
    %137 = arith.mulf %132, %136 : vector<1x128xf32>
    %cst_124 = arith.constant 0.001953125 : f32
    %138 = vector.broadcast %cst_124 : f32 to vector<1x128xf32>
    %139 = arith.mulf %135, %138 : vector<1x128xf32>
    %140 = arith.mulf %137, %137 : vector<1x128xf32>
    %141 = arith.subf %139, %140 : vector<1x128xf32>
    %cst_125 = arith.constant 0.000000e+00 : f32
    %142 = vector.broadcast %cst_125 : f32 to vector<1x128xf32>
    %143 = arith.maximumf %141, %142 : vector<1x128xf32>
    %cst_126 = arith.constant 9.99999974E-6 : f32
    %144 = vector.broadcast %cst_126 : f32 to vector<1x128xf32>
    %145 = arith.addf %143, %144 : vector<1x128xf32>
    %146 = math.rsqrt %145 : vector<1x128xf32>
    %147 = arith.mulf %146, %129 : vector<1x128xf32>
    %148 = arith.mulf %137, %147 : vector<1x128xf32>
    %149 = arith.subf %130, %148 : vector<1x128xf32>
    %150 = vector.broadcast %147 : vector<1x128xf32> to vector<512x128xf32>
    %151 = arith.mulf %128, %150 : vector<512x128xf32>
    %152 = vector.broadcast %149 : vector<1x128xf32> to vector<512x128xf32>
    %153 = arith.addf %151, %152 : vector<512x128xf32>
    %c0_127 = arith.constant 0 : index
    %c0_128 = arith.constant 0 : index
    %c0_129 = arith.constant 0 : index
    %c0_130 = arith.constant 0 : index
    %154 = vector.load %arg13[%c0_127, %c0_128, %c0_129, %c0_130] : memref<2x16x16x128xf32, #tpu.memory_space<vmem>>, vector<2x16x16x128xf32>
    %155 = vector.shape_cast %154 : vector<2x16x16x128xf32> to vector<512x128xf32>
    %156 = arith.addf %153, %155 : vector<512x128xf32>
    %cst_131 = arith.constant 0.000000e+00 : f32
    %157 = vector.broadcast %cst_131 : f32 to vector<512x128xf32>
    %158 = arith.maximumf %156, %157 : vector<512x128xf32>
    %159 = vector.shape_cast %158 : vector<512x128xf32> to vector<2x16x16x128xf32>
    %c0_132 = arith.constant 0 : index
    %c0_133 = arith.constant 0 : index
    %c0_134 = arith.constant 0 : index
    %c0_135 = arith.constant 0 : index
    %160 = vector.load %arg13[%c0_132, %c0_133, %c0_134, %c0_135] : memref<2x16x16x128xf32, #tpu.memory_space<vmem>>, vector<2x16x16x128xf32>
    tpu.vector_store %arg13[%c0_132, %c0_133, %c0_134, %c0_135], %159 {strides = array<i32>} : memref<2x16x16x128xf32, #tpu.memory_space<vmem>>, vector<2x16x16x128xf32>,
    return
  }
}

</mosaic_0001>

<bundles_post_ra>
// kernel: tpu_custom_call.1
= control target key start
LH: loop header
LB: loop body
LE: loop exit
PB: predicated region body
PF: predicated region fallthrough
CT: control target
= control target key end

     0   :  { %18 = vsyncpa [#allocation5], 0  ;;  %s18230_s0 = inlined_call_operand.hbm [shape: bf16[2,16,16,128], index: 0, kind: input, shape index: {}]   ;;  %s18231_s1 = inlined_call_operand.hbm [shape: bf16[128,128], index: 1, kind: input, shape index: {}]   ;;  %s18232_s2 = inlined_call_operand.vmem [shape: f32[1,128], index: 2, kind: input, shape index: {}]   ;;  %s18233_s3 = inlined_call_operand.vmem [shape: f32[1,128], index: 3, kind: input, shape index: {}]   ;;  %s18234_s4 = inlined_call_operand.hbm [shape: bf16[1152,128], index: 4, kind: input, shape index: {}]   ;;  %s18235_s5 = inlined_call_operand.vmem [shape: f32[1,128], index: 5, kind: input, shape index: {}]   ;;  %s18236_s6 = inlined_call_operand.vmem [shape: f32[1,128], index: 6, kind: input, shape index: {}]   ;;  %s18237_s7 = inlined_call_operand.hbm [shape: bf16[128,128], index: 7, kind: input, shape index: {}]   ;;  %s18238_s8 = inlined_call_operand.vmem [shape: f32[1,128], index: 8, kind: input, shape index: {}]   ;;  %s18239_s9 = inlined_call_operand.vmem [shape: f32[1,128], index: 9, kind: input, shape index: {}]   ;;  %s18240_s10 = inlined_call_operand.hbm [shape: bf16[128,128], index: 10, kind: input, shape index: {}]   ;;  %s18241_s11 = inlined_call_operand.vmem [shape: f32[1,128], index: 11, kind: input, shape index: {}]   ;;  %s18242_s12 = inlined_call_operand.vmem [shape: f32[1,128], index: 12, kind: input, shape index: {}]   ;;  %s18243_s13 = inlined_call_operand.hbm [shape: f32[2,16,16,128], index: 13, kind: output, shape index: {}]  }
   0x1   :  { %19 = vsyncpa [#allocation8], 0 }
   0x2   :  { %20 = vsyncpa [#allocation11], 0 }
   0x3   :  { %21 = vsyncpa [#allocation6], 0  ;;  %s12568_s25 = smov [#allocation7]   ;;  %s12569_s27 = smov [#allocation10]  }
   0x4   :  { %s39_s26 = sshll.u32 %s12568_s25, 4  ;;  %s71_s28 = sshll.u32 %s12569_s27, 4  ;;  %s40_s26 = int_to_ptr.vmem [resolvable:$true] %s39_s26  ;;  %s12649_s28 = int_to_ptr.vmem [resolvable:$true] %s71_s28 }
   0x5   :  { %s12428_s14 = scalar_lea.hbm %s18231_s1, 1024 }
   0x6   :  { %p12429_p0 = scmp.ne.s32.totalorder %s18231_s1, %s12428_s14  ;;  %p12432_p1 = scmp.lt.u32.totalorder %s12428_s14, %s18231_s1 }
   0x8   :  { %p12434_p2 = pnand %p12432_p1, %p12429_p0 }
   0xa   :  { %12437 = shalt.err (!%p12434_p2)
}
   0xb   :  { %s12438_s19 = scalar_lea.vmem %s40_s26, 1024  ;;  %p12443_p4 = scmp.lt.s32.totalorder %s40_s26, %s40_s26 }
   0xc   :  { %p12439_p3 = scmp.ne.s32.totalorder %s40_s26, %s12438_s19  ;;  %p12444_p5 = scmp.lt.s32.totalorder %s12438_s19, %s12438_s19 }
   0xe   :  { %p12445_p6 = por %p12444_p5, %p12443_p4 }
  0x10   :  { %p12446_p7 = pnand %p12445_p6, %p12439_p3 }
  0x12   :  { %12449 = shalt.err (!%p12446_p7)
}
  0x13   :  { %s12570_s20 = smov 64   ;;  %s12571_s21 = smov 4  }
  0x14   :  { %45 = dma.hbm_to_vmem [thread:$0]  %s18231_s1, 1024, %s40_s26, [#allocation8], %s12570_s20, %s12570_s20, %s12571_s21  }
  0x15   :  { %s12450_s27 = scalar_lea.hbm %s18237_s7, 1024 }
  0x16   :  { %p12451_p8 = scmp.ne.s32.totalorder %s18237_s7, %s12450_s27  ;;  %p12454_p9 = scmp.lt.u32.totalorder %s12450_s27, %s18237_s7 }
  0x18   :  { %p12456_p10 = pnand %p12454_p9, %p12451_p8 }
  0x1a   :  { %12459 = shalt.err (!%p12456_p10)
}
  0x1b   :  { %s12460_s16 = scalar_lea.vmem %s12649_s28, 1024  ;;  %p12465_p12 = scmp.lt.s32.totalorder %s12649_s28, %s12649_s28 }
  0x1c   :  { %p12461_p11 = scmp.ne.s32.totalorder %s12649_s28, %s12460_s16  ;;  %p12466_p13 = scmp.lt.s32.totalorder %s12460_s16, %s12460_s16 }
  0x1e   :  { %p12467_p0 = por %p12466_p13, %p12465_p12 }
  0x20   :  { %p12468_p1 = pnand %p12467_p0, %p12461_p11 }
  0x22   :  { %12471 = shalt.err (!%p12468_p1)
}
  0x23   :  { %77 = dma.hbm_to_vmem [thread:$0]  %s18237_s7, 1024, %s12649_s28, [#allocation11], %s12570_s20, %s12570_s20, %s12571_s21  }
  0x24   :  { %s12572_s17 = smov [#allocation4]   ;;  %s12573_s19 = smov [#allocation9]  }
  0x25   :  { %s27_s18 = sshll.u32 %s12572_s17, 4  ;;  %s55_s22 = sshll.u32 %s12573_s19, 4  ;;  %s28_s18 = int_to_ptr.vmem [resolvable:$true] %s27_s18  ;;  %s12686_s22 = int_to_ptr.vmem [resolvable:$true] %s55_s22 }
  0x26   :  { %s12472_s25 = scalar_lea.hbm %s18230_s0, 4096 }
  0x27   :  { %p12473_p2 = scmp.ne.s32.totalorder %s18230_s0, %s12472_s25  ;;  %p12476_p3 = scmp.lt.u32.totalorder %s12472_s25, %s18230_s0 }
  0x29   :  { %p12478_p4 = pnand %p12476_p3, %p12473_p2 }
  0x2b   :  { %12481 = shalt.err (!%p12478_p4)
}
  0x2c   :  { %s12482_s7 = scalar_lea.vmem %s28_s18, 4096  ;;  %p12487_p6 = scmp.lt.s32.totalorder %s28_s18, %s28_s18 }
  0x2d   :  { %p12483_p5 = scmp.ne.s32.totalorder %s28_s18, %s12482_s7  ;;  %p12488_p7 = scmp.lt.s32.totalorder %s12482_s7, %s12482_s7 }
  0x2f   :  { %p12489_p8 = por %p12488_p7, %p12487_p6 }
  0x31   :  { %p12490_p9 = pnand %p12489_p8, %p12483_p5 }
  0x33   :  { %12493 = shalt.err (!%p12490_p9)
}
  0x34   :  { %33 = dma.hbm_to_vmem [thread:$0]  %s18230_s0, 4096, %s28_s18, [#allocation5], %s12570_s20, %s12570_s20, %s12571_s21  }
  0x35   :  { %s12494_s26 = scalar_lea.hbm %s18234_s4, 9216 }
  0x36   :  { %p12495_p10 = scmp.ne.s32.totalorder %s18234_s4, %s12494_s26  ;;  %p12498_p11 = scmp.lt.u32.totalorder %s12494_s26, %s18234_s4 }
  0x38   :  { %p12500_p12 = pnand %p12498_p11, %p12495_p10 }
  0x3a   :  { %12503 = shalt.err (!%p12500_p12)
}
  0x3b   :  { %s12504_s25 = scalar_lea.vmem %s12686_s22, 9216  ;;  %p12509_p0 = scmp.lt.s32.totalorder %s12686_s22, %s12686_s22 }
  0x3c   :  { %p12505_p13 = scmp.ne.s32.totalorder %s12686_s22, %s12504_s25  ;;  %p12510_p1 = scmp.lt.s32.totalorder %s12504_s25, %s12504_s25 }
  0x3e   :  { %p12511_p2 = por %p12510_p1, %p12509_p0 }
  0x40   :  { %p12512_p3 = pnand %p12511_p2, %p12505_p13 }
  0x42   :  { %12515 = shalt.err (!%p12512_p3)
}
  0x43   :  { %61 = dma.hbm_to_vmem [thread:$0]  %s18234_s4, 9216, %s12686_s22, [#allocation8], %s12570_s20, %s12570_s20, %s12571_s21  }
  0x44   :  { %s12574_s27 = smov [#allocation12]   ;;  %s12516_s7 = scalar_lea.hbm %s18240_s10, 1024 }
  0x45   :  { %s87_s29 = sshll.u32 %s12574_s27, 4  ;;  %p12517_p4 = scmp.ne.s32.totalorder %s18240_s10, %s12516_s7  ;;  %s88_s29 = int_to_ptr.vmem [resolvable:$true] %s87_s29 }
  0x46   :  { %p12520_p5 = scmp.lt.u32.totalorder %s12516_s7, %s18240_s10 }
  0x48   :  { %p12522_p6 = pnand %p12520_p5, %p12517_p4 }
  0x4a   :  { %12525 = shalt.err (!%p12522_p6)
}
  0x4b   :  { %s12526_s26 = scalar_lea.vmem %s88_s29, 1024  ;;  %p12531_p8 = scmp.lt.s32.totalorder %s88_s29, %s88_s29 }
  0x4c   :  { %p12527_p7 = scmp.ne.s32.totalorder %s88_s29, %s12526_s26  ;;  %p12532_p9 = scmp.lt.s32.totalorder %s12526_s26, %s12526_s26 }
  0x4e   :  { %p12533_p10 = por %p12532_p9, %p12531_p8 }
  0x50   :  { %p12534_p11 = pnand %p12533_p10, %p12527_p7 }
  0x52   :  { %12537 = shalt.err (!%p12534_p11)
}
  0x53   :  { %93 = dma.hbm_to_vmem [thread:$0]  %s18240_s10, 1024, %s88_s29, [#allocation11], %s12570_s20, %s12570_s20, %s12571_s21  }
  0x54   :  { %12560 = dma.done.wait [#allocation5], 4096  }
  0x55   :  { %12561 = vsyncadd [#allocation5], 4294963200 }
  0x56   :  { %12562 = dma.done.wait [#allocation8], 10240  }
  0x57   :  { %12563 = vsyncadd [#allocation8], 4294957056 }
  0x58   :  { %12564 = dma.done.wait [#allocation11], 2048  }
  0x59   :  { %12565 = vsyncadd [#allocation11], 4294965248  ;;  %v12188_v0 = vld [vmem:[#allocation7] sm:$0xff]   ;;  %v12189_v1 = vld [vmem:[#allocation7 + $0x8] sm:$0xff]   ;;  %v18244_v48 = vmov 0   ;;  %vm3025_vm0 = vcmask 1042432  }
  0x5a   :  { %11585 = vmatprep.subr.bf16.mxu1 %v12188_v0  ;;  %v12190_v2 = vld [vmem:[#allocation7 + $0x10] sm:$0xff]   ;;  %v12191_v3 = vld [vmem:[#allocation7 + $0x18] sm:$0xff]   ;;  %v12196_v4 = vld [vmem:[#allocation4] sm:$0xff]   ;;  %1908 = vst [vmem:[#allocation2] sm:$0xf] %v18244_v48  ;;  %vm3026_vm1 = vcmask 1046532  }
  0x5b   :  { %11586 = vmatpush3.bf16.msra.mxu1 %v12188_v0  ;;  %11601 = vmatprep.mubr.bf16.mxu1 %v12196_v4  ;;  %v12192_v5 = vld [vmem:[#allocation7 + $0x20] sm:$0xff]   ;;  %v12193_v6 = vld [vmem:[#allocation7 + $0x28] sm:$0xff]   ;;  %v12194_v7 = vld [vmem:[#allocation7 + $0x30] sm:$0xff]   ;;  %1909 = vst [vmem:[#allocation2 + $0x4] sm:$0xf] %v18244_v48  ;;  %vm3604_vm3 = vcmask 1041408  }
  0x5c   :  { %11587 = vmatprep.subr.bf16.mxu1 %v12189_v1  ;;  %11521 = vmatprep.mubr.bf16.mxu0 %v12196_v4  ;;  %v12195_v8 = vld [vmem:[#allocation7 + $0x38] sm:$0xff]   ;;  %v12216_v9 = vld [vmem:[#allocation12] sm:$0xff]   ;;  %v12197_v10 = vld [vmem:[#allocation4 + $0x8] sm:$0xff]   ;;  %1910 = vst [vmem:[#allocation2 + $0x8] sm:$0x3] %v18244_v48  ;;  %vm3605_vm4 = vcmask 1045508  }
  0x5d   :  { %11505 = vmatprep.subr.bf16.mxu0 %v12216_v9  ;;  %v12218_v11 = vld [vmem:[#allocation12 + $0x8] sm:$0xff]   ;;  %v12198_v12 = vld [vmem:[#allocation4 + $0x10] sm:$0xff]   ;;  %v12222_v14 = vld [vmem:[#allocation12 + $0x18] sm:$0xff]   ;;  %1911 = vst [vmem:[#allocation2 + $0xc] sm:$0xf] %v18244_v48  ;;  %vm2190_vm6 = vcmask 1040384  }
  0x5e   :  { %11506 = vmatpush3.bf16.msra.mxu0 %v12216_v9  ;;  %v12220_v13 = vld [vmem:[#allocation12 + $0x10] sm:$0xff]   ;;  %v12199_v15 = vld [vmem:[#allocation4 + $0x18] sm:$0xff]   ;;  %v12200_v16 = vld [vmem:[#allocation4 + $0x20] sm:$0xff]   ;;  %1912 = vst [vmem:[#allocation2 + $0x10] sm:$0xf] %v18244_v48  ;;  %vm2191_vm7 = vcmask 1044484  }
  0x5f   :  { %11588 = vmatpush3.bf16.msra.mxu1 %v12189_v1  ;;  %11507 = vmatprep.subr.bf16.mxu0 %v12218_v11  ;;  %v12224_v17 = vld [vmem:[#allocation12 + $0x20] sm:$0xff]   ;;  %v12226_v18 = vld [vmem:[#allocation12 + $0x28] sm:$0xff]   ;;  %v12202_v20 = vld [vmem:[#allocation4 + $0x30] sm:$0xff]   ;;  %1913 = vst [vmem:[#allocation2 + $0x14] sm:$0x3] %v18244_v48 }
  0x60   :  { %11589 = vmatprep.subr.bf16.mxu1 %v12190_v2  ;;  %v12201_v19 = vld [vmem:[#allocation4 + $0x28] sm:$0xff]   ;;  %v12228_v21 = vld [vmem:[#allocation12 + $0x30] sm:$0xff]   ;;  %v12230_v22 = vld [vmem:[#allocation12 + $0x38] sm:$0xff]   ;;  %1914 = vst [vmem:[#allocation2 + $0xf0] sm:$0xf] %v18244_v48 }
  0x61   :  { %v12203_v23 = vld [vmem:[#allocation4 + $0x38] sm:$0xff]   ;;  %v12204_v24 = vld [vmem:[#allocation4 + $0x40] sm:$0xff]   ;;  %v12205_v25 = vld [vmem:[#allocation4 + $0x48] sm:$0xff]   ;;  %1915 = vst [vmem:[#allocation2 + $0xf4] sm:$0xf] %v18244_v48 }
  0x62   :  { %11508 = vmatpush3.bf16.msra.mxu0 %v12218_v11  ;;  %v12206_v26 = vld [vmem:[#allocation4 + $0x50] sm:$0xff]   ;;  %v12207_v27 = vld [vmem:[#allocation4 + $0x58] sm:$0xff]   ;;  %v12208_v28 = vld [vmem:[#allocation4 + $0x60] sm:$0xff]   ;;  %1916 = vst [vmem:[#allocation2 + $0xf8] sm:$0x3] %v18244_v48 }
  0x63   :  { %11590 = vmatpush3.bf16.msra.mxu1 %v12190_v2  ;;  %11509 = vmatprep.subr.bf16.mxu0 %v12220_v13  ;;  %v12209_v29 = vld [vmem:[#allocation4 + $0x68] sm:$0xff]   ;;  %v12210_v30 = vld [vmem:[#allocation4 + $0x70] sm:$0xff]   ;;  %v12211_v31 = vld [vmem:[#allocation4 + $0x78] sm:$0xff]   ;;  %1917 = vst [vmem:[#allocation2 + $0xfc] sm:$0xf] %v18244_v48 }
  0x64   :  { %11591 = vmatprep.subr.bf16.mxu1 %v12191_v3  ;;  %v12212_v32 = vld [vmem:[#allocation4 + $0x80] sm:$0xff]   ;;  %v12213_v33 = vld [vmem:[#allocation4 + $0x88] sm:$0xff]   ;;  %v12214_v34 = vld [vmem:[#allocation4 + $0x90] sm:$0xff]   ;;  %1918 = vst [vmem:[#allocation2 + $0x100] sm:$0xf] %v18244_v48 }
  0x65   :  { %v12215_v35 = vld [vmem:[#allocation4 + $0x98] sm:$0xff]   ;;  %v12217_v36 = vld [vmem:[#allocation4 + $0xa0] sm:$0xff]   ;;  %v12219_v37 = vld [vmem:[#allocation4 + $0xa8] sm:$0xff]   ;;  %1919 = vst [vmem:[#allocation2 + $0x104] sm:$0x3] %v18244_v48 }
  0x66   :  { %11510 = vmatpush3.bf16.msra.mxu0 %v12220_v13  ;;  %v12221_v38 = vld [vmem:[#allocation4 + $0xb0] sm:$0xff]   ;;  %v12223_v39 = vld [vmem:[#allocation4 + $0xb8] sm:$0xff]   ;;  %v12225_v40 = vld [vmem:[#allocation4 + $0xc0] sm:$0xff]   ;;  %1921 = vst [vmem:[#allocation2 + $0xd8] sm:$0xf] %v18244_v48 }
  0x67   :  { %11592 = vmatpush3.bf16.msra.mxu1 %v12191_v3  ;;  %11511 = vmatprep.subr.bf16.mxu0 %v12222_v14  ;;  %v12227_v41 = vld [vmem:[#allocation4 + $0xc8] sm:$0xff]   ;;  %v12229_v42 = vld [vmem:[#allocation4 + $0xd0] sm:$0xff]   ;;  %v12231_v43 = vld [vmem:[#allocation4 + $0xd8] sm:$0xff]   ;;  %1922 = vst [vmem:[#allocation2 + $0xdc] sm:$0xf] %v18244_v48 }
  0x68   :  { %11593 = vmatprep.subr.bf16.mxu1 %v12192_v5  ;;  %v12232_v44 = vld [vmem:[#allocation4 + $0xe0] sm:$0xff]   ;;  %v12233_v45 = vld [vmem:[#allocation4 + $0xe8] sm:$0xff]   ;;  %v12234_v46 = vld [vmem:[#allocation4 + $0xf0] sm:$0xff]   ;;  %1923 = vst [vmem:[#allocation2 + $0xe0] sm:$0x3] %v18244_v48 }
  0x69   :  { %v12235_v47 = vld [vmem:[#allocation4 + $0xf8] sm:$0xff]   ;;  %1924 = vst [vmem:[#allocation2 + $0xe4] sm:$0xf] %v18244_v48  ;;  %1925 = vst [vmem:[#allocation2 + $0xe8] sm:$0xf] %v18244_v48  ;;  %v12236_v49 = vld [vmem:[#allocation9 + $0x80] sm:$0xff]  }
  0x6a   :  { %11512 = vmatpush3.bf16.msra.mxu0 %v12222_v14  ;;  %1926 = vst [vmem:[#allocation2 + $0xec] sm:$0x3] %v18244_v48  ;;  %1927 = vst [vmem:[#allocation2 + $0x1c8] sm:$0xf] %v18244_v48  ;;  %v12237_v50 = vld [vmem:[#allocation9 + $0x88] sm:$0xff]   ;;  %v12238_v51 = vld [vmem:[#allocation9 + $0x90] sm:$0xff]  }
  0x6b   :  { %11594 = vmatpush3.bf16.msra.mxu1 %v12192_v5  ;;  %11513 = vmatprep.subr.bf16.mxu0 %v12224_v17  ;;  %1928 = vst [vmem:[#allocation2 + $0x1cc] sm:$0xf] %v18244_v48  ;;  %1929 = vst [vmem:[#allocation2 + $0x1d0] sm:$0x3] %v18244_v48  ;;  %v12239_v52 = vld [vmem:[#allocation9 + $0x98] sm:$0xff]   ;;  %v12240_v53 = vld [vmem:[#allocation9 + $0xa0] sm:$0xff]  }
  0x6c   :  { %11595 = vmatprep.subr.bf16.mxu1 %v12193_v6  ;;  %1930 = vst [vmem:[#allocation2 + $0x1d4] sm:$0xf] %v18244_v48  ;;  %1931 = vst [vmem:[#allocation2 + $0x1d8] sm:$0xf] %v18244_v48  ;;  %v12241_v54 = vld [vmem:[#allocation9 + $0xa8] sm:$0xff]   ;;  %v12242_v55 = vld [vmem:[#allocation9 + $0xb0] sm:$0xff]  }
  0x6d   :  { %1932 = vst [vmem:[#allocation2 + $0x1dc] sm:$0x3] %v18244_v48  ;;  %1934 = vst [vmem:[#allocation2 + $0x18] sm:$0x1] %v18244_v48  ;;  %v12243_v56 = vld [vmem:[#allocation9] sm:$0xff]   ;;  %v12244_v57 = vld [vmem:[#allocation9 + $0xb8] sm:$0xff]  }
  0x6e   :  { %11514 = vmatpush3.bf16.msra.mxu0 %v12224_v17  ;;  %1935 = vst [vmem:[#allocation2 + $0x24] sm:$0x1] %v18244_v48  ;;  %1936 = vst [vmem:[#allocation2 + $0x30] sm:$0x1] %v18244_v48 }
  0x6f   :  { %11596 = vmatpush3.bf16.msra.mxu1 %v12193_v6  ;;  %11515 = vmatprep.subr.bf16.mxu0 %v12226_v18  ;;  %1937 = vst [vmem:[#allocation2 + $0x3c] sm:$0x1] %v18244_v48  ;;  %1938 = vst [vmem:[#allocation2 + $0x48] sm:$0x1] %v18244_v48 }
  0x70   :  { %11597 = vmatprep.subr.bf16.mxu1 %v12194_v7  ;;  %1939 = vst [vmem:[#allocation2 + $0x54] sm:$0x1] %v18244_v48  ;;  %1940 = vst [vmem:[#allocation2 + $0x60] sm:$0x1] %v18244_v48 }
  0x71   :  { %1941 = vst [vmem:[#allocation2 + $0x6c] sm:$0x1] %v18244_v48  ;;  %1942 = vst [vmem:[#allocation2 + $0x78] sm:$0x1] %v18244_v48 }
  0x72   :  { %11516 = vmatpush3.bf16.msra.mxu0 %v12226_v18  ;;  %1943 = vst [vmem:[#allocation2 + $0x84] sm:$0x1] %v18244_v48  ;;  %1944 = vst [vmem:[#allocation2 + $0x90] sm:$0x1] %v18244_v48 }
  0x73   :  { %11598 = vmatpush3.bf16.msra.mxu1 %v12194_v7  ;;  %11517 = vmatprep.subr.bf16.mxu0 %v12228_v21  ;;  %1945 = vst [vmem:[#allocation2 + $0x9c] sm:$0x1] %v18244_v48  ;;  %1946 = vst [vmem:[#allocation2 + $0xa8] sm:$0x1] %v18244_v48 }
  0x74   :  { %11599 = vmatprep.subr.bf16.mxu1 %v12195_v8  ;;  %1947 = vst [vmem:[#allocation2 + $0xb4] sm:$0x1] %v18244_v48  ;;  %1948 = vst [vmem:[#allocation2 + $0xc0] sm:$0x1] %v18244_v48 }
  0x75   :  { %1949 = vst [vmem:[#allocation2 + $0xcc] sm:$0x1] %v18244_v48  ;;  %1950 = vst [vmem:[#allocation2 + $0x108] sm:$0x1] %v18244_v48 }
  0x76   :  { %11518 = vmatpush3.bf16.msra.mxu0 %v12228_v21  ;;  %1951 = vst [vmem:[#allocation2 + $0x114] sm:$0x1] %v18244_v48  ;;  %1952 = vst [vmem:[#allocation2 + $0x120] sm:$0x1] %v18244_v48 }
  0x77   :  { %11600 = vmatpush3.bf16.msra.mxu1 %v12195_v8  ;;  %11519 = vmatprep.subr.bf16.mxu0 %v12230_v22  ;;  %1953 = vst [vmem:[#allocation2 + $0x12c] sm:$0x1] %v18244_v48  ;;  %1954 = vst [vmem:[#allocation2 + $0x138] sm:$0x1] %v18244_v48 }
  0x78   :  { %1955 = vst [vmem:[#allocation2 + $0x144] sm:$0x1] %v18244_v48  ;;  %1956 = vst [vmem:[#allocation2 + $0x150] sm:$0x1] %v18244_v48  ;;  %7736 = vmatprep.subr.bf16.mxu1 %v18244_v48 }
  0x79   :  { %1957 = vst [vmem:[#allocation2 + $0x15c] sm:$0x1] %v18244_v48  ;;  %1958 = vst [vmem:[#allocation2 + $0x168] sm:$0x1] %v18244_v48 }
  0x7a   :  { %11602 = vmatmul.mubr.bf16.vlgmr.msra.gmra.mrb[0].mxu1 %v12197_v10  ;;  %11520 = vmatpush3.bf16.msra.mxu0 %v12230_v22  ;;  %1959 = vst [vmem:[#allocation2 + $0x174] sm:$0x1] %v18244_v48  ;;  %1960 = vst [vmem:[#allocation2 + $0x180] sm:$0x1] %v18244_v48 }
  0x7b   :  { %11605 = vmatprep.mubr.bf16.mxu1 %v12198_v12  ;;  %8025 = vmatprep.subr.bf16.mxu0 %v18244_v48  ;;  %1961 = vst [vmem:[#allocation2 + $0x18c] sm:$0x1] %v18244_v48  ;;  %1962 = vst [vmem:[#allocation2 + $0x198] sm:$0x1] %v18244_v48 }
  0x7c   :  { %1963 = vst [vmem:[#allocation2 + $0x1a4] sm:$0x1] %v18244_v48  ;;  %1964 = vst [vmem:[#allocation2 + $0x1b0] sm:$0x1] %v18244_v48  ;;  %7737 = vmatpush1.bf16.msra.mxu1 %v12243_v56 }
  0x7d   :  { %11522 = vmatmul.mubr.bf16.vlgmr.msra.gmra.mrb[0].mxu0 %v12197_v10  ;;  %1965 = vst [vmem:[#allocation2 + $0x1bc] sm:$0x1] %v18244_v48  ;;  %1966 = vst [vmem:[#allocation2 + $0x20] sm:$0x2] %v18244_v48  ;;  %7738 = vmatprep.subr.bf16.mxu1 %v18244_v48 }
  0x7e   :  { %11525 = vmatprep.mubr.bf16.mxu0 %v12198_v12  ;;  %1967 = vst [vmem:[#allocation2 + $0x2c] sm:$0x2] %v18244_v48  ;;  %1968 = vst [vmem:[#allocation2 + $0x38] sm:$0x2] %v18244_v48  ;;  %8026 = vmatpush1.bf16.msra.mxu0 %v12236_v49 }
  0x7f   :  { %1969 = vst [vmem:[#allocation2 + $0x44] sm:$0x2] %v18244_v48  ;;  %1970 = vst [vmem:[#allocation2 + $0x50] sm:$0x2] %v18244_v48  ;;  %8027 = vmatprep.subr.bf16.mxu0 %v18244_v48 }
  0x80   :  { %1971 = vst [vmem:[#allocation2 + $0x5c] sm:$0x2] %v18244_v48  ;;  %1972 = vst [vmem:[#allocation2 + $0x68] sm:$0x2] %v18244_v48 }
  0x81   :  { %1973 = vst [vmem:[#allocation2 + $0x74] sm:$0x2] %v18244_v48  ;;  %1974 = vst [vmem:[#allocation2 + $0x80] sm:$0x2] %v18244_v48 }
  0x82   :  { %11606 = vmatmul.mubr.bf16.gmra.mrb[4].mxu1 %v12199_v15  ;;  %1975 = vst [vmem:[#allocation2 + $0x8c] sm:$0x2] %v18244_v48  ;;  %1976 = vst [vmem:[#allocation2 + $0x98] sm:$0x2] %v18244_v48  ;;  %8028 = vmatpush1.bf16.msra.mxu0 %v12237_v50 }
  0x83   :  { %11609 = vmatprep.mubr.bf16.mxu1 %v12200_v16  ;;  %1977 = vst [vmem:[#allocation2 + $0xa4] sm:$0x2] %v18244_v48  ;;  %1978 = vst [vmem:[#allocation2 + $0xb0] sm:$0x2] %v18244_v48  ;;  %8029 = vmatprep.subr.bf16.mxu0 %v18244_v48 }
  0x84   :  { %1979 = vst [vmem:[#allocation2 + $0xbc] sm:$0x2] %v18244_v48  ;;  %1980 = vst [vmem:[#allocation2 + $0xc8] sm:$0x2] %v18244_v48 }
  0x85   :  { %11526 = vmatmul.mubr.bf16.gmra.mrb[4].mxu0 %v12199_v15  ;;  %1981 = vst [vmem:[#allocation2 + $0xd4] sm:$0x2] %v18244_v48  ;;  %1982 = vst [vmem:[#allocation2 + $0x110] sm:$0x2] %v18244_v48 }
  0x86   :  { %11529 = vmatprep.mubr.bf16.mxu0 %v12200_v16  ;;  %1983 = vst [vmem:[#allocation2 + $0x11c] sm:$0x2] %v18244_v48  ;;  %1984 = vst [vmem:[#allocation2 + $0x128] sm:$0x2] %v18244_v48  ;;  %8030 = vmatpush1.bf16.msra.mxu0 %v12238_v51 }
  0x87   :  { %1985 = vst [vmem:[#allocation2 + $0x134] sm:$0x2] %v18244_v48  ;;  %1986 = vst [vmem:[#allocation2 + $0x140] sm:$0x2] %v18244_v48  ;;  %8031 = vmatprep.subr.bf16.mxu0 %v18244_v48 }
  0x88   :  { %1987 = vst [vmem:[#allocation2 + $0x14c] sm:$0x2] %v18244_v48  ;;  %1988 = vst [vmem:[#allocation2 + $0x158] sm:$0x2] %v18244_v48 }
  0x89   :  { %1989 = vst [vmem:[#allocation2 + $0x164] sm:$0x2] %v18244_v48  ;;  %1990 = vst [vmem:[#allocation2 + $0x170] sm:$0x2] %v18244_v48 }
  0x8a   :  { %11610 = vmatmul.mubr.bf16.gmra.mrb[8].mxu1 %v12201_v19  ;;  %1991 = vst [vmem:[#allocation2 + $0x17c] sm:$0x2] %v18244_v48  ;;  %1992 = vst [vmem:[#allocation2 + $0x188] sm:$0x2] %v18244_v48  ;;  %8032 = vmatpush1.bf16.msra.mxu0 %v12239_v52 }
  0x8b   :  { %11613 = vmatprep.mubr.bf16.mxu1 %v12202_v20  ;;  %1993 = vst [vmem:[#allocation2 + $0x194] sm:$0x2] %v18244_v48  ;;  %1994 = vst [vmem:[#allocation2 + $0x1a0] sm:$0x2] %v18244_v48  ;;  %8033 = vmatprep.subr.bf16.mxu0 %v18244_v48 }
  0x8c   :  { %1995 = vst [vmem:[#allocation2 + $0x1ac] sm:$0x2] %v18244_v48  ;;  %1996 = vst [vmem:[#allocation2 + $0x1b8] sm:$0x2] %v18244_v48 }
  0x8d   :  { %11530 = vmatmul.mubr.bf16.gmra.mrb[8].mxu0 %v12201_v19  ;;  %1997 = vst [vmem:[#allocation2 + $0x1c4] sm:$0x2] %v18244_v48  ;;  %vm13373_vm2 = vmor %vm3025_vm0, %vm3026_vm1 }
  0x8e   :  { %11533 = vmatprep.mubr.bf16.mxu0 %v12202_v20  ;;  %8034 = vmatpush1.bf16.msra.mxu0 %v12240_v53  ;;  %vm13465_vm5 = vmor %vm3604_vm3, %vm3605_vm4 }
  0x8f   :  { %8035 = vmatprep.subr.bf16.mxu0 %v18244_v48  ;;  %vm13681_vm8 = vmor %vm2190_vm6, %vm2191_vm7 }
  0x92   :  { %11614 = vmatmul.mubr.bf16.gmra.mrb[12].mxu1 %v12203_v23  ;;  %8036 = vmatpush1.bf16.msra.mxu0 %v12241_v54 }
  0x93   :  { %11617 = vmatprep.mubr.bf16.mxu1 %v12204_v24  ;;  %8037 = vmatprep.subr.bf16.mxu0 %v18244_v48 }
  0x95   :  { %11534 = vmatmul.mubr.bf16.gmra.mrb[12].mxu0 %v12203_v23 }
  0x96   :  { %11537 = vmatprep.mubr.bf16.mxu0 %v12204_v24  ;;  %8038 = vmatpush1.bf16.msra.mxu0 %v12242_v55 }
  0x97   :  { %8039 = vmatprep.subr.bf16.mxu0 %v18244_v48 }
  0x9a   :  { %11618 = vmatmul.mubr.bf16.gmra.mrb[16].mxu1 %v12205_v25  ;;  %8040 = vmatpush1.bf16.msra.mxu0 %v12244_v57 }
  0x9b   :  { %11621 = vmatprep.mubr.bf16.mxu1 %v12206_v26  ;;  %8041 = vmatprep.subr.bf16.mxu0 %v18244_v48 }
  0x9d   :  { %11538 = vmatmul.mubr.bf16.gmra.mrb[16].mxu0 %v12205_v25 }
  0x9e   :  { %11541 = vmatprep.mubr.bf16.mxu0 %v12206_v26 }
  0xa2   :  { %11622 = vmatmul.mubr.bf16.gmra.mrb[20].mxu1 %v12207_v27 }
  0xa3   :  { %11625 = vmatprep.mubr.bf16.mxu1 %v12208_v28 }
  0xa5   :  { %11542 = vmatmul.mubr.bf16.gmra.mrb[20].mxu0 %v12207_v27 }
  0xa6   :  { %11545 = vmatprep.mubr.bf16.mxu0 %v12208_v28 }
  0xaa   :  { %11626 = vmatmul.mubr.bf16.gmra.mrb[24].mxu1 %v12209_v29 }
  0xab   :  { %11629 = vmatprep.mubr.bf16.mxu1 %v12210_v30 }
  0xad   :  { %11546 = vmatmul.mubr.bf16.gmra.mrb[24].mxu0 %v12209_v29 }
  0xae   :  { %11549 = vmatprep.mubr.bf16.mxu0 %v12210_v30 }
  0xb2   :  { %11630 = vmatmul.mubr.bf16.gmra.mrb[28].mxu1 %v12211_v31 }
  0xb3   :  { %11633 = vmatprep.mubr.bf16.mxu1 %v12212_v32 }
  0xb5   :  { %11550 = vmatmul.mubr.bf16.gmra.mrb[28].mxu0 %v12211_v31 }
  0xb6   :  { %11553 = vmatprep.mubr.bf16.mxu0 %v12212_v32 }
  0xba   :  { %11634 = vmatmul.mubr.bf16.gmra.mrb[32].mxu1 %v12213_v33 }
  0xbb   :  { %11637 = vmatprep.mubr.bf16.mxu1 %v12214_v34 }
  0xbd   :  { %11554 = vmatmul.mubr.bf16.gmra.mrb[32].mxu0 %v12213_v33 }
  0xbe   :  { %11557 = vmatprep.mubr.bf16.mxu0 %v12214_v34 }
  0xc2   :  { %11638 = vmatmul.mubr.bf16.gmra.mrb[36].mxu1 %v12215_v35 }
  0xc3   :  { %11641 = vmatprep.mubr.bf16.mxu1 %v12217_v36 }
  0xc5   :  { %11558 = vmatmul.mubr.bf16.gmra.mrb[36].mxu0 %v12215_v35 }
  0xc6   :  { %11561 = vmatprep.mubr.bf16.mxu0 %v12217_v36 }
  0xca   :  { %11642 = vmatmul.mubr.bf16.gmra.mrb[40].mxu1 %v12219_v37 }
  0xcb   :  { %11645 = vmatprep.mubr.bf16.mxu1 %v12221_v38 }
  0xcd   :  { %11562 = vmatmul.mubr.bf16.gmra.mrb[40].mxu0 %v12219_v37 }
  0xce   :  { %11565 = vmatprep.mubr.bf16.mxu0 %v12221_v38 }
  0xd2   :  { %11646 = vmatmul.mubr.bf16.gmra.mrb[44].mxu1 %v12223_v39 }
  0xd3   :  { %11649 = vmatprep.mubr.bf16.mxu1 %v12225_v40 }
  0xd5   :  { %11566 = vmatmul.mubr.bf16.gmra.mrb[44].mxu0 %v12223_v39 }
  0xd6   :  { %11569 = vmatprep.mubr.bf16.mxu0 %v12225_v40 }
  0xda   :  { %11650 = vmatmul.mubr.bf16.gmra.mrb[48].mxu1 %v12227_v41 }
  0xdb   :  { %11653 = vmatprep.mubr.bf16.mxu1 %v12229_v42 }
  0xdd   :  { %11570 = vmatmul.mubr.bf16.gmra.mrb[48].mxu0 %v12227_v41 }
  0xde   :  { %11573 = vmatprep.mubr.bf16.mxu0 %v12229_v42 }
  0xe2   :  { %11654 = vmatmul.mubr.bf16.gmra.mrb[52].mxu1 %v12231_v43 }
  0xe3   :  { %11657 = vmatprep.mubr.bf16.mxu1 %v12232_v44 }
  0xe5   :  { %11574 = vmatmul.mubr.bf16.gmra.mrb[52].mxu0 %v12231_v43 }
  0xe6   :  { %11577 = vmatprep.mubr.bf16.mxu0 %v12232_v44 }
  0xea   :  { %11658 = vmatmul.mubr.bf16.gmra.mrb[56].mxu1 %v12233_v45 }
  0xeb   :  { %11661 = vmatprep.mubr.bf16.mxu1 %v12234_v46 }
  0xed   :  { %11578 = vmatmul.mubr.bf16.gmra.mrb[56].mxu0 %v12233_v45 }
  0xee   :  { %11581 = vmatprep.mubr.bf16.mxu0 %v12234_v46 }
  0xf2   :  { %11662 = vmatmul.mubr.bf16.gmra.mrb[60].mxu1 %v12235_v47 }
  0xf5   :  { %11582 = vmatmul.mubr.bf16.gmra.mrb[60].mxu0 %v12235_v47 }
 0x14d   :  { %v12837_v58 = vpop.f32.mrb[0].mxu1 }
 0x14e   :  { %v12839_v59 = vpop.f32.mrb[1].mxu1  ;;  %v1565_v1 = vmul.f32 %v12837_v58, %v12837_v58 }
 0x14f   :  { %v12841_v60 = vpop.f32.mrb[2].mxu1  ;;  %v1563_v62 = vmul.f32 %v12839_v59, %v12839_v59 }
 0x150   :  { %v12843_v61 = vpop.f32.mrb[3].mxu1  ;;  %v1566_v4 = vmul.f32 %v12841_v60, %v12841_v60  ;;  %v12911_v50 = vpop.f32.mrb[0].mxu0 }
 0x151   :  { %v1494_v63 = vadd.f32 %v12843_v61, %v12839_v59  ;;  %v1564_v0 = vmul.f32 %v12843_v61, %v12843_v61  ;;  %18436 = vst [vmem:[#allocation18_spill] sm:$0xff] %v12911_v50  ;;  %v12913_v51 = vpop.f32.mrb[1].mxu0 }
 0x152   :  { %18437 = vst [vmem:[#allocation19_spill] sm:$0xff] %v12913_v51  ;;  %v12918_v55 = vpop.f32.mrb[2].mxu0  ;;  %v794_v57 = vmul.f32 %v12913_v51, %v12913_v51 }
 0x153   :  { %v1495_v2 = vadd.f32 %v12837_v58, %v1494_v63  ;;  %v1627_v3 = vadd.f32 %v1564_v0, %v1563_v62  ;;  %18438 = vst [vmem:[#allocation20_spill] sm:$0xff] %v12918_v55  ;;  %v12924_v62 = vpop.f32.mrb[3].mxu0 }
 0x154   :  { %18439 = vst [vmem:[#allocation21_spill] sm:$0xff] %v12924_v62 }
 0x155   :  { %v1628_v5 = vadd.f32 %v1627_v3, %v1565_v1  ;;  %v12856_v6 = vpop.f32.mrb[4].mxu1  ;;  %v1496_v7 = vadd.f32 %v12841_v60, %v1495_v2  ;;  %v725_v2 = vadd.f32 %v12924_v62, %v12913_v51  ;;  %v795_v3 = vmul.f32 %v12924_v62, %v12924_v62 }
 0x156   :  { %v12859_v8 = vpop.f32.mrb[5].mxu1  ;;  %v1569_v17 = vmul.f32 %v12856_v6, %v12856_v6  ;;  %v18459_v62 = vmov 0  }
 0x157   :  { %v1497_v9 = vadd.f32 %v1496_v7, %v12859_v8  ;;  %v1567_v10 = vmul.f32 %v12859_v8, %v12859_v8  ;;  %v1629_v11 = vadd.f32 %v1628_v5, %v1566_v4  ;;  %v12864_v12 = vpop.f32.mrb[6].mxu1  ;;  %v796_v5 = vmul.f32 %v12911_v50, %v12911_v50 }
 0x158   :  { %v12866_v13 = vpop.f32.mrb[7].mxu1  ;;  %v1570_v20 = vmul.f32 %v12864_v12, %v12864_v12 }
 0x159   :  { %v1630_v14 = vadd.f32 %v1629_v11, %v1567_v10  ;;  %v1498_v15 = vadd.f32 %v1497_v9, %v12866_v13  ;;  %v1568_v16 = vmul.f32 %v12866_v13, %v12866_v13 }
 0x15b   :  { %v1499_v18 = vadd.f32 %v12856_v6, %v1498_v15  ;;  %v1631_v19 = vadd.f32 %v1630_v14, %v1568_v16  ;;  %v726_v14 = vadd.f32 %v12911_v50, %v725_v2  ;;  %v797_v16 = vmul.f32 %v12918_v55, %v12918_v55 }
 0x15d   :  { %v1632_v21 = vadd.f32 %v1631_v19, %v1569_v17  ;;  %v12876_v22 = vpop.f32.mrb[8].mxu1  ;;  %v1500_v23 = vadd.f32 %v12864_v12, %v1499_v18  ;;  %v858_v17 = vadd.f32 %v795_v3, %v794_v57 }
 0x15e   :  { %v12879_v24 = vpop.f32.mrb[9].mxu1  ;;  %v1573_v33 = vmul.f32 %v12876_v22, %v12876_v22 }
 0x15f   :  { %v1501_v25 = vadd.f32 %v1500_v23, %v12879_v24  ;;  %v1571_v26 = vmul.f32 %v12879_v24, %v12879_v24  ;;  %v1633_v27 = vadd.f32 %v1632_v21, %v1570_v20  ;;  %v12884_v28 = vpop.f32.mrb[10].mxu1  ;;  %v12950_v21 = vpop.f32.mrb[4].mxu0  ;;  %v727_v23 = vadd.f32 %v12918_v55, %v726_v14 }
 0x160   :  { %v12886_v29 = vpop.f32.mrb[11].mxu1  ;;  %v1574_v36 = vmul.f32 %v12884_v28, %v12884_v28  ;;  %18440 = vst [vmem:[#allocation22_spill] sm:$0xff] %v12950_v21 }
 0x161   :  { %v1634_v30 = vadd.f32 %v1633_v27, %v1571_v26  ;;  %v1502_v31 = vadd.f32 %v1501_v25, %v12886_v29  ;;  %v1572_v32 = vmul.f32 %v12886_v29, %v12886_v29  ;;  %v859_v26 = vadd.f32 %v858_v17, %v796_v5  ;;  %v12955_v27 = vpop.f32.mrb[5].mxu0 }
 0x162   :  { %18441 = vst [vmem:[#allocation23_spill] sm:$0xff] %v12955_v27 }
 0x163   :  { %v1503_v34 = vadd.f32 %v12876_v22, %v1502_v31  ;;  %v1635_v35 = vadd.f32 %v1634_v30, %v1572_v32  ;;  %v728_v32 = vadd.f32 %v727_v23, %v12955_v27 }
 0x165   :  { %v1636_v37 = vadd.f32 %v1635_v35, %v1573_v33  ;;  %v12896_v38 = vpop.f32.mrb[12].mxu1  ;;  %v1504_v39 = vadd.f32 %v12884_v28, %v1503_v34  ;;  %v798_v33 = vmul.f32 %v12955_v27, %v12955_v27  ;;  %v12961_v34 = vpop.f32.mrb[6].mxu0 }
 0x166   :  { %v12899_v40 = vpop.f32.mrb[13].mxu1  ;;  %v1577_v52 = vmul.f32 %v12896_v38, %v12896_v38  ;;  %18442 = vst [vmem:[#allocation24_spill] sm:$0xff] %v12961_v34 }
 0x167   :  { %v1505_v41 = vadd.f32 %v1504_v39, %v12899_v40  ;;  %v1575_v42 = vmul.f32 %v12899_v40, %v12899_v40  ;;  %v1637_v43 = vadd.f32 %v1636_v37, %v1574_v36  ;;  %v12904_v44 = vpop.f32.mrb[14].mxu1  ;;  %v860_v36 = vadd.f32 %v859_v26, %v797_v16  ;;  %v12965_v37 = vpop.f32.mrb[7].mxu0 }
 0x168   :  { %v12906_v45 = vpop.f32.mrb[15].mxu1  ;;  %v1578_v56 = vmul.f32 %v12904_v44, %v12904_v44  ;;  %18443 = vst [vmem:[#allocation25_spill] sm:$0xff] %v12965_v37 }
 0x169   :  { %v1638_v46 = vadd.f32 %v1637_v43, %v1575_v42  ;;  %v1506_v47 = vadd.f32 %v1505_v41, %v12906_v45  ;;  %v1576_v49 = vmul.f32 %v12906_v45, %v12906_v45  ;;  %v729_v43 = vadd.f32 %v728_v32, %v12965_v37 }
 0x16b   :  { %v1507_v53 = vadd.f32 %v12896_v38, %v1506_v47  ;;  %v1639_v54 = vadd.f32 %v1638_v46, %v1576_v49  ;;  %v799_v46 = vmul.f32 %v12965_v37, %v12965_v37  ;;  %v800_v49 = vmul.f32 %v12950_v21, %v12950_v21 }
 0x16d   :  { %v1640_v63 = vadd.f32 %v1639_v54, %v1577_v52  ;;  %v12926_v0 = vpop.f32.mrb[16].mxu1  ;;  %v1508_v1 = vadd.f32 %v12904_v44, %v1507_v53  ;;  %v861_v52 = vadd.f32 %v860_v36, %v798_v33 }
 0x16e   :  { %v12933_v4 = vpop.f32.mrb[17].mxu1  ;;  %v1581_v25 = vmul.f32 %v12926_v0, %v12926_v0 }
 0x16f   :  { %v1509_v7 = vadd.f32 %v1508_v1, %v12933_v4  ;;  %v1579_v9 = vmul.f32 %v12933_v4, %v12933_v4  ;;  %v1641_v10 = vadd.f32 %v1640_v63, %v1578_v56  ;;  %v12940_v11 = vpop.f32.mrb[18].mxu1  ;;  %v12983_v63 = vadd.f32 %v12950_v21, %v729_v43 }
 0x170   :  { %v12943_v15 = vpop.f32.mrb[19].mxu1  ;;  %v1582_v35 = vmul.f32 %v12940_v11, %v12940_v11  ;;  %v862_v2 = vadd.f32 %v861_v52, %v799_v46 }
 0x171   :  { %v1642_v18 = vadd.f32 %v1641_v10, %v1579_v9  ;;  %v1510_v19 = vadd.f32 %v1509_v7, %v12943_v15  ;;  %v1580_v20 = vmul.f32 %v12943_v15, %v12943_v15 }
 0x172   :  { %v12990_v9 = vadd.f32 %v862_v2, %v800_v49 }
 0x173   :  { %v1511_v30 = vadd.f32 %v12926_v0, %v1510_v19  ;;  %v1643_v31 = vadd.f32 %v1642_v18, %v1580_v20 }
 0x175   :  { %v1644_v39 = vadd.f32 %v1643_v31, %v1581_v25  ;;  %v12967_v41 = vpop.f32.mrb[20].mxu1  ;;  %v1512_v42 = vadd.f32 %v12940_v11, %v1511_v30 }
 0x176   :  { %v12973_v47 = vpop.f32.mrb[21].mxu1  ;;  %v1585_v10 = vmul.f32 %v12967_v41, %v12967_v41 }
 0x177   :  { %v1513_v53 = vadd.f32 %v1512_v42, %v12973_v47  ;;  %v1583_v54 = vmul.f32 %v12973_v47, %v12973_v47  ;;  %v1645_v56 = vadd.f32 %v1644_v39, %v1582_v35  ;;  %v12980_v57 = vpop.f32.mrb[22].mxu1 }
 0x178   :  { %v12985_v1 = vpop.f32.mrb[23].mxu1  ;;  %v1586_v17 = vmul.f32 %v12980_v57, %v12980_v57 }
 0x179   :  { %v1646_v3 = vadd.f32 %v1645_v56, %v1583_v54  ;;  %v1514_v5 = vadd.f32 %v1513_v53, %v12985_v1  ;;  %v1584_v7 = vmul.f32 %v12985_v1, %v12985_v1 }
 0x17b   :  { %v1515_v14 = vadd.f32 %v12967_v41, %v1514_v5  ;;  %v1647_v16 = vadd.f32 %v1646_v3, %v1584_v7 }
 0x17d   :  { %v1648_v18 = vadd.f32 %v1647_v16, %v1585_v10  ;;  %v12997_v19 = vpop.f32.mrb[24].mxu1  ;;  %v1516_v20 = vadd.f32 %v12980_v57, %v1515_v14 }
 0x17e   :  { %v13000_v23 = vpop.f32.mrb[25].mxu1  ;;  %v1589_v39 = vmul.f32 %v12997_v19, %v12997_v19 }
 0x17f   :  { %v1517_v25 = vadd.f32 %v1516_v20, %v13000_v23  ;;  %v1587_v26 = vmul.f32 %v13000_v23, %v13000_v23  ;;  %v1649_v30 = vadd.f32 %v1648_v18, %v1586_v17  ;;  %v13005_v31 = vpop.f32.mrb[26].mxu1 }
 0x180   :  { %v13007_v32 = vpop.f32.mrb[27].mxu1  ;;  %v1590_v46 = vmul.f32 %v13005_v31, %v13005_v31 }
 0x181   :  { %v1650_v33 = vadd.f32 %v1649_v30, %v1587_v26  ;;  %v1518_v35 = vadd.f32 %v1517_v25, %v13007_v32  ;;  %v1588_v36 = vmul.f32 %v13007_v32, %v13007_v32 }
 0x183   :  { %v1519_v42 = vadd.f32 %v12997_v19, %v1518_v35  ;;  %v1651_v43 = vadd.f32 %v1650_v33, %v1588_v36 }
 0x185   :  { %v1652_v49 = vadd.f32 %v1651_v43, %v1589_v39  ;;  %v13017_v52 = vpop.f32.mrb[28].mxu1  ;;  %v1520_v53 = vadd.f32 %v13005_v31, %v1519_v42 }
 0x186   :  { %v13020_v54 = vpop.f32.mrb[29].mxu1  ;;  %v1593_v17 = vmul.f32 %v13017_v52, %v13017_v52 }
 0x187   :  { %v1521_v56 = vadd.f32 %v1520_v53, %v13020_v54  ;;  %v1591_v2 = vmul.f32 %v13020_v54, %v13020_v54  ;;  %v1653_v3 = vadd.f32 %v1652_v49, %v1590_v46  ;;  %v13025_v5 = vpop.f32.mrb[30].mxu1 }
 0x188   :  { %v13027_v7 = vpop.f32.mrb[31].mxu1  ;;  %v1594_v25 = vmul.f32 %v13025_v5, %v13025_v5 }
 0x189   :  { %v1654_v10 = vadd.f32 %v1653_v3, %v1591_v2  ;;  %v1522_v14 = vadd.f32 %v1521_v56, %v13027_v7  ;;  %v1592_v16 = vmul.f32 %v13027_v7, %v13027_v7 }
 0x18b   :  { %v1523_v18 = vadd.f32 %v13017_v52, %v1522_v14  ;;  %v1655_v20 = vadd.f32 %v1654_v10, %v1592_v16 }
 0x18d   :  { %v1656_v26 = vadd.f32 %v1655_v20, %v1593_v17  ;;  %v13037_v30 = vpop.f32.mrb[32].mxu1  ;;  %v1524_v33 = vadd.f32 %v13025_v5, %v1523_v18 }
 0x18e   :  { %18444 = vst [vmem:[#allocation26_spill] sm:$0xff] %v13037_v30  ;;  %v13040_v35 = vpop.f32.mrb[33].mxu1  ;;  %v1597_v2 = vmul.f32 %v13037_v30, %v13037_v30 }
 0x18f   :  { %18445 = vst [vmem:[#allocation27_spill] sm:$0xff] %v13040_v35  ;;  %v1525_v36 = vadd.f32 %v1524_v33, %v13040_v35  ;;  %v1595_v39 = vmul.f32 %v13040_v35, %v13040_v35  ;;  %v1657_v42 = vadd.f32 %v1656_v26, %v1594_v25  ;;  %v13045_v43 = vpop.f32.mrb[34].mxu1 }
 0x190   :  { %18446 = vst [vmem:[#allocation28_spill] sm:$0xff] %v13045_v43  ;;  %v13047_v46 = vpop.f32.mrb[35].mxu1  ;;  %v1598_v14 = vmul.f32 %v13045_v43, %v13045_v43 }
 0x191   :  { %18447 = vst [vmem:[#allocation29_spill] sm:$0xff] %v13047_v46  ;;  %v1658_v49 = vadd.f32 %v1657_v42, %v1595_v39  ;;  %v1526_v53 = vadd.f32 %v1525_v36, %v13047_v46  ;;  %v1596_v56 = vmul.f32 %v13047_v46, %v13047_v46 }
 0x193   :  { %v1527_v3 = vadd.f32 %v13037_v30, %v1526_v53  ;;  %v1659_v10 = vadd.f32 %v1658_v49, %v1596_v56 }
 0x195   :  { %v1660_v16 = vadd.f32 %v1659_v10, %v1597_v2  ;;  %v13057_v17 = vpop.f32.mrb[36].mxu1  ;;  %v1528_v18 = vadd.f32 %v13045_v43, %v1527_v3 }
 0x196   :  { %18448 = vst [vmem:[#allocation30_spill] sm:$0xff] %v13057_v17  ;;  %v13060_v20 = vpop.f32.mrb[37].mxu1  ;;  %v1601_v56 = vmul.f32 %v13057_v17, %v13057_v17 }
 0x197   :  { %18449 = vst [vmem:[#allocation31_spill] sm:$0xff] %v13060_v20  ;;  %v1529_v25 = vadd.f32 %v1528_v18, %v13060_v20  ;;  %v1599_v26 = vmul.f32 %v13060_v20, %v13060_v20  ;;  %v1661_v33 = vadd.f32 %v1660_v16, %v1598_v14  ;;  %v13065_v36 = vpop.f32.mrb[38].mxu1 }
 0x198   :  { %18450 = vst [vmem:[#allocation32_spill] sm:$0xff] %v13065_v36  ;;  %v13067_v39 = vpop.f32.mrb[39].mxu1  ;;  %v1602_v10 = vmul.f32 %v13065_v36, %v13065_v36 }
 0x199   :  { %18451 = vst [vmem:[#allocation33_spill] sm:$0xff] %v13067_v39  ;;  %v1662_v42 = vadd.f32 %v1661_v33, %v1599_v26  ;;  %v1530_v49 = vadd.f32 %v1529_v25, %v13067_v39  ;;  %v1600_v53 = vmul.f32 %v13067_v39, %v13067_v39  ;;  %v2838_v39 = vld [vmem:[#allocation2 + $0x14] sm:$0x1] }
 0x19a   :  { %v3040_v30 = vrot.slane %v2838_v39, 5 }
 0x19b   :  { %v1531_v2 = vadd.f32 %v13057_v17, %v1530_v49  ;;  %v1663_v3 = vadd.f32 %v1662_v42, %v1600_v53 }
 0x19d   :  { %v1664_v14 = vadd.f32 %v1663_v3, %v1601_v56  ;;  %v13077_v16 = vpop.f32.mrb[40].mxu1  ;;  %v1532_v18 = vadd.f32 %v13065_v36, %v1531_v2  ;;  %v801_v2 = vmul.f32 %v12961_v34, %v12961_v34  ;;  %v12245_v3 = vld [vmem:[#allocation9 + $0x8] sm:$0xff]  }
 0x19e   :  { %18452 = vst [vmem:[#allocation34_spill] sm:$0xff] %v13077_v16  ;;  %v13080_v26 = vpop.f32.mrb[41].mxu1  ;;  %7739 = vmatpush1.bf16.msra.mxu1 %v12245_v3 }
 0x19f   :  { %18453 = vst [vmem:[#allocation35_spill] sm:$0xff] %v13080_v26  ;;  %v1533_v25 = vadd.f32 %v1532_v18, %v13080_v26  ;;  %v1603_v33 = vmul.f32 %v13080_v26, %v13080_v26  ;;  %v1665_v48 = vadd.f32 %v1664_v14, %v1602_v10  ;;  %v13085_v21 = vpop.f32.mrb[42].mxu1  ;;  %v1605_v18 = vmul.f32 %v13077_v16, %v13077_v16  ;;  %v13097_v14 = vpop.f32.mrb[8].mxu0 }
 0x1a0   :  { %18454 = vst [vmem:[#allocation36_spill] sm:$0xff] %v13085_v21  ;;  %v13087_v49 = vpop.f32.mrb[43].mxu1  ;;  %18456 = vst [vmem:[#allocation38_spill] sm:$0xff] %v13097_v14  ;;  %v13106_v50 = vpop.f32.mrb[9].mxu0  ;;  %7740 = vmatprep.subr.bf16.mxu1 %v18459_v62 }
 0x1a1   :  { %18455 = vst [vmem:[#allocation37_spill] sm:$0xff] %v13087_v49  ;;  %v1666_v42 = vadd.f32 %v1665_v48, %v1603_v33  ;;  %v1534_v53 = vadd.f32 %v1533_v25, %v13087_v49  ;;  %v1604_v56 = vmul.f32 %v13087_v49, %v13087_v49  ;;  %v731_v48 = vadd.f32 %v12961_v34, %v12983_v63  ;;  %v13115_v3 = vpop.f32.mrb[10].mxu0 }
 0x1a2   :  { %v1606_v25 = vmul.f32 %v13085_v21, %v13085_v21  ;;  %18458 = vst [vmem:[#allocation40_spill] sm:$0xff] %v13106_v50  ;;  %v864_v63 = vadd.f32 %v12990_v9, %v801_v2  ;;  %18461 = vst [vmem:[#allocation42_spill] sm:$0xff] %v13115_v3 }
 0x1a3   :  { %v1535_v37 = vadd.f32 %v13077_v16, %v1534_v53  ;;  %v1667_v10 = vadd.f32 %v1666_v42, %v1604_v56  ;;  %v732_v42 = vadd.f32 %v731_v48, %v13106_v50  ;;  %v802_v56 = vmul.f32 %v13106_v50, %v13106_v50 }
 0x1a5   :  { %v1668_v33 = vadd.f32 %v1667_v10, %v1605_v18  ;;  %v13103_v27 = vpop.f32.mrb[44].mxu1  ;;  %v1536_v55 = vadd.f32 %v13085_v21, %v1535_v37  ;;  %v12246_v18 = vld [vmem:[#allocation9 + $0x10] sm:$0xff]   ;;  %v13122_v21 = vpop.f32.mrb[11].mxu0  ;;  %v865_v48 = vadd.f32 %v864_v63, %v802_v56  ;;  %v12248_v63 = vld [vmem:[#allocation9 + $0x18] sm:$0xff]  }
 0x1a6   :  { %18457 = vst [vmem:[#allocation39_spill] sm:$0xff] %v13103_v27  ;;  %v13109_v53 = vpop.f32.mrb[45].mxu1  ;;  %18463 = vst [vmem:[#allocation44_spill] sm:$0xff] %v13122_v21  ;;  %v733_v50 = vadd.f32 %v732_v42, %v13122_v21  ;;  %v803_v9 = vmul.f32 %v13122_v21, %v13122_v21  ;;  %7741 = vmatpush1.bf16.msra.mxu1 %v12246_v18  ;;  %v1609_v42 = vmul.f32 %v13103_v27, %v13103_v27  ;;  %v13141_v21 = vpop.f32.mrb[12].mxu0 }
 0x1a7   :  { %18460 = vst [vmem:[#allocation41_spill] sm:$0xff] %v13109_v53  ;;  %v1537_v10 = vadd.f32 %v1536_v55, %v13109_v53  ;;  %v1607_v37 = vmul.f32 %v13109_v53, %v13109_v53  ;;  %v1669_v34 = vadd.f32 %v1668_v33, %v1606_v25  ;;  %v13120_v51 = vpop.f32.mrb[46].mxu1  ;;  %7742 = vmatprep.subr.bf16.mxu1 %v18459_v62  ;;  %18465 = vst [vmem:[#allocation46_spill] sm:$0xff] %v13141_v21  ;;  %v13149_v49 = vpop.f32.mrb[13].mxu0 }
 0x1a8   :  { %18462 = vst [vmem:[#allocation43_spill] sm:$0xff] %v13120_v51  ;;  %v13124_v16 = vpop.f32.mrb[47].mxu1  ;;  %v804_v25 = vmul.f32 %v13097_v14, %v13097_v14  ;;  %v734_v33 = vadd.f32 %v13097_v14, %v733_v50  ;;  %v866_v56 = vadd.f32 %v865_v48, %v803_v9  ;;  %v1610_v50 = vmul.f32 %v13120_v51, %v13120_v51 }
 0x1a9   :  { %18464 = vst [vmem:[#allocation45_spill] sm:$0xff] %v13124_v16  ;;  %v1670_v2 = vadd.f32 %v1669_v34, %v1607_v37  ;;  %v1538_v55 = vadd.f32 %v1537_v10, %v13124_v16  ;;  %v1608_v53 = vmul.f32 %v13124_v16, %v13124_v16  ;;  %v805_v10 = vmul.f32 %v13115_v3, %v13115_v3 }
 0x1aa   :  { %v867_v37 = vadd.f32 %v866_v56, %v804_v25  ;;  %7743 = vmatpush1.bf16.msra.mxu1 %v12248_v63  ;;  %v735_v16 = vadd.f32 %v13115_v3, %v734_v33  ;;  %18467 = vst [vmem:[#allocation48_spill] sm:$0xff] %v13149_v49  ;;  %v13157_v33 = vpop.f32.mrb[14].mxu0  ;;  %v12249_v56 = vld [vmem:[#allocation9 + $0x20] sm:$0xff]  }
 0x1ab   :  { %v1539_v18 = vadd.f32 %v13103_v27, %v1538_v55  ;;  %v1671_v34 = vadd.f32 %v1670_v2, %v1608_v53  ;;  %7744 = vmatprep.subr.bf16.mxu1 %v18459_v62  ;;  %v806_v55 = vmul.f32 %v13149_v49, %v13149_v49  ;;  %18469 = vst [vmem:[#allocation50_spill] sm:$0xff] %v13157_v33  ;;  %v13164_v3 = vpop.f32.mrb[15].mxu0 }
 0x1ac   :  { %v736_v2 = vadd.f32 %v735_v16, %v13149_v49  ;;  %v868_v25 = vadd.f32 %v867_v37, %v805_v10  ;;  %18471 = vst [vmem:[#allocation52_spill] sm:$0xff] %v13164_v3  ;;  %v807_v10 = vmul.f32 %v13164_v3, %v13164_v3 }
 0x1ad   :  { %v1672_v48 = vadd.f32 %v1671_v34, %v1609_v42  ;;  %v13146_v9 = vpop.f32.mrb[48].mxu1  ;;  %v1540_v14 = vadd.f32 %v13120_v51, %v1539_v18 }
 0x1ae   :  { %18466 = vst [vmem:[#allocation47_spill] sm:$0xff] %v13146_v9  ;;  %v13152_v53 = vpop.f32.mrb[49].mxu1  ;;  %v869_v16 = vadd.f32 %v868_v25, %v806_v55  ;;  %v737_v27 = vadd.f32 %v736_v2, %v13164_v3  ;;  %7745 = vmatpush1.bf16.msra.mxu1 %v12249_v56  ;;  %v12251_v25 = vld [vmem:[#allocation9 + $0x28] sm:$0xff]   ;;  %v1613_v2 = vmul.f32 %v13146_v9, %v13146_v9  ;;  %v13183_v3 = vpop.f32.mrb[16].mxu0 }
 0x1af   :  { %18468 = vst [vmem:[#allocation49_spill] sm:$0xff] %v13152_v53  ;;  %v1541_v63 = vadd.f32 %v1540_v14, %v13152_v53  ;;  %v1611_v42 = vmul.f32 %v13152_v53, %v13152_v53  ;;  %v1673_v18 = vadd.f32 %v1672_v48, %v1610_v50  ;;  %v13162_v34 = vpop.f32.mrb[50].mxu1  ;;  %7746 = vmatprep.subr.bf16.mxu1 %v18459_v62  ;;  %18473 = vst [vmem:[#allocation54_spill] sm:$0xff] %v13183_v3  ;;  %v13191_v53 = vpop.f32.mrb[17].mxu0 }
 0x1b0   :  { %18470 = vst [vmem:[#allocation51_spill] sm:$0xff] %v13162_v34  ;;  %v13166_v51 = vpop.f32.mrb[51].mxu1  ;;  %v808_v50 = vmul.f32 %v13141_v21, %v13141_v21  ;;  %v738_v48 = vadd.f32 %v13141_v21, %v737_v27  ;;  %v870_v55 = vadd.f32 %v869_v16, %v807_v10  ;;  %v1614_v27 = vmul.f32 %v13162_v34, %v13162_v34 }
 0x1b1   :  { %18472 = vst [vmem:[#allocation53_spill] sm:$0xff] %v13166_v51  ;;  %v1674_v37 = vadd.f32 %v1673_v18, %v1611_v42  ;;  %v1542_v14 = vadd.f32 %v1541_v63, %v13166_v51  ;;  %v1612_v49 = vmul.f32 %v13166_v51, %v13166_v51  ;;  %v809_v63 = vmul.f32 %v13157_v33, %v13157_v33 }
 0x1b2   :  { %v871_v18 = vadd.f32 %v870_v55, %v808_v50  ;;  %7747 = vmatpush1.bf16.msra.mxu1 %v12251_v25  ;;  %v739_v51 = vadd.f32 %v13157_v33, %v738_v48  ;;  %18475 = vst [vmem:[#allocation56_spill] sm:$0xff] %v13191_v53  ;;  %v13199_v48 = vpop.f32.mrb[18].mxu0  ;;  %v12252_v55 = vld [vmem:[#allocation9 + $0x30] sm:$0xff]  }
 0x1b3   :  { %v1543_v56 = vadd.f32 %v13146_v9, %v1542_v14  ;;  %v1675_v42 = vadd.f32 %v1674_v37, %v1612_v49  ;;  %7748 = vmatprep.subr.bf16.mxu1 %v18459_v62  ;;  %v810_v14 = vmul.f32 %v13191_v53, %v13191_v53  ;;  %18477 = vst [vmem:[#allocation58_spill] sm:$0xff] %v13199_v48  ;;  %v13206_v33 = vpop.f32.mrb[19].mxu0 }
 0x1b4   :  { %v740_v37 = vadd.f32 %v739_v51, %v13191_v53  ;;  %v872_v50 = vadd.f32 %v871_v18, %v809_v63  ;;  %18479 = vst [vmem:[#allocation60_spill] sm:$0xff] %v13206_v33  ;;  %v811_v63 = vmul.f32 %v13206_v33, %v13206_v33 }
 0x1b5   :  { %v1676_v16 = vadd.f32 %v1675_v42, %v1613_v2  ;;  %v13188_v10 = vpop.f32.mrb[52].mxu1  ;;  %v1544_v21 = vadd.f32 %v13162_v34, %v1543_v56 }
 0x1b6   :  { %18474 = vst [vmem:[#allocation55_spill] sm:$0xff] %v13188_v10  ;;  %v13194_v49 = vpop.f32.mrb[53].mxu1  ;;  %v873_v51 = vadd.f32 %v872_v50, %v810_v14  ;;  %v741_v9 = vadd.f32 %v740_v37, %v13206_v33  ;;  %7749 = vmatpush1.bf16.msra.mxu1 %v12252_v55  ;;  %v12254_v50 = vld [vmem:[#allocation9 + $0x38] sm:$0xff]   ;;  %v1617_v37 = vmul.f32 %v13188_v10, %v13188_v10  ;;  %v13225_v33 = vpop.f32.mrb[20].mxu0 }
 0x1b7   :  { %18476 = vst [vmem:[#allocation57_spill] sm:$0xff] %v13194_v49  ;;  %v1545_v25 = vadd.f32 %v1544_v21, %v13194_v49  ;;  %v1615_v2 = vmul.f32 %v13194_v49, %v13194_v49  ;;  %v1677_v56 = vadd.f32 %v1676_v16, %v1614_v27  ;;  %v13204_v42 = vpop.f32.mrb[54].mxu1  ;;  %7750 = vmatprep.subr.bf16.mxu1 %v18459_v62  ;;  %18481 = vst [vmem:[#allocation62_spill] sm:$0xff] %v13225_v33  ;;  %v13233_v49 = vpop.f32.mrb[21].mxu0 }
 0x1b8   :  { %18478 = vst [vmem:[#allocation59_spill] sm:$0xff] %v13204_v42  ;;  %v13208_v34 = vpop.f32.mrb[55].mxu1  ;;  %v812_v27 = vmul.f32 %v13183_v3, %v13183_v3  ;;  %v742_v16 = vadd.f32 %v13183_v3, %v741_v9  ;;  %v874_v14 = vadd.f32 %v873_v51, %v811_v63  ;;  %v1618_v9 = vmul.f32 %v13204_v42, %v13204_v42 }
 0x1b9   :  { %18480 = vst [vmem:[#allocation61_spill] sm:$0xff] %v13208_v34  ;;  %v1678_v18 = vadd.f32 %v1677_v56, %v1615_v2  ;;  %v1546_v21 = vadd.f32 %v1545_v25, %v13208_v34  ;;  %v1616_v53 = vmul.f32 %v13208_v34, %v13208_v34  ;;  %v813_v25 = vmul.f32 %v13199_v48, %v13199_v48 }
 0x1ba   :  { %v875_v56 = vadd.f32 %v874_v14, %v812_v27  ;;  %7751 = vmatpush1.bf16.msra.mxu1 %v12254_v50  ;;  %v743_v34 = vadd.f32 %v13199_v48, %v742_v16  ;;  %18483 = vst [vmem:[#allocation64_spill] sm:$0xff] %v13233_v49  ;;  %v13241_v16 = vpop.f32.mrb[22].mxu0  ;;  %v12255_v14 = vld [vmem:[#allocation9 + $0x40] sm:$0xff]  }
 0x1bb   :  { %v1547_v55 = vadd.f32 %v13188_v10, %v1546_v21  ;;  %v1679_v2 = vadd.f32 %v1678_v18, %v1616_v53  ;;  %7752 = vmatprep.subr.bf16.mxu1 %v18459_v62  ;;  %v814_v21 = vmul.f32 %v13233_v49, %v13233_v49  ;;  %18485 = vst [vmem:[#allocation66_spill] sm:$0xff] %v13241_v16  ;;  %v13248_v48 = vpop.f32.mrb[23].mxu0 }
 0x1bc   :  { %v744_v18 = vadd.f32 %v743_v34, %v13233_v49  ;;  %v876_v27 = vadd.f32 %v875_v56, %v813_v25  ;;  %18487 = vst [vmem:[#allocation68_spill] sm:$0xff] %v13248_v48  ;;  %v815_v25 = vmul.f32 %v13248_v48, %v13248_v48 }
 0x1bd   :  { %v1680_v51 = vadd.f32 %v1679_v2, %v1617_v37  ;;  %v13230_v63 = vpop.f32.mrb[56].mxu1  ;;  %v1548_v3 = vadd.f32 %v13204_v42, %v1547_v55 }
 0x1be   :  { %18482 = vst [vmem:[#allocation63_spill] sm:$0xff] %v13230_v63  ;;  %v13236_v53 = vpop.f32.mrb[57].mxu1  ;;  %v877_v34 = vadd.f32 %v876_v27, %v814_v21  ;;  %v745_v10 = vadd.f32 %v744_v18, %v13248_v48  ;;  %7753 = vmatpush1.bf16.msra.mxu1 %v12255_v14  ;;  %v12257_v27 = vld [vmem:[#allocation9 + $0x48] sm:$0xff]   ;;  %v1621_v18 = vmul.f32 %v13230_v63, %v13230_v63  ;;  %v13267_v48 = vpop.f32.mrb[24].mxu0 }
 0x1bf   :  { %18484 = vst [vmem:[#allocation65_spill] sm:$0xff] %v13236_v53  ;;  %v1549_v50 = vadd.f32 %v1548_v3, %v13236_v53  ;;  %v1619_v37 = vmul.f32 %v13236_v53, %v13236_v53  ;;  %v1681_v55 = vadd.f32 %v1680_v51, %v1618_v9  ;;  %v13246_v2 = vpop.f32.mrb[58].mxu1  ;;  %7754 = vmatprep.subr.bf16.mxu1 %v18459_v62  ;;  %18489 = vst [vmem:[#allocation70_spill] sm:$0xff] %v13267_v48  ;;  %v13275_v53 = vpop.f32.mrb[25].mxu0 }
 0x1c0   :  { %18486 = vst [vmem:[#allocation67_spill] sm:$0xff] %v13246_v2  ;;  %v13250_v42 = vpop.f32.mrb[59].mxu1  ;;  %v816_v9 = vmul.f32 %v13225_v33, %v13225_v33  ;;  %v746_v51 = vadd.f32 %v13225_v33, %v745_v10  ;;  %v878_v21 = vadd.f32 %v877_v34, %v815_v25  ;;  %v1622_v10 = vmul.f32 %v13246_v2, %v13246_v2 }
 0x1c1   :  { %18488 = vst [vmem:[#allocation69_spill] sm:$0xff] %v13250_v42  ;;  %v1682_v56 = vadd.f32 %v1681_v55, %v1619_v37  ;;  %v1550_v3 = vadd.f32 %v1549_v50, %v13250_v42  ;;  %v1620_v49 = vmul.f32 %v13250_v42, %v13250_v42  ;;  %v817_v50 = vmul.f32 %v13241_v16, %v13241_v16 }
 0x1c2   :  { %v879_v55 = vadd.f32 %v878_v21, %v816_v9  ;;  %7755 = vmatpush1.bf16.msra.mxu1 %v12257_v27  ;;  %v747_v42 = vadd.f32 %v13241_v16, %v746_v51  ;;  %18491 = vst [vmem:[#allocation72_spill] sm:$0xff] %v13275_v53  ;;  %v13283_v51 = vpop.f32.mrb[26].mxu0  ;;  %v12258_v21 = vld [vmem:[#allocation9 + $0x50] sm:$0xff]  }
 0x1c3   :  { %v1551_v14 = vadd.f32 %v13230_v63, %v1550_v3  ;;  %v1683_v37 = vadd.f32 %v1682_v56, %v1620_v49  ;;  %7756 = vmatprep.subr.bf16.mxu1 %v18459_v62  ;;  %v818_v3 = vmul.f32 %v13275_v53, %v13275_v53  ;;  %18492 = vst [vmem:[#allocation73_spill] sm:$0xff] %v13283_v51  ;;  %v13290_v16 = vpop.f32.mrb[27].mxu0 }
 0x1c4   :  { %v748_v56 = vadd.f32 %v747_v42, %v13275_v53  ;;  %v880_v9 = vadd.f32 %v879_v55, %v817_v50  ;;  %18494 = vst [vmem:[#allocation75_spill] sm:$0xff] %v13290_v16  ;;  %v13294_v42 = vld [vmem:[#allocation9 + $0xc0] sm:$0xff]   ;;  %v819_v55 = vmul.f32 %v13290_v16, %v13290_v16  ;;  %v13315_v26 = vpop.f32.mrb[28].mxu0 }
 0x1c5   :  { %v1684_v34 = vadd.f32 %v1683_v37, %v1621_v18  ;;  %v13272_v25 = vpop.f32.mrb[60].mxu1  ;;  %v1552_v33 = vadd.f32 %v13246_v2, %v1551_v14  ;;  %18495 = vst [vmem:[#allocation76_spill] sm:$0xff] %v13294_v42  ;;  %8042 = vmatpush1.bf16.msra.mxu0 %v13294_v42  ;;  %18497 = vst [vmem:[#allocation78_spill] sm:$0xff] %v13315_v26 }
 0x1c6   :  { %18490 = vst [vmem:[#allocation71_spill] sm:$0xff] %v13272_v25  ;;  %v13278_v49 = vpop.f32.mrb[61].mxu1  ;;  %v881_v63 = vadd.f32 %v880_v9, %v818_v3  ;;  %v749_v50 = vadd.f32 %v748_v56, %v13290_v16  ;;  %7757 = vmatpush1.bf16.msra.mxu1 %v12258_v21  ;;  %v12260_v9 = vld [vmem:[#allocation9 + $0x58] sm:$0xff]   ;;  %v1625_v21 = vmul.f32 %v13272_v25, %v13272_v25 }
 0x1c7   :  { %v1553_v27 = vadd.f32 %v1552_v33, %v13278_v49  ;;  %v1623_v18 = vmul.f32 %v13278_v49, %v13278_v49  ;;  %v1685_v14 = vadd.f32 %v1684_v34, %v1622_v10  ;;  %v13288_v37 = vpop.f32.mrb[62].mxu1  ;;  %7758 = vmatprep.subr.bf16.mxu1 %v18459_v62  ;;  %v820_v34 = vmul.f32 %v13267_v48, %v13267_v48 }
 0x1c8   :  { %18493 = vst [vmem:[#allocation74_spill] sm:$0xff] %v13288_v37  ;;  %v13292_v2 = vpop.f32.mrb[63].mxu1  ;;  %v750_v3 = vadd.f32 %v13267_v48, %v749_v50  ;;  %v882_v56 = vadd.f32 %v881_v63, %v819_v55  ;;  %8043 = vmatprep.subr.bf16.mxu0 %v18459_v62  ;;  %v821_v16 = vmul.f32 %v13283_v51, %v13283_v51 }
 0x1c9   :  { %v1686_v33 = vadd.f32 %v1685_v14, %v1623_v18  ;;  %v1554_v53 = vadd.f32 %v1553_v27, %v13292_v2  ;;  %v1624_v10 = vmul.f32 %v13292_v2, %v13292_v2  ;;  %v13311_v14 = vld [vmem:[#allocation9 + $0xc8] sm:$0xff]   ;;  %v1626_v50 = vmul.f32 %v13288_v37, %v13288_v37 }
 0x1ca   :  { %18496 = vst [vmem:[#allocation77_spill] sm:$0xff] %v13311_v14  ;;  %v883_v42 = vadd.f32 %v882_v56, %v820_v34  ;;  %7759 = vmatpush1.bf16.msra.mxu1 %v12260_v9  ;;  %v751_v63 = vadd.f32 %v13283_v51, %v750_v3  ;;  %8044 = vmatpush1.bf16.msra.mxu0 %v13311_v14  ;;  %v12261_v3 = vld [vmem:[#allocation9 + $0x60] sm:$0xff]  }
 0x1cb   :  { %v1555_v18 = vadd.f32 %v13272_v25, %v1554_v53  ;;  %v1687_v27 = vadd.f32 %v1686_v33, %v1624_v10  ;;  %v13321_v33 = vpop.f32.mrb[29].mxu0  ;;  %7760 = vmatprep.subr.bf16.mxu1 %v18459_v62  ;;  %8045 = vmatprep.subr.bf16.mxu0 %v18459_v62 }
 0x1cc   :  { %18498 = vst [vmem:[#allocation79_spill] sm:$0xff] %v13321_v33  ;;  %v752_v10 = vadd.f32 %v751_v63, %v13321_v33  ;;  %v822_v34 = vmul.f32 %v13321_v33, %v13321_v33  ;;  %v884_v56 = vadd.f32 %v883_v42, %v821_v16  ;;  %v13328_v9 = vpop.f32.mrb[30].mxu0  ;;  %v824_v42 = vmul.f32 %v13315_v26, %v13315_v26 }
 0x1cd   :  { %v1556_v55 = vadd.f32 %v13288_v37, %v1555_v18  ;;  %v1688_v53 = vadd.f32 %v1687_v27, %v1625_v21  ;;  %18499 = vst [vmem:[#allocation80_spill] sm:$0xff] %v13328_v9  ;;  %v13331_v21 = vpop.f32.mrb[31].mxu0  ;;  %v13333_v18 = vld [vmem:[#allocation9 + $0xd0] sm:$0xff]   ;;  %v12263_v37 = vld [vmem:[#allocation9 + $0x68] sm:$0xff]  }
 0x1ce   :  { %18500 = vst [vmem:[#allocation81_spill] sm:$0xff] %v13331_v21  ;;  %18501 = vst [vmem:[#allocation82_spill] sm:$0xff] %v13333_v18  ;;  %v885_v27 = vadd.f32 %v884_v56, %v822_v34  ;;  %v753_v14 = vadd.f32 %v752_v10, %v13331_v21  ;;  %v823_v63 = vmul.f32 %v13331_v21, %v13331_v21  ;;  %7761 = vmatpush1.bf16.msra.mxu1 %v12261_v3  ;;  %v13344_v10 = vld [vmem:[#allocation9 + $0xd8] sm:$0xff]   ;;  %v13348_v3 = vpop.f32.mrb[32].mxu0 }
 0x1cf   :  { %v1557_v51 = vrot.slane %v1556_v55, 4  ;;  %v1689_v48 = vadd.f32 %v1688_v53, %v1626_v50  ;;  %7762 = vmatprep.subr.bf16.mxu1 %v18459_v62  ;;  %8046 = vmatpush1.bf16.msra.mxu0 %v13333_v18  ;;  %18502 = vst [vmem:[#allocation83_spill] sm:$0xff] %v13344_v10  ;;  %18503 = vst [vmem:[#allocation84_spill] sm:$0xff] %v13348_v3 }
 0x1d0   :  { %v754_v50 = vadd.f32 %v13315_v26, %v753_v14  ;;  %v886_v53 = vadd.f32 %v885_v27, %v823_v63  ;;  %8047 = vmatprep.subr.bf16.mxu0 %v18459_v62  ;;  %v13351_v14 = vpop.f32.mrb[33].mxu0 }
 0x1d1   :  { %v1558_v33 = vadd.f32 %v1557_v51, %v1556_v55  ;;  %v1690_v16 = vrot.slane %v1689_v48, 4  ;;  %v825_v51 = vmul.f32 %v13328_v9, %v13328_v9  ;;  %18504 = vst [vmem:[#allocation85_spill] sm:$0xff] %v13351_v14  ;;  %v826_v27 = vmul.f32 %v13351_v14, %v13351_v14 }
 0x1d2   :  { %v887_v55 = vadd.f32 %v886_v53, %v824_v42  ;;  %7763 = vmatpush1.bf16.msra.mxu1 %v12263_v37  ;;  %v755_v21 = vadd.f32 %v13328_v9, %v754_v50  ;;  %v12264_v37 = vld [vmem:[#allocation9 + $0x70] sm:$0xff]   ;;  %v2834_v42 = vld [vmem:[#allocation2 + $0x4] sm:$0xf] }
 0x1d3   :  { %v1559_v34 = vrot.slane %v1558_v33, 2  ;;  %v1691_v56 = vadd.f32 %v1690_v16, %v1689_v48  ;;  %7764 = vmatprep.subr.bf16.mxu1 %v18459_v62  ;;  %8048 = vmatpush1.bf16.msra.mxu0 %v13344_v10  ;;  %v13358_v16 = vpop.f32.mrb[34].mxu0  ;;  %v13363_v9 = vld [vmem:[#allocation9 + $0xe0] sm:$0xff]  }
 0x1d4   :  { %v756_v48 = vadd.f32 %v755_v21, %v13351_v14  ;;  %v888_v63 = vadd.f32 %v887_v55, %v825_v51  ;;  %18505 = vst [vmem:[#allocation86_spill] sm:$0xff] %v13358_v16  ;;  %8049 = vmatprep.subr.bf16.mxu0 %v18459_v62  ;;  %18507 = vst [vmem:[#allocation88_spill] sm:$0xff] %v13363_v9  ;;  %v2833_v51 = vld [vmem:[#allocation2] sm:$0xe]  ;;  %v2835_v55 = vld [vmem:[#allocation2 + $0x8] sm:$0x1]  ;;  %v829_v17 = vmul.f32 %v13358_v16, %v13358_v16 }
 0x1d5   :  { %v1560_v18 = vadd.f32 %v1559_v34, %v1558_v33  ;;  %v1692_v25 = vrot.slane %v1691_v56, 2  ;;  %v13361_v33 = vpop.f32.mrb[35].mxu0  ;;  %v3030_v34 = vrot.slane %v2834_v42, 5 }
 0x1d6   :  { %18506 = vst [vmem:[#allocation87_spill] sm:$0xff] %v13361_v33  ;;  %v889_v26 = vadd.f32 %v888_v63, %v826_v27  ;;  %v757_v21 = vadd.f32 %v756_v48, %v13361_v33  ;;  %v827_v14 = vmul.f32 %v13361_v33, %v13361_v33  ;;  %7765 = vmatpush1.bf16.msra.mxu1 %v12264_v37  ;;  %v12266_v27 = vld [vmem:[#allocation9 + $0x78] sm:$0xff]   ;;  %v18508_v63 = vmov 0 }
 0x1d7   :  { %v1561_v53 = vrot.slane %v1560_v18, 1  ;;  %v1693_v50 = vadd.f32 %v1692_v25, %v1691_v56  ;;  %7766 = vmatprep.subr.bf16.mxu1 %v18459_v62  ;;  %8050 = vmatpush1.bf16.msra.mxu0 %v13363_v9  ;;  %v828_v25 = vmul.f32 %v13348_v3, %v13348_v3  ;;  %v18509_v63 = vsel %vm13373_vm2, 4294967295, %v18508_v63  ;;  %v13380_v9 = vld [vmem:[#allocation9 + $0xe8] sm:$0xff]  }
 0x1d8   :  { %v758_v56 = vadd.f32 %v13348_v3, %v757_v21  ;;  %v890_v48 = vadd.f32 %v889_v26, %v827_v14  ;;  %18510 = vst [vmem:[#allocation89_spill] sm:$0xff] %v18509_v63  ;;  %v10753_v37 = vrot.slane %v2833_v51, 9  ;;  %8051 = vmatprep.subr.bf16.mxu0 %v18459_v62  ;;  %v3033_v33 = vrot.slane %v2835_v55, 5  ;;  %18511 = vst [vmem:[#allocation90_spill] sm:$0xff] %v13380_v9  ;;  %v13384_v26 = vpop.f32.mrb[36].mxu0 }
 0x1d9   :  { %v1562_v10 = vadd.f32 %v1561_v53, %v1560_v18  ;;  %v1694_v36 = vrot.slane %v1693_v50, 1  ;;  %v3032_v53 = vrot.slane %v3030_v34, 4  ;;  %18512 = vst [vmem:[#allocation91_spill] sm:$0xff] %v13384_v26  ;;  %v13391_v51 = vpop.f32.mrb[37].mxu0 }
 0x1da   :  { %v891_v21 = vadd.f32 %v890_v48, %v828_v25  ;;  %7767 = vmatpush1.bf16.msra.mxu1 %v12266_v27  ;;  %v759_v14 = vadd.f32 %v13358_v16, %v758_v56  ;;  %18513 = vst [vmem:[#allocation92_spill] sm:$0xff] %v13391_v51  ;;  %v13397_v25 = vld [vmem:[#allocation9 + $0xf0] sm:$0xff]   ;;  %v13402_v27 = vpop.f32.mrb[38].mxu0 }
 0x1db   :  { %v1695_v18 = vadd.f32 %v1694_v36, %v1693_v50  ;;  %v13377_v42 = vmul.f32 0.001953125, %v1562_v10  ;;  %v3031_v36 = vsel %vm13373_vm2, %v10753_v37, %v3030_v34  ;;  %v3034_v55 = vsel %vm13373_vm2, %v3032_v53, %v3033_v33  ;;  %11825 = vmatprep.subr.bf16.mxu1 %v18459_v62  ;;  %8052 = vmatpush1.bf16.msra.mxu0 %v13380_v9  ;;  %v12267_v37 = vld [vmem:[#allocation2] sm:$0xff]   ;;  %v13407_v3 = vpop.f32.mrb[39].mxu0  ;;  %v2837_v9 = vld [vmem:[#allocation2 + $0x10] sm:$0xf] }
 0x1dc   :  { %18514 = vst [vmem:[#allocation93_spill] sm:$0xff] %v13397_v25  ;;  %v760_v56 = vadd.f32 %v759_v14, %v13391_v51  ;;  %v830_v34 = vmul.f32 %v13391_v51, %v13391_v51  ;;  %v892_v48 = vadd.f32 %v891_v21, %v829_v17  ;;  %18515 = vst [vmem:[#allocation94_spill] sm:$0xff] %v13402_v27  ;;  %8053 = vmatprep.subr.bf16.mxu0 %v18459_v62  ;;  %v13412_v21 = vpop.f32.mrb[40].mxu0 }
 0x1dd   :  { %v1697_v10 = vmul.f32 0.001953125, %v1695_v18  ;;  %v1698_v50 = vmul.f32 %v13377_v42, %v13377_v42  ;;  %v2836_v18 = vld [vmem:[#allocation2 + $0xc] sm:$0xe]  ;;  %v832_v33 = vmul.f32 %v13384_v26, %v13384_v26  ;;  %v10785_v53 = vcombine.low %v3031_v36, %v3034_v55  ;;  %18516 = vst [vmem:[#allocation95_spill] sm:$0xff] %v13407_v3  ;;  %18517 = vst [vmem:[#allocation96_spill] sm:$0xff] %v13412_v21  ;;  %v13414_v43 = vpop.f32.mrb[41].mxu0 }
 0x1de   :  { %v10754_v14 = vrot.slane %v2836_v18, 9  ;;  %v893_v20 = vadd.f32 %v892_v48, %v830_v34  ;;  %v761_v51 = vadd.f32 %v760_v56, %v13407_v3  ;;  %v831_v17 = vmul.f32 %v13407_v3, %v13407_v3  ;;  %18518 = vst [vmem:[#allocation97_spill] sm:$0xff] %v13414_v43  ;;  %v13420_v34 = vld [vmem:[#allocation9 + $0xf8] sm:$0xff]   ;;  %v13422_v18 = vpop.f32.mrb[42].mxu0  ;;  %v12420_v3 = vld [vmem:[#allocation9 + $0x80] sm:$0xff]  }
 0x1df   :  { %v1699_v16 = vsub.f32 %v1697_v10, %v1698_v50  ;;  %v3037_v10 = vrot.slane %v2837_v9, 5  ;;  %7768 = vmatprep.mubr.bf16.mxu1 %v10785_v53  ;;  %8054 = vmatpush1.bf16.msra.mxu0 %v13397_v25  ;;  %v833_v36 = vmul.f32 %v13402_v27, %v13402_v27  ;;  %18519 = vst [vmem:[#allocation98_spill] sm:$0xff] %v13420_v34  ;;  %18520 = vst [vmem:[#allocation99_spill] sm:$0xff] %v13422_v18  ;;  %v937_v9 = vlaneseq  ;;  %v13427_v53 = vpop.f32.mrb[43].mxu0 }
 0x1e0   :  { %7769 = vmatmul.mubr.bf16.vlgmr.msra.gmra.mrb[64].mxu1 %v12267_v37  ;;  %v762_v55 = vadd.f32 %v13384_v26, %v761_v51  ;;  %v894_v56 = vadd.f32 %v893_v20, %v831_v17  ;;  %8055 = vmatprep.subr.bf16.mxu0 %v18459_v62  ;;  %18521 = vst [vmem:[#allocation100_spill] sm:$0xff] %v13427_v53  ;;  %v3413_v26 = vld [vmem:[#allocation2 + $0x4] sm:$0xf] }
 0x1e1   :  { %v1700_v50 = vmax.f32 %v1699_v16, 0.0  ;;  %v3039_v48 = vrot.slane %v3037_v10, 4  ;;  %v3038_v39 = vsel %vm13373_vm2, %v10754_v14, %v3037_v10  ;;  %11841 = vmatpush1.bf16.msra.mxu1 %v12420_v3  ;;  %v834_v20 = vmul.f32 %v13414_v43, %v13414_v43 }
 0x1e2   :  { %v895_v37 = vadd.f32 %v894_v56, %v832_v33  ;;  %v763_v51 = vadd.f32 %v13402_v27, %v762_v55  ;;  %11826 = vmatprep.subr.bf16.mxu1 %v18459_v62  ;;  %v12269_v55 = vld [vmem:[#allocation2 + $0xc] sm:$0xff]   ;;  %v835_v56 = vmul.f32 %v13427_v53, %v13427_v53  ;;  %v836_v63 = vmul.f32 %v13412_v21, %v13412_v21 }
 0x1e3   :  { %v1701_v16 = vadd.f32 1e-05, %v1700_v50  ;;  %v3041_v17 = vsel %vm13373_vm2, %v3039_v48, %v3040_v30  ;;  %v13434_v50 = vpop.f32.mrb[44].mxu0  ;;  %8056 = vmatpush1.bf16.msra.mxu0 %v13420_v34  ;;  %v3416_v30 = vld [vmem:[#allocation2 + $0x10] sm:$0xf] }
 0x1e4   :  { %18522 = vst [vmem:[#allocation101_spill] sm:$0xff] %v13434_v50  ;;  %v10786_v14 = vcombine.low %v3038_v39, %v3041_v17  ;;  %v13437_v10 = vpop.f32.mrb[45].mxu0  ;;  %v764_v3 = vadd.f32 %v763_v51, %v13414_v43  ;;  %v896_v33 = vadd.f32 %v895_v37, %v833_v36  ;;  %8314 = vmatprep.subr.bf16.mxu0 %v18459_v62  ;;  %v3412_v48 = vld [vmem:[#allocation2] sm:$0xc]  ;;  %v938_v17 = vshrl.u32 %v937_v9, 7 }
 0x1e5   :  { %12412 = vrsqrt.f32 %v1701_v16  ;;  %18523 = vst [vmem:[#allocation102_spill] sm:$0xff] %v13437_v10  ;;  %v13443_v27 = vpop.f32.mrb[46].mxu0  ;;  %v3609_v16 = vrot.slane %v3413_v26, 6  ;;  %v3414_v37 = vld [vmem:[#allocation2 + $0x8] sm:$0x3]  ;;  %v3616_v25 = vrot.slane %v3416_v30, 6  ;;  %v837_v9 = vmul.f32 %v13422_v18, %v13422_v18 }
 0x1e6   :  { %18524 = vst [vmem:[#allocation103_spill] sm:$0xff] %v13443_v27  ;;  %7776 = vmatprep.mubr.bf16.mxu1 %v10786_v14  ;;  %v13446_v39 = vpop.f32.mrb[47].mxu0  ;;  %v897_v51 = vadd.f32 %v896_v33, %v834_v20  ;;  %v765_v36 = vadd.f32 %v764_v3, %v13427_v53  ;;  %v3415_v43 = vld [vmem:[#allocation2 + $0xc] sm:$0xc]  ;;  %v3417_v14 = vld [vmem:[#allocation2 + $0x14] sm:$0x3]  ;;  %v838_v46 = vmul.f32 %v13437_v10, %v13437_v10 }
 0x1e7   :  { %18525 = vst [vmem:[#allocation104_spill] sm:$0xff] %v13446_v39  ;;  %v13451_v34 = vpop.f32.mrb[48].mxu0  ;;  %v12421_v27 = vld [vmem:[#allocation9 + $0x88] sm:$0xff]   ;;  %v10817_v33 = vrot.slane %v3412_v48, 10  ;;  %v10818_v30 = vrot.slane %v3415_v43, 10 }
 0x1e8   :  { %18526 = vst [vmem:[#allocation105_spill] sm:$0xff] %v13451_v34  ;;  %11842 = vmatpush1.bf16.msra.mxu1 %v12421_v27  ;;  %v13453_v26 = vpop.f32.mrb[49].mxu0  ;;  %v766_v20 = vadd.f32 %v13412_v21, %v765_v36  ;;  %v898_v3 = vadd.f32 %v897_v51, %v835_v56  ;;  %v3611_v34 = vrot.slane %v3609_v16, 4  ;;  %v3612_v27 = vrot.slane %v3414_v37, 6  ;;  %v12422_v51 = vld [vmem:[#allocation9 + $0x90] sm:$0xff]  }
 0x1e9   :  { %18527 = vst [vmem:[#allocation106_spill] sm:$0xff] %v13453_v26  ;;  %11827 = vmatprep.subr.bf16.mxu1 %v18459_v62  ;;  %7777 = vmatmul.mubr.bf16.gmra.mrb[68].mxu1 %v12269_v55  ;;  %v13459_v53 = vpop.f32.mrb[50].mxu0  ;;  %v18529_v26 = vmov 0  ;;  %v3618_v36 = vrot.slane %v3616_v25, 4  ;;  %v3619_v56 = vrot.slane %v3417_v14, 6  ;;  %v839_v14 = vmul.f32 %v13446_v39, %v13446_v39 }
 0x1ea   :  { %18528 = vst [vmem:[#allocation107_spill] sm:$0xff] %v13459_v53  ;;  %v899_v35 = vadd.f32 %v898_v3, %v836_v63  ;;  %v18530_v26 = vsel %vm13465_vm5, 4294967295, %v18529_v26  ;;  %v767_v55 = vadd.f32 %v13422_v18, %v766_v20  ;;  %v13470_v48 = vpop.f32.mrb[51].mxu0  ;;  %v1492_v37 = vld [vmem:[%s18232_s2] sm:$0x1]  ;;  %v13478_v63 = vsub.s32 0, %v938_v17 }
 0x1eb   :  { %18531 = vst [vmem:[#allocation108_spill] sm:$0xff] %v18530_v26  ;;  %18532 = vst [vmem:[#allocation109_spill] sm:$0xff] %v13470_v48  ;;  %v13475_v43 = vpop.f32.mrb[52].mxu0  ;;  %v13495_v17 = vsel %vm13465_vm5, %v10818_v30, %v3616_v25  ;;  %v12426_v30 = vld [vmem:[#allocation9 + $0xb0] sm:$0xff]   ;;  %v18563_v26 = vld [vmem:[#allocation35_spill] sm:$0xff] }
 0x1ec   :  { %11843 = vmatpush1.bf16.msra.mxu1 %v12422_v51  ;;  %18533 = vst [vmem:[#allocation110_spill] sm:$0xff] %v13475_v43  ;;  %18534 = vst [vmem:[#allocation111_spill] sm:$0xff] %v13478_v63  ;;  %v768_v3 = vadd.f32 %v767_v55, %v13437_v10  ;;  %v900_v21 = vadd.f32 %v899_v35, %v837_v9  ;;  %v13483_v20 = vpop.f32.mrb[53].mxu0  ;;  %v13487_v51 = vsel %vm13465_vm5, %v10817_v33, %v3609_v16  ;;  %v12423_v16 = vld [vmem:[#allocation9 + $0x98] sm:$0xff]  }
 0x1ed   :  { %11828 = vmatprep.subr.bf16.mxu1 %v18459_v62  ;;  %18535 = vst [vmem:[#allocation112_spill] sm:$0xff] %v13483_v20  ;;  %18536 = vst [vmem:[#allocation113_spill] sm:$0xff] %v13487_v51  ;;  %v13491_v43 = vsel %vm13465_vm5, %v3611_v34, %v3612_v27  ;;  %v13497_v55 = vpop.f32.mrb[54].mxu0  ;;  %v13502_v20 = vsel %vm13465_vm5, %v3618_v36, %v3619_v56  ;;  %v1493_v34 = vld [vmem:[%s18233_s3] sm:$0x1]  ;;  %v13521_v27 = vmul.f32 %v13434_v50, %v13434_v50  ;;  %v18580_v51 = vld [vmem:[#allocation61_spill] sm:$0xff] }
 0x1ee   :  { %18537 = vst [vmem:[#allocation114_spill] sm:$0xff] %v13491_v43  ;;  %18538 = vst [vmem:[#allocation115_spill] sm:$0xff] %v13495_v17  ;;  %v901_v9 = vadd.f32 %v900_v21, %v838_v46  ;;  %v769_v10 = vadd.f32 %v768_v3, %v13446_v39  ;;  %v12424_v3 = vld [vmem:[#allocation9 + $0xa0] sm:$0xff]   ;;  %v18557_v39 = vld [vmem:[#allocation28_spill] sm:$0xff] }
 0x1ef   :  { %v12413_v18 = vpop.eup %12412  ;;  %18539 = vst [vmem:[#allocation116_spill] sm:$0xff] %v13497_v55  ;;  %18540 = vst [vmem:[#allocation117_spill] sm:$0xff] %v13502_v20  ;;  %v18575_v20 = vld [vmem:[#allocation51_spill] sm:$0xff]  ;;  %v18577_v17 = vld [vmem:[#allocation57_spill] sm:$0xff] }
 0x1f0   :  { %v1703_v35 = vmul.f32 %v12413_v18, %v1492_v37  ;;  %11844 = vmatpush1.bf16.msra.mxu1 %v12423_v16  ;;  %v13513_v46 = vadd.f32 %v13434_v50, %v769_v10  ;;  %v13515_v21 = vadd.f32 %v901_v9, %v839_v14  ;;  %18543 = vst [vmem:[#allocation120_spill] sm:$0xff] %v13521_v27  ;;  %v13533_v37 = vpop.f32.mrb[55].mxu0  ;;  %v18554_v18 = vld [vmem:[#allocation27_spill] sm:$0xff]  ;;  %v18556_v50 = vld [vmem:[#allocation26_spill] sm:$0xff]  ;;  %v18572_v27 = vld [vmem:[#allocation53_spill] sm:$0xff] }
 0x1f1   :  { %11829 = vmatprep.subr.bf16.mxu1 %v18459_v62  ;;  %18544 = vst [vmem:[#allocation121_spill] sm:$0xff] %v13533_v37 }
 0x1f2   :  { %v1704_v25 = vmul.f32 %v1703_v35, %v13377_v42  ;;  %v13510_v33 = vrot.slane %v1703_v35, %v13478_v63  ;;  %18541 = vst [vmem:[#allocation118_spill] sm:$0xff] %v13513_v46  ;;  %18542 = vst [vmem:[#allocation119_spill] sm:$0xff] %v13515_v21  ;;  %v18571_v21 = vld [vmem:[#allocation49_spill] sm:$0xff] }
 0x1f4   :  { %v1705_v42 = vsub.f32 %v1493_v34, %v1704_v25  ;;  %v1770_v36 = vmul.f32 %v13510_v33, %v13278_v49  ;;  %v1771_v10 = vmul.f32 %v13510_v33, %v13292_v2  ;;  %v13531_v56 = vmul.f32 %v13510_v33, %v12839_v59  ;;  %11845 = vmatpush1.bf16.msra.mxu1 %v12424_v3  ;;  %v13551_v2 = vpop.f32.mrb[56].mxu0 }
 0x1f5   :  { %v13537_v14 = vmul.f32 %v13510_v33, %v12843_v61  ;;  %v13541_v35 = vmul.f32 %v12837_v58, %v13510_v33  ;;  %v13545_v49 = vmul.f32 %v12841_v60, %v13510_v33  ;;  %v13549_v59 = vmul.f32 %v13510_v33, %v12859_v8  ;;  %18545 = vst [vmem:[#allocation122_spill] sm:$0xff] %v13551_v2  ;;  %v13569_v8 = vpop.f32.mrb[57].mxu0  ;;  %v18559_v2 = vld [vmem:[#allocation31_spill] sm:$0xff] }
 0x1f6   :  { %11830 = vmatprep.subr.bf16.mxu1 %v18459_v62  ;;  %v13555_v9 = vrot.slane %v1705_v42, %v13478_v63  ;;  %v13559_v61 = vmul.f32 %v13510_v33, %v12866_v13  ;;  %v13563_v58 = vmul.f32 %v12856_v6, %v13510_v33  ;;  %v13567_v60 = vmul.f32 %v12864_v12, %v13510_v33  ;;  %v13587_v12 = vpop.f32.mrb[58].mxu0 }
 0x1f7   :  { %18546 = vst [vmem:[#allocation123_spill] sm:$0xff] %v13569_v8  ;;  %v13573_v16 = vmul.f32 %v13510_v33, %v12879_v24  ;;  %v13577_v34 = vmul.f32 %v13510_v33, %v12886_v29  ;;  %v13581_v13 = vmul.f32 %v12876_v22, %v13510_v33  ;;  %v13585_v6 = vmul.f32 %v12884_v28, %v13510_v33  ;;  %v12425_v22 = vld [vmem:[#allocation9 + $0xa8] sm:$0xff]   ;;  %v12427_v8 = vld [vmem:[#allocation9 + $0xb8] sm:$0xff]  }
 0x1f8   :  { %18547 = vst [vmem:[#allocation124_spill] sm:$0xff] %v13587_v12  ;;  %v1840_v25 = vadd.f32 %v13555_v9, %v1770_v36  ;;  %v1841_v42 = vadd.f32 %v13555_v9, %v1771_v10  ;;  %v13593_v24 = vmul.f32 %v13510_v33, %v12899_v40  ;;  %v13597_v29 = vmul.f32 %v13510_v33, %v12906_v45 }
 0x1f9   :  { %11846 = vmatpush1.bf16.msra.mxu1 %v12425_v22  ;;  %v13601_v28 = vmul.f32 %v12896_v38, %v13510_v33  ;;  %v13605_v3 = vmul.f32 %v12904_v44, %v13510_v33  ;;  %v13609_v36 = vmul.f32 %v13510_v33, %v12933_v4  ;;  %v13613_v40 = vmul.f32 %v13510_v33, %v12943_v15 }
 0x1fa   :  { %11831 = vmatprep.subr.bf16.mxu1 %v18459_v62  ;;  %v1904_v45 = vmax.f32 %v1840_v25, 0.0  ;;  %v1905_v10 = vmax.f32 %v1841_v42, 0.0  ;;  %v13618_v38 = vmul.f32 %v12926_v0, %v13510_v33  ;;  %v13622_v44 = vmul.f32 %v12940_v11, %v13510_v33 }
 0x1fb   :  { %v13626_v4 = vmul.f32 %v13510_v33, %v12973_v47  ;;  %v13630_v15 = vmul.f32 %v13510_v33, %v12985_v1  ;;  %v13634_v25 = vmul.f32 %v12967_v41, %v13510_v33  ;;  %v13638_v0 = vmul.f32 %v12980_v57, %v13510_v33  ;;  %v13648_v1 = vpop.f32.mrb[59].mxu0 }
 0x1fc   :  { %v11341_v42 = vpack.c.bf16 %v1904_v45, %v1904_v45  ;;  %v11342_v22 = vpack.c.bf16 %v1905_v10, %v1905_v10  ;;  %v13642_v11 = vmul.f32 %v13510_v33, %v13000_v23  ;;  %v13646_v47 = vmul.f32 %v13510_v33, %v13007_v32  ;;  %18548 = vst [vmem:[#allocation125_spill] sm:$0xff] %v13648_v1  ;;  %v13666_v45 = vpop.f32.mrb[60].mxu0  ;;  %v18560_v1 = vld [vmem:[#allocation33_spill] sm:$0xff] }
 0x1fd   :  { %11847 = vmatpush1.bf16.msra.mxu1 %v12426_v30  ;;  %v13652_v41 = vmul.f32 %v12997_v19, %v13510_v33  ;;  %v13656_v57 = vmul.f32 %v13005_v31, %v13510_v33  ;;  %v13660_v23 = vmul.f32 %v13510_v33, %v13020_v54  ;;  %v13664_v32 = vmul.f32 %v13510_v33, %v13027_v7  ;;  %v13677_v54 = vpop.f32.mrb[61].mxu0 }
 0x1fe   :  { %18549 = vst [vmem:[#allocation126_spill] sm:$0xff] %v13666_v45  ;;  %11832 = vmatprep.subr.bf16.mxu1 %v18459_v62  ;;  %v2343_v30 = vrot.slane %v11341_v42, 7  ;;  %v2345_v10 = vrot.slane %v11342_v22, 7  ;;  %v13671_v19 = vmul.f32 %v13017_v52, %v13510_v33  ;;  %v13675_v31 = vmul.f32 %v13025_v5, %v13510_v33  ;;  %18550 = vst [vmem:[#allocation127_spill] sm:$0xff] %v13677_v54  ;;  %v18555_v22 = vld [vmem:[#allocation29_spill] sm:$0xff]  ;;  %v13701_v45 = vpop.f32.mrb[62].mxu0 }
 0x1ff   :  { %v18551_v7 = vmov 0  ;;  %v13687_v42 = vmul.f32 %v13510_v33, %v18554_v18  ;;  %v13691_v52 = vmul.f32 %v13510_v33, %v18555_v22  ;;  %v13695_v5 = vmul.f32 %v18556_v50, %v13510_v33  ;;  %18558 = vst [vmem:[#allocation27_spill] sm:$0xff] %v13701_v45  ;;  %v18561_v50 = vld [vmem:[#allocation30_spill] sm:$0xff]  ;;  %v13774_v43 = vpop.f32.mrb[63].mxu0 }
 0x200   :  { %v18552_v7 = vsel %vm13681_vm8, 4294967295, %v18551_v7  ;;  %v13699_v63 = vmul.f32 %v18557_v39, %v13510_v33  ;;  %v2344_v54 = vrot.slane %v2343_v30, 4  ;;  %v2347_v12 = vrot.slane %v2345_v10, 4  ;;  %2539 = vst [vmem:[#allocation2 + $0x1b0] sm:$0xe] %v2343_v30  ;;  %v18562_v39 = vld [vmem:[#allocation32_spill] sm:$0xff] }
 0x201   :  { %18553 = vst [vmem:[#allocation128_spill] sm:$0xff] %v18552_v7  ;;  %v13705_v18 = vmul.f32 %v13510_v33, %v18559_v2  ;;  %v13709_v22 = vmul.f32 %v13510_v33, %v18560_v1  ;;  %11848 = vmatpush1.bf16.msra.mxu1 %v12427_v8  ;;  %v13713_v55 = vmul.f32 %v18561_v50, %v13510_v33  ;;  %v18564_v2 = vld [vmem:[#allocation37_spill] sm:$0xff]  ;;  %v18565_v1 = vld [vmem:[#allocation34_spill] sm:$0xff]  ;;  %v18566_v50 = vld [vmem:[#allocation36_spill] sm:$0xff] }
 0x202   :  { %v13717_v45 = vmul.f32 %v18562_v39, %v13510_v33  ;;  %v13721_v37 = vmul.f32 %v13510_v33, %v18563_v26  ;;  %v13725_v53 = vmul.f32 %v13510_v33, %v18564_v2  ;;  %11833 = vmatprep.subr.bf16.mxu1 %v18459_v62  ;;  %v2346_v8 = vsel %vm13681_vm8, %v2344_v54, %v2345_v10  ;;  %v18567_v26 = vld [vmem:[#allocation41_spill] sm:$0xff]  ;;  %v18569_v10 = vld [vmem:[#allocation39_spill] sm:$0xff] }
 0x203   :  { %2541 = vst [vmem:[#allocation2 + $0x1b8] sm:$0x1] %v2347_v12  ;;  %v13732_v30 = vmul.f32 %v18565_v1, %v13510_v33  ;;  %v13736_v39 = vmul.f32 %v18566_v50, %v13510_v33  ;;  %v13740_v48 = vmul.f32 %v13510_v33, %v18567_v26  ;;  %2540 = vst [vmem:[#allocation2 + $0x1b4] sm:$0xf] %v2346_v8  ;;  %v18568_v2 = vld [vmem:[#allocation45_spill] sm:$0xff]  ;;  %v18570_v54 = vld [vmem:[#allocation43_spill] sm:$0xff] }
 0x204   :  { %v13744_v46 = vmul.f32 %v13510_v33, %v18568_v2  ;;  %v13748_v12 = vmul.f32 %v18569_v10, %v13510_v33  ;;  %v13752_v1 = vmul.f32 %v18570_v54, %v13510_v33  ;;  %v13756_v50 = vmul.f32 %v13510_v33, %v18571_v21  ;;  %v18573_v8 = vld [vmem:[#allocation47_spill] sm:$0xff]  ;;  %18578 = vst [vmem:[#allocation28_spill] sm:$0xff] %v13774_v43  ;;  %v18579_v21 = vld [vmem:[#allocation76_spill] sm:$0xff]  ;;  %v18588_v43 = vld [vmem:[#allocation69_spill] sm:$0xff] }
 0x205   :  { %v13760_v26 = vmul.f32 %v13510_v33, %v18572_v27  ;;  %v13764_v2 = vmul.f32 %v18573_v8, %v13510_v33  ;;  %v13768_v10 = vmul.f32 %v18575_v20, %v13510_v33  ;;  %v13772_v54 = vmul.f32 %v13510_v33, %v18577_v17  ;;  %11849 = vmatpush1.bf16.msra.mxu1 %v18579_v21  ;;  %v18582_v7 = vld [vmem:[#allocation55_spill] sm:$0xff] }
 0x206   :  { %v13779_v27 = vmul.f32 %v13510_v33, %v18580_v51  ;;  %v13783_v8 = vmul.f32 %v18582_v7, %v13510_v33  ;;  %11834 = vmatprep.subr.bf16.mxu1 %v18459_v62  ;;  %v13796_v21 = vmul.f32 %v13510_v33, %v18588_v43  ;;  %v18589_v51 = vld [vmem:[#allocation63_spill] sm:$0xff]  ;;  %v13816_v43 = vadd.f32 %v13555_v9, %v13531_v56 }
 0x207   :  { %18574 = vst [vmem:[#allocation29_spill] sm:$0xff] %v13764_v2  ;;  %18576 = vst [vmem:[#allocation26_spill] sm:$0xff] %v13768_v10  ;;  %v18584_v2 = vld [vmem:[#allocation59_spill] sm:$0xff]  ;;  %v18586_v10 = vld [vmem:[#allocation65_spill] sm:$0xff]  ;;  %v13836_v56 = vadd.f32 %v13555_v9, %v13559_v61  ;;  %v13857_v61 = vadd.f32 %v13555_v9, %v13581_v13  ;;  %v13878_v13 = vadd.f32 %v13555_v9, %v13605_v3 }
 0x208   :  { %18581 = vst [vmem:[#allocation31_spill] sm:$0xff] %v13779_v27  ;;  %18583 = vst [vmem:[#allocation33_spill] sm:$0xff] %v13783_v8  ;;  %v13787_v20 = vmul.f32 %v18584_v2, %v13510_v33  ;;  %v13791_v17 = vmul.f32 %v13510_v33, %v18586_v10  ;;  %v13800_v27 = vmul.f32 %v18589_v51, %v13510_v33  ;;  %v18590_v7 = vld [vmem:[#allocation67_spill] sm:$0xff]  ;;  %v18592_v10 = vld [vmem:[#allocation74_spill] sm:$0xff] }
 0x209   :  { %v13804_v8 = vmul.f32 %v18590_v7, %v13510_v33  ;;  %v18591_v2 = vld [vmem:[#allocation71_spill] sm:$0xff]  ;;  %v13820_v51 = vadd.f32 %v13555_v9, %v13537_v14  ;;  %v13824_v7 = vadd.f32 %v13555_v9, %v13541_v35  ;;  %v13840_v14 = vadd.f32 %v13555_v9, %v13563_v58 }
 0x20a   :  { %18585 = vst [vmem:[#allocation30_spill] sm:$0xff] %v13787_v20  ;;  %18587 = vst [vmem:[#allocation32_spill] sm:$0xff] %v13791_v17  ;;  %v13808_v20 = vmul.f32 %v18591_v2, %v13510_v33  ;;  %v13812_v17 = vmul.f32 %v18592_v10, %v13510_v33  ;;  %v13828_v2 = vadd.f32 %v13555_v9, %v13545_v49  ;;  %v18593_v10 = vld [vmem:[#allocation77_spill] sm:$0xff] }
 0x20b   :  { %v13832_v33 = vadd.f32 %v13555_v9, %v13549_v59  ;;  %11850 = vmatpush1.bf16.msra.mxu1 %v18593_v10  ;;  %v13845_v35 = vadd.f32 %v13555_v9, %v13567_v60  ;;  %v13849_v49 = vadd.f32 %v13555_v9, %v13573_v16  ;;  %v13853_v59 = vadd.f32 %v13555_v9, %v13577_v34  ;;  %v18594_v10 = vld [vmem:[#allocation82_spill] sm:$0xff] }
 0x20c   :  { %11835 = vmatprep.subr.bf16.mxu1 %v18459_v62  ;;  %v13862_v58 = vadd.f32 %v13555_v9, %v13585_v6  ;;  %v13866_v60 = vadd.f32 %v13555_v9, %v13593_v24  ;;  %v13870_v16 = vadd.f32 %v13555_v9, %v13597_v29  ;;  %v13874_v34 = vadd.f32 %v13555_v9, %v13601_v28 }
 0x20d   :  { %v13882_v6 = vadd.f32 %v13555_v9, %v13609_v36  ;;  %v13886_v24 = vadd.f32 %v13555_v9, %v13613_v40  ;;  %v13890_v29 = vadd.f32 %v13555_v9, %v13618_v38  ;;  %v13894_v28 = vadd.f32 %v13555_v9, %v13622_v44 }
 0x20e   :  { %v13898_v3 = vadd.f32 %v13555_v9, %v13626_v4  ;;  %v13902_v36 = vadd.f32 %v13555_v9, %v13630_v15  ;;  %v13906_v40 = vadd.f32 %v13555_v9, %v13634_v25  ;;  %v13911_v38 = vadd.f32 %v13555_v9, %v13638_v0 }
 0x20f   :  { %11851 = vmatpush1.bf16.msra.mxu1 %v18594_v10  ;;  %v13915_v44 = vadd.f32 %v13555_v9, %v13642_v11  ;;  %v13919_v4 = vadd.f32 %v13555_v9, %v13646_v47  ;;  %v13923_v15 = vadd.f32 %v13555_v9, %v13652_v41  ;;  %v13928_v25 = vadd.f32 %v13555_v9, %v13656_v57  ;;  %v18601_v10 = vld [vmem:[#allocation83_spill] sm:$0xff] }
 0x210   :  { %11836 = vmatprep.subr.bf16.mxu1 %v18459_v62  ;;  %v13932_v0 = vadd.f32 %v13555_v9, %v13660_v23  ;;  %v13936_v11 = vadd.f32 %v13555_v9, %v13664_v32  ;;  %v13940_v47 = vadd.f32 %v13555_v9, %v13671_v19  ;;  %v13944_v41 = vadd.f32 %v13555_v9, %v13675_v31 }
 0x211   :  { %v13948_v57 = vadd.f32 %v13555_v9, %v13687_v42  ;;  %v13952_v23 = vadd.f32 %v13555_v9, %v13691_v52  ;;  %v13956_v32 = vadd.f32 %v13555_v9, %v13695_v5  ;;  %v13960_v19 = vadd.f32 %v13555_v9, %v13699_v63 }
 0x212   :  { %v13964_v31 = vadd.f32 %v13555_v9, %v13705_v18  ;;  %v13968_v42 = vadd.f32 %v13555_v9, %v13709_v22  ;;  %v13972_v52 = vadd.f32 %v13555_v9, %v13713_v55  ;;  %v13977_v5 = vadd.f32 %v13555_v9, %v13717_v45 }
 0x213   :  { %18595 = vst [vmem:[#allocation35_spill] sm:$0xff] %v13952_v23  ;;  %18596 = vst [vmem:[#allocation37_spill] sm:$0xff] %v13956_v32  ;;  %11852 = vmatpush1.bf16.msra.mxu1 %v18601_v10  ;;  %v13981_v63 = vadd.f32 %v13555_v9, %v13721_v37  ;;  %v13985_v18 = vadd.f32 %v13555_v9, %v13725_v53  ;;  %v13989_v22 = vadd.f32 %v13555_v9, %v13732_v30  ;;  %v18608_v10 = vld [vmem:[#allocation29_spill] sm:$0xff] }
 0x214   :  { %18597 = vst [vmem:[#allocation34_spill] sm:$0xff] %v13960_v19  ;;  %18598 = vst [vmem:[#allocation36_spill] sm:$0xff] %v13964_v31  ;;  %11837 = vmatprep.subr.bf16.mxu1 %v18459_v62  ;;  %v13994_v55 = vadd.f32 %v13555_v9, %v13736_v39  ;;  %v13998_v45 = vadd.f32 %v13555_v9, %v13740_v48  ;;  %v14002_v37 = vadd.f32 %v13555_v9, %v13744_v46 }
 0x215   :  { %18599 = vst [vmem:[#allocation41_spill] sm:$0xff] %v13968_v42  ;;  %18600 = vst [vmem:[#allocation45_spill] sm:$0xff] %v13972_v52  ;;  %v14006_v53 = vadd.f32 %v13555_v9, %v13748_v12  ;;  %v14010_v30 = vadd.f32 %v13555_v9, %v13752_v1  ;;  %v14014_v39 = vadd.f32 %v13555_v9, %v13756_v50 }
 0x216   :  { %18602 = vst [vmem:[#allocation39_spill] sm:$0xff] %v13977_v5  ;;  %18603 = vst [vmem:[#allocation43_spill] sm:$0xff] %v13981_v63  ;;  %v14018_v48 = vadd.f32 %v13555_v9, %v13760_v26  ;;  %v14022_v46 = vadd.f32 %v13555_v9, %v18608_v10  ;;  %v14030_v1 = vadd.f32 %v13555_v9, %v13772_v54  ;;  %v18615_v10 = vld [vmem:[#allocation30_spill] sm:$0xff] }
 0x217   :  { %18604 = vst [vmem:[#allocation49_spill] sm:$0xff] %v14002_v37  ;;  %18605 = vst [vmem:[#allocation53_spill] sm:$0xff] %v14010_v30  ;;  %v18610_v37 = vld [vmem:[#allocation26_spill] sm:$0xff]  ;;  %v18612_v30 = vld [vmem:[#allocation31_spill] sm:$0xff]  ;;  %v14051_v54 = vadd.f32 %v13555_v9, %v13796_v21 }
 0x218   :  { %18606 = vst [vmem:[#allocation47_spill] sm:$0xff] %v14014_v39  ;;  %18607 = vst [vmem:[#allocation51_spill] sm:$0xff] %v14018_v48  ;;  %v14026_v12 = vadd.f32 %v13555_v9, %v18610_v37  ;;  %v14034_v50 = vadd.f32 %v13555_v9, %v18612_v30  ;;  %v18613_v39 = vld [vmem:[#allocation33_spill] sm:$0xff]  ;;  %v18614_v48 = vld [vmem:[#allocation88_spill] sm:$0xff]  ;;  %v14055_v30 = vadd.f32 %v13555_v9, %v13800_v27 }
 0x219   :  { %18609 = vst [vmem:[#allocation57_spill] sm:$0xff] %v14022_v46  ;;  %v14038_v26 = vadd.f32 %v13555_v9, %v18613_v39  ;;  %11853 = vmatpush1.bf16.msra.mxu1 %v18614_v48  ;;  %v14043_v46 = vadd.f32 %v13555_v9, %v18615_v10  ;;  %v18616_v37 = vld [vmem:[#allocation32_spill] sm:$0xff]  ;;  %18617 = vst [vmem:[#allocation61_spill] sm:$0xff] %v14051_v54  ;;  %v14060_v39 = vadd.f32 %v13555_v9, %v13804_v8  ;;  %v18622_v21 = vld [vmem:[#allocation93_spill] sm:$0xff] }
 0x21a   :  { %18611 = vst [vmem:[#allocation76_spill] sm:$0xff] %v14026_v12  ;;  %v14047_v12 = vadd.f32 %v13555_v9, %v18616_v37  ;;  %18618 = vst [vmem:[#allocation55_spill] sm:$0xff] %v14055_v30  ;;  %11838 = vmatprep.subr.bf16.mxu1 %v18459_v62  ;;  %v14064_v48 = vadd.f32 %v13555_v9, %v13808_v20  ;;  %v14068_v10 = vadd.f32 %v13555_v9, %v13812_v17  ;;  %v18621_v9 = vld [vmem:[#allocation90_spill] sm:$0xff] }
 0x21b   :  { %18619 = vst [vmem:[#allocation59_spill] sm:$0xff] %v14060_v39  ;;  %v18623_v20 = vld [vmem:[#allocation98_spill] sm:$0xff]  ;;  %v1885_v39 = vmax.f32 %v13985_v18, 0.0  ;;  %v1890_v37 = vmax.f32 %v14006_v53, 0.0 }
 0x21c   :  { %18620 = vst [vmem:[#allocation65_spill] sm:$0xff] %v14064_v48  ;;  %v1887_v48 = vmax.f32 %v13994_v55, 0.0  ;;  %v1897_v55 = vmax.f32 %v14034_v50, 0.0  ;;  %v1900_v53 = vmax.f32 %v14047_v12, 0.0 }
 0x21d   :  { %11854 = vmatpush1.bf16.msra.mxu1 %v18621_v9  ;;  %v1888_v9 = vmax.f32 %v13998_v45, 0.0  ;;  %v1898_v45 = vmax.f32 %v14038_v26, 0.0  ;;  %v18635_v26 = vmax.f32 %v13820_v51, 0.0  ;;  %v18639_v51 = vmax.f32 %v13836_v56, 0.0 }
 0x21e   :  { %11839 = vmatprep.subr.bf16.mxu1 %v18459_v62  ;;  %v18624_v8 = vld [vmem:[#allocation49_spill] sm:$0xff]  ;;  %v18643_v56 = vmax.f32 %v13853_v59, 0.0  ;;  %v18647_v59 = vmax.f32 %v13870_v16, 0.0  ;;  %v18651_v16 = vmax.f32 %v13886_v24, 0.0  ;;  %v18655_v24 = vmax.f32 %v13902_v36, 0.0 }
 0x21f   :  { %v1889_v17 = vmax.f32 %v18624_v8, 0.0  ;;  %v18626_v52 = vld [vmem:[#allocation47_spill] sm:$0xff]  ;;  %v1899_v8 = vmax.f32 %v14043_v46, 0.0  ;;  %v14145_v46 = vpack.c.bf16 %v18635_v26, %v18635_v26  ;;  %v18659_v36 = vmax.f32 %v13919_v4, 0.0 }
 0x220   :  { %v1892_v30 = vmax.f32 %v18626_v52, 0.0  ;;  %v18627_v5 = vld [vmem:[#allocation51_spill] sm:$0xff]  ;;  %v18628_v63 = vld [vmem:[#allocation57_spill] sm:$0xff]  ;;  %v18663_v4 = vmax.f32 %v13936_v11, 0.0 }
 0x221   :  { %11855 = vmatpush1.bf16.msra.mxu1 %v18622_v21  ;;  %v1886_v21 = vmax.f32 %v13989_v22, 0.0  ;;  %v1893_v54 = vmax.f32 %v18627_v5, 0.0  ;;  %v18629_v42 = vld [vmem:[#allocation76_spill] sm:$0xff]  ;;  %v1896_v22 = vmax.f32 %v14030_v1, 0.0  ;;  %v18630_v31 = vld [vmem:[#allocation61_spill] sm:$0xff]  ;;  %v18631_v19 = vld [vmem:[#allocation55_spill] sm:$0xff] }
 0x222   :  { %11840 = vmatprep.subr.bf16.mxu1 %v18459_v62  ;;  %v18625_v62 = vld [vmem:[#allocation53_spill] sm:$0xff]  ;;  %v1895_v18 = vmax.f32 %v18629_v42, 0.0  ;;  %v1902_v52 = vmax.f32 %v18631_v19, 0.0  ;;  %v18632_v32 = vld [vmem:[#allocation59_spill] sm:$0xff]  ;;  %v1907_v42 = vmax.f32 %v14068_v10, 0.0  ;;  %v18634_v1 = vmax.f32 %v13816_v43, 0.0 }
 0x223   :  { %v1891_v27 = vmax.f32 %v18625_v62, 0.0  ;;  %v1901_v62 = vmax.f32 %v18630_v31, 0.0  ;;  %v1903_v5 = vmax.f32 %v18632_v32, 0.0  ;;  %v18633_v23 = vld [vmem:[#allocation65_spill] sm:$0xff]  ;;  %v18636_v31 = vmax.f32 %v13824_v7, 0.0 }
 0x224   :  { %v14140_v50 = vpack.c.bf16 %v18634_v1, %v18634_v1  ;;  %v18637_v32 = vmax.f32 %v13828_v2, 0.0  ;;  %v18638_v43 = vmax.f32 %v13832_v33, 0.0  ;;  %v14165_v10 = vpack.c.bf16 %v18639_v51, %v18639_v51 }
 0x225   :  { %11856 = vmatpush1.bf16.msra.mxu1 %v18623_v20  ;;  %v1894_v20 = vmax.f32 %v18628_v63, 0.0  ;;  %v1906_v63 = vmax.f32 %v18633_v23, 0.0  ;;  %v14150_v19 = vpack.c.bf16 %v18636_v31, %v18636_v31  ;;  %v18640_v7 = vmax.f32 %v13840_v14, 0.0 }
 0x226   :  { %v14155_v23 = vpack.c.bf16 %v18637_v32, %v18637_v32  ;;  %v14160_v12 = vpack.c.bf16 %v18638_v43, %v18638_v43  ;;  %v18641_v2 = vmax.f32 %v13845_v35, 0.0  ;;  %v18642_v33 = vmax.f32 %v13849_v49, 0.0 }
 0x227   :  { %v14170_v1 = vpack.c.bf16 %v18640_v7, %v18640_v7  ;;  %v14185_v32 = vpack.c.bf16 %v18643_v56, %v18643_v56  ;;  %v18644_v14 = vmax.f32 %v13857_v61, 0.0  ;;  %v18645_v35 = vmax.f32 %v13862_v58, 0.0 }
 0x228   :  { %v14175_v26 = vpack.c.bf16 %v18641_v2, %v18641_v2  ;;  %v14180_v31 = vpack.c.bf16 %v18642_v33, %v18642_v33  ;;  %v18646_v49 = vmax.f32 %v13866_v60, 0.0  ;;  %v14205_v2 = vpack.c.bf16 %v18647_v59, %v18647_v59 }
 0x229   :  { %v14190_v43 = vpack.c.bf16 %v18644_v14, %v18644_v14  ;;  %v14195_v51 = vpack.c.bf16 %v18645_v35, %v18645_v35  ;;  %v18648_v61 = vmax.f32 %v13874_v34, 0.0  ;;  %v18649_v58 = vmax.f32 %v13878_v13, 0.0 }
 0x22a   :  { %v14200_v7 = vpack.c.bf16 %v18646_v49, %v18646_v49  ;;  %v18650_v60 = vmax.f32 %v13882_v6, 0.0  ;;  %v14225_v35 = vpack.c.bf16 %v18651_v16, %v18651_v16  ;;  %v18652_v34 = vmax.f32 %v13890_v29, 0.0 }
 0x22b   :  { %v14210_v33 = vpack.c.bf16 %v18648_v61, %v18648_v61  ;;  %v14215_v56 = vpack.c.bf16 %v18649_v58, %v18649_v58  ;;  %v18653_v13 = vmax.f32 %v13894_v28, 0.0  ;;  %v18654_v6 = vmax.f32 %v13898_v3, 0.0 }
 0x22c   :  { %v14220_v14 = vpack.c.bf16 %v18650_v60, %v18650_v60  ;;  %v14230_v49 = vpack.c.bf16 %v18652_v34, %v18652_v34  ;;  %v14245_v58 = vpack.c.bf16 %v18655_v24, %v18655_v24  ;;  %v18656_v29 = vmax.f32 %v13906_v40, 0.0 }
 0x22d   :  { %v14235_v59 = vpack.c.bf16 %v18653_v13, %v18653_v13  ;;  %v14240_v61 = vpack.c.bf16 %v18654_v6, %v18654_v6  ;;  %v18657_v28 = vmax.f32 %v13911_v38, 0.0  ;;  %v18658_v3 = vmax.f32 %v13915_v44, 0.0 }
 0x22e   :  { %v14250_v60 = vpack.c.bf16 %v18656_v29, %v18656_v29  ;;  %v14265_v13 = vpack.c.bf16 %v18659_v36, %v18659_v36  ;;  %v18660_v40 = vmax.f32 %v13923_v15, 0.0  ;;  %v18661_v38 = vmax.f32 %v13928_v25, 0.0 }
 0x22f   :  { %v14255_v16 = vpack.c.bf16 %v18657_v28, %v18657_v28  ;;  %v14260_v34 = vpack.c.bf16 %v18658_v3, %v18658_v3  ;;  %v18662_v44 = vmax.f32 %v13932_v0, 0.0  ;;  %v14285_v28 = vpack.c.bf16 %v18663_v4, %v18663_v4  ;;  %v18673_v4 = vld [vmem:[#allocation37_spill] sm:$0xff] }
 0x230   :  { %v14270_v6 = vpack.c.bf16 %v18660_v40, %v18660_v40  ;;  %v14275_v24 = vpack.c.bf16 %v18661_v38, %v18661_v38  ;;  %v18664_v15 = vmax.f32 %v13940_v47, 0.0  ;;  %v18666_v25 = vmax.f32 %v13944_v41, 0.0  ;;  %v18670_v38 = vld [vmem:[#allocation35_spill] sm:$0xff] }
 0x231   :  { %v14280_v29 = vpack.c.bf16 %v18662_v44, %v18662_v44  ;;  %v18668_v0 = vmax.f32 %v13948_v57, 0.0  ;;  %v18671_v11 = vmax.f32 %v18670_v38, 0.0  ;;  %v18674_v47 = vmax.f32 %v18673_v4, 0.0 }
 0x232   :  { %v14290_v3 = vpack.c.bf16 %v18664_v15, %v18664_v15  ;;  %v14295_v36 = vpack.c.bf16 %v18666_v25, %v18666_v25 }
 0x233   :  { %v14300_v40 = vpack.c.bf16 %v18668_v0, %v18668_v0  ;;  %v14305_v44 = vpack.c.bf16 %v18671_v11, %v18671_v11  ;;  %v14310_v15 = vpack.c.bf16 %v18674_v47, %v18674_v47 }
 0x234   :  { %18665 = vst [vmem:[#allocation69_spill] sm:$0xff] %v14290_v3  ;;  %18667 = vst [vmem:[#allocation63_spill] sm:$0xff] %v14295_v36  ;;  %v18676_v3 = vld [vmem:[#allocation34_spill] sm:$0xff]  ;;  %v18679_v36 = vld [vmem:[#allocation36_spill] sm:$0xff] }
 0x235   :  { %18669 = vst [vmem:[#allocation67_spill] sm:$0xff] %v14300_v40  ;;  %18672 = vst [vmem:[#allocation71_spill] sm:$0xff] %v14305_v44  ;;  %v18677_v41 = vmax.f32 %v18676_v3, 0.0  ;;  %v18680_v57 = vmax.f32 %v18679_v36, 0.0  ;;  %v18682_v40 = vld [vmem:[#allocation41_spill] sm:$0xff] }
 0x236   :  { %18675 = vst [vmem:[#allocation74_spill] sm:$0xff] %v14310_v15  ;;  %v18683_v38 = vmax.f32 %v18682_v40, 0.0  ;;  %v18684_v44 = vld [vmem:[#allocation45_spill] sm:$0xff]  ;;  %v18687_v15 = vld [vmem:[#allocation39_spill] sm:$0xff]  ;;  %v14344_v40 = vpack.c.bf16 %v1886_v21, %v1886_v21  ;;  %v14364_v21 = vpack.c.bf16 %v1896_v22, %v1896_v22  ;;  %v2193_v22 = vrot.slane %v14140_v50, 7 }
 0x237   :  { %v14315_v25 = vpack.c.bf16 %v18677_v41, %v18677_v41  ;;  %v14320_v0 = vpack.c.bf16 %v18680_v57, %v18680_v57  ;;  %v18685_v4 = vmax.f32 %v18684_v44, 0.0  ;;  %v18688_v3 = vmax.f32 %v18687_v15, 0.0 }
 0x238   :  { %v14325_v11 = vpack.c.bf16 %v18683_v38, %v18683_v38  ;;  %v14346_v38 = vpack.c.bf16 %v1887_v48, %v1887_v48  ;;  %v14348_v44 = vpack.c.bf16 %v1888_v9, %v1888_v9  ;;  %v14354_v15 = vpack.c.bf16 %v1891_v27, %v1891_v27  ;;  %2449 = vst [vmem:[#allocation2 + $0x18] sm:$0xe] %v2193_v22 }
 0x239   :  { %18678 = vst [vmem:[#allocation77_spill] sm:$0xff] %v14315_v25  ;;  %18681 = vst [vmem:[#allocation82_spill] sm:$0xff] %v14320_v0  ;;  %v14330_v47 = vpack.c.bf16 %v18685_v4, %v18685_v4  ;;  %v14335_v41 = vpack.c.bf16 %v18688_v3, %v18688_v3  ;;  %v18689_v25 = vld [vmem:[#allocation43_spill] sm:$0xff]  ;;  %v14342_v0 = vpack.c.bf16 %v1885_v39, %v1885_v39 }
 0x23a   :  { %v18690_v36 = vmax.f32 %v18689_v25, 0.0  ;;  %v14350_v4 = vpack.c.bf16 %v1889_v17, %v1889_v17  ;;  %v14356_v3 = vpack.c.bf16 %v1892_v30, %v1892_v30  ;;  %v14358_v25 = vpack.c.bf16 %v1893_v54, %v1893_v54 }
 0x23b   :  { %18686 = vst [vmem:[#allocation83_spill] sm:$0xff] %v14330_v47  ;;  %v14352_v47 = vpack.c.bf16 %v1890_v37, %v1890_v37  ;;  %v14362_v39 = vpack.c.bf16 %v1895_v18, %v1895_v18  ;;  %v14366_v48 = vpack.c.bf16 %v1897_v55, %v1897_v55  ;;  %v14368_v9 = vpack.c.bf16 %v1898_v45, %v1898_v45 }
 0x23c   :  { %v14340_v57 = vpack.c.bf16 %v18690_v36, %v18690_v36  ;;  %v14360_v36 = vpack.c.bf16 %v1894_v20, %v1894_v20  ;;  %v14370_v17 = vpack.c.bf16 %v1899_v8, %v1899_v8  ;;  %v14372_v37 = vpack.c.bf16 %v1900_v53, %v1900_v53 }
 0x23d   :  { %v14374_v27 = vpack.c.bf16 %v1901_v62, %v1901_v62  ;;  %v14376_v30 = vpack.c.bf16 %v1902_v52, %v1902_v52  ;;  %v14378_v54 = vpack.c.bf16 %v1903_v5, %v1903_v5  ;;  %v14380_v20 = vpack.c.bf16 %v1906_v63, %v1906_v63 }
 0x23e   :  { %v14382_v18 = vpack.c.bf16 %v1907_v42, %v1907_v42  ;;  %v2195_v55 = vrot.slane %v14145_v46, 7  ;;  %v2198_v45 = vrot.slane %v14150_v19, 7  ;;  %v2200_v8 = vrot.slane %v14155_v23, 7 }
 0x23f   :  { %18691 = vst [vmem:[#allocation29_spill] sm:$0xff] %v14378_v54  ;;  %18692 = vst [vmem:[#allocation26_spill] sm:$0xff] %v14380_v20  ;;  %v2203_v53 = vrot.slane %v14160_v12, 7  ;;  %v2194_v62 = vrot.slane %v2193_v22, 4  ;;  %v2205_v52 = vrot.slane %v14165_v10, 7  ;;  %v2208_v5 = vrot.slane %v14170_v1, 7 }
 0x240   :  { %18693 = vst [vmem:[#allocation31_spill] sm:$0xff] %v14382_v18  ;;  %v2210_v63 = vrot.slane %v14175_v26, 7  ;;  %v2197_v42 = vrot.slane %v2195_v55, 4  ;;  %v2199_v18 = vrot.slane %v2198_v45, 4  ;;  %v2202_v20 = vrot.slane %v2200_v8, 4 }
 0x241   :  { %v2204_v50 = vrot.slane %v2203_v53, 4  ;;  %2452 = vst [vmem:[#allocation2 + $0x24] sm:$0xe] %v2198_v45  ;;  %2455 = vst [vmem:[#allocation2 + $0x30] sm:$0xe] %v2203_v53  ;;  %v2196_v19 = vsel %vm13681_vm8, %v2194_v62, %v2195_v55  ;;  %v2207_v23 = vrot.slane %v2205_v52, 4 }
 0x242   :  { %v2209_v54 = vrot.slane %v2208_v5, 4  ;;  %v2212_v12 = vrot.slane %v2210_v63, 4  ;;  %2458 = vst [vmem:[#allocation2 + $0x3c] sm:$0xe] %v2208_v5  ;;  %v2201_v10 = vsel %vm13681_vm8, %v2199_v18, %v2200_v8  ;;  %v2213_v26 = vrot.slane %v14180_v31, 7 }
 0x243   :  { %v2206_v1 = vsel %vm13681_vm8, %v2204_v50, %v2205_v52  ;;  %v2215_v22 = vrot.slane %v14185_v32, 7  ;;  %2450 = vst [vmem:[#allocation2 + $0x1c] sm:$0xf] %v2196_v19  ;;  %2451 = vst [vmem:[#allocation2 + $0x20] sm:$0x1] %v2197_v42  ;;  %v2218_v45 = vrot.slane %v14190_v43, 7 }
 0x244   :  { %2454 = vst [vmem:[#allocation2 + $0x2c] sm:$0x1] %v2202_v20  ;;  %v2211_v55 = vsel %vm13681_vm8, %v2209_v54, %v2210_v63  ;;  %v2220_v53 = vrot.slane %v14195_v51, 7  ;;  %v2223_v62 = vrot.slane %v14200_v7, 7  ;;  %2453 = vst [vmem:[#allocation2 + $0x28] sm:$0xf] %v2201_v10 }
 0x245   :  { %2456 = vst [vmem:[#allocation2 + $0x34] sm:$0xf] %v2206_v1  ;;  %2457 = vst [vmem:[#allocation2 + $0x38] sm:$0x1] %v2207_v23  ;;  %v2214_v18 = vrot.slane %v2213_v26, 4  ;;  %v2217_v31 = vrot.slane %v2215_v22, 4 }
 0x246   :  { %2460 = vst [vmem:[#allocation2 + $0x44] sm:$0x1] %v2212_v12  ;;  %v2225_v32 = vrot.slane %v14205_v2, 7  ;;  %v2228_v8 = vrot.slane %v14210_v33, 7  ;;  %2459 = vst [vmem:[#allocation2 + $0x40] sm:$0xf] %v2211_v55 }
 0x247   :  { %2461 = vst [vmem:[#allocation2 + $0x48] sm:$0xe] %v2213_v26  ;;  %v2219_v20 = vrot.slane %v2218_v45, 4  ;;  %v2222_v54 = vrot.slane %v2220_v53, 4  ;;  %v2224_v52 = vrot.slane %v2223_v62, 4  ;;  %v2230_v43 = vrot.slane %v14215_v56, 7 }
 0x248   :  { %2464 = vst [vmem:[#allocation2 + $0x54] sm:$0xe] %v2218_v45  ;;  %2467 = vst [vmem:[#allocation2 + $0x60] sm:$0xe] %v2223_v62  ;;  %v2216_v51 = vsel %vm13681_vm8, %v2214_v18, %v2215_v22  ;;  %v2227_v7 = vrot.slane %v2225_v32, 4  ;;  %v2229_v5 = vrot.slane %v2228_v8, 4 }
 0x249   :  { %v2233_v63 = vrot.slane %v14220_v14, 7  ;;  %2463 = vst [vmem:[#allocation2 + $0x50] sm:$0x1] %v2217_v31  ;;  %2470 = vst [vmem:[#allocation2 + $0x6c] sm:$0xe] %v2228_v8  ;;  %v2221_v2 = vsel %vm13681_vm8, %v2219_v20, %v2220_v53  ;;  %v2226_v33 = vsel %vm13681_vm8, %v2224_v52, %v2225_v32  ;;  %v2232_v42 = vrot.slane %v2230_v43, 4 }
 0x24a   :  { %v2235_v56 = vrot.slane %v14225_v35, 7  ;;  %2462 = vst [vmem:[#allocation2 + $0x4c] sm:$0xf] %v2216_v51  ;;  %2466 = vst [vmem:[#allocation2 + $0x5c] sm:$0x1] %v2222_v54  ;;  %v2231_v50 = vsel %vm13681_vm8, %v2229_v5, %v2230_v43  ;;  %v2238_v23 = vrot.slane %v14230_v49, 7 }
 0x24b   :  { %v2234_v19 = vrot.slane %v2233_v63, 4  ;;  %v2240_v14 = vrot.slane %v14235_v59, 7  ;;  %2465 = vst [vmem:[#allocation2 + $0x58] sm:$0xf] %v2221_v2  ;;  %2468 = vst [vmem:[#allocation2 + $0x64] sm:$0xf] %v2226_v33 }
 0x24c   :  { %2469 = vst [vmem:[#allocation2 + $0x68] sm:$0x1] %v2227_v7  ;;  %2473 = vst [vmem:[#allocation2 + $0x78] sm:$0xe] %v2233_v63  ;;  %v12271_v12 = vld [vmem:[#allocation9 + $0x100] sm:$0xff]   ;;  %v2237_v10 = vrot.slane %v2235_v56, 4 }
 0x24d   :  { %v2243_v1 = vrot.slane %v14240_v61, 7  ;;  %v2245_v35 = vrot.slane %v14245_v58, 7  ;;  %v2248_v26 = vrot.slane %v14250_v60, 7  ;;  %2471 = vst [vmem:[#allocation2 + $0x70] sm:$0xf] %v2231_v50  ;;  %v2236_v22 = vsel %vm13681_vm8, %v2234_v19, %v2235_v56  ;;  %v12270_v45 = vld [vmem:[#allocation2 + $0x18] sm:$0xff]  }
 0x24e   :  { %2472 = vst [vmem:[#allocation2 + $0x74] sm:$0x1] %v2232_v42  ;;  %v2239_v49 = vrot.slane %v2238_v23, 4  ;;  %v2242_v55 = vrot.slane %v2240_v14, 4  ;;  %v2250_v59 = vrot.slane %v14255_v16, 7  ;;  %v2253_v61 = vrot.slane %v14260_v34, 7  ;;  %8057 = vmatprep.mubr.bf16.mxu0 %v12270_v45 }
 0x24f   :  { %2476 = vst [vmem:[#allocation2 + $0x84] sm:$0xe] %v2238_v23  ;;  %v2244_v53 = vrot.slane %v2243_v1, 4  ;;  %v2247_v62 = vrot.slane %v2245_v35, 4  ;;  %v2249_v18 = vrot.slane %v2248_v26, 4  ;;  %v2255_v31 = vrot.slane %v14265_v13, 7 }
 0x250   :  { %2474 = vst [vmem:[#allocation2 + $0x7c] sm:$0xf] %v2236_v22  ;;  %2475 = vst [vmem:[#allocation2 + $0x80] sm:$0x1] %v2237_v10  ;;  %v2241_v58 = vsel %vm13681_vm8, %v2239_v49, %v2240_v14  ;;  %v2252_v60 = vrot.slane %v2250_v59, 4  ;;  %v2258_v32 = vrot.slane %v14270_v6, 7 }
 0x251   :  { %2479 = vst [vmem:[#allocation2 + $0x90] sm:$0xe] %v2243_v1  ;;  %2482 = vst [vmem:[#allocation2 + $0x9c] sm:$0xe] %v2248_v26  ;;  %v12272_v16 = vld [vmem:[#allocation2 + $0x24] sm:$0xff]   ;;  %v2246_v8 = vsel %vm13681_vm8, %v2244_v53, %v2245_v35  ;;  %v2251_v34 = vsel %vm13681_vm8, %v2249_v18, %v2250_v59  ;;  %v2254_v20 = vrot.slane %v2253_v61, 4 }
 0x252   :  { %2478 = vst [vmem:[#allocation2 + $0x8c] sm:$0x1] %v2242_v55  ;;  %v2260_v54 = vrot.slane %v14275_v24, 7  ;;  %2477 = vst [vmem:[#allocation2 + $0x88] sm:$0xf] %v2241_v58  ;;  %v18695_v52 = vld [vmem:[#allocation113_spill] sm:$0xff] }
 0x253   :  { %2481 = vst [vmem:[#allocation2 + $0x98] sm:$0x1] %v2247_v62  ;;  %2485 = vst [vmem:[#allocation2 + $0xa8] sm:$0xe] %v2253_v61  ;;  %v18696_v43 = vld [vmem:[#allocation114_spill] sm:$0xff]  ;;  %v2257_v6 = vrot.slane %v2255_v31, 4  ;;  %v2256_v63 = vsel %vm13681_vm8, %v2254_v20, %v2255_v31 }
 0x254   :  { %v18697_v13 = vcombine.low %v18695_v52, %v18696_v43  ;;  %v2259_v51 = vrot.slane %v2258_v32, 4  ;;  %v2263_v7 = vrot.slane %v14280_v29, 7  ;;  %v2265_v5 = vrot.slane %v14285_v28, 7  ;;  %2480 = vst [vmem:[#allocation2 + $0x94] sm:$0xf] %v2246_v8  ;;  %v12274_v24 = vld [vmem:[#allocation9 + $0x108] sm:$0xff]  }
 0x255   :  { %2483 = vst [vmem:[#allocation2 + $0xa0] sm:$0xf] %v2251_v34  ;;  %2484 = vst [vmem:[#allocation2 + $0xa4] sm:$0x1] %v2252_v60  ;;  %v2262_v2 = vrot.slane %v2260_v54, 4  ;;  %v18698_v33 = vld [vmem:[#allocation69_spill] sm:$0xff] }
 0x256   :  { %8058 = vmatmul.mubr.bf16.vlgmr.msra.gmra.mrb[64].mxu0 %v18697_v13  ;;  %2488 = vst [vmem:[#allocation2 + $0xb4] sm:$0xe] %v2258_v32  ;;  %v2268_v42 = vrot.slane %v18698_v33, 7  ;;  %v18699_v56 = vld [vmem:[#allocation63_spill] sm:$0xff]  ;;  %v18700_v19 = vmov 0   ;;  %v2261_v29 = vsel %vm13681_vm8, %v2259_v51, %v2260_v54  ;;  %v2264_v28 = vrot.slane %v2263_v7, 4 }
 0x257   :  { %8315 = vmatpush1.bf16.msra.mxu0 %v12271_v12  ;;  %8065 = vmatprep.mubr.bf16.mxu0 %v12272_v16  ;;  %v2270_v50 = vrot.slane %v18699_v56, 7  ;;  %v2267_v23 = vrot.slane %v2265_v5, 4  ;;  %v18701_v14 = vld [vmem:[#allocation67_spill] sm:$0xff]  ;;  %2486 = vst [vmem:[#allocation2 + $0xac] sm:$0xf] %v2256_v63  ;;  %v18703_v22 = vld [vmem:[#allocation74_spill] sm:$0xff] }
 0x258   :  { %8316 = vmatprep.subr.bf16.mxu0 %v18700_v19  ;;  %v2273_v10 = vrot.slane %v18701_v14, 7  ;;  %2487 = vst [vmem:[#allocation2 + $0xb0] sm:$0x1] %v2257_v6  ;;  %2491 = vst [vmem:[#allocation2 + $0xc0] sm:$0xe] %v2263_v7  ;;  %v2269_v12 = vrot.slane %v2268_v42, 4  ;;  %v2266_v55 = vsel %vm13681_vm8, %v2264_v28, %v2265_v5 }
 0x259   :  { %v2272_v1 = vrot.slane %v2270_v50, 4  ;;  %v18702_v35 = vld [vmem:[#allocation71_spill] sm:$0xff]  ;;  %v2278_v49 = vrot.slane %v18703_v22, 7  ;;  %2489 = vst [vmem:[#allocation2 + $0xb8] sm:$0xf] %v2261_v29  ;;  %v18704_v45 = vld [vmem:[#allocation77_spill] sm:$0xff] }
 0x25a   :  { %v2275_v26 = vrot.slane %v18702_v35, 7  ;;  %2490 = vst [vmem:[#allocation2 + $0xbc] sm:$0x1] %v2262_v2  ;;  %2494 = vst [vmem:[#allocation2 + $0xcc] sm:$0xe] %v2268_v42  ;;  %v2274_v59 = vrot.slane %v2273_v10, 4  ;;  %v2271_v58 = vsel %vm13681_vm8, %v2269_v12, %v2270_v50 }
 0x25b   :  { %v2280_v53 = vrot.slane %v18704_v45, 7  ;;  %v18705_v62 = vld [vmem:[#allocation82_spill] sm:$0xff]  ;;  %2493 = vst [vmem:[#allocation2 + $0xc8] sm:$0x1] %v2267_v23  ;;  %2497 = vst [vmem:[#allocation2 + $0x108] sm:$0xe] %v2273_v10  ;;  %8317 = vmatpush1.bf16.msra.mxu0 %v12274_v24 }
 0x25c   :  { %v2283_v18 = vrot.slane %v18705_v62, 7  ;;  %v12277_v61 = vld [vmem:[#allocation9 + $0x110] sm:$0xff]   ;;  %v2277_v60 = vrot.slane %v2275_v26, 4  ;;  %v2279_v31 = vrot.slane %v2278_v49, 4  ;;  %v2285_v32 = vrot.slane %v14325_v11, 7  ;;  %8318 = vmatprep.subr.bf16.mxu0 %v18700_v19  ;;  %v18706_v20 = vld [vmem:[#allocation83_spill] sm:$0xff] }
 0x25d   :  { %2492 = vst [vmem:[#allocation2 + $0xc4] sm:$0xf] %v2266_v55  ;;  %2496 = vst [vmem:[#allocation2 + $0xd4] sm:$0x1] %v2272_v1  ;;  %v2276_v16 = vsel %vm13681_vm8, %v2274_v59, %v2275_v26  ;;  %v2282_v8 = vrot.slane %v2280_v53, 4  ;;  %v2288_v54 = vrot.slane %v18706_v20, 7 }
 0x25e   :  { %2500 = vst [vmem:[#allocation2 + $0x114] sm:$0xe] %v2278_v49  ;;  %v2284_v34 = vrot.slane %v2283_v18, 4  ;;  %2495 = vst [vmem:[#allocation2 + $0xd0] sm:$0xf] %v2271_v58  ;;  %v12275_v52 = vld [vmem:[#allocation2 + $0x30] sm:$0xff]   ;;  %v2281_v43 = vsel %vm13681_vm8, %v2279_v31, %v2280_v53 }
 0x25f   :  { %2503 = vst [vmem:[#allocation2 + $0x120] sm:$0xe] %v2283_v18  ;;  %v2287_v13 = vrot.slane %v2285_v32, 4  ;;  %v2290_v11 = vrot.slane %v14335_v41, 7  ;;  %v2293_v6 = vrot.slane %v14340_v57, 7  ;;  %v18707_v51 = vld [vmem:[#allocation115_spill] sm:$0xff]  ;;  %8319 = vmatpush1.bf16.msra.mxu0 %v12277_v61 }
 0x260   :  { %2498 = vst [vmem:[#allocation2 + $0x10c] sm:$0xf] %v2276_v16  ;;  %2499 = vst [vmem:[#allocation2 + $0x110] sm:$0x1] %v2277_v60  ;;  %v18708_v7 = vld [vmem:[#allocation117_spill] sm:$0xff]  ;;  %v2286_v24 = vsel %vm13681_vm8, %v2284_v34, %v2285_v32  ;;  %v2289_v63 = vrot.slane %v2288_v54, 4  ;;  %8320 = vmatprep.subr.bf16.mxu0 %v18700_v19 }
 0x261   :  { %v18709_v5 = vcombine.low %v18707_v51, %v18708_v7  ;;  %v2295_v2 = vrot.slane %v14342_v0, 7  ;;  %v2298_v33 = vrot.slane %v14344_v40, 7  ;;  %2501 = vst [vmem:[#allocation2 + $0x118] sm:$0xf] %v2281_v43  ;;  %2502 = vst [vmem:[#allocation2 + $0x11c] sm:$0x1] %v2282_v8 }
 0x262   :  { %2506 = vst [vmem:[#allocation2 + $0x12c] sm:$0xe] %v2288_v54  ;;  %v12280_v41 = vld [vmem:[#allocation9 + $0x118] sm:$0xff]   ;;  %v2292_v57 = vrot.slane %v2290_v11, 4  ;;  %v2294_v42 = vrot.slane %v2293_v6, 4  ;;  %v2300_v56 = vrot.slane %v14346_v38, 7  ;;  %v2291_v0 = vsel %vm13681_vm8, %v2289_v63, %v2290_v11 }
 0x263   :  { %8066 = vmatmul.mubr.bf16.gmra.mrb[68].mxu0 %v18709_v5  ;;  %v2303_v50 = vrot.slane %v14348_v44, 7  ;;  %2504 = vst [vmem:[#allocation2 + $0x124] sm:$0xf] %v2286_v24  ;;  %2505 = vst [vmem:[#allocation2 + $0x128] sm:$0x1] %v2287_v13  ;;  %v2297_v40 = vrot.slane %v2295_v2, 4 }
 0x264   :  { %8073 = vmatprep.mubr.bf16.mxu0 %v12275_v52  ;;  %2509 = vst [vmem:[#allocation2 + $0x138] sm:$0xe] %v2293_v6  ;;  %v2299_v29 = vrot.slane %v2298_v33, 4  ;;  %v2305_v28 = vrot.slane %v14350_v4, 7  ;;  %2512 = vst [vmem:[#allocation2 + $0x144] sm:$0xe] %v2298_v33  ;;  %v2296_v23 = vsel %vm13681_vm8, %v2294_v42, %v2295_v2  ;;  %8321 = vmatpush1.bf16.msra.mxu0 %v12280_v41 }
 0x265   :  { %v2302_v14 = vrot.slane %v2300_v56, 4  ;;  %v2304_v38 = vrot.slane %v2303_v50, 4  ;;  %v2308_v44 = vrot.slane %v14352_v47, 7  ;;  %2507 = vst [vmem:[#allocation2 + $0x130] sm:$0xf] %v2291_v0  ;;  %v2310_v1 = vrot.slane %v14354_v15, 7  ;;  %8322 = vmatprep.subr.bf16.mxu0 %v18700_v19 }
 0x266   :  { %2508 = vst [vmem:[#allocation2 + $0x134] sm:$0x1] %v2292_v57  ;;  %2515 = vst [vmem:[#allocation2 + $0x150] sm:$0xe] %v2303_v50  ;;  %v2301_v10 = vsel %vm13681_vm8, %v2299_v29, %v2300_v56  ;;  %v2307_v12 = vrot.slane %v2305_v28, 4  ;;  %v2313_v35 = vrot.slane %v14356_v3, 7 }
 0x267   :  { %2510 = vst [vmem:[#allocation2 + $0x13c] sm:$0xf] %v2296_v23  ;;  %2511 = vst [vmem:[#allocation2 + $0x140] sm:$0x1] %v2297_v40  ;;  %v12283_v4 = vld [vmem:[#allocation9 + $0x120] sm:$0xff]   ;;  %v2306_v26 = vsel %vm13681_vm8, %v2304_v38, %v2305_v28  ;;  %v2309_v22 = vrot.slane %v2308_v44, 4 }
 0x268   :  { %v2315_v47 = vrot.slane %v14358_v25, 7  ;;  %v2318_v49 = vrot.slane %v14360_v36, 7  ;;  %2513 = vst [vmem:[#allocation2 + $0x148] sm:$0xf] %v2301_v10  ;;  %2514 = vst [vmem:[#allocation2 + $0x14c] sm:$0x1] %v2302_v14  ;;  %8323 = vmatpush1.bf16.msra.mxu0 %v12283_v4 }
 0x269   :  { %2518 = vst [vmem:[#allocation2 + $0x15c] sm:$0xe] %v2308_v44  ;;  %v2312_v15 = vrot.slane %v2310_v1, 4  ;;  %v2314_v55 = vrot.slane %v2313_v35, 4  ;;  %v2320_v3 = vrot.slane %v14362_v39, 7  ;;  %v2323_v59 = vrot.slane %v14364_v21, 7  ;;  %8324 = vmatprep.subr.bf16.mxu0 %v18700_v19 }
 0x26a   :  { %2516 = vst [vmem:[#allocation2 + $0x154] sm:$0xf] %v2306_v26  ;;  %2517 = vst [vmem:[#allocation2 + $0x158] sm:$0x1] %v2307_v12  ;;  %v2311_v45 = vsel %vm13681_vm8, %v2309_v22, %v2310_v1  ;;  %v2317_v25 = vrot.slane %v2315_v47, 4  ;;  %v2319_v53 = vrot.slane %v2318_v49, 4 }
 0x26b   :  { %2521 = vst [vmem:[#allocation2 + $0x168] sm:$0xe] %v2313_v35  ;;  %v2325_v36 = vrot.slane %v14366_v48, 7  ;;  %2524 = vst [vmem:[#allocation2 + $0x174] sm:$0xe] %v2318_v49  ;;  %v2316_v62 = vsel %vm13681_vm8, %v2314_v55, %v2315_v47  ;;  %v2322_v18 = vrot.slane %v2320_v3, 4 }
 0x26c   :  { %v2324_v61 = vrot.slane %v2323_v59, 4  ;;  %v2328_v39 = vrot.slane %v14368_v9, 7  ;;  %2519 = vst [vmem:[#allocation2 + $0x160] sm:$0xf] %v2311_v45  ;;  %2520 = vst [vmem:[#allocation2 + $0x164] sm:$0x1] %v2312_v15  ;;  %v2321_v58 = vsel %vm13681_vm8, %v2319_v53, %v2320_v3 }
 0x26d   :  { %2527 = vst [vmem:[#allocation2 + $0x180] sm:$0xe] %v2323_v59  ;;  %v12286_v21 = vld [vmem:[#allocation9 + $0x128] sm:$0xff]   ;;  %v2327_v60 = vrot.slane %v2325_v36, 4  ;;  %v2330_v31 = vrot.slane %v14370_v17, 7  ;;  %v2333_v48 = vrot.slane %v14372_v37, 7 }
 0x26e   :  { %2522 = vst [vmem:[#allocation2 + $0x16c] sm:$0xf] %v2316_v62  ;;  %2523 = vst [vmem:[#allocation2 + $0x170] sm:$0x1] %v2317_v25  ;;  %v2326_v9 = vsel %vm13681_vm8, %v2324_v61, %v2325_v36  ;;  %v2329_v32 = vrot.slane %v2328_v39, 4  ;;  %v2335_v16 = vrot.slane %v14374_v27, 7  ;;  %8325 = vmatpush1.bf16.msra.mxu0 %v12286_v21 }
 0x26f   :  { %v2338_v8 = vrot.slane %v14376_v30, 7  ;;  %2525 = vst [vmem:[#allocation2 + $0x178] sm:$0xf] %v2321_v58  ;;  %2526 = vst [vmem:[#allocation2 + $0x17c] sm:$0x1] %v2322_v18  ;;  %v2332_v17 = vrot.slane %v2330_v31, 4  ;;  %8326 = vmatprep.subr.bf16.mxu0 %v18700_v19 }
 0x270   :  { %2530 = vst [vmem:[#allocation2 + $0x18c] sm:$0xe] %v2328_v39  ;;  %v2839_v34 = vld [vmem:[#allocation2 + $0x18] sm:$0xe]  ;;  %v2840_v20 = vld [vmem:[#allocation2 + $0x1c] sm:$0xf]  ;;  %v2331_v27 = vsel %vm13681_vm8, %v2329_v32, %v2330_v31 }
 0x271   :  { %v2334_v54 = vrot.slane %v2333_v48, 4  ;;  %v18710_v37 = vld [vmem:[#allocation29_spill] sm:$0xff]  ;;  %v18711_v43 = vld [vmem:[#allocation26_spill] sm:$0xff]  ;;  %2528 = vst [vmem:[#allocation2 + $0x184] sm:$0xf] %v2326_v9  ;;  %v2337_v6 = vrot.slane %v2335_v16, 4 }
 0x272   :  { %v2340_v52 = vrot.slane %v18710_v37, 7  ;;  %v2348_v13 = vrot.slane %v18711_v43, 7  ;;  %2529 = vst [vmem:[#allocation2 + $0x188] sm:$0x1] %v2327_v60  ;;  %2533 = vst [vmem:[#allocation2 + $0x198] sm:$0xe] %v2333_v48 }
 0x273   :  { %v2841_v11 = vld [vmem:[#allocation2 + $0x20] sm:$0x1]  ;;  %v2339_v30 = vrot.slane %v2338_v8, 4  ;;  %v18712_v51 = vld [vmem:[#allocation31_spill] sm:$0xff]  ;;  %2536 = vst [vmem:[#allocation2 + $0x1a4] sm:$0xe] %v2338_v8  ;;  %v2336_v63 = vsel %vm13681_vm8, %v2334_v54, %v2335_v16 }
 0x274   :  { %v2350_v7 = vrot.slane %v18712_v51, 7  ;;  %v2843_v5 = vld [vmem:[#allocation2 + $0x28] sm:$0xf]  ;;  %v12289_v24 = vld [vmem:[#allocation9 + $0x130] sm:$0xff]   ;;  %v2342_v2 = vrot.slane %v2340_v52, 4  ;;  %v2349_v33 = vrot.slane %v2348_v13, 4 }
 0x275   :  { %2531 = vst [vmem:[#allocation2 + $0x190] sm:$0xf] %v2331_v27  ;;  %2532 = vst [vmem:[#allocation2 + $0x194] sm:$0x1] %v2332_v17  ;;  %v18713_v41 = vld [vmem:[#allocation103_spill] sm:$0xff]  ;;  %v2341_v50 = vsel %vm13681_vm8, %v2339_v30, %v2340_v52  ;;  %v3044_v40 = vrot.slane %v2840_v20, 5  ;;  %8327 = vmatpush1.bf16.msra.mxu0 %v12289_v24 }
 0x276   :  { %2542 = vst [vmem:[#allocation2 + $0x1bc] sm:$0xe] %v2348_v13  ;;  %v841_v57 = vmul.f32 %v18713_v41, %v18713_v41  ;;  %v2842_v42 = vld [vmem:[#allocation2 + $0x24] sm:$0xe]  ;;  %v2844_v56 = vld [vmem:[#allocation2 + $0x2c] sm:$0x1]  ;;  %v2351_v38 = vsel %vm13681_vm8, %v2349_v33, %v2350_v7  ;;  %8328 = vmatprep.subr.bf16.mxu0 %v18700_v19 }
 0x277   :  { %v2352_v0 = vrot.slane %v2350_v7, 4  ;;  %2534 = vst [vmem:[#allocation2 + $0x19c] sm:$0xf] %v2336_v63  ;;  %2535 = vst [vmem:[#allocation2 + $0x1a0] sm:$0x1] %v2337_v6  ;;  %v18714_v29 = vld [vmem:[#allocation106_spill] sm:$0xff] }
 0x278   :  { %v842_v28 = vmul.f32 %v18714_v29, %v18714_v29  ;;  %v14522_v23 = vld [vmem:[#allocation2 + $0x34] sm:$0xf]  ;;  %v12292_v14 = vld [vmem:[#allocation9 + $0x138] sm:$0xff]   ;;  %2537 = vst [vmem:[#allocation2 + $0x1a8] sm:$0xf] %v2341_v50  ;;  %v10755_v44 = vrot.slane %v2839_v34, 9 }
 0x279   :  { %2538 = vst [vmem:[#allocation2 + $0x1ac] sm:$0x1] %v2342_v2  ;;  %v18715_v10 = vld [vmem:[#allocation120_spill] sm:$0xff]  ;;  %v18716_v12 = vld [vmem:[#allocation119_spill] sm:$0xff]  ;;  %v3051_v35 = vrot.slane %v2843_v5, 5  ;;  %v3046_v4 = vrot.slane %v3044_v40, 4  ;;  %8329 = vmatpush1.bf16.msra.mxu0 %v12292_v14 }
 0x27a   :  { %v903_v1 = vadd.f32 %v18716_v12, %v18715_v10  ;;  %2543 = vst [vmem:[#allocation2 + $0x1c0] sm:$0xf] %v2351_v38  ;;  %2544 = vst [vmem:[#allocation2 + $0x1c4] sm:$0x1] %v2352_v0  ;;  %v3047_v26 = vrot.slane %v2841_v11, 5  ;;  %v18717_v22 = vld [vmem:[#allocation118_spill] sm:$0xff]  ;;  %v3045_v25 = vsel %vm13373_vm2, %v10755_v44, %v3044_v40  ;;  %8330 = vmatprep.subr.bf16.mxu0 %v18700_v19 }
 0x27b   :  { %v771_v47 = vadd.f32 %v18713_v41, %v18717_v22  ;;  %v18718_v49 = vld [vmem:[#allocation109_spill] sm:$0xff]  ;;  %v10756_v46 = vrot.slane %v2842_v42, 9  ;;  %v3053_v55 = vrot.slane %v3051_v35, 4  ;;  %v3054_v3 = vrot.slane %v2844_v56, 5  ;;  %v2845_v48 = vld [vmem:[#allocation2 + $0x30] sm:$0xe] }
 0x27c   :  { %v843_v15 = vmul.f32 %v18718_v49, %v18718_v49  ;;  %v904_v59 = vadd.f32 %v903_v1, %v841_v57  ;;  %v3048_v53 = vsel %vm13373_vm2, %v3046_v4, %v3047_v26  ;;  %v12273_v36 = vld [vmem:[#allocation2 + $0x18] sm:$0xff]   ;;  %v3058_v18 = vrot.slane %v14522_v23, 5  ;;  %v3420_v16 = vld [vmem:[#allocation2 + $0x20] sm:$0x3]  ;;  %v18721_v54 = vld [vmem:[#allocation107_spill] sm:$0xff] }
 0x27d   :  { %v772_v62 = vadd.f32 %v771_v47, %v18714_v29  ;;  %v3419_v61 = vld [vmem:[#allocation2 + $0x1c] sm:$0xf]  ;;  %v10787_v39 = vcombine.low %v3045_v25, %v3048_v53  ;;  %v3055_v21 = vsel %vm13373_vm2, %v3053_v55, %v3054_v3  ;;  %v2847_v9 = vld [vmem:[#allocation2 + $0x38] sm:$0x1]  ;;  %v3418_v32 = vld [vmem:[#allocation2 + $0x18] sm:$0xc]  ;;  %v3052_v8 = vsel %vm13373_vm2, %v10756_v46, %v3051_v35 }
 0x27e   :  { %v18720_v58 = vld [vmem:[#allocation105_spill] sm:$0xff]  ;;  %v905_v31 = vadd.f32 %v904_v59, %v842_v28  ;;  %v12295_v20 = vld [vmem:[#allocation9 + $0x140] sm:$0xff]   ;;  %v10788_v17 = vcombine.low %v3052_v8, %v3055_v21  ;;  %v845_v37 = vmul.f32 %v18721_v54, %v18721_v54  ;;  %v3623_v43 = vrot.slane %v3419_v61, 6  ;;  %v18722_v27 = vld [vmem:[#allocation112_spill] sm:$0xff] }
 0x27f   :  { %v844_v60 = vmul.f32 %v18720_v58, %v18720_v58  ;;  %v773_v34 = vadd.f32 %v772_v62, %v18718_v49  ;;  %7784 = vmatprep.mubr.bf16.mxu1 %v10787_v39  ;;  %v3060_v11 = vrot.slane %v3058_v18, 4  ;;  %v846_v6 = vmul.f32 %v18722_v27, %v18722_v27  ;;  %v3422_v30 = vld [vmem:[#allocation2 + $0x28] sm:$0xf]  ;;  %v14552_v63 = vld [vmem:[#allocation2 + $0x40] sm:$0xf]  ;;  %v18723_v42 = vld [vmem:[#allocation121_spill] sm:$0xff]  ;;  %8331 = vmatpush1.bf16.msra.mxu0 %v12295_v20 }
 0x280   :  { %v906_v52 = vadd.f32 %v905_v31, %v843_v15  ;;  %7785 = vmatmul.mubr.bf16.gmra.mrb[72].mxu1 %v12273_v36  ;;  %v10819_v7 = vrot.slane %v3418_v32, 10  ;;  %v3625_v5 = vrot.slane %v3623_v43, 4  ;;  %v3626_v24 = vrot.slane %v3420_v16, 6  ;;  %v3423_v50 = vld [vmem:[#allocation2 + $0x2c] sm:$0x3]  ;;  %8332 = vmatprep.subr.bf16.mxu0 %v18700_v19  ;;  %v12278_v35 = vld [vmem:[#allocation2 + $0x3c] sm:$0xff]  }
 0x281   :  { %v774_v13 = vadd.f32 %v18720_v58, %v773_v34  ;;  %7792 = vmatprep.mubr.bf16.mxu1 %v10788_v17  ;;  %v10757_v2 = vrot.slane %v2845_v48, 9  ;;  %v3061_v33 = vrot.slane %v2847_v9, 5  ;;  %v847_v56 = vmul.f32 %v18723_v42, %v18723_v42  ;;  %v12298_v38 = vld [vmem:[#allocation9 + $0x148] sm:$0xff]   ;;  %v18725_v4 = vld [vmem:[#allocation110_spill] sm:$0xff]  ;;  %v2848_v59 = vld [vmem:[#allocation2 + $0x3c] sm:$0xe] }
 0x282   :  { %v907_v51 = vadd.f32 %v906_v52, %v844_v60  ;;  %v3624_v40 = vsel %vm13465_vm5, %v10819_v7, %v3623_v43  ;;  %v3627_v28 = vsel %vm13465_vm5, %v3625_v5, %v3626_v24  ;;  %v3630_v14 = vrot.slane %v3422_v30, 6  ;;  %v3421_v47 = vld [vmem:[#allocation2 + $0x24] sm:$0xc]  ;;  %v14571_v25 = vld [vmem:[#allocation2 + $0x34] sm:$0xf]  ;;  %v18727_v16 = vld [vmem:[#allocation123_spill] sm:$0xff] }
 0x283   :  { %v775_v57 = vadd.f32 %v18721_v54, %v774_v13  ;;  %v3062_v44 = vsel %vm13373_vm2, %v3060_v11, %v3061_v33  ;;  %v10851_v10 = vcombine.low %v3624_v40, %v3627_v28  ;;  %v3065_v1 = vrot.slane %v14552_v63, 5  ;;  %v12276_v46 = vld [vmem:[#allocation2 + $0x24] sm:$0xff]   ;;  %v18726_v36 = vld [vmem:[#allocation116_spill] sm:$0xff]  ;;  %8333 = vmatpush1.bf16.msra.mxu0 %v12298_v38  ;;  %v14581_v34 = vld [vmem:[#allocation2 + $0x4c] sm:$0xf] }
 0x284   :  { %v908_v23 = vadd.f32 %v907_v51, %v845_v37  ;;  %v848_v26 = vmul.f32 %v18725_v4, %v18725_v4  ;;  %v3632_v15 = vrot.slane %v3630_v14, 4  ;;  %v3059_v55 = vsel %vm13373_vm2, %v10757_v2, %v3058_v18  ;;  %v2850_v39 = vld [vmem:[#allocation2 + $0x44] sm:$0x1]  ;;  %v12301_v60 = vld [vmem:[#allocation9 + $0x150] sm:$0xff]   ;;  %8334 = vmatprep.subr.bf16.mxu0 %v18700_v19  ;;  %v18728_v11 = vld [vmem:[#allocation125_spill] sm:$0xff] }
 0x285   :  { %v776_v12 = vadd.f32 %v775_v57, %v18722_v27  ;;  %8074 = vmatmul.mubr.bf16.gmra.mrb[72].mxu0 %v10851_v10  ;;  %v10789_v53 = vcombine.low %v3059_v55, %v3062_v44  ;;  %v849_v62 = vmul.f32 %v18726_v36, %v18726_v36  ;;  %v3633_v21 = vrot.slane %v3423_v50, 6  ;;  %v3424_v30 = vld [vmem:[#allocation2 + $0x30] sm:$0xc]  ;;  %v12304_v51 = vld [vmem:[#allocation9 + $0x158] sm:$0xff]   ;;  %v12281_v33 = vld [vmem:[#allocation2 + $0x48] sm:$0xff]  }
 0x286   :  { %v909_v22 = vadd.f32 %v908_v23, %v846_v6  ;;  %8081 = vmatprep.mubr.bf16.mxu0 %v12278_v35  ;;  %v3067_v18 = vrot.slane %v3065_v1, 4  ;;  %v10820_v48 = vrot.slane %v3421_v47, 10  ;;  %v850_v8 = vmul.f32 %v18727_v16, %v18727_v16  ;;  %v3426_v2 = vld [vmem:[#allocation2 + $0x38] sm:$0x3]  ;;  %v18729_v57 = vld [vmem:[#allocation122_spill] sm:$0xff]  ;;  %v12279_v28 = vld [vmem:[#allocation2 + $0x30] sm:$0xff]  }
 0x287   :  { %v777_v3 = vadd.f32 %v776_v12, %v18723_v42  ;;  %v3634_v32 = vsel %vm13465_vm5, %v3632_v15, %v3633_v21  ;;  %v3637_v20 = vrot.slane %v14571_v25, 6  ;;  %v3068_v17 = vrot.slane %v2850_v39, 5  ;;  %8335 = vmatpush1.bf16.msra.mxu0 %v12301_v60  ;;  %v14599_v38 = vld [vmem:[#allocation2 + $0x40] sm:$0xf]  ;;  %v18730_v10 = vld [vmem:[#allocation124_spill] sm:$0xff]  ;;  %v18731_v25 = vld [vmem:[#allocation127_spill] sm:$0xff] }
 0x288   :  { %v910_v61 = vadd.f32 %v909_v22, %v847_v56  ;;  %7793 = vmatmul.mubr.bf16.gmra.mrb[76].mxu1 %v12276_v46  ;;  %v10758_v52 = vrot.slane %v2848_v59, 9  ;;  %v3631_v43 = vsel %vm13465_vm5, %v10820_v48, %v3630_v14  ;;  %v851_v6 = vmul.f32 %v18728_v11, %v18728_v11  ;;  %8336 = vmatprep.subr.bf16.mxu0 %v18700_v19  ;;  %v12307_v47 = vld [vmem:[#allocation9 + $0x160] sm:$0xff]   ;;  %v2851_v46 = vld [vmem:[#allocation2 + $0x48] sm:$0xe]  ;;  %v18732_v48 = vld [vmem:[#allocation28_spill] sm:$0xff] }
 0x289   :  { %v778_v31 = vadd.f32 %v18725_v4, %v777_v3  ;;  %7800 = vmatprep.mubr.bf16.mxu1 %v10789_v53  ;;  %v3069_v7 = vsel %vm13373_vm2, %v3067_v18, %v3068_v17  ;;  %v10852_v5 = vcombine.low %v3631_v43, %v3634_v32  ;;  %v3072_v63 = vrot.slane %v14581_v34, 5  ;;  %v12284_v43 = vld [vmem:[#allocation2 + $0x54] sm:$0xff]   ;;  %v12300_v0 = vld [vmem:[#allocation2 + $0x84] sm:$0xff]  }
 0x28a   :  { %v911_v9 = vadd.f32 %v910_v61, %v848_v26  ;;  %v852_v56 = vmul.f32 %v18729_v57, %v18729_v57  ;;  %v3639_v40 = vrot.slane %v3637_v20, 4  ;;  %v3066_v23 = vsel %vm13373_vm2, %v10758_v52, %v3065_v1  ;;  %v2853_v26 = vld [vmem:[#allocation2 + $0x50] sm:$0x1]  ;;  %v12282_v52 = vld [vmem:[#allocation2 + $0x3c] sm:$0xff]  }
 0x28b   :  { %v779_v37 = vadd.f32 %v18726_v36, %v778_v31  ;;  %v10790_v44 = vcombine.low %v3066_v23, %v3069_v7  ;;  %v853_v12 = vmul.f32 %v18730_v10, %v18730_v10  ;;  %v3640_v22 = vrot.slane %v3426_v2, 6  ;;  %8337 = vmatpush1.bf16.msra.mxu0 %v12304_v51  ;;  %v14624_v51 = vld [vmem:[#allocation2 + $0x64] sm:$0xf]  ;;  %v2856_v2 = vld [vmem:[#allocation2 + $0x5c] sm:$0x1] }
 0x28c   :  { %v912_v13 = vadd.f32 %v911_v9, %v849_v62  ;;  %v3074_v1 = vrot.slane %v3072_v63, 4  ;;  %v10821_v55 = vrot.slane %v3424_v30, 10  ;;  %8338 = vmatprep.subr.bf16.mxu0 %v18700_v19  ;;  %v854_v53 = vmul.f32 %v18731_v25, %v18731_v25  ;;  %v14609_v62 = vld [vmem:[#allocation2 + $0x58] sm:$0xf] }
 0x28d   :  { %v780_v24 = vadd.f32 %v779_v37, %v18727_v16  ;;  %8082 = vmatmul.mubr.bf16.gmra.mrb[76].mxu0 %v10852_v5  ;;  %v3641_v59 = vsel %vm13465_vm5, %v3639_v40, %v3640_v22  ;;  %v3644_v61 = vrot.slane %v14599_v38, 6  ;;  %v3075_v39 = vrot.slane %v2853_v26, 5  ;;  %v3429_v37 = vld [vmem:[#allocation2 + $0x44] sm:$0x3]  ;;  %v18734_v40 = vld [vmem:[#allocation27_spill] sm:$0xff] }
 0x28e   :  { %v913_v50 = vadd.f32 %v912_v13, %v850_v8  ;;  %8089 = vmatprep.mubr.bf16.mxu0 %v12281_v33  ;;  %v10759_v60 = vrot.slane %v2851_v46, 9  ;;  %v3638_v31 = vsel %vm13465_vm5, %v10821_v55, %v3637_v20  ;;  %v855_v9 = vmul.f32 %v18732_v48, %v18732_v48  ;;  %v18733_v13 = vld [vmem:[#allocation126_spill] sm:$0xff]  ;;  %v3427_v33 = vld [vmem:[#allocation2 + $0x3c] sm:$0xc]  ;;  %v12310_v38 = vld [vmem:[#allocation9 + $0x168] sm:$0xff]  }
 0x28f   :  { %v781_v14 = vadd.f32 %v780_v24, %v18728_v11  ;;  %8339 = vmatpush1.bf16.msra.mxu0 %v12307_v47  ;;  %v3076_v32 = vsel %vm13373_vm2, %v3074_v1, %v3075_v39  ;;  %v10853_v8 = vcombine.low %v3638_v31, %v3641_v59  ;;  %v3079_v17 = vrot.slane %v14609_v62, 5  ;;  %v2854_v24 = vld [vmem:[#allocation2 + $0x54] sm:$0xe]  ;;  %v2857_v1 = vld [vmem:[#allocation2 + $0x60] sm:$0xe] }
 0x290   :  { %v914_v35 = vadd.f32 %v913_v50, %v851_v6  ;;  %7801 = vmatmul.mubr.bf16.gmra.mrb[80].mxu1 %v12279_v28  ;;  %8340 = vmatprep.subr.bf16.mxu0 %v18700_v19  ;;  %v856_v20 = vmul.f32 %v18733_v13, %v18733_v13  ;;  %v3646_v30 = vrot.slane %v3644_v61, 4  ;;  %v3073_v7 = vsel %vm13373_vm2, %v10759_v60, %v3072_v63  ;;  %v2859_v55 = vld [vmem:[#allocation2 + $0x68] sm:$0x1]  ;;  %v3430_v62 = vld [vmem:[#allocation2 + $0x48] sm:$0xc] }
 0x291   :  { %v782_v15 = vadd.f32 %v18729_v57, %v781_v14  ;;  %7808 = vmatprep.mubr.bf16.mxu1 %v10790_v44  ;;  %v10791_v50 = vcombine.low %v3073_v7, %v3076_v32  ;;  %v857_v28 = vmul.f32 %v18734_v40, %v18734_v40  ;;  %v3647_v14 = vrot.slane %v3429_v37, 6  ;;  %v3432_v39 = vld [vmem:[#allocation2 + $0x50] sm:$0x3]  ;;  %v12285_v60 = vld [vmem:[#allocation2 + $0x48] sm:$0xff]   ;;  %v12287_v37 = vld [vmem:[#allocation2 + $0x60] sm:$0xff]  }
 0x292   :  { %v915_v3 = vadd.f32 %v914_v35, %v852_v56  ;;  %v14629_v56 = vld [vmem:[#allocation2 + $0x4c] sm:$0xf]  ;;  %v3081_v63 = vrot.slane %v3079_v17, 4  ;;  %v10822_v26 = vrot.slane %v3427_v33, 10  ;;  %v3082_v46 = vrot.slane %v2856_v2, 5 }
 0x293   :  { %v783_v21 = vadd.f32 %v18730_v10, %v782_v15  ;;  %v3648_v22 = vsel %vm13465_vm5, %v3646_v30, %v3647_v14  ;;  %v3651_v47 = vrot.slane %v14629_v56, 6  ;;  %8341 = vmatpush1.bf16.msra.mxu0 %v12310_v38  ;;  %v10760_v59 = vrot.slane %v2854_v24, 9  ;;  %v2860_v24 = vld [vmem:[#allocation2 + $0x6c] sm:$0xe]  ;;  %v14651_v14 = vld [vmem:[#allocation2 + $0x7c] sm:$0xf] }
 0x294   :  { %v916_v18 = vadd.f32 %v915_v3, %v853_v12  ;;  %v3086_v12 = vrot.slane %v14624_v51, 5  ;;  %8342 = vmatprep.subr.bf16.mxu0 %v18700_v19  ;;  %v3089_v30 = vrot.slane %v2859_v55, 5  ;;  %v10762_v55 = vrot.slane %v2860_v24, 9 }
 0x295   :  { %v784_v34 = vadd.f32 %v783_v21, %v18731_v25  ;;  %8090 = vmatmul.mubr.bf16.gmra.mrb[80].mxu0 %v10853_v8  ;;  %v2861_v21 = vld [vmem:[#allocation2 + $0x70] sm:$0xf]  ;;  %v14644_v8 = vld [vmem:[#allocation2 + $0x58] sm:$0xf] }
 0x296   :  { %v917_v6 = vadd.f32 %v916_v18, %v854_v53  ;;  %8097 = vmatprep.mubr.bf16.mxu0 %v12284_v43  ;;  %v3645_v53 = vsel %vm13465_vm5, %v10822_v26, %v3644_v61  ;;  %v3083_v18 = vsel %vm13373_vm2, %v3081_v63, %v3082_v46  ;;  %v3088_v32 = vrot.slane %v3086_v12, 4  ;;  %v12313_v43 = vld [vmem:[#allocation9 + $0x170] sm:$0xff]   ;;  %v3437_v26 = vld [vmem:[#allocation2 + $0x64] sm:$0xf] }
 0x297   :  { %v785_v5 = vadd.f32 %v784_v34, %v18732_v48  ;;  %v3080_v61 = vsel %vm13373_vm2, %v10760_v59, %v3079_v17  ;;  %v3658_v2 = vrot.slane %v14644_v8, 6  ;;  %8343 = vmatpush1.bf16.msra.mxu0 %v12313_v43  ;;  %v3435_v17 = vld [vmem:[#allocation2 + $0x5c] sm:$0x3]  ;;  %v3433_v63 = vld [vmem:[#allocation2 + $0x54] sm:$0xc] }
 0x298   :  { %v918_v23 = vadd.f32 %v917_v6, %v855_v9  ;;  %7809 = vmatmul.mubr.bf16.gmra.mrb[84].mxu1 %v12282_v52  ;;  %v10854_v9 = vcombine.low %v3645_v53, %v3648_v22  ;;  %v3653_v52 = vrot.slane %v3651_v47, 4  ;;  %v10761_v6 = vrot.slane %v2857_v1, 9  ;;  %8344 = vmatprep.subr.bf16.mxu0 %v18700_v19  ;;  %v12316_v22 = vld [vmem:[#allocation9 + $0x178] sm:$0xff]   ;;  %v14660_v59 = vld [vmem:[#allocation2 + $0x88] sm:$0xf] }
 0x299   :  { %v786_v44 = vadd.f32 %v18733_v13, %v785_v5  ;;  %7816 = vmatprep.mubr.bf16.mxu1 %v10791_v50  ;;  %v10792_v7 = vcombine.low %v3080_v61, %v3083_v18  ;;  %v3654_v5 = vrot.slane %v3432_v39, 6  ;;  %v3090_v56 = vsel %vm13373_vm2, %v3088_v32, %v3089_v30  ;;  %v12290_v39 = vld [vmem:[#allocation2 + $0x6c] sm:$0xff]  }
 0x29a   :  { %v919_v35 = vadd.f32 %v918_v23, %v856_v20  ;;  %v10823_v50 = vrot.slane %v3430_v62, 10  ;;  %v3093_v23 = vrot.slane %v2861_v21, 5  ;;  %v3087_v46 = vsel %vm13373_vm2, %v10761_v6, %v3086_v12  ;;  %v12288_v6 = vld [vmem:[#allocation2 + $0x54] sm:$0xff]  }
 0x29b   :  { %v787_v15 = vadd.f32 %v18734_v40, %v786_v44  ;;  %v3655_v44 = vsel %vm13465_vm5, %v3653_v52, %v3654_v5  ;;  %v10793_v62 = vcombine.low %v3087_v46, %v3090_v56  ;;  %v3660_v21 = vrot.slane %v3658_v2, 4  ;;  %8345 = vmatpush1.bf16.msra.mxu0 %v12316_v22 }
 0x29c   :  { %v920_v3 = vadd.f32 %v919_v35, %v857_v28  ;;  %v2862_v28 = vld [vmem:[#allocation2 + $0x74] sm:$0x1]  ;;  %v2863_v35 = vld [vmem:[#allocation2 + $0x78] sm:$0xe]  ;;  %v3652_v1 = vsel %vm13465_vm5, %v10823_v50, %v3651_v47  ;;  %v14667_v12 = vsel %vm13373_vm2, %v10762_v55, %v3093_v23  ;;  %v3438_v47 = vld [vmem:[#allocation2 + $0x68] sm:$0x3]  ;;  %8603 = vmatprep.subr.bf16.mxu0 %v18700_v19 }
 0x29d   :  { %v788_v31 = vrot.slane %v787_v15, 4  ;;  %8098 = vmatmul.mubr.bf16.gmra.mrb[84].mxu0 %v10854_v9  ;;  %v10855_v9 = vcombine.low %v3652_v1, %v3655_v44  ;;  %v3665_v32 = vrot.slane %v3437_v26, 6  ;;  %v3095_v52 = vrot.slane %v3093_v23, 4  ;;  %v3439_v44 = vld [vmem:[#allocation2 + $0x6c] sm:$0xc] }
 0x29e   :  { %v921_v34 = vrot.slane %v920_v3, 4  ;;  %8105 = vmatprep.mubr.bf16.mxu0 %v12287_v37  ;;  %v3096_v43 = vrot.slane %v2862_v28, 5  ;;  %v10824_v30 = vrot.slane %v3433_v63, 10  ;;  %v3107_v5 = vrot.slane %v14660_v59, 5  ;;  %v3441_v63 = vld [vmem:[#allocation2 + $0x74] sm:$0x3] }
 0x29f   :  { %v789_v20 = vadd.f32 %v788_v31, %v787_v15  ;;  %v3436_v31 = vld [vmem:[#allocation2 + $0x60] sm:$0xc]  ;;  %v14680_v26 = vld [vmem:[#allocation2 + $0x7c] sm:$0xf]  ;;  %v3668_v1 = vrot.slane %v3438_v47, 6 }
 0x2a0   :  { %v922_v51 = vadd.f32 %v921_v34, %v920_v3  ;;  %7817 = vmatmul.mubr.bf16.gmra.mrb[88].mxu1 %v12285_v60  ;;  %v2865_v3 = vld [vmem:[#allocation2 + $0x80] sm:$0x1]  ;;  %v3100_v60 = vrot.slane %v14651_v14, 5  ;;  %v14669_v34 = vld [vmem:[#allocation2 + $0x70] sm:$0xf]  ;;  %v10825_v23 = vrot.slane %v3436_v31, 10  ;;  %v3659_v46 = vsel %vm13465_vm5, %v10824_v30, %v3658_v2 }
 0x2a1   :  { %v790_v33 = vrot.slane %v789_v20, 2  ;;  %7824 = vmatprep.mubr.bf16.mxu1 %v10792_v7  ;;  %v2866_v7 = vld [vmem:[#allocation2 + $0x84] sm:$0xe]  ;;  %v3103_v50 = vrot.slane %v2865_v3, 5  ;;  %v2868_v14 = vld [vmem:[#allocation2 + $0x8c] sm:$0x1] }
 0x2a2   :  { %v923_v38 = vrot.slane %v922_v51, 2  ;;  %v3102_v56 = vrot.slane %v3100_v60, 4  ;;  %v14688_v55 = vld [vmem:[#allocation2 + $0xa0] sm:$0xf]  ;;  %v14703_v2 = vsel %vm13465_vm5, %v10825_v23, %v3665_v32  ;;  %v2869_v31 = vld [vmem:[#allocation2 + $0x90] sm:$0xe] }
 0x2a3   :  { %v791_v15 = vadd.f32 %v790_v33, %v789_v20  ;;  %v3661_v20 = vrot.slane %v3435_v17, 6  ;;  %v3667_v17 = vrot.slane %v3665_v32, 4  ;;  %v3110_v47 = vrot.slane %v2868_v14, 5  ;;  %v12291_v30 = vld [vmem:[#allocation2 + $0x60] sm:$0xff]  }
 0x2a4   :  { %v924_v53 = vadd.f32 %v923_v38, %v922_v51  ;;  %v10763_v51 = vrot.slane %v2863_v35, 9  ;;  %v14675_v38 = vld [vmem:[#allocation2 + $0x94] sm:$0xf]  ;;  %v3672_v35 = vrot.slane %v14669_v34, 6  ;;  %v14699_v8 = vsel %vm13373_vm2, %v3102_v56, %v3103_v50  ;;  %v3444_v56 = vld [vmem:[#allocation2 + $0x80] sm:$0x3] }
 0x2a5   :  { %v792_v18 = vrot.slane %v791_v15, 1  ;;  %8106 = vmatmul.mubr.bf16.gmra.mrb[88].mxu0 %v10855_v9  ;;  %v3662_v33 = vsel %vm13465_vm5, %v3660_v21, %v3661_v20  ;;  %v10764_v21 = vrot.slane %v2866_v7, 9  ;;  %v12293_v9 = vld [vmem:[#allocation2 + $0x78] sm:$0xff]   ;;  %v3679_v20 = vrot.slane %v14680_v26, 6 }
 0x2a6   :  { %v925_v37 = vrot.slane %v924_v53, 1  ;;  %8113 = vmatprep.mubr.bf16.mxu0 %v12290_v39  ;;  %v14694_v59 = vsel %vm13373_vm2, %v10763_v51, %v3100_v60  ;;  %v10856_v39 = vcombine.low %v3659_v46, %v3662_v33  ;;  %v3669_v60 = vsel %vm13465_vm5, %v3667_v17, %v3668_v1  ;;  %v3442_v33 = vld [vmem:[#allocation2 + $0x78] sm:$0xc]  ;;  %v2872_v17 = vld [vmem:[#allocation2 + $0x9c] sm:$0xe] }
 0x2a7   :  { %v793_v61 = vadd.f32 %v792_v18, %v791_v15  ;;  %v3097_v15 = vsel %vm13373_vm2, %v3095_v52, %v3096_v43  ;;  %v3674_v34 = vrot.slane %v3672_v35, 4  ;;  %v10826_v52 = vrot.slane %v3439_v44, 10  ;;  %v2874_v44 = vld [vmem:[#allocation2 + $0xa4] sm:$0x1]  ;;  %v3445_v1 = vld [vmem:[#allocation2 + $0x84] sm:$0xc] }
 0x2a8   :  { %v926_v24 = vadd.f32 %v925_v37, %v924_v53  ;;  %7825 = vmatmul.mubr.bf16.gmra.mrb[92].mxu1 %v12288_v6  ;;  %v3109_v53 = vrot.slane %v3107_v5, 4  ;;  %v2871_v37 = vld [vmem:[#allocation2 + $0x98] sm:$0x1]  ;;  %v3675_v43 = vrot.slane %v3441_v63, 6  ;;  %v14709_v6 = vld [vmem:[#allocation2 + $0x88] sm:$0xf]  ;;  %v10794_v50 = vcombine.low %v14667_v12, %v3097_v15 }
 0x2a9   :  { %v14677_v28 = vmul.f32 0.001953125, %v793_v61  ;;  %7832 = vmatprep.mubr.bf16.mxu1 %v10793_v62  ;;  %v3114_v62 = vrot.slane %v14675_v38, 5  ;;  %v3121_v61 = vrot.slane %v14688_v55, 5  ;;  %v10765_v7 = vrot.slane %v2869_v31, 9  ;;  %v14723_v63 = vld [vmem:[#allocation2 + $0xac] sm:$0xf] }
 0x2aa   :  { %v928_v22 = vmul.f32 0.001953125, %v926_v24  ;;  %v14713_v51 = vsel %vm13373_vm2, %v3109_v53, %v3110_v47  ;;  %v10795_v14 = vcombine.low %v14694_v59, %v14699_v8  ;;  %v10857_v38 = vcombine.low %v14703_v2, %v3669_v60  ;;  %v3447_v8 = vld [vmem:[#allocation2 + $0x8c] sm:$0x3]  ;;  %v14742_v2 = vld [vmem:[#allocation2 + $0xb8] sm:$0xf] }
 0x2ab   :  { %v929_v3 = vmul.f32 %v14677_v28, %v14677_v28  ;;  %v3116_v24 = vrot.slane %v3114_v62, 4  ;;  %v14721_v23 = vsel %vm13373_vm2, %v10764_v21, %v3107_v5  ;;  %v14729_v12 = vsel %vm13465_vm5, %v3674_v34, %v3675_v43  ;;  %v2877_v43 = vld [vmem:[#allocation2 + $0xb0] sm:$0x1]  ;;  %v14788_v55 = vld [vmem:[#allocation2 + $0xac] sm:$0xf] }
 0x2ac   :  { %v3117_v15 = vrot.slane %v2871_v37, 5  ;;  %v10796_v5 = vcombine.low %v14721_v23, %v14713_v51  ;;  %v14736_v59 = vsel %vm13465_vm5, %v10826_v52, %v3672_v35  ;;  %v3681_v53 = vrot.slane %v3679_v20, 4  ;;  %v14750_v35 = vld [vmem:[#allocation2 + $0xa0] sm:$0xf]  ;;  %v2875_v52 = vld [vmem:[#allocation2 + $0xa8] sm:$0xe] }
 0x2ad   :  { %v930_v18 = vsub.f32 %v928_v22, %v929_v3  ;;  %8114 = vmatmul.mubr.bf16.gmra.mrb[92].mxu0 %v10856_v39  ;;  %v14725_v22 = vld [vmem:[#allocation2 + $0x94] sm:$0xf]  ;;  %v3686_v3 = vrot.slane %v14709_v6, 6  ;;  %v3123_v39 = vrot.slane %v3121_v61, 4  ;;  %v3128_v31 = vrot.slane %v14723_v63, 5  ;;  %18735 = vst [vmem:[#allocation33_spill] sm:$0xff] %v14788_v55 }
 0x2ae   :  { %8121 = vmatprep.mubr.bf16.mxu0 %v12293_v9  ;;  %v14746_v21 = vsel %vm13373_vm2, %v3116_v24, %v3117_v15  ;;  %v12296_v9 = vld [vmem:[#allocation2 + $0x84] sm:$0xff]   ;;  %v10858_v60 = vcombine.low %v14736_v59, %v14729_v12  ;;  %v14756_v47 = vsel %vm13373_vm2, %v10765_v7, %v3114_v62  ;;  %v10827_v34 = vrot.slane %v3442_v33, 10  ;;  %v12294_v7 = vld [vmem:[#allocation2 + $0x6c] sm:$0xff]  }
 0x2af   :  { %v931_v32 = vmax.f32 %v930_v18, 0.0  ;;  %v3693_v18 = vrot.slane %v14725_v22, 6  ;;  %v3682_v37 = vrot.slane %v3444_v56, 6  ;;  %v10766_v6 = vrot.slane %v2872_v17, 9  ;;  %v18756_v51 = vld [vmem:[#allocation22_spill] sm:$0xff] }
 0x2b0   :  { %7833 = vmatmul.mubr.bf16.gmra.mrb[96].mxu1 %v12291_v30  ;;  %v3688_v30 = vrot.slane %v3686_v3, 4  ;;  %v3135_v24 = vrot.slane %v14742_v2, 5  ;;  %v10828_v22 = vrot.slane %v3445_v1, 10  ;;  %v3700_v62 = vrot.slane %v14750_v35, 6  ;;  %v2878_v2 = vld [vmem:[#allocation2 + $0xb4] sm:$0xe] }
 0x2b1   :  { %v932_v46 = vadd.f32 1e-05, %v931_v32  ;;  %7840 = vmatprep.mubr.bf16.mxu1 %v10794_v50  ;;  %v3124_v32 = vrot.slane %v2874_v44, 5  ;;  %v14763_v63 = vsel %vm13465_vm5, %v3681_v53, %v3682_v37  ;;  %v3689_v56 = vrot.slane %v3447_v8, 6  ;;  %v3448_v44 = vld [vmem:[#allocation2 + $0x90] sm:$0xc] }
 0x2b2   :  { %v3130_v17 = vrot.slane %v3128_v31, 4  ;;  %v3695_v15 = vrot.slane %v3693_v18, 4  ;;  %v14774_v53 = vsel %vm13465_vm5, %v10827_v34, %v3679_v20  ;;  %v10767_v1 = vrot.slane %v2875_v52, 9  ;;  %v2880_v8 = vld [vmem:[#allocation2 + $0xbc] sm:$0x1]  ;;  %v12299_v50 = vld [vmem:[#allocation2 + $0x90] sm:$0xff]  }
 0x2b3   :  { %12414 = vrsqrt.f32 %v932_v46  ;;  %v3450_v46 = vld [vmem:[#allocation2 + $0x98] sm:$0x3]  ;;  %v14768_v33 = vsel %vm13373_vm2, %v3123_v39, %v3124_v32  ;;  %v3131_v39 = vrot.slane %v2877_v43, 5  ;;  %v14786_v26 = vsel %vm13465_vm5, %v3688_v30, %v3689_v56  ;;  %v3453_v34 = vld [vmem:[#allocation2 + $0xa4] sm:$0x3] }
 0x2b4   :  { %v3696_v20 = vrot.slane %v3450_v46, 6  ;;  %v14794_v37 = vsel %vm13465_vm5, %v10828_v22, %v3686_v3  ;;  %v10829_v52 = vrot.slane %v3448_v44, 10  ;;  %v3451_v43 = vld [vmem:[#allocation2 + $0x9c] sm:$0xc]  ;;  %v14796_v32 = vld [vmem:[#allocation2 + $0xf4] sm:$0xf]  ;;  %v14803_v46 = vsel %vm13373_vm2, %v10767_v1, %v3128_v31 }
 0x2b5   :  { %8122 = vmatmul.mubr.bf16.gmra.mrb[96].mxu0 %v10857_v38  ;;  %v14780_v38 = vsel %vm13373_vm2, %v10766_v6, %v3121_v61  ;;  %v3702_v6 = vrot.slane %v3700_v62, 4  ;;  %18736 = vst [vmem:[#allocation88_spill] sm:$0xff] %v14796_v32  ;;  %v723_v30 = vld [vmem:[%s18241_s11] sm:$0x1]  ;;  %18737 = vst [vmem:[#allocation30_spill] sm:$0xff] %v14803_v46  ;;  %v3138_v22 = vrot.slane %v2880_v8, 5 }
 0x2b6   :  { %8129 = vmatprep.mubr.bf16.mxu0 %v12296_v9  ;;  %v3137_v9 = vrot.slane %v3135_v24, 4  ;;  %v14811_v3 = vsel %vm13465_vm5, %v3695_v15, %v3696_v20  ;;  %v14817_v56 = vsel %vm13465_vm5, %v10829_v52, %v3693_v18  ;;  %v3703_v44 = vrot.slane %v3453_v34, 6  ;;  %v14819_v61 = vld [vmem:[#allocation2 + $0xa8] sm:$0xc]  ;;  %v14821_v31 = vld [vmem:[#allocation2 + $0xb0] sm:$0x3] }
 0x2b7   :  { %18739 = vst [vmem:[#allocation90_spill] sm:$0xff] %v14819_v61  ;;  %18740 = vst [vmem:[#allocation93_spill] sm:$0xff] %v14821_v31  ;;  %v10830_v8 = vrot.slane %v3451_v43, 10  ;;  %v18370_v20 = vrot.slane %v14796_v32, 5  ;;  %v14839_v35 = vld [vmem:[#allocation2 + $0xf8] sm:$0x1] }
 0x2b8   :  { %7841 = vmatmul.mubr.bf16.gmra.mrb[100].mxu1 %v12294_v7  ;;  %v14826_v15 = vsel %vm13373_vm2, %v3137_v9, %v3138_v22  ;;  %v14835_v52 = vsel %vm13465_vm5, %v3702_v6, %v3703_v44  ;;  %18744 = vst [vmem:[#allocation47_spill] sm:$0xff] %v14839_v35  ;;  %v724_v9 = vld [vmem:[%s18242_s12] sm:$0x1]  ;;  %v12297_v43 = vld [vmem:[#allocation2 + $0x78] sm:$0xff]   ;;  %v18747_v18 = vld [vmem:[#allocation111_spill] sm:$0xff] }
 0x2b9   :  { %7848 = vmatprep.mubr.bf16.mxu1 %v10795_v14  ;;  %v14807_v14 = vsel %vm13373_vm2, %v3130_v17, %v3131_v39  ;;  %v18369_v17 = vrot.slane %v14788_v55, 6  ;;  %v10768_v39 = vrot.slane %v2878_v2, 9  ;;  %18741 = vst [vmem:[#allocation98_spill] sm:$0xff] %v14826_v15  ;;  %18742 = vst [vmem:[#allocation49_spill] sm:$0xff] %v14835_v52  ;;  %v14837_v2 = vld [vmem:[#allocation2 + $0xf0] sm:$0xe]  ;;  %v14853_v6 = vsel %vm13465_vm5, %v10830_v8, %v3700_v62 }
 0x2ba   :  { %18738 = vst [vmem:[#allocation32_spill] sm:$0xff] %v14807_v14  ;;  %18743 = vst [vmem:[#allocation53_spill] sm:$0xff] %v14837_v2  ;;  %v18755_v62 = vld [vmem:[#allocation25_spill] sm:$0xff]  ;;  %v18766_v35 = vld [vmem:[#allocation56_spill] sm:$0xff] }
 0x2bb   :  { %18746 = vst [vmem:[#allocation57_spill] sm:$0xff] %v14853_v6  ;;  %v14865_v59 = vrot.slane %v18369_v17, 4  ;;  %v18752_v17 = vld [vmem:[#allocation18_spill] sm:$0xff]  ;;  %v18781_v6 = vld [vmem:[#allocation81_spill] sm:$0xff] }
 0x2bd   :  { %v12415_v1 = vpop.eup %12414  ;;  %8130 = vmatmul.mubr.bf16.gmra.mrb[100].mxu0 %v10858_v60  ;;  %18748 = vst [vmem:[#allocation76_spill] sm:$0xff] %v14865_v59  ;;  %v18761_v60 = vld [vmem:[#allocation42_spill] sm:$0xff] }
 0x2be   :  { %v934_v7 = vmul.f32 %v12415_v1, %v723_v30  ;;  %v14849_v30 = vsel %vm13373_vm2, %v10768_v39, %v3135_v24  ;;  %8137 = vmatprep.mubr.bf16.mxu0 %v12299_v50  ;;  %v18750_v39 = vld [vmem:[#allocation19_spill] sm:$0xff] }
 0x2bf   :  { %18745 = vst [vmem:[#allocation51_spill] sm:$0xff] %v14849_v30 }
 0x2c0   :  { %v935_v1 = vmul.f32 %v934_v7, %v14677_v28  ;;  %v14859_v34 = vrot.slane %v934_v7, %v18747_v18  ;;  %7849 = vmatmul.mubr.bf16.gmra.mrb[104].mxu1 %v12297_v43  ;;  %v14872_v28 = vrot.slane %v18370_v20, 4  ;;  %v18751_v43 = vld [vmem:[#allocation21_spill] sm:$0xff] }
 0x2c1   :  { %7856 = vmatprep.mubr.bf16.mxu1 %v10796_v5  ;;  %v18757_v5 = vld [vmem:[#allocation24_spill] sm:$0xff] }
 0x2c2   :  { %18749 = vst [vmem:[#allocation61_spill] sm:$0xff] %v14872_v28  ;;  %v936_v50 = vsub.f32 %v724_v9, %v935_v1  ;;  %v1002_v7 = vmul.f32 %v14859_v34, %v18732_v48  ;;  %v14879_v8 = vmul.f32 %v14859_v34, %v18750_v39  ;;  %v14883_v22 = vmul.f32 %v14859_v34, %v18751_v43  ;;  %v18753_v9 = vld [vmem:[#allocation20_spill] sm:$0xff]  ;;  %v18754_v48 = vld [vmem:[#allocation23_spill] sm:$0xff] }
 0x2c3   :  { %v14890_v24 = vmul.f32 %v18752_v17, %v14859_v34  ;;  %v14894_v1 = vmul.f32 %v18753_v9, %v14859_v34  ;;  %v14898_v39 = vmul.f32 %v14859_v34, %v18754_v48  ;;  %v14902_v43 = vmul.f32 %v14859_v34, %v18755_v62  ;;  %v18758_v9 = vld [vmem:[#allocation40_spill] sm:$0xff]  ;;  %v18760_v62 = vld [vmem:[#allocation38_spill] sm:$0xff] }
 0x2c4   :  { %v14905_v20 = vrot.slane %v936_v50, %v18747_v18  ;;  %v14909_v23 = vmul.f32 %v18756_v51, %v14859_v34  ;;  %v14913_v17 = vmul.f32 %v18757_v5, %v14859_v34  ;;  %v14917_v44 = vmul.f32 %v14859_v34, %v18758_v9  ;;  %v18759_v48 = vld [vmem:[#allocation44_spill] sm:$0xff] }
 0x2c5   :  { %v14921_v12 = vmul.f32 %v14859_v34, %v18759_v48  ;;  %v14925_v50 = vmul.f32 %v18760_v62, %v14859_v34  ;;  %v14929_v51 = vmul.f32 %v18761_v60, %v14859_v34  ;;  %v18762_v18 = vld [vmem:[#allocation48_spill] sm:$0xff]  ;;  %v18764_v48 = vld [vmem:[#allocation46_spill] sm:$0xff]  ;;  %v14950_v45 = vmul.f32 %v14859_v34, %v18766_v35 }
 0x2c6   :  { %v14933_v5 = vmul.f32 %v14859_v34, %v18762_v18  ;;  %v1072_v19 = vadd.f32 %v14905_v20, %v1002_v7  ;;  %v18763_v9 = vld [vmem:[#allocation52_spill] sm:$0xff]  ;;  %v14942_v55 = vmul.f32 %v18764_v48, %v14859_v34  ;;  %v18765_v62 = vld [vmem:[#allocation50_spill] sm:$0xff] }
 0x2c7   :  { %v14938_v61 = vmul.f32 %v14859_v34, %v18763_v9  ;;  %v14946_v28 = vmul.f32 %v18765_v62, %v14859_v34  ;;  %v12302_v60 = vld [vmem:[#allocation2 + $0x9c] sm:$0xff]   ;;  %v18767_v18 = vld [vmem:[#allocation60_spill] sm:$0xff]  ;;  %v18770_v62 = vcombine.low %v14774_v53, %v14763_v63  ;;  %v18776_v53 = vld [vmem:[#allocation75_spill] sm:$0xff] }
 0x2c8   :  { %v14954_v7 = vmul.f32 %v14859_v34, %v18767_v18  ;;  %v18768_v9 = vld [vmem:[#allocation54_spill] sm:$0xff]  ;;  %1136 = vst [vmem:[#allocation13 + $0x1e8] sm:$0xff] %v1072_v19  ;;  %v18771_v35 = vld [vmem:[#allocation64_spill] sm:$0xff]  ;;  %7857 = vmatmul.mubr.bf16.gmra.mrb[108].mxu1 %v12300_v0  ;;  %v18788_v0 = vld [vmem:[#allocation85_spill] sm:$0xff] }
 0x2c9   :  { %v14958_v2 = vmul.f32 %v18768_v9, %v14859_v34  ;;  %v18769_v48 = vld [vmem:[#allocation58_spill] sm:$0xff]  ;;  %8138 = vmatmul.mubr.bf16.gmra.mrb[104].mxu0 %v18770_v62  ;;  %v14969_v59 = vmul.f32 %v14859_v34, %v18771_v35  ;;  %v18772_v18 = vld [vmem:[#allocation68_spill] sm:$0xff]  ;;  %v14989_v62 = vmul.f32 %v14859_v34, %v18776_v53 }
 0x2ca   :  { %v14962_v32 = vmul.f32 %v18769_v48, %v14859_v34  ;;  %v14973_v31 = vmul.f32 %v14859_v34, %v18772_v18  ;;  %v18773_v9 = vld [vmem:[#allocation62_spill] sm:$0xff]  ;;  %8145 = vmatprep.mubr.bf16.mxu0 %v12302_v60  ;;  %v18775_v63 = vld [vmem:[#allocation72_spill] sm:$0xff] }
 0x2cb   :  { %v14977_v15 = vmul.f32 %v18773_v9, %v14859_v34  ;;  %v18774_v48 = vld [vmem:[#allocation66_spill] sm:$0xff]  ;;  %v14985_v19 = vmul.f32 %v14859_v34, %v18775_v63  ;;  %v18778_v9 = vld [vmem:[#allocation73_spill] sm:$0xff]  ;;  %v15005_v63 = vmul.f32 %v14859_v34, %v18781_v6 }
 0x2cc   :  { %v14981_v30 = vmul.f32 %v18774_v48, %v14859_v34  ;;  %v18777_v35 = vld [vmem:[#allocation70_spill] sm:$0xff]  ;;  %v14997_v52 = vmul.f32 %v18778_v9, %v14859_v34  ;;  %v18779_v48 = vld [vmem:[#allocation79_spill] sm:$0xff]  ;;  %v18787_v9 = vcombine.low %v14756_v47, %v14746_v21 }
 0x2cd   :  { %v14993_v18 = vmul.f32 %v18777_v35, %v14859_v34  ;;  %v15001_v60 = vmul.f32 %v14859_v34, %v18779_v48  ;;  %18782 = vst [vmem:[#allocation59_spill] sm:$0xff] %v15005_v63  ;;  %v18783_v53 = vld [vmem:[#allocation78_spill] sm:$0xff]  ;;  %v18785_v35 = vld [vmem:[#allocation80_spill] sm:$0xff]  ;;  %v15020_v48 = vmul.f32 %v14859_v34, %v18788_v0  ;;  %v18797_v47 = vld [vmem:[#allocation95_spill] sm:$0xff] }
 0x2ce   :  { %v15009_v14 = vmul.f32 %v18783_v53, %v14859_v34  ;;  %v15013_v46 = vmul.f32 %v18785_v35, %v14859_v34  ;;  %7864 = vmatprep.mubr.bf16.mxu1 %v18787_v9  ;;  %v18791_v63 = vld [vmem:[#allocation84_spill] sm:$0xff]  ;;  %v15040_v9 = vmul.f32 %v14859_v34, %v18797_v47  ;;  %v18799_v0 = vld [vmem:[#allocation91_spill] sm:$0xff] }
 0x2cf   :  { %18780 = vst [vmem:[#allocation55_spill] sm:$0xff] %v15001_v60  ;;  %v18789_v60 = vld [vmem:[#allocation87_spill] sm:$0xff]  ;;  %v15028_v53 = vmul.f32 %v18791_v63, %v14859_v34 }
 0x2d0   :  { %18784 = vst [vmem:[#allocation65_spill] sm:$0xff] %v15009_v14  ;;  %18786 = vst [vmem:[#allocation35_spill] sm:$0xff] %v15013_v46  ;;  %v15024_v6 = vmul.f32 %v14859_v34, %v18789_v60  ;;  %v18793_v14 = vld [vmem:[#allocation86_spill] sm:$0xff]  ;;  %v18795_v46 = vld [vmem:[#allocation92_spill] sm:$0xff]  ;;  %v15044_v60 = vmul.f32 %v18799_v0, %v14859_v34 }
 0x2d1   :  { %18792 = vst [vmem:[#allocation34_spill] sm:$0xff] %v15028_v53  ;;  %v15032_v35 = vmul.f32 %v18793_v14, %v14859_v34  ;;  %v15036_v21 = vmul.f32 %v14859_v34, %v18795_v46  ;;  %18798 = vst [vmem:[#allocation45_spill] sm:$0xff] %v15040_v9  ;;  %v18803_v53 = vld [vmem:[#allocation97_spill] sm:$0xff]  ;;  %v18808_v9 = vld [vmem:[#allocation99_spill] sm:$0xff] }
 0x2d2   :  { %18790 = vst [vmem:[#allocation37_spill] sm:$0xff] %v15024_v6  ;;  %18800 = vst [vmem:[#allocation39_spill] sm:$0xff] %v15044_v60  ;;  %v18801_v6 = vld [vmem:[#allocation94_spill] sm:$0xff]  ;;  %v15052_v14 = vmul.f32 %v14859_v34, %v18803_v53  ;;  %v15064_v0 = vmul.f32 %v18808_v9, %v14859_v34  ;;  %v15084_v9 = vmul.f32 %v14859_v34, %v18714_v29 }
 0x2d3   :  { %18794 = vst [vmem:[#allocation36_spill] sm:$0xff] %v15032_v35  ;;  %18796 = vst [vmem:[#allocation41_spill] sm:$0xff] %v15036_v21  ;;  %v15048_v63 = vmul.f32 %v18801_v6, %v14859_v34  ;;  %v18805_v35 = vld [vmem:[#allocation100_spill] sm:$0xff]  ;;  %v18809_v60 = vld [vmem:[#allocation102_spill] sm:$0xff]  ;;  %v15103_v29 = vmul.f32 %v14859_v34, %v18722_v27  ;;  %v15123_v27 = vmul.f32 %v14859_v34, %v18728_v11 }
 0x2d4   :  { %18804 = vst [vmem:[#allocation128_spill] sm:$0xff] %v15052_v14  ;;  %v15056_v46 = vmul.f32 %v14859_v34, %v18805_v35  ;;  %v18806_v21 = vld [vmem:[#allocation96_spill] sm:$0xff]  ;;  %v15068_v6 = vmul.f32 %v14859_v34, %v18809_v60  ;;  %v18811_v14 = vld [vmem:[#allocation101_spill] sm:$0xff]  ;;  %v15088_v60 = vmul.f32 %v14859_v34, %v18718_v49  ;;  %v15107_v49 = vmul.f32 %v14859_v34, %v18723_v42 }
 0x2d5   :  { %18802 = vst [vmem:[#allocation43_spill] sm:$0xff] %v15048_v63  ;;  %v15060_v47 = vmul.f32 %v18806_v21, %v14859_v34  ;;  %v18810_v63 = vld [vmem:[#allocation104_spill] sm:$0xff]  ;;  %v15076_v35 = vmul.f32 %v18811_v14, %v14859_v34  ;;  %v15080_v21 = vmul.f32 %v18713_v41, %v14859_v34  ;;  %v15096_v14 = vmul.f32 %v18721_v54, %v14859_v34 }
 0x2d6   :  { %v15072_v53 = vmul.f32 %v14859_v34, %v18810_v63  ;;  %v15092_v63 = vmul.f32 %v18720_v58, %v14859_v34  ;;  %v18813_v41 = vcombine.low %v14794_v37, %v14786_v26  ;;  %v15111_v58 = vmul.f32 %v18725_v4, %v14859_v34 }
 0x2d7   :  { %18807 = vst [vmem:[#allocation113_spill] sm:$0xff] %v15060_v47  ;;  %18812 = vst [vmem:[#allocation114_spill] sm:$0xff] %v15076_v35  ;;  %v12305_v47 = vld [vmem:[#allocation2 + $0xa8] sm:$0xff]   ;;  %v12303_v35 = vld [vmem:[#allocation2 + $0x90] sm:$0xff]   ;;  %v15115_v54 = vmul.f32 %v18726_v36, %v14859_v34  ;;  %v15119_v26 = vmul.f32 %v14859_v34, %v18727_v16  ;;  %v15127_v42 = vmul.f32 %v18729_v57, %v14859_v34 }
 0x2d8   :  { %8146 = vmatmul.mubr.bf16.gmra.mrb[108].mxu0 %v18813_v41  ;;  %v15131_v4 = vmul.f32 %v18730_v10, %v14859_v34  ;;  %7865 = vmatmul.mubr.bf16.gmra.mrb[112].mxu1 %v12303_v35  ;;  %v15135_v36 = vmul.f32 %v14859_v34, %v18731_v25  ;;  %v15139_v16 = vmul.f32 %v18733_v13, %v14859_v34  ;;  %v18819_v35 = vld [vmem:[#allocation35_spill] sm:$0xff]  ;;  %v18820_v41 = vld [vmem:[#allocation30_spill] sm:$0xff] }
 0x2d9   :  { %8153 = vmatprep.mubr.bf16.mxu0 %v12305_v47  ;;  %v15143_v11 = vmul.f32 %v18734_v40, %v14859_v34  ;;  %v1011_v57 = vadd.f32 %v14905_v20, %v14879_v8  ;;  %v18814_v10 = vcombine.low %v14780_v38, %v14768_v33  ;;  %v1012_v37 = vadd.f32 %v14905_v20, %v14883_v22  ;;  %v18818_v47 = vld [vmem:[#allocation65_spill] sm:$0xff] }
 0x2da   :  { %v1013_v25 = vadd.f32 %v14905_v20, %v14890_v24  ;;  %v1014_v13 = vadd.f32 %v14905_v20, %v14894_v1  ;;  %v1015_v40 = vadd.f32 %v14905_v20, %v14898_v39  ;;  %v1016_v34 = vadd.f32 %v14905_v20, %v14902_v43 }
 0x2db   :  { %7872 = vmatprep.mubr.bf16.mxu1 %v18814_v10  ;;  %v1017_v8 = vadd.f32 %v14905_v20, %v14909_v23  ;;  %v1018_v33 = vadd.f32 %v14905_v20, %v14913_v17  ;;  %v1019_v38 = vadd.f32 %v14905_v20, %v14917_v44  ;;  %1075 = vst [vmem:[#allocation13] sm:$0xff] %v1011_v57  ;;  %1076 = vst [vmem:[#allocation13 + $0x8] sm:$0xff] %v1012_v37  ;;  %v12308_v17 = vld [vmem:[#allocation2 + $0xb4] sm:$0xff]  }
 0x2dc   :  { %v1020_v22 = vadd.f32 %v14905_v20, %v14921_v12  ;;  %v1021_v24 = vadd.f32 %v14905_v20, %v14925_v50  ;;  %v1022_v1 = vadd.f32 %v14905_v20, %v14929_v51  ;;  %v1023_v39 = vadd.f32 %v14905_v20, %v14933_v5  ;;  %1077 = vst [vmem:[#allocation13 + $0x10] sm:$0xff] %v1013_v25  ;;  %v18821_v57 = vld [vmem:[#allocation32_spill] sm:$0xff]  ;;  %v18823_v37 = vld [vmem:[#allocation37_spill] sm:$0xff] }
 0x2dd   :  { %1078 = vst [vmem:[#allocation13 + $0x18] sm:$0xff] %v1014_v13  ;;  %1079 = vst [vmem:[#allocation13 + $0x20] sm:$0xff] %v1015_v40  ;;  %v1024_v44 = vadd.f32 %v14905_v20, %v14938_v61  ;;  %v1025_v43 = vadd.f32 %v14905_v20, %v14942_v55  ;;  %v1026_v12 = vadd.f32 %v14905_v20, %v14946_v28  ;;  %v18824_v13 = vld [vmem:[#allocation34_spill] sm:$0xff] }
 0x2de   :  { %v1027_v23 = vadd.f32 %v14905_v20, %v14950_v45  ;;  %1080 = vst [vmem:[#allocation13 + $0x28] sm:$0xff] %v1016_v34  ;;  %1081 = vst [vmem:[#allocation13 + $0x30] sm:$0xff] %v1017_v8  ;;  %v1028_v50 = vadd.f32 %v14905_v20, %v14954_v7  ;;  %v1029_v61 = vadd.f32 %v14905_v20, %v14958_v2  ;;  %v12306_v45 = vld [vmem:[#allocation2 + $0x9c] sm:$0xff]   ;;  %v18817_v7 = vld [vmem:[#allocation59_spill] sm:$0xff] }
 0x2df   :  { %1082 = vst [vmem:[#allocation13 + $0x38] sm:$0xff] %v1018_v33  ;;  %1083 = vst [vmem:[#allocation13 + $0x40] sm:$0xff] %v1019_v38  ;;  %v1030_v55 = vadd.f32 %v14905_v20, %v14962_v32  ;;  %v1031_v28 = vadd.f32 %v14905_v20, %v14969_v59  ;;  %v18815_v51 = vcombine.low %v14817_v56, %v14811_v3  ;;  %v18825_v34 = vld [vmem:[#allocation36_spill] sm:$0xff]  ;;  %v18826_v33 = vld [vmem:[#allocation41_spill] sm:$0xff] }
 0x2e0   :  { %1084 = vst [vmem:[#allocation13 + $0x48] sm:$0xff] %v1020_v22  ;;  %1085 = vst [vmem:[#allocation13 + $0x50] sm:$0xff] %v1021_v24  ;;  %v1032_v5 = vadd.f32 %v14905_v20, %v14973_v31  ;;  %v1033_v2 = vadd.f32 %v14905_v20, %v14977_v15  ;;  %v1034_v32 = vadd.f32 %v14905_v20, %v14981_v30  ;;  %v18816_v15 = vld [vmem:[#allocation55_spill] sm:$0xff]  ;;  %7873 = vmatmul.mubr.bf16.gmra.mrb[116].mxu1 %v12306_v45  ;;  %v18827_v38 = vld [vmem:[#allocation45_spill] sm:$0xff] }
 0x2e1   :  { %1086 = vst [vmem:[#allocation13 + $0x58] sm:$0xff] %v1022_v1  ;;  %1087 = vst [vmem:[#allocation13 + $0x60] sm:$0xff] %v1023_v39  ;;  %8154 = vmatmul.mubr.bf16.gmra.mrb[112].mxu0 %v18815_v51  ;;  %v1035_v59 = vadd.f32 %v14905_v20, %v14985_v19  ;;  %v1036_v3 = vadd.f32 %v14905_v20, %v14989_v62  ;;  %v1037_v56 = vadd.f32 %v14905_v20, %v14993_v18  ;;  %v18828_v24 = vld [vmem:[#allocation39_spill] sm:$0xff]  ;;  %v18832_v45 = vld [vmem:[#allocation114_spill] sm:$0xff] }
 0x2e2   :  { %1088 = vst [vmem:[#allocation13 + $0x68] sm:$0xff] %v1024_v44  ;;  %1089 = vst [vmem:[#allocation13 + $0x70] sm:$0xff] %v1025_v43  ;;  %8161 = vmatprep.mubr.bf16.mxu0 %v12308_v17  ;;  %v1038_v31 = vadd.f32 %v14905_v20, %v14997_v52  ;;  %v1039_v30 = vadd.f32 %v14905_v20, %v18816_v15  ;;  %v1040_v19 = vadd.f32 %v14905_v20, %v18817_v7  ;;  %v18829_v39 = vld [vmem:[#allocation43_spill] sm:$0xff]  ;;  %v18830_v43 = vld [vmem:[#allocation128_spill] sm:$0xff] }
 0x2e3   :  { %1090 = vst [vmem:[#allocation13 + $0x78] sm:$0xff] %v1026_v12  ;;  %1091 = vst [vmem:[#allocation13 + $0x80] sm:$0xff] %v1027_v23  ;;  %v1041_v62 = vadd.f32 %v14905_v20, %v18818_v47  ;;  %v1042_v18 = vadd.f32 %v14905_v20, %v18819_v35  ;;  %v1043_v52 = vadd.f32 %v14905_v20, %v15020_v48  ;;  %v18831_v17 = vld [vmem:[#allocation113_spill] sm:$0xff]  ;;  %v15275_v15 = vld [vmem:[#allocation2 + $0x100] sm:$0xf] }
 0x2e4   :  { %1092 = vst [vmem:[#allocation13 + $0x88] sm:$0xff] %v1028_v50  ;;  %1093 = vst [vmem:[#allocation13 + $0x90] sm:$0xff] %v1029_v61  ;;  %v18822_v10 = vcombine.low %v18820_v41, %v18821_v57  ;;  %v1044_v25 = vadd.f32 %v14905_v20, %v18823_v37  ;;  %v1045_v40 = vadd.f32 %v14905_v20, %v18824_v13  ;;  %v18841_v47 = vld [vmem:[#allocation76_spill] sm:$0xff] }
 0x2e5   :  { %1094 = vst [vmem:[#allocation13 + $0x98] sm:$0xff] %v1030_v55  ;;  %1095 = vst [vmem:[#allocation13 + $0xa0] sm:$0xff] %v1031_v28  ;;  %v1046_v8 = vadd.f32 %v14905_v20, %v18825_v34  ;;  %v1047_v48 = vadd.f32 %v14905_v20, %v18826_v33  ;;  %v1048_v22 = vadd.f32 %v14905_v20, %v18827_v38  ;;  %v3149_v34 = vrot.slane %v15275_v15, 5 }
 0x2e6   :  { %1096 = vst [vmem:[#allocation13 + $0xa8] sm:$0xff] %v1032_v5  ;;  %1097 = vst [vmem:[#allocation13 + $0xb0] sm:$0xff] %v1033_v2  ;;  %7880 = vmatprep.mubr.bf16.mxu1 %v18822_v10  ;;  %v1049_v1 = vadd.f32 %v14905_v20, %v18828_v24  ;;  %v1050_v44 = vadd.f32 %v14905_v20, %v18829_v39  ;;  %v1051_v12 = vadd.f32 %v14905_v20, %v18830_v43  ;;  %v18848_v10 = vld [vmem:[#allocation47_spill] sm:$0xff]  ;;  %v2884_v24 = vld [vmem:[#allocation2 + $0xfc] sm:$0xe]  ;;  %v15317_v39 = vpop.f32.mrb[64].mxu1 }
 0x2e7   :  { %1098 = vst [vmem:[#allocation13 + $0xb8] sm:$0xff] %v1034_v32  ;;  %1099 = vst [vmem:[#allocation13 + $0xc0] sm:$0xff] %v1035_v59  ;;  %v1052_v23 = vadd.f32 %v14905_v20, %v15056_v46  ;;  %v1053_v50 = vadd.f32 %v14905_v20, %v18831_v17  ;;  %v1054_v61 = vadd.f32 %v14905_v20, %v15064_v0  ;;  %v12309_v0 = vld [vmem:[#allocation2 + $0xa8] sm:$0xff]   ;;  %v18834_v59 = vld [vmem:[#allocation49_spill] sm:$0xff]  ;;  %v18849_v37 = vrot.slane %v18848_v10, 5 }
 0x2e8   :  { %1100 = vst [vmem:[#allocation13 + $0xc8] sm:$0xff] %v1036_v3  ;;  %1101 = vst [vmem:[#allocation13 + $0xd0] sm:$0xff] %v1037_v56  ;;  %v1055_v55 = vadd.f32 %v14905_v20, %v15068_v6  ;;  %v1056_v28 = vadd.f32 %v14905_v20, %v15072_v53  ;;  %v1057_v51 = vadd.f32 %v14905_v20, %v18832_v45  ;;  %v12311_v6 = vld [vmem:[#allocation2 + $0xc0] sm:$0xff]   ;;  %v15263_v56 = vld [vmem:[#allocation2 + $0xb8] sm:$0xf]  ;;  %7881 = vmatmul.mubr.bf16.gmra.mrb[120].mxu1 %v12309_v0  ;;  %v7772_v45 = vpop.f32.mrb[65].mxu1 }
 0x2e9   :  { %1102 = vst [vmem:[#allocation13 + $0xd8] sm:$0xff] %v1038_v31  ;;  %1103 = vst [vmem:[#allocation13 + $0xe0] sm:$0xff] %v1039_v30  ;;  %v1058_v46 = vadd.f32 %v14905_v20, %v15080_v21  ;;  %v1059_v5 = vadd.f32 %v14905_v20, %v15084_v9  ;;  %v1060_v2 = vadd.f32 %v14905_v20, %v15088_v60  ;;  %v18833_v9 = vld [vmem:[#allocation57_spill] sm:$0xff]  ;;  %v4858_v10 = vld [vmem:[#allocation2 + $0x24] sm:$0xc] }
 0x2ea   :  { %1104 = vst [vmem:[#allocation13 + $0xe8] sm:$0xff] %v1040_v19  ;;  %1105 = vst [vmem:[#allocation13 + $0xf0] sm:$0xff] %v1041_v62  ;;  %v1061_v53 = vadd.f32 %v14905_v20, %v15092_v63  ;;  %v1062_v32 = vadd.f32 %v14905_v20, %v15096_v14  ;;  %v1063_v21 = vadd.f32 %v14905_v20, %v15103_v29  ;;  %v15273_v31 = vld [vmem:[#allocation2 + $0x1c] sm:$0xf] }
 0x2eb   :  { %1106 = vst [vmem:[#allocation13 + $0xf8] sm:$0xff] %v1042_v18  ;;  %1107 = vst [vmem:[#allocation13 + $0x100] sm:$0xff] %v1043_v52  ;;  %v18835_v3 = vcombine.low %v18833_v9, %v18834_v59  ;;  %v1064_v60 = vadd.f32 %v14905_v20, %v15107_v49  ;;  %v1065_v63 = vadd.f32 %v14905_v20, %v15111_v58  ;;  %v3714_v18 = vrot.slane %v15263_v56, 6  ;;  %v3459_v17 = vld [vmem:[#allocation2 + $0xbc] sm:$0x3] }
 0x2ec   :  { %1108 = vst [vmem:[#allocation13 + $0x108] sm:$0xff] %v1044_v25  ;;  %1109 = vst [vmem:[#allocation13 + $0x110] sm:$0xff] %v1045_v40  ;;  %v1066_v14 = vadd.f32 %v14905_v20, %v15115_v54  ;;  %v1067_v29 = vadd.f32 %v14905_v20, %v15119_v26  ;;  %v1068_v49 = vadd.f32 %v14905_v20, %v15123_v27  ;;  %v18850_v25 = vld [vmem:[#allocation61_spill] sm:$0xff]  ;;  %v5049_v40 = vrot.slane %v15273_v31, 6  ;;  %v2888_v56 = vld [vmem:[#allocation2 + $0x10c] sm:$0xf] }
 0x2ed   :  { %1110 = vst [vmem:[#allocation13 + $0x118] sm:$0xff] %v1046_v8  ;;  %1111 = vst [vmem:[#allocation13 + $0x120] sm:$0xff] %v1047_v48  ;;  %8162 = vmatmul.mubr.bf16.gmra.mrb[116].mxu0 %v18835_v3  ;;  %v1069_v58 = vadd.f32 %v14905_v20, %v15127_v42  ;;  %v1070_v54 = vadd.f32 %v14905_v20, %v15131_v4  ;;  %v1071_v26 = vadd.f32 %v14905_v20, %v15135_v36  ;;  %v18836_v42 = vld [vmem:[#allocation51_spill] sm:$0xff]  ;;  %v18837_v4 = vld [vmem:[#allocation98_spill] sm:$0xff] }
 0x2ee   :  { %1112 = vst [vmem:[#allocation13 + $0x128] sm:$0xff] %v1048_v22  ;;  %1113 = vst [vmem:[#allocation13 + $0x130] sm:$0xff] %v1049_v1  ;;  %8169 = vmatprep.mubr.bf16.mxu0 %v12311_v6  ;;  %v1073_v30 = vadd.f32 %v14905_v20, %v15139_v16  ;;  %v1074_v27 = vadd.f32 %v14905_v20, %v15143_v11  ;;  %v18838_v7 = vcombine.low %v18836_v42, %v18837_v4  ;;  %v18839_v36 = vld [vmem:[#allocation93_spill] sm:$0xff]  ;;  %v18843_v20 = vld [vmem:[#allocation88_spill] sm:$0xff] }
 0x2ef   :  { %1114 = vst [vmem:[#allocation13 + $0x138] sm:$0xff] %v1050_v44  ;;  %1115 = vst [vmem:[#allocation13 + $0x140] sm:$0xff] %v1051_v12  ;;  %v18840_v19 = vrot.slane %v18839_v36, 6  ;;  %v18844_v16 = vrot.slane %v18843_v20, 5  ;;  %v18845_v11 = vld [vmem:[#allocation53_spill] sm:$0xff]  ;;  %v3146_v13 = vsel %vm13373_vm2, %v18850_v25, %v18849_v37  ;;  %v18853_v48 = vld [vmem:[#allocation90_spill] sm:$0xff] }
 0x2f0   :  { %1116 = vst [vmem:[#allocation13 + $0x148] sm:$0xff] %v1052_v23  ;;  %1117 = vst [vmem:[#allocation13 + $0x150] sm:$0xff] %v1053_v50  ;;  %7888 = vmatprep.mubr.bf16.mxu1 %v18838_v7  ;;  %v18846_v52 = vrot.slane %v18845_v11, 9  ;;  %v18851_v8 = vld [vmem:[#allocation33_spill] sm:$0xff]  ;;  %v18854_v38 = vrot.slane %v18853_v48, 10  ;;  %v12314_v12 = vld [vmem:[#allocation2 + $0xcc] sm:$0xff]  }
 0x2f1   :  { %1118 = vst [vmem:[#allocation13 + $0x158] sm:$0xff] %v1054_v61  ;;  %1119 = vst [vmem:[#allocation13 + $0x160] sm:$0xff] %v1055_v55  ;;  %v3711_v35 = vsel %vm13465_vm5, %v18841_v47, %v18840_v19  ;;  %v18852_v33 = vrot.slane %v18851_v8, 6  ;;  %v2886_v1 = vld [vmem:[#allocation2 + $0x104] sm:$0x1]  ;;  %v12312_v44 = vld [vmem:[#allocation2 + $0xb4] sm:$0xff]  }
 0x2f2   :  { %1120 = vst [vmem:[#allocation13 + $0x168] sm:$0xff] %v1056_v28  ;;  %1121 = vst [vmem:[#allocation13 + $0x170] sm:$0xff] %v1057_v51  ;;  %v3143_v57 = vsel %vm13373_vm2, %v18846_v52, %v18844_v16  ;;  %v3457_v23 = vld [vmem:[#allocation2 + $0xb4] sm:$0xc]  ;;  %v3716_v61 = vrot.slane %v3714_v18, 4  ;;  %v5051_v51 = vrot.slane %v5049_v40, 4  ;;  %7889 = vmatmul.mubr.bf16.gmra.mrb[124].mxu1 %v12312_v44 }
 0x2f3   :  { %1122 = vst [vmem:[#allocation13 + $0x178] sm:$0xff] %v1058_v46  ;;  %1123 = vst [vmem:[#allocation13 + $0x180] sm:$0xff] %v1059_v5  ;;  %v3708_v22 = vsel %vm13465_vm5, %v18854_v38, %v18852_v33  ;;  %v10801_v50 = vcombine.low %v3143_v57, %v3146_v13  ;;  %v4855_v55 = vld [vmem:[#allocation2 + $0x18] sm:$0xc]  ;;  %v4857_v28 = vld [vmem:[#allocation2 + $0x20] sm:$0x3] }
 0x2f4   :  { %1124 = vst [vmem:[#allocation13 + $0x188] sm:$0xff] %v1060_v2  ;;  %1125 = vst [vmem:[#allocation13 + $0x190] sm:$0xff] %v1061_v53  ;;  %v10863_v43 = vcombine.low %v3708_v22, %v3711_v35  ;;  %v10770_v46 = vrot.slane %v2884_v24, 9  ;;  %v3151_v5 = vrot.slane %v3149_v34, 4  ;;  %v3152_v0 = vrot.slane %v2886_v1, 5 }
 0x2f5   :  { %1126 = vst [vmem:[#allocation13 + $0x198] sm:$0xff] %v1062_v32  ;;  %1127 = vst [vmem:[#allocation13 + $0x1a0] sm:$0xff] %v1063_v21  ;;  %v4280_v6 = vld [vmem:[#allocation2 + $0x1c] sm:$0xf]  ;;  %v3717_v2 = vrot.slane %v3459_v17, 6  ;;  %v15319_v32 = vpop.f32.mrb[66].mxu1  ;;  %7896 = vmatprep.mubr.bf16.mxu1 %v10801_v50 }
 0x2f6   :  { %1128 = vst [vmem:[#allocation13 + $0x1a8] sm:$0xff] %v1064_v60  ;;  %1129 = vst [vmem:[#allocation13 + $0x1b0] sm:$0xff] %v1065_v63  ;;  %8170 = vmatmul.mubr.bf16.gmra.mrb[120].mxu0 %v10863_v43  ;;  %v4859_v53 = vld [vmem:[#allocation2 + $0x28] sm:$0xf]  ;;  %v5052_v21 = vrot.slane %v4857_v28, 6  ;;  %v10832_v9 = vrot.slane %v3457_v23, 10  ;;  %v3153_v31 = vsel %vm13373_vm2, %v3151_v5, %v3152_v0 }
 0x2f7   :  { %1130 = vst [vmem:[#allocation13 + $0x1b8] sm:$0xff] %v1066_v14  ;;  %1131 = vst [vmem:[#allocation13 + $0x1c0] sm:$0xff] %v1067_v29  ;;  %8177 = vmatprep.mubr.bf16.mxu0 %v12314_v12  ;;  %v3718_v59 = vsel %vm13465_vm5, %v3716_v61, %v3717_v2  ;;  %v10977_v3 = vrot.slane %v4855_v55, 10  ;;  %v4473_v60 = vrot.slane %v4280_v6, 5  ;;  %v7775_v63 = vpop.f32.mrb[67].mxu1  ;;  %v3150_v29 = vsel %vm13373_vm2, %v10770_v46, %v3149_v34  ;;  %v12318_v12 = vld [vmem:[#allocation9 + $0x180] sm:$0xff]  }
 0x2f8   :  { %1132 = vst [vmem:[#allocation13 + $0x1c8] sm:$0xff] %v1068_v49  ;;  %1133 = vst [vmem:[#allocation13 + $0x1d0] sm:$0xff] %v1069_v58  ;;  %v5053_v14 = vsel %vm13465_vm5, %v5051_v51, %v5052_v21  ;;  %v5056_v15 = vrot.slane %v4859_v53, 6  ;;  %v15329_v49 = vpop.f32.mrb[68].mxu1  ;;  %v12315_v58 = vld [vmem:[#allocation2 + $0xf0] sm:$0xff]   ;;  %v3156_v42 = vrot.slane %v2888_v56, 5  ;;  %v10802_v19 = vcombine.low %v3150_v29, %v3153_v31 }
 0x2f9   :  { %1134 = vst [vmem:[#allocation13 + $0x1d8] sm:$0xff] %v1070_v54  ;;  %1135 = vst [vmem:[#allocation13 + $0x1e0] sm:$0xff] %v1071_v26  ;;  %v3715_v54 = vsel %vm13465_vm5, %v10832_v9, %v3714_v18  ;;  %v7780_v26 = vpop.f32.mrb[69].mxu1  ;;  %v4281_v4 = vld [vmem:[#allocation2 + $0x20] sm:$0x1]  ;;  %v4475_v35 = vrot.slane %v4473_v60, 4 }
 0x2fa   :  { %1137 = vst [vmem:[#allocation13 + $0x1f0] sm:$0xff] %v1073_v30  ;;  %1138 = vst [vmem:[#allocation13 + $0x1f8] sm:$0xff] %v1074_v27  ;;  %v10864_v30 = vcombine.low %v3715_v54, %v3718_v59  ;;  %v5050_v27 = vsel %vm13465_vm5, %v10977_v3, %v5049_v40  ;;  %v15335_v7 = vpop.f32.mrb[70].mxu1  ;;  %v2889_v47 = vld [vmem:[#allocation2 + $0x110] sm:$0x1]  ;;  %v5058_v11 = vrot.slane %v5056_v15, 4  ;;  %7897 = vmatmul.mubr.bf16.gmra.mrb[128].mxu1 %v12315_v58 }
 0x2fb   :  { %v11009_v36 = vcombine.low %v5050_v27, %v5053_v14  ;;  %v4860_v20 = vld [vmem:[#allocation2 + $0x2c] sm:$0x3]  ;;  %v4279_v16 = vld [vmem:[#allocation2 + $0x18] sm:$0xe]  ;;  %v4283_v52 = vld [vmem:[#allocation2 + $0x28] sm:$0xf]  ;;  %7904 = vmatprep.mubr.bf16.mxu1 %v10802_v19 }
 0x2fc   :  { %v7783_v57 = vpop.f32.mrb[71].mxu1  ;;  %v4476_v18 = vrot.slane %v4281_v4, 5  ;;  %v4862_v37 = vld [vmem:[#allocation2 + $0x34] sm:$0xf]  ;;  %v2887_v25 = vld [vmem:[#allocation2 + $0x108] sm:$0xe] }
 0x2fd   :  { %v3158_v13 = vrot.slane %v3156_v42, 4  ;;  %v5059_v40 = vrot.slane %v4860_v20, 6  ;;  %v10913_v34 = vrot.slane %v4279_v16, 9  ;;  %v2891_v33 = vld [vmem:[#allocation2 + $0x118] sm:$0xf]  ;;  %v4480_v48 = vrot.slane %v4283_v52, 5 }
 0x2fe   :  { %8178 = vmatmul.mubr.bf16.gmra.mrb[124].mxu0 %v10864_v30  ;;  %v4477_v8 = vsel %vm13373_vm2, %v4475_v35, %v4476_v18  ;;  %v3159_v38 = vrot.slane %v2889_v47, 5  ;;  %v10978_v22 = vrot.slane %v4858_v10, 10  ;;  %v5063_v1 = vrot.slane %v4862_v37, 6  ;;  %v12317_v23 = vld [vmem:[#allocation2 + $0xfc] sm:$0xff]   ;;  %v4284_v28 = vld [vmem:[#allocation2 + $0x2c] sm:$0x1] }
 0x2ff   :  { %8346 = vmatprep.mubr.bf16.mxu0 %v11009_v36  ;;  %v5060_v24 = vsel %vm13465_vm5, %v5058_v11, %v5059_v40  ;;  %v10771_v44 = vrot.slane %v2887_v25, 9  ;;  %v4474_v43 = vsel %vm13373_vm2, %v10913_v34, %v4473_v60  ;;  %v3163_v55 = vrot.slane %v2891_v33, 5  ;;  %v2892_v51 = vld [vmem:[#allocation2 + $0x11c] sm:$0x1]  ;;  %v4863_v5 = vld [vmem:[#allocation2 + $0x38] sm:$0x3] }
 0x300   :  { %v3160_v17 = vsel %vm13373_vm2, %v3158_v13, %v3159_v38  ;;  %v10945_v50 = vcombine.low %v4474_v43, %v4477_v8  ;;  %v5057_v61 = vsel %vm13465_vm5, %v10978_v22, %v5056_v15  ;;  %v4482_v46 = vrot.slane %v4480_v48, 4  ;;  %v4282_v6 = vld [vmem:[#allocation2 + $0x24] sm:$0xe]  ;;  %v15349_v53 = vld [vmem:[#allocation2 + $0x34] sm:$0xf]  ;;  %v12321_v3 = vld [vmem:[#allocation9 + $0x188] sm:$0xff]  }
 0x301   :  { %v11010_v45 = vcombine.low %v5057_v61, %v5060_v24  ;;  %v3157_v0 = vsel %vm13373_vm2, %v10771_v44, %v3156_v42  ;;  %v5065_v2 = vrot.slane %v5063_v1, 4  ;;  %v4483_v9 = vrot.slane %v4284_v28, 5  ;;  %v4861_v59 = vld [vmem:[#allocation2 + $0x30] sm:$0xc]  ;;  %v15351_v56 = vld [vmem:[#allocation2 + $0x40] sm:$0xf] }
 0x302   :  { %v10803_v21 = vcombine.low %v3157_v0, %v3160_v17  ;;  %7905 = vmatmul.mubr.bf16.gmra.mrb[132].mxu1 %v12317_v23  ;;  %v2890_v60 = vld [vmem:[#allocation2 + $0x114] sm:$0xe]  ;;  %v3165_v63 = vrot.slane %v3163_v55, 4  ;;  %v5066_v14 = vrot.slane %v4863_v5, 6  ;;  %v18855_v29 = vmov 0   ;;  %v12319_v37 = vld [vmem:[#allocation2 + $0x108] sm:$0xff]  }
 0x303   :  { %v10914_v31 = vrot.slane %v4282_v6, 9  ;;  %v4484_v15 = vsel %vm13373_vm2, %v4482_v46, %v4483_v9  ;;  %v15356_v58 = vld [vmem:[#allocation2 + $0x124] sm:$0xf]  ;;  %v4487_v54 = vrot.slane %v15349_v53, 5  ;;  %v3166_v26 = vrot.slane %v2892_v51, 5  ;;  %v12324_v19 = vld [vmem:[#allocation9 + $0x190] sm:$0xff]  }
 0x304   :  { %7912 = vmatprep.mubr.bf16.mxu1 %v10803_v21  ;;  %v10979_v30 = vrot.slane %v4861_v59, 10  ;;  %v5067_v27 = vsel %vm13465_vm5, %v5065_v2, %v5066_v14  ;;  %v5070_v42 = vrot.slane %v15351_v56, 6  ;;  %v10772_v4 = vrot.slane %v2890_v60, 9  ;;  %v4287_v11 = vld [vmem:[#allocation2 + $0x38] sm:$0x1]  ;;  %v12330_v46 = vld [vmem:[#allocation9 + $0x1a0] sm:$0xff]  }
 0x305   :  { %v4481_v36 = vsel %vm13373_vm2, %v10914_v31, %v4480_v48  ;;  %v3167_v47 = vsel %vm13373_vm2, %v3165_v63, %v3166_v26  ;;  %v3170_v16 = vrot.slane %v15356_v58, 5  ;;  %v2895_v57 = vld [vmem:[#allocation2 + $0x128] sm:$0x1]  ;;  %v4489_v18 = vrot.slane %v4487_v54, 4  ;;  %v4866_v10 = vld [vmem:[#allocation2 + $0x44] sm:$0x3] }
 0x306   :  { %8347 = vmatmul.mubr.bf16.vlgmr.msra.gmra.mrb[64].mxu0 %v10945_v50  ;;  %v10946_v35 = vcombine.low %v4481_v36, %v4484_v15  ;;  %v5064_v20 = vsel %vm13465_vm5, %v10979_v30, %v5063_v1  ;;  %v3164_v25 = vsel %vm13373_vm2, %v10772_v4, %v3163_v55  ;;  %v2893_v13 = vld [vmem:[#allocation2 + $0x120] sm:$0xe]  ;;  %v4285_v40 = vld [vmem:[#allocation2 + $0x30] sm:$0xe]  ;;  %v5072_v34 = vrot.slane %v5070_v42, 4  ;;  %v12327_v24 = vld [vmem:[#allocation9 + $0x198] sm:$0xff]  }
 0x307   :  { %8604 = vmatpush1.bf16.msra.mxu0 %v12318_v12  ;;  %8354 = vmatprep.mubr.bf16.mxu0 %v11010_v45  ;;  %v11011_v52 = vcombine.low %v5064_v20, %v5067_v27  ;;  %v15372_v8 = vld [vmem:[#allocation2 + $0x40] sm:$0xf]  ;;  %v10804_v33 = vcombine.low %v3164_v25, %v3167_v47  ;;  %v4490_v48 = vrot.slane %v4287_v11, 5  ;;  %v4864_v38 = vld [vmem:[#allocation2 + $0x3c] sm:$0xc]  ;;  %v3172_v1 = vrot.slane %v3170_v16, 4 }
 0x308   :  { %8605 = vmatprep.subr.bf16.mxu0 %v18855_v29  ;;  %v15374_v22 = vld [vmem:[#allocation2 + $0x4c] sm:$0xf]  ;;  %v5073_v44 = vrot.slane %v4866_v10, 6  ;;  %v15376_v43 = vld [vmem:[#allocation2 + $0x130] sm:$0xf]  ;;  %v10915_v12 = vrot.slane %v4285_v40, 9 }
 0x309   :  { %v4491_v23 = vsel %vm13373_vm2, %v4489_v18, %v4490_v48  ;;  %v4494_v17 = vrot.slane %v15372_v8, 5  ;;  %v3173_v50 = vrot.slane %v2895_v57, 5  ;;  %v10980_v61 = vrot.slane %v4864_v38, 10  ;;  %v4290_v53 = vld [vmem:[#allocation2 + $0x44] sm:$0x1]  ;;  %v12320_v56 = vld [vmem:[#allocation2 + $0x114] sm:$0xff]  }
 0x30a   :  { %7913 = vmatmul.mubr.bf16.gmra.mrb[136].mxu1 %v12319_v37  ;;  %v5074_v55 = vsel %vm13465_vm5, %v5072_v34, %v5073_v44  ;;  %v5077_v28 = vrot.slane %v15374_v22, 6  ;;  %v10773_v45 = vrot.slane %v2893_v13, 9  ;;  %v4488_v51 = vsel %vm13373_vm2, %v10915_v12, %v4487_v54  ;;  %v2898_v9 = vld [vmem:[#allocation2 + $0x134] sm:$0x1]  ;;  %v4288_v63 = vld [vmem:[#allocation2 + $0x3c] sm:$0xe] }
 0x30b   :  { %8606 = vmatpush1.bf16.msra.mxu0 %v12321_v3  ;;  %7920 = vmatprep.mubr.bf16.mxu1 %v10804_v33  ;;  %v3174_v5 = vsel %vm13373_vm2, %v3172_v1, %v3173_v50  ;;  %v10947_v0 = vcombine.low %v4488_v51, %v4491_v23  ;;  %v5071_v6 = vsel %vm13465_vm5, %v10980_v61, %v5070_v42  ;;  %v3177_v2 = vrot.slane %v15376_v43, 5  ;;  %v4869_v3 = vld [vmem:[#allocation2 + $0x50] sm:$0x3]  ;;  %v15395_v31 = vld [vmem:[#allocation2 + $0x4c] sm:$0xf]  ;;  %v12340_v61 = vld [vmem:[#allocation9 + $0x1b8] sm:$0xff]  }
 0x30c   :  { %8607 = vmatprep.subr.bf16.mxu0 %v18855_v29  ;;  %v11012_v21 = vcombine.low %v5071_v6, %v5074_v55  ;;  %v4496_v59 = vrot.slane %v4494_v17, 4  ;;  %v3171_v60 = vsel %vm13373_vm2, %v10773_v45, %v3170_v16  ;;  %v5079_v14 = vrot.slane %v5077_v28, 4  ;;  %v4867_v54 = vld [vmem:[#allocation2 + $0x48] sm:$0xc]  ;;  %v15397_v26 = vld [vmem:[#allocation2 + $0x58] sm:$0xf] }
 0x30d   :  { %v10805_v15 = vcombine.low %v3171_v60, %v3174_v5  ;;  %v4497_v58 = vrot.slane %v4290_v53, 5  ;;  %v12333_v30 = vld [vmem:[#allocation9 + $0x1a8] sm:$0xff]   ;;  %v3179_v42 = vrot.slane %v3177_v2, 4  ;;  %v5080_v4 = vrot.slane %v4869_v3, 6  ;;  %v15402_v47 = vld [vmem:[#allocation2 + $0x13c] sm:$0xf] }
 0x30e   :  { %8355 = vmatmul.mubr.bf16.gmra.mrb[68].mxu0 %v10946_v35  ;;  %v2896_v27 = vld [vmem:[#allocation2 + $0x12c] sm:$0xe]  ;;  %v10916_v36 = vrot.slane %v4288_v63, 9  ;;  %v4501_v35 = vrot.slane %v15395_v31, 5  ;;  %v3180_v20 = vrot.slane %v2898_v9, 5  ;;  %v10981_v16 = vrot.slane %v4867_v54, 10 }
 0x30f   :  { %8362 = vmatprep.mubr.bf16.mxu0 %v11011_v52  ;;  %8608 = vmatpush1.bf16.msra.mxu0 %v12324_v19  ;;  %v4498_v19 = vsel %vm13373_vm2, %v4496_v59, %v4497_v58  ;;  %v5081_v11 = vsel %vm13465_vm5, %v5079_v14, %v5080_v4  ;;  %v5084_v52 = vrot.slane %v15397_v26, 6  ;;  %v10774_v57 = vrot.slane %v2896_v27, 9  ;;  %v12336_v10 = vld [vmem:[#allocation9 + $0x1b0] sm:$0xff]   ;;  %v2901_v33 = vld [vmem:[#allocation2 + $0x140] sm:$0x1] }
 0x310   :  { %8609 = vmatprep.subr.bf16.mxu0 %v18855_v29  ;;  %v4495_v18 = vsel %vm13373_vm2, %v10916_v36, %v4494_v17  ;;  %v3181_v37 = vsel %vm13373_vm2, %v3179_v42, %v3180_v20  ;;  %v5078_v13 = vsel %vm13465_vm5, %v10981_v16, %v5077_v28  ;;  %v3184_v40 = vrot.slane %v15402_v47, 5  ;;  %v4293_v34 = vld [vmem:[#allocation2 + $0x50] sm:$0x1]  ;;  %v4291_v48 = vld [vmem:[#allocation2 + $0x48] sm:$0xe]  ;;  %v12343_v3 = vld [vmem:[#allocation9 + $0x1c0] sm:$0xff]  }
 0x311   :  { %v10948_v25 = vcombine.low %v4495_v18, %v4498_v19  ;;  %v11013_v8 = vcombine.low %v5078_v13, %v5081_v11  ;;  %v4503_v38 = vrot.slane %v4501_v35, 4  ;;  %v4872_v22 = vld [vmem:[#allocation2 + $0x5c] sm:$0x3]  ;;  %v3178_v1 = vsel %vm13373_vm2, %v10774_v57, %v3177_v2  ;;  %v4870_v44 = vld [vmem:[#allocation2 + $0x54] sm:$0xc]  ;;  %v12323_v42 = vld [vmem:[#allocation2 + $0x12c] sm:$0xff]  }
 0x312   :  { %7921 = vmatmul.mubr.bf16.gmra.mrb[140].mxu1 %v12320_v56  ;;  %v5086_v43 = vrot.slane %v5084_v52, 4  ;;  %v15418_v12 = vld [vmem:[#allocation2 + $0x58] sm:$0xf]  ;;  %v10806_v23 = vcombine.low %v3178_v1, %v3181_v37  ;;  %v4504_v17 = vrot.slane %v4293_v34, 5  ;;  %v15420_v50 = vld [vmem:[#allocation2 + $0x64] sm:$0xf] }
 0x313   :  { %8610 = vmatpush1.bf16.msra.mxu0 %v12327_v24  ;;  %7928 = vmatprep.mubr.bf16.mxu1 %v10805_v15  ;;  %v12322_v24 = vld [vmem:[#allocation2 + $0x120] sm:$0xff]   ;;  %v2899_v55 = vld [vmem:[#allocation2 + $0x138] sm:$0xe]  ;;  %v3186_v28 = vrot.slane %v3184_v40, 4  ;;  %v5087_v45 = vrot.slane %v4872_v22, 6  ;;  %v10917_v51 = vrot.slane %v4291_v48, 9 }
 0x314   :  { %8611 = vmatprep.subr.bf16.mxu0 %v18855_v29  ;;  %v15425_v5 = vld [vmem:[#allocation2 + $0x148] sm:$0xf]  ;;  %v3187_v6 = vrot.slane %v2901_v33, 5  ;;  %v10982_v2 = vrot.slane %v4870_v44, 10  ;;  %v10775_v9 = vrot.slane %v2899_v55, 9  ;;  %v12325_v55 = vld [vmem:[#allocation2 + $0x138] sm:$0xff]  }
 0x315   :  { %v5088_v53 = vsel %vm13465_vm5, %v5086_v43, %v5087_v45  ;;  %v4502_v59 = vsel %vm13373_vm2, %v10917_v51, %v4501_v35  ;;  %v3191_v14 = vrot.slane %v15425_v5, 5  ;;  %v4294_v31 = vld [vmem:[#allocation2 + $0x54] sm:$0xe]  ;;  %v4296_v15 = vld [vmem:[#allocation2 + $0x5c] sm:$0x1]  ;;  %v12346_v16 = vld [vmem:[#allocation9 + $0x1c8] sm:$0xff]  }
 0x316   :  { %8363 = vmatmul.mubr.bf16.gmra.mrb[72].mxu0 %v10947_v0  ;;  %v4508_v0 = vrot.slane %v15418_v12, 5  ;;  %v3188_v56 = vsel %vm13373_vm2, %v3186_v28, %v3187_v6  ;;  %v5085_v63 = vsel %vm13465_vm5, %v10982_v2, %v5084_v52  ;;  %v2904_v54 = vld [vmem:[#allocation2 + $0x14c] sm:$0x1]  ;;  %v4875_v27 = vld [vmem:[#allocation2 + $0x68] sm:$0x3]  ;;  %v3185_v4 = vsel %vm13373_vm2, %v10775_v9, %v3184_v40 }
 0x317   :  { %8370 = vmatprep.mubr.bf16.mxu0 %v11012_v21  ;;  %8612 = vmatpush1.bf16.msra.mxu0 %v12330_v46  ;;  %v4505_v46 = vsel %vm13373_vm2, %v4503_v38, %v4504_v17  ;;  %v5091_v21 = vrot.slane %v15420_v50, 6  ;;  %v11014_v58 = vcombine.low %v5085_v63, %v5088_v53  ;;  %v15441_v19 = vld [vmem:[#allocation2 + $0x64] sm:$0xf]  ;;  %v10807_v47 = vcombine.low %v3185_v4, %v3188_v56  ;;  %v15443_v20 = vld [vmem:[#allocation2 + $0x70] sm:$0xf] }
 0x318   :  { %8613 = vmatprep.subr.bf16.mxu0 %v18855_v29  ;;  %v10949_v60 = vcombine.low %v4502_v59, %v4505_v46  ;;  %v4510_v26 = vrot.slane %v4508_v0, 4  ;;  %v4511_v35 = vrot.slane %v4296_v15, 5  ;;  %v2902_v11 = vld [vmem:[#allocation2 + $0x144] sm:$0xe]  ;;  %v3193_v52 = vrot.slane %v3191_v14, 4  ;;  %v12349_v38 = vld [vmem:[#allocation9 + $0x1d0] sm:$0xff]  }
 0x319   :  { %v5093_v36 = vrot.slane %v5091_v21, 4  ;;  %v5094_v57 = vrot.slane %v4875_v27, 6  ;;  %v10918_v18 = vrot.slane %v4294_v31, 9  ;;  %v2906_v37 = vld [vmem:[#allocation2 + $0x154] sm:$0xf]  ;;  %v3194_v13 = vrot.slane %v2904_v54, 5 }
 0x31a   :  { %7929 = vmatmul.mubr.bf16.gmra.mrb[144].mxu1 %v12322_v24  ;;  %v10776_v33 = vrot.slane %v2902_v11, 9  ;;  %v3198_v44 = vrot.slane %v2906_v37, 5  ;;  %v4297_v43 = vld [vmem:[#allocation2 + $0x60] sm:$0xe]  ;;  %v4299_v12 = vld [vmem:[#allocation2 + $0x68] sm:$0x1] }
 0x31b   :  { %8614 = vmatpush1.bf16.msra.mxu0 %v12333_v30  ;;  %7936 = vmatprep.mubr.bf16.mxu1 %v10806_v23  ;;  %v4873_v30 = vld [vmem:[#allocation2 + $0x60] sm:$0xc]  ;;  %v5095_v34 = vsel %vm13465_vm5, %v5093_v36, %v5094_v57  ;;  %v4509_v48 = vsel %vm13373_vm2, %v10918_v18, %v4508_v0  ;;  %v3195_v22 = vsel %vm13373_vm2, %v3193_v52, %v3194_v13  ;;  %v2907_v17 = vld [vmem:[#allocation2 + $0x158] sm:$0x1]  ;;  %v4301_v51 = vld [vmem:[#allocation2 + $0x70] sm:$0xf] }
 0x31c   :  { %8615 = vmatprep.subr.bf16.mxu0 %v18855_v29  ;;  %v10983_v40 = vrot.slane %v4873_v30, 10  ;;  %v3192_v28 = vsel %vm13373_vm2, %v10776_v33, %v3191_v14  ;;  %v4518_v5 = vrot.slane %v4299_v12, 5  ;;  %v4876_v0 = vld [vmem:[#allocation2 + $0x6c] sm:$0xc]  ;;  %v4880_v6 = vld [vmem:[#allocation2 + $0x7c] sm:$0xf] }
 0x31d   :  { %v10808_v46 = vcombine.low %v3192_v28, %v3195_v22  ;;  %v2905_v2 = vld [vmem:[#allocation2 + $0x150] sm:$0xe]  ;;  %v3200_v53 = vrot.slane %v3198_v44, 4  ;;  %v10919_v9 = vrot.slane %v4297_v43, 9  ;;  %v4522_v56 = vrot.slane %v4301_v51, 5 }
 0x31e   :  { %8371 = vmatmul.mubr.bf16.gmra.mrb[76].mxu0 %v10948_v25  ;;  %v4515_v25 = vrot.slane %v15441_v19, 5  ;;  %v5092_v1 = vsel %vm13465_vm5, %v10983_v40, %v5091_v21  ;;  %v10984_v63 = vrot.slane %v4876_v0, 10  ;;  %v5105_v31 = vrot.slane %v4880_v6, 6  ;;  %v2910_v36 = vld [vmem:[#allocation2 + $0x164] sm:$0x1] }
 0x31f   :  { %8378 = vmatprep.mubr.bf16.mxu0 %v11013_v8  ;;  %8616 = vmatpush1.bf16.msra.mxu0 %v12336_v10  ;;  %v4512_v10 = vsel %vm13373_vm2, %v4510_v26, %v4511_v35  ;;  %v5098_v8 = vrot.slane %v15443_v20, 6  ;;  %v11015_v23 = vcombine.low %v5092_v1, %v5095_v34  ;;  %v10777_v15 = vrot.slane %v2905_v2, 9  ;;  %v12326_v35 = vld [vmem:[#allocation2 + $0x144] sm:$0xff]   ;;  %v4304_v52 = vld [vmem:[#allocation2 + $0x7c] sm:$0xf] }
 0x320   :  { %8617 = vmatprep.subr.bf16.mxu0 %v18855_v29  ;;  %v10950_v24 = vcombine.low %v4509_v48, %v4512_v10  ;;  %v4517_v50 = vrot.slane %v4515_v25, 4  ;;  %v4524_v19 = vrot.slane %v4522_v56, 4  ;;  %v5107_v11 = vrot.slane %v5105_v31, 4  ;;  %v4879_v10 = vld [vmem:[#allocation2 + $0x78] sm:$0xc] }
 0x321   :  { %v5100_v45 = vrot.slane %v5098_v8, 4  ;;  %v5099_v30 = vsel %vm13465_vm5, %v10984_v63, %v5098_v8  ;;  %v3199_v20 = vsel %vm13373_vm2, %v10777_v15, %v3198_v44  ;;  %v4883_v37 = vld [vmem:[#allocation2 + $0x88] sm:$0xf]  ;;  %v2912_v33 = vld [vmem:[#allocation2 + $0x16c] sm:$0xf]  ;;  %v4529_v48 = vrot.slane %v4304_v52, 5 }
 0x322   :  { %7937 = vmatmul.mubr.bf16.gmra.mrb[148].mxu1 %v12323_v42  ;;  %v4519_v59 = vsel %vm13373_vm2, %v4517_v50, %v4518_v5  ;;  %v4302_v42 = vld [vmem:[#allocation2 + $0x74] sm:$0x1]  ;;  %v10985_v22 = vrot.slane %v4879_v10, 10  ;;  %v5112_v1 = vrot.slane %v4883_v37, 6  ;;  %v3212_v50 = vrot.slane %v2912_v33, 5 }
 0x323   :  { %8618 = vmatpush1.bf16.msra.mxu0 %v12340_v61  ;;  %7944 = vmatprep.mubr.bf16.mxu1 %v10807_v47  ;;  %v4878_v61 = vld [vmem:[#allocation2 + $0x74] sm:$0x3]  ;;  %v4881_v47 = vld [vmem:[#allocation2 + $0x80] sm:$0x3]  ;;  %v4525_v18 = vrot.slane %v4302_v42, 5  ;;  %v4531_v51 = vrot.slane %v4529_v48, 4 }
 0x324   :  { %8619 = vmatprep.subr.bf16.mxu0 %v18855_v29  ;;  %v5101_v21 = vrot.slane %v4878_v61, 6  ;;  %v5108_v40 = vrot.slane %v4881_v47, 6  ;;  %v4305_v61 = vld [vmem:[#allocation2 + $0x80] sm:$0x1]  ;;  %v12328_v5 = vld [vmem:[#allocation2 + $0x150] sm:$0xff]   ;;  %v5114_v2 = vrot.slane %v5112_v1, 4 }
 0x325   :  { %v4526_v8 = vsel %vm13373_vm2, %v4524_v19, %v4525_v18  ;;  %v4303_v6 = vld [vmem:[#allocation2 + $0x78] sm:$0xe]  ;;  %v12329_v18 = vld [vmem:[#allocation2 + $0x15c] sm:$0xff]   ;;  %v4306_v37 = vld [vmem:[#allocation2 + $0x84] sm:$0xe] }
 0x326   :  { %8379 = vmatmul.mubr.bf16.gmra.mrb[80].mxu0 %v10949_v60  ;;  %v3201_v60 = vrot.slane %v2907_v17, 5  ;;  %v5102_v14 = vsel %vm13465_vm5, %v5100_v45, %v5101_v21  ;;  %v5106_v17 = vsel %vm13465_vm5, %v10985_v22, %v5105_v31  ;;  %v2913_v45 = vld [vmem:[#allocation2 + $0x170] sm:$0x1]  ;;  %v2915_v15 = vld [vmem:[#allocation2 + $0x178] sm:$0xf] }
 0x327   :  { %8386 = vmatprep.mubr.bf16.mxu0 %v11014_v58  ;;  %8620 = vmatpush1.bf16.msra.mxu0 %v12343_v3  ;;  %v2909_v3 = vld [vmem:[#allocation2 + $0x160] sm:$0xf]  ;;  %v4516_v58 = vsel %vm13373_vm2, %v10919_v9, %v4515_v25  ;;  %v11016_v4 = vcombine.low %v5099_v30, %v5102_v14  ;;  %v2908_v25 = vld [vmem:[#allocation2 + $0x15c] sm:$0xe]  ;;  %v4532_v9 = vrot.slane %v4305_v61, 5  ;;  %v10921_v14 = vrot.slane %v4303_v6, 9 }
 0x328   :  { %8621 = vmatprep.subr.bf16.mxu0 %v18855_v29  ;;  %v3202_v54 = vsel %vm13373_vm2, %v3200_v53, %v3201_v60  ;;  %v10951_v26 = vcombine.low %v4516_v58, %v4519_v59  ;;  %v3205_v27 = vrot.slane %v2909_v3, 5  ;;  %v10778_v44 = vrot.slane %v2908_v25, 9  ;;  %v4307_v53 = vld [vmem:[#allocation2 + $0x88] sm:$0xf]  ;;  %v4882_v59 = vld [vmem:[#allocation2 + $0x84] sm:$0xc] }
 0x329   :  { %v10809_v57 = vcombine.low %v3199_v20, %v3202_v54  ;;  %v4886_v3 = vld [vmem:[#allocation2 + $0x94] sm:$0xf]  ;;  %v3214_v60 = vrot.slane %v3212_v50, 4  ;;  %v4533_v31 = vsel %vm13373_vm2, %v4531_v51, %v4532_v9  ;;  %v4536_v58 = vrot.slane %v4307_v53, 5  ;;  %v4308_v20 = vld [vmem:[#allocation2 + $0x8c] sm:$0x1] }
 0x32a   :  { %7945 = vmatmul.mubr.bf16.gmra.mrb[152].mxu1 %v12325_v55  ;;  %v3207_v13 = vrot.slane %v3205_v27, 4  ;;  %v12352_v55 = vld [vmem:[#allocation9 + $0x1d8] sm:$0xff]   ;;  %v3206_v0 = vsel %vm13373_vm2, %v10778_v44, %v3205_v27  ;;  %v3215_v54 = vrot.slane %v2913_v45, 5  ;;  %v5119_v27 = vrot.slane %v4886_v3, 6  ;;  %v4889_v33 = vld [vmem:[#allocation2 + $0xa0] sm:$0xf] }
 0x32b   :  { %8622 = vmatpush1.bf16.msra.mxu0 %v12346_v16  ;;  %7952 = vmatprep.mubr.bf16.mxu1 %v10808_v46  ;;  %v4300_v16 = vld [vmem:[#allocation2 + $0x6c] sm:$0xe]  ;;  %v4538_v52 = vrot.slane %v4536_v58, 4  ;;  %v2918_v44 = vld [vmem:[#allocation2 + $0x184] sm:$0xf] }
 0x32c   :  { %8623 = vmatprep.subr.bf16.mxu0 %v18855_v29  ;;  %v10920_v34 = vrot.slane %v4300_v16, 9  ;;  %v4884_v46 = vld [vmem:[#allocation2 + $0x8c] sm:$0x3]  ;;  %v5121_v25 = vrot.slane %v5119_v27, 4  ;;  %v4309_v3 = vld [vmem:[#allocation2 + $0x90] sm:$0xe] }
 0x32d   :  { %v5115_v63 = vrot.slane %v4884_v46, 6  ;;  %v12331_v9 = vld [vmem:[#allocation2 + $0x168] sm:$0xff]  }
 0x32e   :  { %8387 = vmatmul.mubr.bf16.gmra.mrb[84].mxu0 %v10950_v24  ;;  %v5109_v24 = vsel %vm13465_vm5, %v5107_v11, %v5108_v40  ;;  %v4523_v43 = vsel %vm13373_vm2, %v10920_v34, %v4522_v56  ;;  %v2911_v56 = vld [vmem:[#allocation2 + $0x168] sm:$0xe]  ;;  %v2916_v11 = vld [vmem:[#allocation2 + $0x17c] sm:$0x1]  ;;  %v4539_v34 = vrot.slane %v4308_v20, 5 }
 0x32f   :  { %8394 = vmatprep.mubr.bf16.mxu0 %v11015_v23  ;;  %8624 = vmatpush1.bf16.msra.mxu0 %v12349_v38  ;;  %v3208_v38 = vrot.slane %v2910_v36, 5  ;;  %v10952_v23 = vcombine.low %v4523_v43, %v4526_v8  ;;  %v11017_v28 = vcombine.low %v5106_v17, %v5109_v24  ;;  %v5116_v30 = vsel %vm13465_vm5, %v5114_v2, %v5115_v63  ;;  %v4885_v8 = vld [vmem:[#allocation2 + $0x90] sm:$0xc]  ;;  %v2919_v2 = vld [vmem:[#allocation2 + $0x188] sm:$0x1] }
 0x330   :  { %8625 = vmatprep.subr.bf16.mxu0 %v18855_v29  ;;  %v10779_v42 = vrot.slane %v2911_v56, 9  ;;  %v3216_v36 = vsel %vm13373_vm2, %v3214_v60, %v3215_v54  ;;  %v10922_v24 = vrot.slane %v4306_v37, 9  ;;  %v4313_v60 = vld [vmem:[#allocation2 + $0xa0] sm:$0xf] }
 0x331   :  { %v3209_v12 = vsel %vm13373_vm2, %v3207_v13, %v3208_v38  ;;  %v4310_v13 = vld [vmem:[#allocation2 + $0x94] sm:$0xf] }
 0x332   :  { %7953 = vmatmul.mubr.bf16.gmra.mrb[156].mxu1 %v12326_v35  ;;  %v10810_v21 = vcombine.low %v3206_v0, %v3209_v12  ;;  %v3219_v35 = vrot.slane %v2915_v15, 5  ;;  %v3213_v10 = vsel %vm13373_vm2, %v10779_v42, %v3212_v50  ;;  %v4543_v43 = vrot.slane %v4310_v13, 5  ;;  %v4311_v0 = vld [vmem:[#allocation2 + $0x98] sm:$0x1]  ;;  %v4892_v15 = vld [vmem:[#allocation2 + $0xac] sm:$0xf] }
 0x333   :  { %7960 = vmatprep.mubr.bf16.mxu1 %v10809_v57  ;;  %8626 = vmatpush1.bf16.msra.mxu0 %v12352_v55  ;;  %v4887_v57 = vld [vmem:[#allocation2 + $0x98] sm:$0x3]  ;;  %v10811_v40 = vcombine.low %v3213_v10, %v3216_v36  ;;  %v3222_v12 = vrot.slane %v2916_v11, 5  ;;  %v5126_v50 = vrot.slane %v4889_v33, 6  ;;  %v4537_v55 = vsel %vm13373_vm2, %v10922_v24, %v4536_v58  ;;  %v2917_v58 = vld [vmem:[#allocation2 + $0x180] sm:$0xe] }
 0x334   :  { %8627 = vmatprep.subr.bf16.mxu0 %v18855_v29  ;;  %v3221_v38 = vrot.slane %v3219_v35, 4  ;;  %v5122_v22 = vrot.slane %v4887_v57, 6  ;;  %v4545_v53 = vrot.slane %v4543_v43, 4  ;;  %v2921_v42 = vld [vmem:[#allocation2 + $0x190] sm:$0xf]  ;;  %v3229_v36 = vrot.slane %v2919_v2, 5 }
 0x335   :  { %v5128_v56 = vrot.slane %v5126_v50, 4  ;;  %v10781_v20 = vrot.slane %v2917_v58, 9  ;;  %v4314_v10 = vld [vmem:[#allocation2 + $0xa4] sm:$0x1]  ;;  %v4312_v13 = vld [vmem:[#allocation2 + $0x9c] sm:$0xe] }
 0x336   :  { %8395 = vmatmul.mubr.bf16.gmra.mrb[88].mxu0 %v10951_v26  ;;  %v10986_v26 = vrot.slane %v4882_v59, 10  ;;  %v5123_v17 = vsel %vm13465_vm5, %v5121_v25, %v5122_v22  ;;  %v3223_v45 = vsel %vm13373_vm2, %v3221_v38, %v3222_v12  ;;  %v2922_v25 = vld [vmem:[#allocation2 + $0x194] sm:$0x1]  ;;  %v4316_v22 = vld [vmem:[#allocation2 + $0xac] sm:$0xf] }
 0x337   :  { %8402 = vmatprep.mubr.bf16.mxu0 %v11016_v4  ;;  %v4530_v4 = vsel %vm13373_vm2, %v10921_v14, %v4529_v48  ;;  %v2914_v48 = vld [vmem:[#allocation2 + $0x174] sm:$0xe]  ;;  %v4546_v14 = vrot.slane %v4311_v0, 5 }
 0x338   :  { %v10953_v19 = vcombine.low %v4530_v4, %v4533_v31  ;;  %v5113_v47 = vsel %vm13465_vm5, %v10986_v26, %v5112_v1  ;;  %v4540_v1 = vsel %vm13373_vm2, %v4538_v52, %v4539_v34  ;;  %v10780_v61 = vrot.slane %v2914_v48, 9  ;;  %v4888_v31 = vld [vmem:[#allocation2 + $0x9c] sm:$0xc]  ;;  %v4893_v34 = vld [vmem:[#allocation2 + $0xb0] sm:$0x3] }
 0x339   :  { %v11018_v16 = vcombine.low %v5113_v47, %v5116_v30  ;;  %v10954_v51 = vcombine.low %v4537_v55, %v4540_v1  ;;  %v10923_v30 = vrot.slane %v4309_v3, 9  ;;  %v4550_v4 = vrot.slane %v4313_v60, 5  ;;  %v4891_v48 = vld [vmem:[#allocation2 + $0xa8] sm:$0xc]  ;;  %v4317_v3 = vld [vmem:[#allocation2 + $0xb0] sm:$0x1] }
 0x33a   :  { %7961 = vmatmul.mubr.bf16.gmra.mrb[160].mxu1 %v12328_v5  ;;  %v3226_v5 = vrot.slane %v2918_v44, 5  ;;  %v3220_v59 = vsel %vm13373_vm2, %v10780_v61, %v3219_v35  ;;  %v5133_v35 = vrot.slane %v4892_v15, 6  ;;  %v4553_v1 = vrot.slane %v4314_v10, 5  ;;  %v15524_v44 = vld [vmem:[#allocation2 + $0xb8] sm:$0xf]  ;;  %v12334_v15 = vld [vmem:[#allocation2 + $0x180] sm:$0xff]  }
 0x33b   :  { %7968 = vmatprep.mubr.bf16.mxu1 %v10810_v21  ;;  %v4890_v21 = vld [vmem:[#allocation2 + $0xa4] sm:$0x3]  ;;  %v10812_v63 = vcombine.low %v3220_v59, %v3223_v45  ;;  %v15528_v61 = vld [vmem:[#allocation2 + $0x19c] sm:$0xf]  ;;  %v4557_v55 = vrot.slane %v4316_v22, 5  ;;  %v3236_v45 = vrot.slane %v2922_v25, 5 }
 0x33c   :  { %v3228_v54 = vrot.slane %v3226_v5, 4  ;;  %v5129_v26 = vrot.slane %v4890_v21, 6  ;;  %v3227_v33 = vsel %vm13373_vm2, %v10781_v20, %v3226_v5  ;;  %v5135_v38 = vrot.slane %v5133_v35, 4  ;;  %v4315_v59 = vld [vmem:[#allocation2 + $0xa8] sm:$0xe] }
 0x33d   :  { %v5140_v5 = vrot.slane %v15524_v44, 6  ;;  %v2925_v60 = vld [vmem:[#allocation2 + $0x1a0] sm:$0x1]  ;;  %v4320_v22 = vld [vmem:[#allocation2 + $0xbc] sm:$0x1] }
 0x33e   :  { %8403 = vmatmul.mubr.bf16.gmra.mrb[92].mxu0 %v10952_v23  ;;  %v10987_v23 = vrot.slane %v4885_v8, 10  ;;  %v5130_v47 = vsel %vm13465_vm5, %v5128_v56, %v5129_v26  ;;  %v3230_v11 = vsel %vm13373_vm2, %v3228_v54, %v3229_v36  ;;  %v12332_v8 = vld [vmem:[#allocation2 + $0x174] sm:$0xff]   ;;  %v2928_v44 = vld [vmem:[#allocation2 + $0x1ac] sm:$0x1] }
 0x33f   :  { %8410 = vmatprep.mubr.bf16.mxu0 %v11017_v28  ;;  %v12355_v28 = vld [vmem:[#allocation9 + $0x1e0] sm:$0xff]   ;;  %v10813_v24 = vcombine.low %v3227_v33, %v3230_v11  ;;  %v5142_v54 = vrot.slane %v5140_v5, 4  ;;  %v4319_v26 = vld [vmem:[#allocation2 + $0xb8] sm:$0xf] }
 0x340   :  { %v5120_v46 = vsel %vm13465_vm5, %v10987_v23, %v5119_v27  ;;  %8628 = vmatpush1.bf16.msra.mxu0 %v12355_v28  ;;  %v4547_v27 = vsel %vm13373_vm2, %v4545_v53, %v4546_v14  ;;  %v5136_v23 = vrot.slane %v4893_v34, 6  ;;  %v12358_v28 = vld [vmem:[#allocation9 + $0x1e8] sm:$0xff]   ;;  %v4894_v14 = vld [vmem:[#allocation2 + $0xb4] sm:$0xc]  ;;  %v4564_v11 = vrot.slane %v4319_v26, 5 }
 0x341   :  { %v11019_v6 = vcombine.low %v5120_v46, %v5123_v17  ;;  %8629 = vmatprep.subr.bf16.mxu0 %v18855_v29  ;;  %v10924_v17 = vrot.slane %v4312_v13, 9  ;;  %v12335_v34 = vld [vmem:[#allocation2 + $0x18c] sm:$0xff]  }
 0x342   :  { %7969 = vmatmul.mubr.bf16.gmra.mrb[164].mxu1 %v12329_v18  ;;  %v3233_v18 = vrot.slane %v2921_v42, 5  ;;  %v5137_v46 = vsel %vm13465_vm5, %v5135_v38, %v5136_v23  ;;  %v15543_v42 = vld [vmem:[#allocation2 + $0xc4] sm:$0xf]  ;;  %v4899_v23 = vld [vmem:[#allocation2 + $0xc8] sm:$0x3] }
 0x343   :  { %7976 = vmatprep.mubr.bf16.mxu1 %v10811_v40  ;;  %v4552_v40 = vrot.slane %v4550_v4, 4  ;;  %v5147_v10 = vrot.slane %v15543_v42, 6  ;;  %v4323_v42 = vld [vmem:[#allocation2 + $0xc8] sm:$0x1] }
 0x344   :  { %v3235_v12 = vrot.slane %v3233_v18, 4  ;;  %8630 = vmatpush1.bf16.msra.mxu0 %v12358_v28  ;;  %v4322_v28 = vld [vmem:[#allocation2 + $0xc4] sm:$0xf] }
 0x345   :  { %8631 = vmatprep.subr.bf16.mxu0 %v18855_v29 }
 0x346   :  { %8411 = vmatmul.mubr.bf16.gmra.mrb[96].mxu0 %v10953_v19  ;;  %v10988_v19 = vrot.slane %v4888_v31, 10  ;;  %v3237_v2 = vsel %vm13373_vm2, %v3235_v12, %v3236_v45  ;;  %v4896_v31 = vld [vmem:[#allocation2 + $0xbc] sm:$0x3]  ;;  %v4566_v12 = vrot.slane %v4564_v11, 4 }
 0x347   :  { %8418 = vmatprep.mubr.bf16.mxu0 %v11018_v16  ;;  %v4544_v16 = vsel %vm13373_vm2, %v10923_v30, %v4543_v43  ;;  %v2920_v43 = vld [vmem:[#allocation2 + $0x18c] sm:$0xe] }
 0x348   :  { %v10955_v52 = vcombine.low %v4544_v16, %v4547_v27  ;;  %v5127_v57 = vsel %vm13465_vm5, %v10988_v19, %v5126_v50  ;;  %v4554_v50 = vsel %vm13373_vm2, %v4552_v40, %v4553_v1  ;;  %v10782_v0 = vrot.slane %v2920_v43, 9  ;;  %v15549_v16 = vld [vmem:[#allocation2 + $0x1a8] sm:$0xf]  ;;  %v4318_v43 = vld [vmem:[#allocation2 + $0xb4] sm:$0xe] }
 0x349   :  { %v11020_v37 = vcombine.low %v5127_v57, %v5130_v47  ;;  %v4560_v27 = vrot.slane %v4317_v3, 5  ;;  %v5143_v19 = vrot.slane %v4896_v31, 6  ;;  %v15545_v47 = vld [vmem:[#allocation9 + $0x200] sm:$0xff]   ;;  %v10990_v57 = vrot.slane %v4894_v14, 10 }
 0x34a   :  { %7977 = vmatmul.mubr.bf16.gmra.mrb[168].mxu1 %v12331_v9  ;;  %v3240_v9 = vrot.slane %v15528_v61, 5  ;;  %v3234_v58 = vsel %vm13373_vm2, %v10782_v0, %v3233_v18  ;;  %11665 = vmatprep.subr.bf16.mxu1 %v15545_v47  ;;  %v3247_v38 = vrot.slane %v15549_v16, 5  ;;  %v4897_v61 = vld [vmem:[#allocation2 + $0xc0] sm:$0xc]  ;;  %v5150_v0 = vrot.slane %v4899_v23, 6 }
 0x34b   :  { %7984 = vmatprep.mubr.bf16.mxu1 %v10812_v63  ;;  %v4559_v63 = vrot.slane %v4557_v55, 4  ;;  %v10814_v30 = vcombine.low %v3234_v58, %v3237_v2  ;;  %v5144_v18 = vsel %vm13465_vm5, %v5142_v54, %v5143_v19  ;;  %v10926_v2 = vrot.slane %v4318_v43, 9 }
 0x34c   :  { %v3242_v36 = vrot.slane %v3240_v9, 4 }
 0x34d   :  { %v4561_v20 = vsel %vm13373_vm2, %v4559_v63, %v4560_v27  ;;  %v4565_v14 = vsel %vm13373_vm2, %v10926_v2, %v4564_v11  ;;  %v4321_v27 = vld [vmem:[#allocation2 + $0xc0] sm:$0xe] }
 0x34e   :  { %8419 = vmatmul.mubr.bf16.gmra.mrb[100].mxu0 %v10954_v51  ;;  %v10989_v51 = vrot.slane %v4891_v48, 10  ;;  %v5141_v48 = vsel %vm13465_vm5, %v10990_v57, %v5140_v5  ;;  %v3249_v5 = vrot.slane %v3247_v38, 4  ;;  %v3464_v2 = vld [vmem:[#allocation2 + $0x100] sm:$0xf] }
 0x34f   :  { %8426 = vmatprep.mubr.bf16.mxu0 %v11019_v6  ;;  %v4551_v6 = vsel %vm13373_vm2, %v10924_v17, %v4550_v4  ;;  %v2923_v4 = vld [vmem:[#allocation2 + $0x198] sm:$0xe]  ;;  %v11022_v1 = vcombine.low %v5141_v48, %v5144_v18  ;;  %v4325_v18 = vld [vmem:[#allocation2 + $0xd0] sm:$0xf] }
 0x350   :  { %v10956_v53 = vcombine.low %v4551_v6, %v4554_v50  ;;  %v5134_v21 = vsel %vm13465_vm5, %v10989_v51, %v5133_v35  ;;  %v10925_v35 = vrot.slane %v4315_v59, 9  ;;  %v10783_v25 = vrot.slane %v2923_v4, 9  ;;  %v2926_v6 = vld [vmem:[#allocation2 + $0x1a4] sm:$0xe] }
 0x351   :  { %v11021_v56 = vcombine.low %v5134_v21, %v5137_v46  ;;  %v4567_v51 = vrot.slane %v4320_v22, 5  ;;  %v4901_v46 = vld [vmem:[#allocation2 + $0xd0] sm:$0xf]  ;;  %v4571_v21 = vrot.slane %v4322_v28, 5  ;;  %v3250_v59 = vrot.slane %v2928_v44, 5 }
 0x352   :  { %7985 = vmatmul.mubr.bf16.gmra.mrb[172].mxu1 %v12332_v8  ;;  %v4558_v13 = vsel %vm13373_vm2, %v10925_v35, %v4557_v55  ;;  %v3241_v50 = vsel %vm13373_vm2, %v10783_v25, %v3240_v9  ;;  %v5149_v55 = vrot.slane %v5147_v10, 4  ;;  %v10991_v9 = vrot.slane %v4897_v61, 10  ;;  %v4902_v35 = vld [vmem:[#allocation2 + $0xd4] sm:$0x3]  ;;  %v3462_v22 = vld [vmem:[#allocation2 + $0xf8] sm:$0x3] }
 0x353   :  { %7992 = vmatprep.mubr.bf16.mxu1 %v10813_v24  ;;  %v10957_v33 = vcombine.low %v4558_v13, %v4561_v20  ;;  %v10784_v58 = vrot.slane %v2926_v6, 9  ;;  %v3251_v54 = vsel %vm13373_vm2, %v3249_v5, %v3250_v59  ;;  %v4573_v19 = vrot.slane %v4571_v21, 4  ;;  %v3461_v20 = vld [vmem:[#allocation2 + $0xf4] sm:$0xf]  ;;  %v4904_v13 = vld [vmem:[#allocation2 + $0x10c] sm:$0xf] }
 0x354   :  { %v5151_v3 = vsel %vm13465_vm5, %v5149_v55, %v5150_v0  ;;  %v4574_v25 = vrot.slane %v4323_v42, 5  ;;  %v5161_v44 = vrot.slane %v4904_v13, 6  ;;  %v4905_v6 = vld [vmem:[#allocation2 + $0x110] sm:$0x3]  ;;  %v4324_v59 = vld [vmem:[#allocation2 + $0xcc] sm:$0xe] }
 0x355   :  { %v3248_v11 = vsel %vm13373_vm2, %v10784_v58, %v3247_v38  ;;  %v4578_v38 = vrot.slane %v4325_v18, 5  ;;  %v5164_v58 = vrot.slane %v4905_v6, 6  ;;  %v3465_v42 = vld [vmem:[#allocation2 + $0x104] sm:$0x3]  ;;  %v4329_v18 = vld [vmem:[#allocation2 + $0x110] sm:$0x1] }
 0x356   :  { %8427 = vmatmul.mubr.bf16.gmra.mrb[104].mxu0 %v10955_v52  ;;  %v3243_v52 = vrot.slane %v2925_v60, 5  ;;  %v12364_v60 = vld [vmem:[#allocation9 + $0x1f0] sm:$0xff]  }
 0x357   :  { %8434 = vmatprep.mubr.bf16.mxu0 %v11020_v37  ;;  %v15555_v37 = vpop.f32.mrb[72].mxu1  ;;  %8632 = vmatpush1.bf16.msra.mxu0 %v12364_v60  ;;  %v4580_v0 = vrot.slane %v4578_v38, 4  ;;  %v4903_v60 = vld [vmem:[#allocation2 + $0x108] sm:$0xc] }
 0x358   :  { %v7788_v40 = vpop.f32.mrb[73].mxu1  ;;  %v3244_v8 = vsel %vm13373_vm2, %v3242_v36, %v3243_v52  ;;  %8633 = vmatprep.subr.bf16.mxu0 %v18855_v29  ;;  %v4900_v52 = vld [vmem:[#allocation2 + $0xcc] sm:$0xc]  ;;  %v4575_v29 = vsel %vm13373_vm2, %v4573_v19, %v4574_v25  ;;  %v10993_v19 = vrot.slane %v4903_v60, 10 }
 0x359   :  { %v15564_v24 = vpop.f32.mrb[74].mxu1  ;;  %v10815_v45 = vcombine.low %v3241_v50, %v3244_v8  ;;  %v5157_v40 = vrot.slane %v4902_v35, 6  ;;  %v3721_v8 = vrot.slane %v3461_v20, 6  ;;  %v10992_v48 = vrot.slane %v4900_v52, 10  ;;  %v12338_v50 = vld [vmem:[#allocation2 + $0x1a4] sm:$0xff]  }
 0x35a   :  { %7993 = vmatmul.mubr.bf16.gmra.mrb[176].mxu1 %v12334_v15  ;;  %v7791_v17 = vpop.f32.mrb[75].mxu1  ;;  %v12337_v15 = vld [vmem:[#allocation2 + $0x198] sm:$0xff]   ;;  %v5162_v13 = vsel %vm13465_vm5, %v10993_v19, %v5161_v44  ;;  %v4911_v19 = vld [vmem:[#allocation2 + $0x128] sm:$0x3] }
 0x35b   :  { %8000 = vmatprep.mubr.bf16.mxu1 %v10814_v30  ;;  %v15572_v63 = vpop.f32.mrb[76].mxu1  ;;  %v5148_v30 = vsel %vm13465_vm5, %v10991_v9, %v5147_v10  ;;  %v10816_v10 = vcombine.low %v3248_v11, %v3251_v54  ;;  %v3723_v28 = vrot.slane %v3721_v8, 4  ;;  %v15597_v9 = vld [vmem:[#allocation2 + $0x10c] sm:$0xf]  ;;  %v3463_v54 = vld [vmem:[#allocation2 + $0xfc] sm:$0xc] }
 0x35c   :  { %v7796_v31 = vpop.f32.mrb[77].mxu1  ;;  %v11023_v36 = vcombine.low %v5148_v30, %v5151_v3  ;;  %v12339_v3 = vld [vmem:[#allocation2 + $0x108] sm:$0xff]   ;;  %v10928_v30 = vrot.slane %v4324_v59, 9 }
 0x35d   :  { %v15580_v4 = vpop.f32.mrb[78].mxu1 }
 0x35e   :  { %8435 = vmatmul.mubr.bf16.gmra.mrb[108].mxu0 %v10956_v53  ;;  %v4568_v53 = vsel %vm13373_vm2, %v4566_v12, %v4567_v51  ;;  %v7799_v16 = vpop.f32.mrb[79].mxu1  ;;  %v4326_v51 = vld [vmem:[#allocation2 + $0xd4] sm:$0x1]  ;;  %v4579_v52 = vsel %vm13373_vm2, %v10928_v30, %v4578_v38  ;;  %v12361_v38 = vld [vmem:[#allocation9 + $0x208] sm:$0xff]  }
 0x35f   :  { %8442 = vmatprep.mubr.bf16.mxu0 %v11021_v56  ;;  %v5154_v56 = vrot.slane %v4901_v46, 6  ;;  %v10958_v26 = vcombine.low %v4565_v14, %v4568_v53  ;;  %v15599_v14 = vld [vmem:[#allocation2 + $0x118] sm:$0xf] }
 0x360   :  { %v5168_v20 = vrot.slane %v15599_v14, 6 }
 0x361   :  { %v5156_v57 = vrot.slane %v5154_v56, 4  ;;  %v5155_v23 = vsel %vm13465_vm5, %v10992_v48, %v5154_v56  ;;  %v4581_v56 = vrot.slane %v4326_v51, 5  ;;  %v15625_v51 = vld [vmem:[#allocation2 + $0x10c] sm:$0xf] }
 0x362   :  { %8001 = vmatmul.mubr.bf16.gmra.mrb[180].mxu1 %v12335_v34  ;;  %v3460_v34 = vld [vmem:[#allocation2 + $0xf0] sm:$0xc]  ;;  %v3735_v60 = vrot.slane %v15625_v51, 6 }
 0x363   :  { %8008 = vmatprep.mubr.bf16.mxu1 %v10815_v45  ;;  %v15589_v43 = vpop.f32.mrb[80].mxu1  ;;  %v10833_v55 = vrot.slane %v3460_v34, 10  ;;  %v3724_v45 = vrot.slane %v3462_v22, 6  ;;  %v3731_v34 = vrot.slane %v3465_v42, 6 }
 0x364   :  { %v7804_v17 = vpop.f32.mrb[81].mxu1 }
 0x365   :  { %v15595_v46 = vpop.f32.mrb[82].mxu1  ;;  %v3722_v31 = vsel %vm13465_vm5, %v10833_v55, %v3721_v8  ;;  %v4327_v8 = vld [vmem:[#allocation2 + $0x108] sm:$0xe]  ;;  %v12370_v17 = vld [vmem:[#allocation9 + $0x1f8] sm:$0xff]   ;;  %v4906_v55 = vld [vmem:[#allocation2 + $0x114] sm:$0xc] }
 0x366   :  { %8443 = vmatmul.mubr.bf16.gmra.mrb[112].mxu0 %v10957_v33  ;;  %v10927_v33 = vrot.slane %v4321_v27, 9  ;;  %v7807_v53 = vpop.f32.mrb[83].mxu1  ;;  %v4582_v27 = vsel %vm13373_vm2, %v4580_v0, %v4581_v56  ;;  %v10929_v0 = vrot.slane %v4327_v8, 9 }
 0x367   :  { %8450 = vmatprep.mubr.bf16.mxu0 %v11022_v1  ;;  %v5158_v1 = vsel %vm13465_vm5, %v5156_v57, %v5157_v40  ;;  %v10834_v57 = vrot.slane %v3463_v54, 10  ;;  %v10960_v25 = vcombine.low %v4579_v52, %v4582_v27  ;;  %8634 = vmatpush1.bf16.msra.mxu0 %v12370_v17  ;;  %v10994_v53 = vrot.slane %v4906_v55, 10  ;;  %v4332_v54 = vld [vmem:[#allocation2 + $0x11c] sm:$0x1]  ;;  %v4330_v27 = vld [vmem:[#allocation2 + $0x114] sm:$0xe] }
 0x368   :  { %v4572_v12 = vsel %vm13373_vm2, %v10927_v33, %v4571_v21  ;;  %v11024_v5 = vcombine.low %v5155_v23, %v5158_v1  ;;  %v5163_v21 = vrot.slane %v5161_v44, 4  ;;  %v4908_v33 = vld [vmem:[#allocation2 + $0x11c] sm:$0x3]  ;;  %v15619_v23 = vld [vmem:[#allocation2 + $0x118] sm:$0xf] }
 0x369   :  { %v10959_v61 = vcombine.low %v4572_v12, %v4575_v29  ;;  %v5170_v12 = vrot.slane %v5168_v20, 4  ;;  %v15621_v44 = vld [vmem:[#allocation2 + $0x124] sm:$0xf] }
 0x36a   :  { %8009 = vmatmul.mubr.bf16.gmra.mrb[184].mxu1 %v12337_v15  ;;  %v3725_v15 = vsel %vm13465_vm5, %v3723_v28, %v3724_v45  ;;  %v5165_v35 = vsel %vm13465_vm5, %v5163_v21, %v5164_v58  ;;  %v5171_v45 = vrot.slane %v4908_v33, 6  ;;  %v5175_v21 = vrot.slane %v15621_v44, 6  ;;  %v3468_v58 = vld [vmem:[#allocation2 + $0x110] sm:$0x3]  ;;  %v15645_v52 = vld [vmem:[#allocation2 + $0x124] sm:$0xf] }
 0x36b   :  { %8016 = vmatprep.mubr.bf16.mxu1 %v10816_v10  ;;  %v15611_v16 = vpop.f32.mrb[84].mxu1  ;;  %v10865_v11 = vcombine.low %v3722_v31, %v3725_v15  ;;  %v11025_v48 = vcombine.low %v5162_v13, %v5165_v35  ;;  %v3466_v13 = vld [vmem:[#allocation2 + $0x108] sm:$0xc]  ;;  %v3738_v8 = vrot.slane %v3468_v58, 6  ;;  %v10930_v33 = vrot.slane %v4330_v27, 9 }
 0x36c   :  { %v7812_v10 = vpop.f32.mrb[85].mxu1  ;;  %v5172_v59 = vsel %vm13465_vm5, %v5170_v12, %v5171_v45  ;;  %v15670_v58 = vld [vmem:[#allocation2 + $0x130] sm:$0xf]  ;;  %v4912_v27 = vld [vmem:[#allocation2 + $0x12c] sm:$0xc] }
 0x36d   :  { %v15617_v29 = vpop.f32.mrb[86].mxu1  ;;  %v4909_v10 = vld [vmem:[#allocation2 + $0x120] sm:$0xc] }
 0x36e   :  { %8451 = vmatmul.mubr.bf16.gmra.mrb[116].mxu0 %v10958_v26  ;;  %v3728_v26 = vrot.slane %v3464_v2, 6  ;;  %v7815_v1 = vpop.f32.mrb[87].mxu1  ;;  %v4592_v2 = vrot.slane %v15619_v23, 5 }
 0x36f   :  { %8458 = vmatprep.mubr.bf16.mxu0 %v11023_v36  ;;  %v4585_v36 = vrot.slane %v15597_v9, 5  ;;  %v12362_v9 = vld [vmem:[#allocation9 + $0x210] sm:$0xff]   ;;  %v10995_v1 = vrot.slane %v4909_v10, 10 }
 0x370   :  { %v3730_v40 = vrot.slane %v3728_v26, 4  ;;  %v3729_v28 = vsel %vm13465_vm5, %v10834_v57, %v3728_v26  ;;  %v4594_v42 = vrot.slane %v4592_v2, 4  ;;  %v12365_v57 = vld [vmem:[#allocation9 + $0x218] sm:$0xff]   ;;  %v4593_v55 = vsel %vm13373_vm2, %v10930_v33, %v4592_v2 }
 0x371   :  { %v4587_v22 = vrot.slane %v4585_v36, 4  ;;  %v4586_v56 = vsel %vm13373_vm2, %v10929_v0, %v4585_v36  ;;  %v5177_v36 = vrot.slane %v5175_v21, 4  ;;  %v5176_v51 = vsel %vm13465_vm5, %v10995_v1, %v5175_v21  ;;  %v4335_v0 = vld [vmem:[#allocation2 + $0x128] sm:$0x1] }
 0x372   :  { %8017 = vmatmul.mubr.bf16.gmra.mrb[188].mxu1 %v12338_v50  ;;  %v12341_v50 = vld [vmem:[#allocation2 + $0x114] sm:$0xff]   ;;  %v12368_v21 = vld [vmem:[#allocation9 + $0x228] sm:$0xff]  }
 0x373   :  { %8185 = vmatprep.mubr.bf16.mxu1 %v12339_v3  ;;  %v15636_v3 = vpop.f32.mrb[88].mxu1 }
 0x374   :  { %v7820_v14 = vpop.f32.mrb[89].mxu1 }
 0x375   :  { %v15643_v26 = vpop.f32.mrb[90].mxu1  ;;  %v4914_v14 = vld [vmem:[#allocation2 + $0x134] sm:$0x3] }
 0x376   :  { %8459 = vmatmul.mubr.bf16.gmra.mrb[120].mxu0 %v10959_v61  ;;  %v4588_v61 = vrot.slane %v4329_v18, 5  ;;  %v7823_v35 = vpop.f32.mrb[91].mxu1  ;;  %v3737_v18 = vrot.slane %v3735_v60, 4 }
 0x377   :  { %8466 = vmatprep.mubr.bf16.mxu0 %v11024_v5  ;;  %v3732_v5 = vsel %vm13465_vm5, %v3730_v40, %v3731_v34  ;;  %v5178_v40 = vrot.slane %v4911_v19, 6  ;;  %v15649_v34 = vld [vmem:[#allocation2 + $0x118] sm:$0xf]  ;;  %v5185_v19 = vrot.slane %v4914_v14, 6  ;;  %v15674_v35 = vld [vmem:[#allocation2 + $0x124] sm:$0xf] }
 0x378   :  { %v4589_v6 = vsel %vm13373_vm2, %v4587_v22, %v4588_v61  ;;  %v10866_v31 = vcombine.low %v3729_v28, %v3732_v5  ;;  %v4599_v22 = vrot.slane %v15645_v52, 5  ;;  %v3739_v61 = vsel %vm13465_vm5, %v3737_v18, %v3738_v8  ;;  %v3471_v5 = vld [vmem:[#allocation2 + $0x11c] sm:$0x3] }
 0x379   :  { %v10961_v15 = vcombine.low %v4586_v56, %v4589_v6  ;;  %v5179_v12 = vsel %vm13465_vm5, %v5177_v36, %v5178_v40  ;;  %v3742_v44 = vrot.slane %v15649_v34, 6  ;;  %v10996_v18 = vrot.slane %v4912_v27, 10 }
 0x37a   :  { %8186 = vmatmul.mubr.bf16.vlgmr.msra.gmra.mrb[128].mxu1 %v10865_v11  ;;  %v12342_v11 = vld [vmem:[#allocation2 + $0x120] sm:$0xff]   ;;  %v4601_v56 = vrot.slane %v4599_v22, 4  ;;  %v3749_v33 = vrot.slane %v15674_v35, 6 }
 0x37b   :  { %8193 = vmatprep.mubr.bf16.mxu1 %v12341_v50  ;;  %11666 = vmatpush3.bf16.msra.mxu1 %v15545_v47  ;;  %v5169_v47 = vsel %vm13465_vm5, %v10994_v53, %v5168_v20  ;;  %v4595_v20 = vrot.slane %v4332_v54, 5  ;;  %v15657_v17 = vpop.f32.mrb[92].mxu1  ;;  %v10835_v50 = vrot.slane %v3466_v13, 10  ;;  %v3744_v54 = vrot.slane %v3742_v44, 4 }
 0x37c   :  { %11667 = vmatprep.subr.bf16.mxu1 %v12361_v38  ;;  %v11026_v30 = vcombine.low %v5169_v47, %v5172_v59  ;;  %v7828_v28 = vpop.f32.mrb[93].mxu1  ;;  %v11027_v59 = vcombine.low %v5176_v51, %v5179_v12 }
 0x37d   :  { %v15666_v6 = vpop.f32.mrb[94].mxu1  ;;  %v3736_v53 = vsel %vm13465_vm5, %v10835_v50, %v3735_v60  ;;  %v3469_v60 = vld [vmem:[#allocation2 + $0x114] sm:$0xc]  ;;  %v4338_v50 = vld [vmem:[#allocation2 + $0x134] sm:$0x1] }
 0x37e   :  { %8467 = vmatmul.mubr.bf16.gmra.mrb[124].mxu0 %v10960_v25  ;;  %v15647_v25 = vld [vmem:[#allocation2 + $0x130] sm:$0xf]  ;;  %v7831_v2 = vpop.f32.mrb[95].mxu1  ;;  %v10836_v40 = vrot.slane %v3469_v60, 10  ;;  %v4609_v14 = vrot.slane %v4338_v50, 5 }
 0x37f   :  { %8474 = vmatprep.mubr.bf16.mxu0 %v11025_v48  ;;  %11668 = vmatpush3.bf16.msra.mxu1 %v12361_v38  ;;  %v4596_v48 = vsel %vm13373_vm2, %v4594_v42, %v4595_v20  ;;  %v5182_v23 = vrot.slane %v15647_v25, 6  ;;  %v12366_v38 = vld [vmem:[#allocation9 + $0x220] sm:$0xff]   ;;  %v15672_v42 = vld [vmem:[#allocation2 + $0x13c] sm:$0xf]  ;;  %v12369_v25 = vld [vmem:[#allocation9 + $0x230] sm:$0xff]  }
 0x380   :  { %11669 = vmatprep.subr.bf16.mxu1 %v12362_v9  ;;  %v10962_v45 = vcombine.low %v4593_v55, %v4596_v48  ;;  %v5189_v10 = vrot.slane %v15672_v42, 6  ;;  %v3743_v55 = vsel %vm13465_vm5, %v10836_v40, %v3742_v44  ;;  %v4915_v2 = vld [vmem:[#allocation2 + $0x138] sm:$0xc]  ;;  %v3472_v44 = vld [vmem:[#allocation2 + $0x120] sm:$0xc] }
 0x381   :  { %v5184_v47 = vrot.slane %v5182_v23, 4  ;;  %v5183_v12 = vsel %vm13465_vm5, %v10996_v18, %v5182_v23  ;;  %v12371_v23 = vld [vmem:[#allocation9 + $0x238] sm:$0xff]   ;;  %v10997_v27 = vrot.slane %v4915_v2, 10  ;;  %v10837_v35 = vrot.slane %v3472_v44, 10  ;;  %v4341_v40 = vld [vmem:[#allocation2 + $0x140] sm:$0x1] }
 0x382   :  { %8194 = vmatmul.mubr.bf16.gmra.mrb[132].mxu1 %v10866_v31  ;;  %v10867_v31 = vcombine.low %v3736_v53, %v3739_v61  ;;  %v12345_v53 = vld [vmem:[#allocation2 + $0x138] sm:$0xff]   ;;  %v4920_v50 = vld [vmem:[#allocation2 + $0x14c] sm:$0x3] }
 0x383   :  { %8201 = vmatprep.mubr.bf16.mxu1 %v12342_v11  ;;  %11670 = vmatpush3.bf16.msra.mxu1 %v12362_v9  ;;  %v4333_v9 = vld [vmem:[#allocation2 + $0x120] sm:$0xe]  ;;  %v3745_v11 = vrot.slane %v3471_v5, 6  ;;  %v5186_v20 = vsel %vm13465_vm5, %v5184_v47, %v5185_v19  ;;  %v15682_v13 = vpop.f32.mrb[96].mxu1  ;;  %v15699_v47 = vld [vmem:[#allocation2 + $0x130] sm:$0xf] }
 0x384   :  { %11671 = vmatprep.subr.bf16.mxu1 %v12365_v57  ;;  %v10931_v36 = vrot.slane %v4333_v9, 9  ;;  %v7836_v48 = vpop.f32.mrb[97].mxu1  ;;  %v11028_v28 = vcombine.low %v5183_v12, %v5186_v20  ;;  %v4917_v5 = vld [vmem:[#allocation2 + $0x140] sm:$0x3]  ;;  %v15695_v9 = vld [vmem:[#allocation2 + $0x13c] sm:$0xf] }
 0x385   :  { %v3746_v34 = vsel %vm13465_vm5, %v3744_v54, %v3745_v11  ;;  %v15691_v61 = vpop.f32.mrb[98].mxu1  ;;  %v12347_v48 = vld [vmem:[#allocation2 + $0x144] sm:$0xff]   ;;  %v3477_v12 = vld [vmem:[#allocation2 + $0x134] sm:$0x3] }
 0x386   :  { %8475 = vmatmul.mubr.bf16.gmra.mrb[128].mxu0 %v10961_v15  ;;  %v12344_v15 = vld [vmem:[#allocation2 + $0x12c] sm:$0xff]   ;;  %v4600_v8 = vsel %vm13373_vm2, %v10931_v36, %v4599_v22  ;;  %v7839_v22 = vpop.f32.mrb[99].mxu1 }
 0x387   :  { %8482 = vmatprep.mubr.bf16.mxu0 %v11026_v30  ;;  %11672 = vmatpush3.bf16.msra.mxu1 %v12365_v57  ;;  %v4602_v30 = vrot.slane %v4335_v0, 5  ;;  %v4606_v57 = vrot.slane %v15670_v58, 5  ;;  %v10868_v0 = vcombine.low %v3743_v55, %v3746_v34  ;;  %v4918_v22 = vld [vmem:[#allocation2 + $0x144] sm:$0xc] }
 0x388   :  { %11673 = vmatprep.subr.bf16.mxu1 %v12366_v38  ;;  %v10998_v2 = vrot.slane %v4918_v22, 10 }
 0x389   :  { %v4603_v52 = vsel %vm13373_vm2, %v4601_v56, %v4602_v30  ;;  %v4608_v51 = vrot.slane %v4606_v57, 4  ;;  %v3751_v56 = vrot.slane %v3749_v33, 4  ;;  %v4613_v30 = vrot.slane %v15695_v9, 5  ;;  %v3479_v9 = vld [vmem:[#allocation2 + $0x13c] sm:$0xf] }
 0x38a   :  { %8202 = vmatmul.mubr.bf16.gmra.mrb[136].mxu1 %v10867_v31  ;;  %v10963_v1 = vcombine.low %v4600_v8, %v4603_v52  ;;  %v15697_v31 = vld [vmem:[#allocation2 + $0x148] sm:$0xf]  ;;  %v3756_v52 = vrot.slane %v15699_v47, 6  ;;  %v3750_v8 = vsel %vm13465_vm5, %v10837_v35, %v3749_v33  ;;  %v3759_v33 = vrot.slane %v3477_v12, 6 }
 0x38b   :  { %8209 = vmatprep.mubr.bf16.mxu1 %v12344_v15  ;;  %11674 = vmatpush3.bf16.msra.mxu1 %v12366_v38  ;;  %v3474_v38 = vld [vmem:[#allocation2 + $0x128] sm:$0x3]  ;;  %v5192_v15 = vrot.slane %v4917_v5, 6  ;;  %v4610_v54 = vsel %vm13373_vm2, %v4608_v51, %v4609_v14  ;;  %v5196_v60 = vrot.slane %v15697_v31, 6  ;;  %v15707_v19 = vpop.f32.mrb[100].mxu1  ;;  %v4616_v5 = vrot.slane %v4341_v40, 5 }
 0x38c   :  { %11675 = vmatprep.subr.bf16.mxu1 %v12368_v21  ;;  %v3752_v58 = vrot.slane %v3474_v38, 6  ;;  %v7844_v18 = vpop.f32.mrb[101].mxu1  ;;  %v4615_v38 = vrot.slane %v4613_v30, 4  ;;  %v4343_v51 = vld [vmem:[#allocation2 + $0x148] sm:$0xf] }
 0x38d   :  { %v15716_v34 = vpop.f32.mrb[102].mxu1  ;;  %v4620_v14 = vrot.slane %v4343_v51, 5  ;;  %v5197_v35 = vsel %vm13465_vm5, %v10998_v2, %v5196_v60  ;;  %v4925_v51 = vld [vmem:[#allocation2 + $0x160] sm:$0xf] }
 0x38e   :  { %8483 = vmatmul.mubr.bf16.gmra.mrb[132].mxu0 %v10962_v45  ;;  %v4336_v45 = vld [vmem:[#allocation2 + $0x12c] sm:$0xe]  ;;  %v3753_v11 = vsel %vm13465_vm5, %v3751_v56, %v3752_v58 }
 0x38f   :  { %8490 = vmatprep.mubr.bf16.mxu0 %v11027_v59  ;;  %11676 = vmatpush3.bf16.msra.mxu1 %v12368_v21  ;;  %v5191_v59 = vrot.slane %v5189_v10, 4  ;;  %v10932_v21 = vrot.slane %v4336_v45, 9  ;;  %v10869_v55 = vcombine.low %v3750_v8, %v3753_v11  ;;  %v5198_v45 = vrot.slane %v5196_v60, 4  ;;  %v3480_v11 = vld [vmem:[#allocation2 + $0x140] sm:$0x3] }
 0x390   :  { %11677 = vmatprep.subr.bf16.mxu1 %v12369_v25  ;;  %v4342_v8 = vld [vmem:[#allocation2 + $0x144] sm:$0xe] }
 0x391   :  { %v5193_v42 = vsel %vm13465_vm5, %v5191_v59, %v5192_v15  ;;  %v4607_v36 = vsel %vm13373_vm2, %v10932_v21, %v4606_v57  ;;  %v7847_v57 = vpop.f32.mrb[103].mxu1  ;;  %v5199_v59 = vrot.slane %v4920_v50, 6  ;;  %v4921_v50 = vld [vmem:[#allocation2 + $0x150] sm:$0xc] }
 0x392   :  { %8210 = vmatmul.mubr.bf16.gmra.mrb[140].mxu1 %v10868_v0  ;;  %v10964_v20 = vcombine.low %v4607_v36, %v4610_v54  ;;  %v4922_v0 = vld [vmem:[#allocation2 + $0x154] sm:$0xf]  ;;  %v3763_v54 = vrot.slane %v3479_v9, 6  ;;  %v4344_v36 = vld [vmem:[#allocation2 + $0x14c] sm:$0x1] }
 0x393   :  { %8217 = vmatprep.mubr.bf16.mxu1 %v12345_v53  ;;  %11678 = vmatpush3.bf16.msra.mxu1 %v12369_v25  ;;  %v5190_v25 = vsel %vm13465_vm5, %v10997_v27, %v5189_v10  ;;  %v3758_v10 = vrot.slane %v3756_v52, 4  ;;  %v3475_v53 = vld [vmem:[#allocation2 + $0x12c] sm:$0xc]  ;;  %v5200_v31 = vsel %vm13465_vm5, %v5198_v45, %v5199_v59  ;;  %v5203_v44 = vrot.slane %v4922_v0, 6  ;;  %v15724_v15 = vpop.f32.mrb[104].mxu1 }
 0x394   :  { %11679 = vmatprep.subr.bf16.mxu1 %v12371_v23  ;;  %v10838_v47 = vrot.slane %v3475_v53, 10  ;;  %v7852_v27 = vpop.f32.mrb[105].mxu1  ;;  %v11030_v40 = vcombine.low %v5197_v35, %v5200_v31  ;;  %v3765_v60 = vrot.slane %v3763_v54, 4  ;;  %v15736_v45 = vld [vmem:[#allocation2 + $0x148] sm:$0xf]  ;;  %v10999_v53 = vrot.slane %v4921_v50, 10 }
 0x395   :  { %v3760_v58 = vsel %vm13465_vm5, %v3758_v10, %v3759_v33  ;;  %v15732_v18 = vpop.f32.mrb[106].mxu1  ;;  %v5205_v57 = vrot.slane %v5203_v44, 4  ;;  %v3766_v10 = vrot.slane %v3480_v11, 6  ;;  %v5210_v59 = vrot.slane %v4925_v51, 6  ;;  %v3483_v27 = vld [vmem:[#allocation2 + $0x14c] sm:$0x3] }
 0x396   :  { %8491 = vmatmul.mubr.bf16.gmra.mrb[136].mxu0 %v10963_v1  ;;  %v11029_v1 = vcombine.low %v5190_v25, %v5193_v42  ;;  %v12348_v25 = vld [vmem:[#allocation2 + $0x150] sm:$0xff]   ;;  %v7855_v12 = vpop.f32.mrb[107].mxu1  ;;  %v3770_v31 = vrot.slane %v15736_v45, 6  ;;  %v4347_v35 = vld [vmem:[#allocation2 + $0x158] sm:$0x1] }
 0x397   :  { %8498 = vmatprep.mubr.bf16.mxu0 %v11028_v28  ;;  %11680 = vmatpush3.bf16.msra.mxu1 %v12371_v23  ;;  %v4339_v28 = vld [vmem:[#allocation2 + $0x138] sm:$0xe]  ;;  %v4617_v23 = vsel %vm13373_vm2, %v4615_v38, %v4616_v5  ;;  %v10934_v5 = vrot.slane %v4342_v8, 9  ;;  %v4924_v8 = vld [vmem:[#allocation2 + $0x15c] sm:$0xc]  ;;  %v5212_v12 = vrot.slane %v5210_v59, 4 }
 0x398   :  { %v10933_v56 = vrot.slane %v4339_v28, 9  ;;  %v3478_v38 = vld [vmem:[#allocation2 + $0x138] sm:$0xc]  ;;  %v4623_v28 = vrot.slane %v4344_v36, 5  ;;  %v4630_v50 = vrot.slane %v4347_v35, 5 }
 0x399   :  { %v4621_v2 = vsel %vm13373_vm2, %v10934_v5, %v4620_v14 }
 0x39a   :  { %8218 = vmatmul.mubr.bf16.gmra.mrb[144].mxu1 %v10869_v55  ;;  %v4614_v21 = vsel %vm13373_vm2, %v10933_v56, %v4613_v30  ;;  %v4346_v55 = vld [vmem:[#allocation2 + $0x154] sm:$0xf]  ;;  %v10839_v56 = vrot.slane %v3478_v38, 10  ;;  %v15755_v38 = vld [vmem:[#allocation2 + $0x16c] sm:$0xf] }
 0x39b   :  { %8225 = vmatprep.mubr.bf16.mxu1 %v12347_v48  ;;  %v10965_v42 = vcombine.low %v4614_v21, %v4617_v23  ;;  %v4622_v48 = vrot.slane %v4620_v14, 4  ;;  %v4627_v0 = vrot.slane %v4346_v55, 5  ;;  %v15742_v9 = vpop.f32.mrb[108].mxu1  ;;  %v3767_v23 = vsel %vm13465_vm5, %v3765_v60, %v3766_v10  ;;  %v4926_v14 = vld [vmem:[#allocation2 + $0x164] sm:$0x3] }
 0x39c   :  { %v5204_v21 = vsel %vm13465_vm5, %v10999_v53, %v5203_v44  ;;  %v3764_v36 = vsel %vm13465_vm5, %v10839_v56, %v3763_v54  ;;  %v3772_v44 = vrot.slane %v3770_v31, 4  ;;  %v5213_v55 = vrot.slane %v4926_v14, 6  ;;  %v3485_v60 = vld [vmem:[#allocation2 + $0x154] sm:$0xf] }
 0x39d   :  { %v4624_v22 = vsel %vm13373_vm2, %v4622_v48, %v4623_v28  ;;  %v3773_v54 = vrot.slane %v3483_v27, 6  ;;  %v5217_v5 = vrot.slane %v15755_v38, 6  ;;  %v4348_v27 = vld [vmem:[#allocation2 + $0x15c] sm:$0xe]  ;;  %v4931_v38 = vld [vmem:[#allocation2 + $0x178] sm:$0xf] }
 0x39e   :  { %8499 = vmatmul.mubr.bf16.gmra.mrb[140].mxu0 %v10964_v20  ;;  %v3757_v20 = vsel %vm13465_vm5, %v10838_v47, %v3756_v52  ;;  %v7860_v47 = vpop.f32.mrb[109].mxu1  ;;  %v5214_v10 = vsel %vm13465_vm5, %v5212_v12, %v5213_v55  ;;  %v10936_v55 = vrot.slane %v4348_v27, 9  ;;  %v4353_v27 = vld [vmem:[#allocation2 + $0x170] sm:$0x1] }
 0x39f   :  { %8506 = vmatprep.mubr.bf16.mxu0 %v11029_v1  ;;  %v4923_v1 = vld [vmem:[#allocation2 + $0x158] sm:$0x3]  ;;  %v10870_v30 = vcombine.low %v3757_v20, %v3760_v58  ;;  %v10966_v58 = vcombine.low %v4621_v2, %v4624_v22  ;;  %v15751_v11 = vpop.f32.mrb[110].mxu1  ;;  %v12350_v20 = vld [vmem:[#allocation2 + $0x15c] sm:$0xff]  }
 0x3a0   :  { %v5206_v52 = vrot.slane %v4923_v1, 6  ;;  %v7863_v48 = vpop.f32.mrb[111].mxu1  ;;  %v10871_v1 = vcombine.low %v3764_v36, %v3767_v23  ;;  %v3777_v23 = vrot.slane %v3485_v60, 6 }
 0x3a1   :  { %v5219_v48 = vrot.slane %v5217_v5, 4 }
 0x3a2   :  { %8226 = vmatmul.mubr.bf16.gmra.mrb[148].mxu1 %v10870_v30  ;;  %v5207_v33 = vsel %vm13465_vm5, %v5205_v57, %v5206_v52  ;;  %v4349_v30 = vld [vmem:[#allocation2 + $0x160] sm:$0xf]  ;;  %v3481_v57 = vld [vmem:[#allocation2 + $0x144] sm:$0xc]  ;;  %v11000_v52 = vrot.slane %v4924_v8, 10  ;;  %v3779_v12 = vrot.slane %v3777_v23, 4 }
 0x3a3   :  { %8233 = vmatprep.mubr.bf16.mxu1 %v12348_v25  ;;  %v11031_v25 = vcombine.low %v5204_v21, %v5207_v33  ;;  %v4634_v51 = vrot.slane %v4349_v30, 5  ;;  %v10840_v53 = vrot.slane %v3481_v57, 10  ;;  %v3774_v33 = vsel %vm13465_vm5, %v3772_v44, %v3773_v54  ;;  %v3486_v21 = vld [vmem:[#allocation2 + $0x158] sm:$0x3]  ;;  %v4929_v8 = vld [vmem:[#allocation2 + $0x170] sm:$0x3] }
 0x3a4   :  { %v4927_v30 = vld [vmem:[#allocation2 + $0x168] sm:$0xc]  ;;  %v3484_v44 = vld [vmem:[#allocation2 + $0x150] sm:$0xc]  ;;  %v3488_v57 = vld [vmem:[#allocation2 + $0x160] sm:$0xf] }
 0x3a5   :  { %v3771_v36 = vsel %vm13465_vm5, %v10840_v53, %v3770_v31  ;;  %v3780_v31 = vrot.slane %v3486_v21, 6  ;;  %v10841_v53 = vrot.slane %v3484_v44, 10  ;;  %v3487_v44 = vld [vmem:[#allocation2 + $0x15c] sm:$0xc] }
 0x3a6   :  { %8507 = vmatmul.mubr.bf16.gmra.mrb[144].mxu0 %v10965_v42  ;;  %v4345_v42 = vld [vmem:[#allocation2 + $0x150] sm:$0xe] }
 0x3a7   :  { %8514 = vmatprep.mubr.bf16.mxu0 %v11030_v40  ;;  %v4629_v40 = vrot.slane %v4627_v0, 4  ;;  %v10935_v28 = vrot.slane %v4345_v42, 9  ;;  %v4350_v42 = vld [vmem:[#allocation2 + $0x164] sm:$0x1] }
 0x3a9   :  { %v4631_v45 = vsel %vm13373_vm2, %v4629_v40, %v4630_v50  ;;  %v4628_v56 = vsel %vm13373_vm2, %v10935_v28, %v4627_v0  ;;  %v4636_v40 = vrot.slane %v4634_v51, 4  ;;  %v10872_v0 = vcombine.low %v3771_v36, %v3774_v33 }
 0x3aa   :  { %8234 = vmatmul.mubr.bf16.gmra.mrb[152].mxu1 %v10871_v1  ;;  %v10967_v47 = vcombine.low %v4628_v56, %v4631_v45  ;;  %v4352_v1 = vld [vmem:[#allocation2 + $0x16c] sm:$0xf]  ;;  %v5220_v50 = vrot.slane %v4929_v8, 6  ;;  %v11001_v28 = vrot.slane %v4927_v30, 10  ;;  %v3781_v33 = vsel %vm13465_vm5, %v3779_v12, %v3780_v31  ;;  %v4355_v12 = vld [vmem:[#allocation2 + $0x178] sm:$0xf] }
 0x3ab   :  { %8241 = vmatprep.mubr.bf16.mxu1 %v12350_v20  ;;  %v15762_v22 = vpop.f32.mrb[112].mxu1  ;;  %v12351_v20 = vld [vmem:[#allocation2 + $0x168] sm:$0xff]   ;;  %v4641_v54 = vrot.slane %v4352_v1, 5  ;;  %v4635_v56 = vsel %vm13373_vm2, %v10936_v55, %v4634_v51  ;;  %v3778_v36 = vsel %vm13465_vm5, %v10841_v53, %v3777_v23  ;;  %v4930_v30 = vld [vmem:[#allocation2 + $0x174] sm:$0xc] }
 0x3ac   :  { %v7868_v2 = vpop.f32.mrb[113].mxu1  ;;  %v5221_v45 = vsel %vm13465_vm5, %v5219_v48, %v5220_v50  ;;  %v5218_v21 = vsel %vm13465_vm5, %v11001_v28, %v5217_v5  ;;  %v10873_v48 = vcombine.low %v3778_v36, %v3781_v33  ;;  %v4351_v51 = vld [vmem:[#allocation2 + $0x168] sm:$0xe]  ;;  %v4644_v5 = vrot.slane %v4353_v27, 5  ;;  %v3491_v23 = vld [vmem:[#allocation2 + $0x16c] sm:$0xf] }
 0x3ad   :  { %v15770_v35 = vpop.f32.mrb[114].mxu1  ;;  %v3784_v2 = vrot.slane %v3488_v57, 6  ;;  %v4643_v8 = vrot.slane %v4641_v54, 4  ;;  %v10937_v31 = vrot.slane %v4351_v51, 9  ;;  %v11002_v28 = vrot.slane %v4930_v30, 10 }
 0x3ae   :  { %8515 = vmatmul.mubr.bf16.gmra.mrb[148].mxu0 %v10966_v58  ;;  %v5211_v58 = vsel %vm13465_vm5, %v11000_v52, %v5210_v59  ;;  %v7871_v14 = vpop.f32.mrb[115].mxu1  ;;  %v4637_v59 = vrot.slane %v4350_v42, 5  ;;  %v5224_v52 = vrot.slane %v4931_v38, 6  ;;  %v4934_v38 = vld [vmem:[#allocation2 + $0x184] sm:$0xf] }
 0x3af   :  { %8522 = vmatprep.mubr.bf16.mxu0 %v11031_v25  ;;  %v11032_v25 = vcombine.low %v5211_v58, %v5214_v10  ;;  %v4932_v14 = vld [vmem:[#allocation2 + $0x17c] sm:$0x3]  ;;  %v4645_v55 = vsel %vm13373_vm2, %v4643_v8, %v4644_v5  ;;  %v5231_v53 = vrot.slane %v4934_v38, 6  ;;  %v4358_v30 = vld [vmem:[#allocation2 + $0x184] sm:$0xf] }
 0x3b0   :  { %v4638_v60 = vsel %vm13373_vm2, %v4636_v40, %v4637_v59  ;;  %v3489_v40 = vld [vmem:[#allocation2 + $0x164] sm:$0x3]  ;;  %v5226_v1 = vrot.slane %v5224_v52, 4  ;;  %v3786_v59 = vrot.slane %v3784_v2, 4  ;;  %v5227_v50 = vrot.slane %v4932_v14, 6 }
 0x3b1   :  { %v10968_v58 = vcombine.low %v4635_v56, %v4638_v60  ;;  %v3787_v57 = vrot.slane %v3489_v40, 6  ;;  %v4648_v60 = vrot.slane %v4355_v12, 5  ;;  %v10842_v56 = vrot.slane %v3487_v44, 10  ;;  %v12354_v14 = vld [vmem:[#allocation2 + $0x180] sm:$0xff]  }
 0x3b2   :  { %8242 = vmatmul.mubr.bf16.gmra.mrb[156].mxu1 %v10872_v0  ;;  %v5233_v5 = vrot.slane %v5231_v53, 4  ;;  %v4933_v44 = vld [vmem:[#allocation2 + $0x180] sm:$0xc] }
 0x3b3   :  { %8249 = vmatprep.mubr.bf16.mxu1 %v12351_v20  ;;  %v15778_v10 = vpop.f32.mrb[116].mxu1  ;;  %v12353_v20 = vld [vmem:[#allocation2 + $0x174] sm:$0xff]   ;;  %v3785_v8 = vsel %vm13465_vm5, %v10842_v56, %v3784_v2  ;;  %v4650_v51 = vrot.slane %v4648_v60, 4  ;;  %v11003_v56 = vrot.slane %v4933_v44, 10 }
 0x3b6   :  { %8523 = vmatmul.mubr.bf16.gmra.mrb[152].mxu0 %v10967_v47  ;;  %v7876_v47 = vpop.f32.mrb[117].mxu1 }
 0x3b7   :  { %8530 = vmatprep.mubr.bf16.mxu0 %v11032_v25  ;;  %v15786_v42 = vpop.f32.mrb[118].mxu1  ;;  %v11033_v25 = vcombine.low %v5218_v21, %v5221_v45  ;;  %v5228_v45 = vsel %vm13465_vm5, %v5226_v1, %v5227_v50  ;;  %v3788_v47 = vsel %vm13465_vm5, %v3786_v59, %v3787_v57  ;;  %v3791_v21 = vrot.slane %v3491_v23, 6  ;;  %v4935_v1 = vld [vmem:[#allocation2 + $0x188] sm:$0x3]  ;;  %v4937_v50 = vld [vmem:[#allocation2 + $0x190] sm:$0xf] }
 0x3b8   :  { %v7879_v0 = vpop.f32.mrb[119].mxu1  ;;  %v10874_v59 = vcombine.low %v3785_v8, %v3788_v47  ;;  %v3490_v23 = vld [vmem:[#allocation2 + $0x168] sm:$0xc]  ;;  %v5234_v2 = vrot.slane %v4935_v1, 6  ;;  %v4359_v1 = vld [vmem:[#allocation2 + $0x188] sm:$0x1] }
 0x3b9   :  { %v3793_v38 = vrot.slane %v3791_v21, 4 }
 0x3ba   :  { %8250 = vmatmul.mubr.bf16.gmra.mrb[160].mxu1 %v10873_v48  ;;  %v3492_v48 = vld [vmem:[#allocation2 + $0x170] sm:$0x3]  ;;  %v5235_v47 = vsel %vm13465_vm5, %v5233_v5, %v5234_v2 }
 0x3bb   :  { %8257 = vmatprep.mubr.bf16.mxu1 %v12353_v20  ;;  %v15794_v33 = vpop.f32.mrb[120].mxu1  ;;  %v5225_v20 = vsel %vm13465_vm5, %v11002_v28, %v5224_v52  ;;  %v3794_v57 = vrot.slane %v3492_v48, 6  ;;  %v5232_v48 = vsel %vm13465_vm5, %v11003_v56, %v5231_v53  ;;  %v4361_v2 = vld [vmem:[#allocation2 + $0x190] sm:$0xf] }
 0x3bc   :  { %v7884_v27 = vpop.f32.mrb[121].mxu1  ;;  %v11034_v0 = vcombine.low %v5225_v20, %v5228_v45  ;;  %v4655_v45 = vrot.slane %v4358_v30, 5  ;;  %v11035_v5 = vcombine.low %v5232_v48, %v5235_v47  ;;  %v4357_v30 = vld [vmem:[#allocation2 + $0x180] sm:$0xe] }
 0x3bd   :  { %v15802_v40 = vpop.f32.mrb[122].mxu1  ;;  %v3795_v20 = vsel %vm13465_vm5, %v3793_v38, %v3794_v57  ;;  %v10939_v47 = vrot.slane %v4357_v30, 9  ;;  %v3498_v30 = vld [vmem:[#allocation2 + $0x188] sm:$0x3] }
 0x3be   :  { %8531 = vmatmul.mubr.bf16.gmra.mrb[156].mxu0 %v10968_v58  ;;  %v4642_v58 = vsel %vm13373_vm2, %v10937_v31, %v4641_v54  ;;  %v7887_v12 = vpop.f32.mrb[123].mxu1  ;;  %v4354_v54 = vld [vmem:[#allocation2 + $0x174] sm:$0xe]  ;;  %v3494_v31 = vld [vmem:[#allocation2 + $0x178] sm:$0xf]  ;;  %v4657_v38 = vrot.slane %v4655_v45, 4 }
 0x3bf   :  { %8538 = vmatprep.mubr.bf16.mxu0 %v11033_v25  ;;  %v10969_v36 = vcombine.low %v4642_v58, %v4645_v55  ;;  %v4356_v25 = vld [vmem:[#allocation2 + $0x17c] sm:$0x1]  ;;  %v10938_v55 = vrot.slane %v4354_v54, 9  ;;  %v5238_v58 = vrot.slane %v4937_v50, 6  ;;  %v3798_v8 = vrot.slane %v3494_v31, 6  ;;  %v12356_v54 = vld [vmem:[#allocation2 + $0x18c] sm:$0xff]  }
 0x3c0   :  { %v4651_v52 = vrot.slane %v4356_v25, 5  ;;  %v3493_v50 = vld [vmem:[#allocation2 + $0x174] sm:$0xc]  ;;  %v4658_v31 = vrot.slane %v4359_v1, 5 }
 0x3c1   :  { %v4649_v25 = vsel %vm13373_vm2, %v10938_v55, %v4648_v60  ;;  %v5240_v57 = vrot.slane %v5238_v58, 4  ;;  %v3800_v53 = vrot.slane %v3798_v8, 4  ;;  %v3497_v55 = vld [vmem:[#allocation2 + $0x184] sm:$0xf]  ;;  %v10844_v48 = vrot.slane %v3493_v50, 10 }
 0x3c2   :  { %8258 = vmatmul.mubr.bf16.gmra.mrb[164].mxu1 %v10874_v59  ;;  %v4652_v28 = vsel %vm13373_vm2, %v4650_v51, %v4651_v52  ;;  %v3495_v51 = vld [vmem:[#allocation2 + $0x17c] sm:$0x3]  ;;  %v4938_v52 = vld [vmem:[#allocation2 + $0x194] sm:$0x3]  ;;  %v4939_v50 = vld [vmem:[#allocation2 + $0x198] sm:$0xc] }
 0x3c3   :  { %8265 = vmatprep.mubr.bf16.mxu1 %v12354_v14  ;;  %v5241_v56 = vrot.slane %v4938_v52, 6  ;;  %v4362_v52 = vld [vmem:[#allocation2 + $0x194] sm:$0x1] }
 0x3c5   :  { %v15810_v27 = vpop.f32.mrb[124].mxu1 }
 0x3c6   :  { %8539 = vmatmul.mubr.bf16.gmra.mrb[160].mxu0 %v10969_v36  ;;  %18856 = vst [vmem:[#allocation69_spill] sm:$0xff] %v15810_v27  ;;  %v10843_v36 = vrot.slane %v3490_v23, 10  ;;  %v7892_v14 = vpop.f32.mrb[125].mxu1  ;;  %v4936_v23 = vld [vmem:[#allocation2 + $0x18c] sm:$0xc] }
 0x3c7   :  { %8546 = vmatprep.mubr.bf16.mxu0 %v11034_v0  ;;  %v10970_v0 = vcombine.low %v4649_v25, %v4652_v28  ;;  %v15818_v12 = vpop.f32.mrb[126].mxu1  ;;  %v4940_v28 = vld [vmem:[#allocation2 + $0x19c] sm:$0xf]  ;;  %v4662_v25 = vrot.slane %v4361_v2, 5  ;;  %v5242_v14 = vsel %vm13465_vm5, %v5240_v57, %v5241_v56  ;;  %v4941_v57 = vld [vmem:[#allocation2 + $0x1a0] sm:$0x3] }
 0x3c8   :  { %18857 = vst [vmem:[#allocation63_spill] sm:$0xff] %v15818_v12  ;;  %v3792_v59 = vsel %vm13465_vm5, %v10843_v36, %v3791_v21  ;;  %v7895_v44 = vpop.f32.mrb[127].mxu1  ;;  %v3801_v21 = vrot.slane %v3495_v51, 6  ;;  %v4659_v36 = vsel %vm13373_vm2, %v4657_v38, %v4658_v31  ;;  %v4360_v38 = vld [vmem:[#allocation2 + $0x18c] sm:$0xe] }
 0x3c9   :  { %v10875_v60 = vcombine.low %v3792_v59, %v3795_v20  ;;  %v11004_v20 = vrot.slane %v4936_v23, 10  ;;  %v4656_v59 = vsel %vm13373_vm2, %v10939_v47, %v4655_v45  ;;  %v3799_v44 = vsel %vm13465_vm5, %v10844_v48, %v3798_v8  ;;  %v4364_v45 = vld [vmem:[#allocation2 + $0x19c] sm:$0xf]  ;;  %v4943_v56 = vld [vmem:[#allocation2 + $0x1a8] sm:$0xf] }
 0x3ca   :  { %v3802_v1 = vsel %vm13465_vm5, %v3800_v53, %v3801_v21  ;;  %v4664_v23 = vrot.slane %v4662_v25, 4  ;;  %v12357_v53 = vld [vmem:[#allocation2 + $0x198] sm:$0xff]   ;;  %v5248_v21 = vrot.slane %v4941_v57, 6  ;;  %v3500_v47 = vld [vmem:[#allocation2 + $0x190] sm:$0xf]  ;;  %v10940_v8 = vrot.slane %v4360_v38, 9 }
 0x3cb   :  { %8266 = vmatmul.mubr.bf16.gmra.mrb[168].mxu1 %v10875_v60  ;;  %v5239_v51 = vsel %vm13465_vm5, %v11004_v20, %v5238_v58  ;;  %v10876_v2 = vcombine.low %v3799_v44, %v3802_v1  ;;  %v3496_v58 = vld [vmem:[#allocation2 + $0x180] sm:$0xc]  ;;  %v11005_v48 = vrot.slane %v4939_v50, 10  ;;  %v3812_v44 = vrot.slane %v3500_v47, 6  ;;  %v3501_v38 = vld [vmem:[#allocation2 + $0x194] sm:$0x3] }
 0x3cc   :  { %8273 = vmatprep.mubr.bf16.mxu1 %v12356_v54  ;;  %v10971_v54 = vcombine.low %v4656_v59, %v4659_v36  ;;  %v11036_v60 = vcombine.low %v5239_v51, %v5242_v14  ;;  %v3808_v36 = vrot.slane %v3498_v30, 6  ;;  %v4669_v14 = vrot.slane %v4364_v45, 5  ;;  %v12360_v45 = vld [vmem:[#allocation2 + $0x1a4] sm:$0xff]   ;;  %v4946_v47 = vld [vmem:[#allocation2 + $0x1b4] sm:$0xf] }
 0x3cd   :  { %v5252_v59 = vrot.slane %v4943_v56, 6  ;;  %v4367_v56 = vld [vmem:[#allocation2 + $0x1a8] sm:$0xf] }
 0x3ce   :  { %8547 = vmatmul.mubr.bf16.gmra.mrb[164].mxu0 %v10970_v0  ;;  %v5245_v0 = vrot.slane %v4940_v28, 6  ;;  %v4665_v28 = vrot.slane %v4362_v52, 5  ;;  %v4663_v52 = vsel %vm13373_vm2, %v10940_v8, %v4662_v25  ;;  %v3814_v25 = vrot.slane %v3812_v44, 4  ;;  %v3503_v8 = vld [vmem:[#allocation2 + $0x19c] sm:$0xf] }
 0x3cf   :  { %8554 = vmatprep.mubr.bf16.mxu0 %v11035_v5  ;;  %v3805_v5 = vrot.slane %v3497_v55, 6 }
 0x3d0   :  { %v5247_v31 = vrot.slane %v5245_v0, 4  ;;  %v4666_v20 = vsel %vm13373_vm2, %v4664_v23, %v4665_v28  ;;  %v5246_v30 = vsel %vm13465_vm5, %v11005_v48, %v5245_v0  ;;  %v4365_v23 = vld [vmem:[#allocation2 + $0x1a0] sm:$0x1]  ;;  %v5254_v28 = vrot.slane %v5252_v59, 4  ;;  %v3499_v0 = vld [vmem:[#allocation2 + $0x18c] sm:$0xc] }
 0x3d1   :  { %v3807_v55 = vrot.slane %v3805_v5, 4 }
 0x3d2   :  { %v5249_v1 = vsel %vm13465_vm5, %v5247_v31, %v5248_v21  ;;  %v4942_v21 = vld [vmem:[#allocation2 + $0x1a4] sm:$0xc] }
 0x3d3   :  { %8274 = vmatmul.mubr.bf16.gmra.mrb[172].mxu1 %v10876_v2  ;;  %v3809_v51 = vsel %vm13465_vm5, %v3807_v55, %v3808_v36  ;;  %v11037_v57 = vcombine.low %v5246_v30, %v5249_v1  ;;  %v4671_v2 = vrot.slane %v4669_v14, 4  ;;  %v4363_v55 = vld [vmem:[#allocation2 + $0x198] sm:$0xe]  ;;  %v4676_v1 = vrot.slane %v4367_v56, 5 }
 0x3d4   :  { %8281 = vmatprep.mubr.bf16.mxu1 %v12357_v53  ;;  %v4944_v53 = vld [vmem:[#allocation2 + $0x1ac] sm:$0x3] }
 0x3d5   :  { %v5255_v36 = vrot.slane %v4944_v53, 6  ;;  %v4368_v53 = vld [vmem:[#allocation2 + $0x1ac] sm:$0x1] }
 0x3d6   :  { %8555 = vmatmul.mubr.bf16.gmra.mrb[168].mxu0 %v10971_v54  ;;  %v10845_v54 = vrot.slane %v3496_v58, 10  ;;  %v4672_v58 = vrot.slane %v4365_v23, 5 }
 0x3d7   :  { %8562 = vmatprep.mubr.bf16.mxu0 %v11036_v60  ;;  %v10972_v60 = vcombine.low %v4663_v52, %v4666_v20  ;;  %v10941_v20 = vrot.slane %v4363_v55, 9  ;;  %v5259_v52 = vrot.slane %v4946_v47, 6  ;;  %v4678_v55 = vrot.slane %v4676_v1, 4 }
 0x3d8   :  { %v3806_v50 = vsel %vm13465_vm5, %v10845_v54, %v3805_v5  ;;  %v3815_v5 = vrot.slane %v3501_v38, 6  ;;  %v4673_v48 = vsel %vm13373_vm2, %v4671_v2, %v4672_v58  ;;  %v11006_v54 = vrot.slane %v4942_v21, 10  ;;  %v12363_v58 = vld [vmem:[#allocation2 + $0x1b0] sm:$0xff]   ;;  %v4366_v21 = vld [vmem:[#allocation2 + $0x1a4] sm:$0xe] }
 0x3d9   :  { %v10877_v31 = vcombine.low %v3806_v50, %v3809_v51  ;;  %v5256_v51 = vsel %vm13465_vm5, %v5254_v28, %v5255_v36  ;;  %v4670_v23 = vsel %vm13373_vm2, %v10941_v20, %v4669_v14  ;;  %v3819_v50 = vrot.slane %v3503_v8, 6  ;;  %v4947_v28 = vld [vmem:[#allocation2 + $0x1b8] sm:$0x3]  ;;  %v15858_v14 = vld [vmem:[#allocation2 + $0x1b4] sm:$0xf] }
 0x3da   :  { %v3816_v30 = vsel %vm13465_vm5, %v3814_v25, %v3815_v5  ;;  %v5253_v38 = vsel %vm13465_vm5, %v11006_v54, %v5252_v59  ;;  %v3502_v25 = vld [vmem:[#allocation2 + $0x198] sm:$0xc]  ;;  %v5261_v47 = vrot.slane %v5259_v52, 4  ;;  %v4679_v36 = vrot.slane %v4368_v53, 5  ;;  %v4945_v59 = vld [vmem:[#allocation2 + $0x1b0] sm:$0xc] }
 0x3db   :  { %8282 = vmatmul.mubr.bf16.gmra.mrb[176].mxu1 %v10877_v31  ;;  %v11038_v31 = vcombine.low %v5253_v38, %v5256_v51  ;;  %v15860_v8 = vld [vmem:[#allocation2 + $0x1c0] sm:$0xf]  ;;  %v5262_v5 = vrot.slane %v4947_v28, 6  ;;  %v15862_v20 = vld [vmem:[#allocation2 + $0x1a8] sm:$0xf]  ;;  %v10942_v54 = vrot.slane %v4366_v21, 9 }
 0x3dc   :  { %8289 = vmatprep.mubr.bf16.mxu1 %v12360_v45  ;;  %v3504_v45 = vld [vmem:[#allocation2 + $0x1a0] sm:$0x3]  ;;  %v4680_v51 = vsel %vm13373_vm2, %v4678_v55, %v4679_v36  ;;  %v10847_v38 = vrot.slane %v3502_v25, 10  ;;  %v6298_v28 = vld [vmem:[#allocation2 + $0x38] sm:$0x3] }
 0x3dd   :  { %v4371_v55 = vld [vmem:[#allocation2 + $0x1b8] sm:$0x1]  ;;  %v4950_v25 = vld [vmem:[#allocation2 + $0x1c4] sm:$0x3] }
 0x3de   :  { %8563 = vmatmul.mubr.bf16.gmra.mrb[172].mxu0 %v10972_v60  ;;  %v10846_v60 = vrot.slane %v3499_v0, 10  ;;  %v3821_v0 = vrot.slane %v3819_v50, 4 }
 0x3df   :  { %8570 = vmatprep.mubr.bf16.mxu0 %v11037_v57  ;;  %v10973_v57 = vcombine.low %v4670_v23, %v4673_v48  ;;  %v15864_v48 = vld [vmem:[#allocation2 + $0x34] sm:$0xf]  ;;  %v5263_v23 = vsel %vm13465_vm5, %v5261_v47, %v5262_v5  ;;  %v4369_v47 = vld [vmem:[#allocation2 + $0x1b0] sm:$0xe] }
 0x3e0   :  { %v3813_v2 = vsel %vm13465_vm5, %v10846_v60, %v3812_v44  ;;  %v3822_v44 = vrot.slane %v3504_v45, 6  ;;  %v4683_v60 = vrot.slane %v15858_v14, 5  ;;  %v3826_v45 = vrot.slane %v15862_v20, 6  ;;  %v4948_v14 = vld [vmem:[#allocation2 + $0x1bc] sm:$0xc] }
 0x3e1   :  { %v10878_v56 = vcombine.low %v3813_v2, %v3816_v30  ;;  %v11007_v30 = vrot.slane %v4945_v59, 10  ;;  %v4677_v2 = vsel %vm13373_vm2, %v10942_v54, %v4676_v1  ;;  %v6490_v21 = vrot.slane %v15864_v48, 6  ;;  %v6296_v5 = vld [vmem:[#allocation2 + $0x30] sm:$0xc]  ;;  %v15882_v54 = vld [vmem:[#allocation2 + $0x40] sm:$0xf] }
 0x3e2   :  { %v3823_v53 = vsel %vm13465_vm5, %v3821_v0, %v3822_v44  ;;  %v3820_v0 = vsel %vm13465_vm5, %v10847_v38, %v3819_v50  ;;  %v4685_v59 = vrot.slane %v4683_v60, 4  ;;  %v3505_v44 = vld [vmem:[#allocation2 + $0x1a4] sm:$0xc]  ;;  %v4686_v48 = vrot.slane %v4371_v55, 5  ;;  %v6301_v55 = vld [vmem:[#allocation2 + $0x44] sm:$0x3] }
 0x3e3   :  { %8290 = vmatmul.mubr.bf16.gmra.mrb[180].mxu1 %v10878_v56  ;;  %v10974_v56 = vcombine.low %v4677_v2, %v4680_v51  ;;  %v10879_v1 = vcombine.low %v3820_v0, %v3823_v53  ;;  %v15884_v51 = vld [vmem:[#allocation2 + $0x1c0] sm:$0xf]  ;;  %v6492_v50 = vrot.slane %v6490_v21, 4  ;;  %v5269_v38 = vrot.slane %v4950_v25, 6  ;;  %v6303_v0 = vld [vmem:[#allocation2 + $0x4c] sm:$0xf] }
 0x3e4   :  { %8297 = vmatprep.mubr.bf16.mxu1 %v12363_v58  ;;  %v5260_v58 = vsel %vm13465_vm5, %v11007_v30, %v5259_v52  ;;  %v3828_v52 = vrot.slane %v3826_v45, 4  ;;  %v15886_v30 = vld [vmem:[#allocation2 + $0x34] sm:$0xf]  ;;  %v10943_v53 = vrot.slane %v4369_v47, 9  ;;  %v4690_v12 = vrot.slane %v15884_v51, 5 }
 0x3e5   :  { %v11039_v36 = vcombine.low %v5260_v58, %v5263_v23  ;;  %v6493_v23 = vrot.slane %v6298_v28, 6  ;;  %v11008_v58 = vrot.slane %v4948_v14, 10  ;;  %v6497_v27 = vrot.slane %v15882_v54, 6  ;;  %v6304_v14 = vld [vmem:[#allocation2 + $0x50] sm:$0x3] }
 0x3e6   :  { %8571 = vmatmul.mubr.bf16.gmra.mrb[176].mxu0 %v10973_v57  ;;  %v5266_v57 = vrot.slane %v15860_v8, 6  ;;  %v12367_v8 = vld [vmem:[#allocation2 + $0x1bc] sm:$0xff]   ;;  %v11137_v47 = vrot.slane %v6296_v5, 10  ;;  %v4684_v25 = vsel %vm13373_vm2, %v10943_v53, %v4683_v60  ;;  %v6504_v54 = vrot.slane %v6303_v0, 6  ;;  %v5722_v5 = vld [vmem:[#allocation2 + $0x38] sm:$0x1] }
 0x3e7   :  { %8578 = vmatprep.mubr.bf16.mxu0 %v11038_v31  ;;  %v3507_v31 = vld [vmem:[#allocation2 + $0x1ac] sm:$0x3]  ;;  %v6499_v53 = vrot.slane %v6497_v27, 4  ;;  %v6306_v0 = vld [vmem:[#allocation2 + $0x58] sm:$0xf] }
 0x3e8   :  { %v5268_v20 = vrot.slane %v5266_v57, 4  ;;  %v3829_v2 = vrot.slane %v3507_v31, 6  ;;  %v5914_v31 = vrot.slane %v15886_v30, 5  ;;  %v6491_v60 = vsel %vm13465_vm5, %v11137_v47, %v6490_v21  ;;  %v6309_v47 = vld [vmem:[#allocation2 + $0x64] sm:$0xf] }
 0x3ea   :  { %v3830_v28 = vsel %vm13465_vm5, %v3828_v52, %v3829_v2  ;;  %v4692_v52 = vrot.slane %v4690_v12, 4 }
 0x3eb   :  { %8298 = vmatmul.mubr.bf16.gmra.mrb[184].mxu1 %v10879_v1  ;;  %v10848_v1 = vrot.slane %v3505_v44, 10 }
 0x3ec   :  { %8305 = vmatprep.mubr.bf16.mxu1 %v12367_v8  ;;  %v6494_v8 = vsel %vm13465_vm5, %v6492_v50, %v6493_v23  ;;  %v5720_v50 = vld [vmem:[#allocation2 + $0x30] sm:$0xe]  ;;  %v5916_v23 = vrot.slane %v5914_v31, 4 }
 0x3ed   :  { %v3827_v44 = vsel %vm13465_vm5, %v10848_v1, %v3826_v45  ;;  %v6302_v45 = vld [vmem:[#allocation2 + $0x48] sm:$0xc]  ;;  %v6507_v1 = vrot.slane %v6304_v14, 6 }
 0x3ee   :  { %8579 = vmatmul.mubr.bf16.gmra.mrb[180].mxu0 %v10974_v56  ;;  %v4687_v56 = vsel %vm13373_vm2, %v4685_v59, %v4686_v48  ;;  %v4372_v59 = vld [vmem:[#allocation2 + $0x1bc] sm:$0xe]  ;;  %v4374_v48 = vld [vmem:[#allocation2 + $0x1c4] sm:$0x1]  ;;  %v10880_v2 = vcombine.low %v3827_v44, %v3830_v28  ;;  %v5917_v28 = vrot.slane %v5722_v5, 5  ;;  %v6511_v44 = vrot.slane %v6306_v0, 6 }
 0x3ef   :  { %8586 = vmatprep.mubr.bf16.mxu0 %v11039_v36  ;;  %v5270_v36 = vsel %vm13465_vm5, %v5268_v20, %v5269_v38  ;;  %v10975_v51 = vcombine.low %v4684_v25, %v4687_v56  ;;  %v5267_v20 = vsel %vm13465_vm5, %v11008_v58, %v5266_v57  ;;  %v6299_v38 = vld [vmem:[#allocation2 + $0x3c] sm:$0xc]  ;;  %v11169_v56 = vcombine.low %v6491_v60, %v6494_v8  ;;  %v5724_v25 = vld [vmem:[#allocation2 + $0x40] sm:$0xf]  ;;  %v6310_v0 = vld [vmem:[#allocation2 + $0x68] sm:$0x3] }
 0x3f0   :  { %v11040_v30 = vcombine.low %v5267_v20, %v5270_v36  ;;  %v6500_v57 = vrot.slane %v6301_v55, 6  ;;  %v4693_v58 = vrot.slane %v4374_v48, 5  ;;  %v6506_v36 = vrot.slane %v6504_v54, 4 }
 0x3f1   :  { %v10944_v20 = vrot.slane %v4372_v59, 9  ;;  %v5918_v8 = vsel %vm13373_vm2, %v5916_v23, %v5917_v28  ;;  %v5921_v55 = vrot.slane %v5724_v25, 5  ;;  %v11138_v48 = vrot.slane %v6299_v38, 10  ;;  %v5725_v38 = vld [vmem:[#allocation2 + $0x44] sm:$0x1] }
 0x3f2   :  { %v4694_v21 = vsel %vm13373_vm2, %v4692_v52, %v4693_v58  ;;  %v6508_v59 = vsel %vm13465_vm5, %v6506_v36, %v6507_v1  ;;  %v6518_v60 = vrot.slane %v6309_v47, 6  ;;  %v6513_v58 = vrot.slane %v6511_v44, 4  ;;  %v5723_v36 = vld [vmem:[#allocation2 + $0x3c] sm:$0xe]  ;;  %v5727_v1 = vld [vmem:[#allocation2 + $0x4c] sm:$0xf] }
 0x3f3   :  { %8306 = vmatmul.mubr.bf16.gmra.mrb[188].mxu1 %v10880_v2  ;;  %v11139_v2 = vrot.slane %v6302_v45, 10  ;;  %v4691_v14 = vsel %vm13373_vm2, %v10944_v20, %v4690_v12  ;;  %v6307_v12 = vld [vmem:[#allocation2 + $0x5c] sm:$0x3]  ;;  %v5923_v25 = vrot.slane %v5921_v55, 4  ;;  %v6308_v20 = vld [vmem:[#allocation2 + $0x60] sm:$0xc] }
 0x3f4   :  { %11681 = vmatprep.mubr.bf16.mxu1 %v11169_v56  ;;  %v10976_v5 = vcombine.low %v4691_v14, %v4694_v21  ;;  %v5924_v28 = vrot.slane %v5725_v38, 5  ;;  %v6514_v21 = vrot.slane %v6307_v12, 6  ;;  %v6521_v47 = vrot.slane %v6310_v0, 6  ;;  %v5728_v12 = vld [vmem:[#allocation2 + $0x50] sm:$0x1] }
 0x3f6   :  { %8587 = vmatmul.mubr.bf16.gmra.mrb[184].mxu0 %v10975_v51  ;;  %v11073_v51 = vrot.slane %v5720_v50, 9  ;;  %v6498_v50 = vsel %vm13465_vm5, %v11138_v48, %v6497_v27  ;;  %v6520_v27 = vrot.slane %v6518_v60, 4  ;;  %v6515_v14 = vsel %vm13465_vm5, %v6513_v58, %v6514_v21  ;;  %v6311_v58 = vld [vmem:[#allocation2 + $0x6c] sm:$0xc]  ;;  %v6314_v21 = vld [vmem:[#allocation2 + $0x78] sm:$0xc] }
 0x3f7   :  { %8594 = vmatprep.mubr.bf16.mxu0 %v11040_v30  ;;  %v6501_v30 = vsel %vm13465_vm5, %v6499_v53, %v6500_v57  ;;  %v6505_v53 = vsel %vm13465_vm5, %v11139_v2, %v6504_v54  ;;  %v6305_v57 = vld [vmem:[#allocation2 + $0x54] sm:$0xc]  ;;  %v11074_v54 = vrot.slane %v5723_v36, 9 }
 0x3f8   :  { %v5915_v52 = vsel %vm13373_vm2, %v11073_v51, %v5914_v31  ;;  %v11170_v56 = vcombine.low %v6498_v50, %v6501_v30  ;;  %v11171_v45 = vcombine.low %v6505_v53, %v6508_v59  ;;  %v6312_v31 = vld [vmem:[#allocation2 + $0x70] sm:$0xf]  ;;  %v6315_v51 = vld [vmem:[#allocation2 + $0x7c] sm:$0xf]  ;;  %v5928_v30 = vrot.slane %v5727_v1, 5 }
 0x3f9   :  { %v11105_v23 = vcombine.low %v5915_v52, %v5918_v8  ;;  %v5925_v8 = vsel %vm13373_vm2, %v5923_v25, %v5924_v28  ;;  %v6525_v48 = vrot.slane %v6312_v31, 6  ;;  %v11140_v2 = vrot.slane %v6305_v57, 10  ;;  %v12372_v52 = vld [vmem:[#allocation2 + $0x30] sm:$0xff]   ;;  %v5726_v1 = vld [vmem:[#allocation2 + $0x48] sm:$0xe] }
 0x3fa   :  { %v11141_v59 = vrot.slane %v6308_v20, 10  ;;  %v5922_v50 = vsel %vm13373_vm2, %v11074_v54, %v5921_v55  ;;  %v6313_v53 = vld [vmem:[#allocation2 + $0x74] sm:$0x3]  ;;  %v5930_v36 = vrot.slane %v5928_v30, 4  ;;  %v6318_v55 = vld [vmem:[#allocation2 + $0x88] sm:$0xf] }
 0x3fb   :  { %11682 = vmatmul.mubr.bf16.vlgmr.msra.gmra.mrb[192].mxu1 %v11170_v56  ;;  %v6512_v38 = vsel %vm13465_vm5, %v11140_v2, %v6511_v44  ;;  %v11106_v56 = vcombine.low %v5922_v50, %v5925_v8  ;;  %v6527_v25 = vrot.slane %v6525_v48, 4  ;;  %v5730_v20 = vld [vmem:[#allocation2 + $0x58] sm:$0xf]  ;;  %v5931_v44 = vrot.slane %v5728_v12, 5  ;;  %v12373_v50 = vld [vmem:[#allocation2 + $0x3c] sm:$0xff]  }
 0x3fc   :  { %11685 = vmatprep.mubr.bf16.mxu1 %v11171_v45  ;;  %v11172_v0 = vcombine.low %v6512_v38, %v6515_v14  ;;  %v6519_v57 = vsel %vm13465_vm5, %v11141_v59, %v6518_v60  ;;  %v6316_v45 = vld [vmem:[#allocation2 + $0x80] sm:$0x3]  ;;  %v6528_v28 = vrot.slane %v6313_v53, 6  ;;  %v11075_v54 = vrot.slane %v5726_v1, 9 }
 0x3fd   :  { %v5932_v60 = vsel %vm13373_vm2, %v5930_v36, %v5931_v44  ;;  %v6539_v8 = vrot.slane %v6318_v55, 6  ;;  %v5935_v2 = vrot.slane %v5730_v20, 5  ;;  %v11142_v14 = vrot.slane %v6311_v58, 10  ;;  %v6322_v36 = vld [vmem:[#allocation2 + $0x98] sm:$0x3] }
 0x3fe   :  { %8595 = vmatmul.mubr.bf16.gmra.mrb[188].mxu0 %v10976_v5  ;;  %v6522_v5 = vsel %vm13465_vm5, %v6520_v27, %v6521_v47  ;;  %v6535_v47 = vrot.slane %v6316_v45, 6  ;;  %v6529_v59 = vsel %vm13465_vm5, %v6527_v25, %v6528_v28  ;;  %v5929_v38 = vsel %vm13373_vm2, %v11075_v54, %v5928_v30  ;;  %v6324_v20 = vld [vmem:[#allocation2 + $0xa0] sm:$0xf]  ;;  %v5733_v30 = vld [vmem:[#allocation2 + $0x64] sm:$0xf] }
 0x3ff   :  { %8635 = vmatprep.mubr.bf16.mxu0 %v11105_v23  ;;  %v6532_v23 = vrot.slane %v6315_v51, 6  ;;  %v11173_v31 = vcombine.low %v6519_v57, %v6522_v5  ;;  %v6321_v51 = vld [vmem:[#allocation2 + $0x94] sm:$0xf]  ;;  %v11143_v5 = vrot.slane %v6314_v21, 10  ;;  %v6526_v12 = vsel %vm13465_vm5, %v11142_v14, %v6525_v48  ;;  %v5731_v57 = vld [vmem:[#allocation2 + $0x5c] sm:$0x1] }
 0x400   :  { %v6546_v53 = vrot.slane %v6321_v51, 6  ;;  %v11174_v45 = vcombine.low %v6526_v12, %v6529_v59  ;;  %v6541_v25 = vrot.slane %v6539_v8, 4  ;;  %v5937_v1 = vrot.slane %v5935_v2, 4  ;;  %v6320_v21 = vld [vmem:[#allocation2 + $0x90] sm:$0xc] }
 0x401   :  { %v6534_v27 = vrot.slane %v6532_v23, 4  ;;  %v6533_v58 = vsel %vm13465_vm5, %v11143_v5, %v6532_v23  ;;  %v5938_v28 = vrot.slane %v5731_v57, 5  ;;  %v6327_v51 = vld [vmem:[#allocation2 + $0xac] sm:$0xf]  ;;  %v5942_v14 = vrot.slane %v5733_v30, 5 }
 0x402   :  { %v6548_v44 = vrot.slane %v6546_v53, 4  ;;  %v6560_v12 = vrot.slane %v6327_v51, 6  ;;  %v6328_v30 = vld [vmem:[#allocation2 + $0xb0] sm:$0x3]  ;;  %v6333_v51 = vld [vmem:[#allocation2 + $0xc4] sm:$0xf] }
 0x403   :  { %11686 = vmatmul.mubr.bf16.gmra.mrb[196].mxu1 %v11172_v0  ;;  %v11107_v0 = vcombine.low %v5929_v38, %v5932_v60  ;;  %v5939_v23 = vsel %vm13373_vm2, %v5937_v1, %v5938_v28  ;;  %v6553_v60 = vrot.slane %v6324_v20, 6  ;;  %v5944_v1 = vrot.slane %v5942_v14, 4 }
 0x404   :  { %11689 = vmatprep.mubr.bf16.mxu1 %v11173_v31  ;;  %v5729_v31 = vld [vmem:[#allocation2 + $0x54] sm:$0xe]  ;;  %v6562_v28 = vrot.slane %v6560_v12, 4 }
 0x405   :  { %v11076_v54 = vrot.slane %v5729_v31, 9  ;;  %v6555_v31 = vrot.slane %v6553_v60, 4 }
 0x406   :  { %8636 = vmatmul.mubr.bf16.vlgmr.msra.gmra.mrb[64].mxu0 %v12372_v52  ;;  %v6536_v52 = vsel %vm13465_vm5, %v6534_v27, %v6535_v47  ;;  %v6317_v27 = vld [vmem:[#allocation2 + $0x84] sm:$0xc]  ;;  %v6549_v47 = vrot.slane %v6322_v36, 6 }
 0x407   :  { %8643 = vmatprep.mubr.bf16.mxu0 %v11106_v56  ;;  %v6319_v56 = vld [vmem:[#allocation2 + $0x8c] sm:$0x3]  ;;  %v11175_v55 = vcombine.low %v6533_v58, %v6536_v52  ;;  %v11144_v59 = vrot.slane %v6317_v27, 10  ;;  %v5732_v27 = vld [vmem:[#allocation2 + $0x60] sm:$0xe] }
 0x408   :  { %v6542_v48 = vrot.slane %v6319_v56, 6  ;;  %v12374_v52 = vld [vmem:[#allocation2 + $0x48] sm:$0xff]   ;;  %v6550_v38 = vsel %vm13465_vm5, %v6548_v44, %v6549_v47  ;;  %v5936_v56 = vsel %vm13373_vm2, %v11076_v54, %v5935_v2  ;;  %v5736_v2 = vld [vmem:[#allocation2 + $0x70] sm:$0xf]  ;;  %v6323_v44 = vld [vmem:[#allocation2 + $0x9c] sm:$0xc] }
 0x409   :  { %v11108_v57 = vcombine.low %v5936_v56, %v5939_v23  ;;  %v11077_v54 = vrot.slane %v5732_v27, 9  ;;  %v6334_v27 = vld [vmem:[#allocation2 + $0xc8] sm:$0x3] }
 0x40a   :  { %v6543_v5 = vsel %vm13465_vm5, %v6541_v25, %v6542_v48  ;;  %v6325_v25 = vld [vmem:[#allocation2 + $0xa4] sm:$0x3] }
 0x40b   :  { %11690 = vmatmul.mubr.bf16.gmra.mrb[200].mxu1 %v11174_v45  ;;  %v5734_v45 = vld [vmem:[#allocation2 + $0x68] sm:$0x1]  ;;  %v6556_v48 = vrot.slane %v6325_v25, 6 }
 0x40c   :  { %11693 = vmatprep.mubr.bf16.mxu1 %v11175_v55  ;;  %v6330_v55 = vld [vmem:[#allocation2 + $0xb8] sm:$0xf] }
 0x40d   :  { %v6567_v47 = vrot.slane %v6330_v55, 6 }
 0x40e   :  { %8644 = vmatmul.mubr.bf16.gmra.mrb[68].mxu0 %v12373_v50  ;;  %v11145_v50 = vrot.slane %v6320_v21, 10  ;;  %v6326_v21 = vld [vmem:[#allocation2 + $0xa8] sm:$0xc] }
 0x40f   :  { %8651 = vmatprep.mubr.bf16.mxu0 %v11107_v0  ;;  %v6540_v0 = vsel %vm13465_vm5, %v11144_v59, %v6539_v8  ;;  %v5945_v8 = vrot.slane %v5734_v45, 5  ;;  %v5949_v59 = vrot.slane %v5736_v2, 5  ;;  %v6574_v45 = vrot.slane %v6333_v51, 6  ;;  %v6336_v51 = vld [vmem:[#allocation2 + $0xd0] sm:$0xf] }
 0x410   :  { %v11176_v58 = vcombine.low %v6540_v0, %v6543_v5  ;;  %v6547_v36 = vsel %vm13465_vm5, %v11145_v50, %v6546_v53  ;;  %v6563_v53 = vrot.slane %v6328_v30, 6  ;;  %v11146_v5 = vrot.slane %v6323_v44, 10  ;;  %v6331_v50 = vld [vmem:[#allocation2 + $0xbc] sm:$0x3]  ;;  %v12375_v0 = vld [vmem:[#allocation2 + $0x54] sm:$0xff]  }
 0x411   :  { %v11177_v20 = vcombine.low %v6547_v36, %v6550_v38  ;;  %v5946_v23 = vsel %vm13373_vm2, %v5944_v1, %v5945_v8  ;;  %v11147_v38 = vrot.slane %v6326_v21, 10  ;;  %v6569_v25 = vrot.slane %v6567_v47, 4  ;;  %v5737_v1 = vld [vmem:[#allocation2 + $0x74] sm:$0x1]  ;;  %v6339_v8 = vld [vmem:[#allocation2 + $0xdc] sm:$0xf] }
 0x412   :  { %v6564_v56 = vsel %vm13465_vm5, %v6562_v28, %v6563_v53  ;;  %v6570_v30 = vrot.slane %v6331_v50, 6  ;;  %v5951_v2 = vrot.slane %v5949_v59, 4  ;;  %v5735_v28 = vld [vmem:[#allocation2 + $0x6c] sm:$0xe]  ;;  %v5952_v21 = vrot.slane %v5737_v1, 5  ;;  %v12376_v1 = vld [vmem:[#allocation2 + $0x60] sm:$0xff]  }
 0x413   :  { %11694 = vmatmul.mubr.bf16.gmra.mrb[204].mxu1 %v11176_v58  ;;  %v6554_v58 = vsel %vm13465_vm5, %v11146_v5, %v6553_v60  ;;  %v6576_v60 = vrot.slane %v6574_v45, 4  ;;  %v6588_v50 = vrot.slane %v6339_v8, 6 }
 0x414   :  { %11697 = vmatprep.mubr.bf16.mxu1 %v11177_v20  ;;  %v6329_v20 = vld [vmem:[#allocation2 + $0xb4] sm:$0xc]  ;;  %v5953_v5 = vsel %vm13373_vm2, %v5951_v2, %v5952_v21  ;;  %v5738_v2 = vld [vmem:[#allocation2 + $0x78] sm:$0xe] }
 0x415   :  { %v11148_v53 = vrot.slane %v6329_v20, 10 }
 0x416   :  { %8652 = vmatmul.mubr.bf16.gmra.mrb[72].mxu0 %v12374_v52  ;;  %v6557_v52 = vsel %vm13465_vm5, %v6555_v31, %v6556_v48  ;;  %v6561_v31 = vsel %vm13465_vm5, %v11147_v38, %v6560_v12  ;;  %v6332_v48 = vld [vmem:[#allocation2 + $0xc0] sm:$0xc]  ;;  %v6571_v12 = vsel %vm13465_vm5, %v6569_v25, %v6570_v30 }
 0x417   :  { %8659 = vmatprep.mubr.bf16.mxu0 %v11108_v57  ;;  %v5943_v57 = vsel %vm13373_vm2, %v11077_v54, %v5942_v14  ;;  %v11178_v55 = vcombine.low %v6554_v58, %v6557_v52  ;;  %v11179_v44 = vcombine.low %v6561_v31, %v6564_v56  ;;  %v5739_v14 = vld [vmem:[#allocation2 + $0x7c] sm:$0xf]  ;;  %v6577_v54 = vrot.slane %v6334_v27, 6  ;;  %v6337_v27 = vld [vmem:[#allocation2 + $0xd4] sm:$0x3] }
 0x418   :  { %v11109_v36 = vcombine.low %v5943_v57, %v5946_v23  ;;  %v11078_v23 = vrot.slane %v5735_v28, 9  ;;  %v5956_v52 = vrot.slane %v5739_v14, 5  ;;  %v11149_v38 = vrot.slane %v6332_v48, 10  ;;  %v6340_v57 = vld [vmem:[#allocation2 + $0xe0] sm:$0x3] }
 0x419   :  { %v6581_v56 = vrot.slane %v6336_v51, 6  ;;  %v6568_v58 = vsel %vm13465_vm5, %v11148_v53, %v6567_v47  ;;  %v6590_v47 = vrot.slane %v6588_v50, 4  ;;  %v6591_v8 = vrot.slane %v6340_v57, 6  ;;  %v6342_v48 = vld [vmem:[#allocation2 + $0xe8] sm:$0xf] }
 0x41a   :  { %v5950_v25 = vsel %vm13373_vm2, %v11078_v23, %v5949_v59  ;;  %v11180_v31 = vcombine.low %v6568_v58, %v6571_v12  ;;  %v6575_v20 = vsel %vm13465_vm5, %v11149_v38, %v6574_v45  ;;  %v5958_v28 = vrot.slane %v5956_v52, 4  ;;  %v5742_v51 = vld [vmem:[#allocation2 + $0x88] sm:$0xf]  ;;  %v6343_v58 = vld [vmem:[#allocation2 + $0xec] sm:$0x3] }
 0x41b   :  { %11698 = vmatmul.mubr.bf16.gmra.mrb[208].mxu1 %v11178_v55  ;;  %v6335_v55 = vld [vmem:[#allocation2 + $0xcc] sm:$0xc]  ;;  %v11110_v30 = vcombine.low %v5950_v25, %v5953_v5  ;;  %v6583_v21 = vrot.slane %v6581_v56, 4  ;;  %v6584_v53 = vrot.slane %v6337_v27, 6  ;;  %v11079_v45 = vrot.slane %v5738_v2, 9 }
 0x41c   :  { %11701 = vmatprep.mubr.bf16.mxu1 %v11179_v44  ;;  %v5740_v44 = vld [vmem:[#allocation2 + $0x80] sm:$0x1]  ;;  %v11150_v59 = vrot.slane %v6335_v55, 10  ;;  %v6595_v23 = vrot.slane %v6342_v48, 6  ;;  %v6345_v5 = vld [vmem:[#allocation2 + $0x124] sm:$0xf]  ;;  %v6592_v57 = vsel %vm13465_vm5, %v6590_v47, %v6591_v8 }
 0x41d   :  { %v5959_v12 = vrot.slane %v5740_v44, 5  ;;  %v12377_v55 = vld [vmem:[#allocation2 + $0x6c] sm:$0xff]   ;;  %v6598_v44 = vrot.slane %v6343_v58, 6  ;;  %v6346_v8 = vld [vmem:[#allocation2 + $0x128] sm:$0x3] }
 0x41e   :  { %8660 = vmatmul.mubr.bf16.gmra.mrb[76].mxu0 %v12375_v0  ;;  %v6338_v0 = vld [vmem:[#allocation2 + $0xd8] sm:$0xc]  ;;  %v6582_v25 = vsel %vm13465_vm5, %v11150_v59, %v6581_v56  ;;  %v5741_v48 = vld [vmem:[#allocation2 + $0x84] sm:$0xe]  ;;  %v6344_v56 = vld [vmem:[#allocation2 + $0x120] sm:$0xc] }
 0x41f   :  { %8667 = vmatprep.mubr.bf16.mxu0 %v11109_v36  ;;  %v6578_v36 = vsel %vm13465_vm5, %v6576_v60, %v6577_v54  ;;  %v11151_v14 = vrot.slane %v6338_v0, 10  ;;  %v6341_v54 = vld [vmem:[#allocation2 + $0xe4] sm:$0xc]  ;;  %v5960_v38 = vsel %vm13373_vm2, %v5958_v28, %v5959_v12  ;;  %v5743_v28 = vld [vmem:[#allocation2 + $0x8c] sm:$0x1] }
 0x420   :  { %v11181_v60 = vcombine.low %v6575_v20, %v6578_v36  ;;  %v5963_v36 = vrot.slane %v5742_v51, 5  ;;  %v11152_v20 = vrot.slane %v6341_v54, 10  ;;  %v5966_v51 = vrot.slane %v5743_v28, 5  ;;  %v6348_v59 = vld [vmem:[#allocation2 + $0x130] sm:$0xf] }
 0x421   :  { %v6589_v0 = vsel %vm13465_vm5, %v11151_v14, %v6588_v50  ;;  %v6597_v50 = vrot.slane %v6595_v23, 4  ;;  %v6351_v12 = vld [vmem:[#allocation2 + $0x13c] sm:$0xf]  ;;  %v11080_v54 = vrot.slane %v5741_v48, 9  ;;  %v6347_v48 = vld [vmem:[#allocation2 + $0x12c] sm:$0xc] }
 0x422   :  { %v11183_v2 = vcombine.low %v6589_v0, %v6592_v57  ;;  %v5965_v47 = vrot.slane %v5963_v36, 4  ;;  %v11153_v0 = vrot.slane %v6344_v56, 10  ;;  %v6609_v57 = vrot.slane %v6348_v59, 6  ;;  %v6357_v59 = vld [vmem:[#allocation2 + $0x154] sm:$0xf] }
 0x423   :  { %11702 = vmatmul.mubr.bf16.gmra.mrb[212].mxu1 %v11180_v31  ;;  %v5957_v31 = vsel %vm13373_vm2, %v11079_v45, %v5956_v52  ;;  %v6596_v52 = vsel %vm13465_vm5, %v11152_v20, %v6595_v23  ;;  %v6605_v45 = vrot.slane %v6346_v8, 6  ;;  %v5964_v23 = vsel %vm13373_vm2, %v11080_v54, %v5963_v36  ;;  %v5746_v20 = vld [vmem:[#allocation2 + $0x98] sm:$0x1]  ;;  %v5748_v8 = vld [vmem:[#allocation2 + $0xa0] sm:$0xf] }
 0x424   :  { %11705 = vmatprep.mubr.bf16.mxu1 %v11181_v60  ;;  %v11111_v27 = vcombine.low %v5957_v31, %v5960_v38  ;;  %v5745_v60 = vld [vmem:[#allocation2 + $0x94] sm:$0xf]  ;;  %v5973_v56 = vrot.slane %v5746_v20, 5  ;;  %v6354_v36 = vld [vmem:[#allocation2 + $0x148] sm:$0xf] }
 0x425   :  { %v5970_v38 = vrot.slane %v5745_v60, 5 }
 0x426   :  { %8668 = vmatmul.mubr.bf16.gmra.mrb[80].mxu0 %v12376_v1  ;;  %v6585_v1 = vsel %vm13465_vm5, %v6583_v21, %v6584_v53  ;;  %v6599_v53 = vsel %vm13465_vm5, %v6597_v50, %v6598_v44  ;;  %v6352_v50 = vld [vmem:[#allocation2 + $0x140] sm:$0x3] }
 0x427   :  { %8675 = vmatprep.mubr.bf16.mxu0 %v11110_v30  ;;  %v6602_v30 = vrot.slane %v6345_v5, 6  ;;  %v11182_v14 = vcombine.low %v6582_v25, %v6585_v1  ;;  %v5967_v5 = vsel %vm13373_vm2, %v5965_v47, %v5966_v51  ;;  %v11184_v58 = vcombine.low %v6596_v52, %v6599_v53  ;;  %v12378_v25 = vld [vmem:[#allocation2 + $0x78] sm:$0xff]   ;;  %v5744_v47 = vld [vmem:[#allocation2 + $0x90] sm:$0xe] }
 0x428   :  { %v11112_v31 = vcombine.low %v5964_v23, %v5967_v5  ;;  %v5972_v44 = vrot.slane %v5970_v38, 4  ;;  %v6350_v51 = vld [vmem:[#allocation2 + $0x138] sm:$0xc]  ;;  %v6619_v52 = vrot.slane %v6352_v50, 6  ;;  %v6623_v5 = vrot.slane %v6354_v36, 6 }
 0x429   :  { %v6604_v21 = vrot.slane %v6602_v30, 4  ;;  %v6630_v23 = vrot.slane %v6357_v59, 6  ;;  %v6363_v59 = vld [vmem:[#allocation2 + $0x16c] sm:$0xf] }
 0x42a   :  { %v5974_v53 = vsel %vm13373_vm2, %v5972_v44, %v5973_v56  ;;  %v6355_v44 = vld [vmem:[#allocation2 + $0x14c] sm:$0x3] }
 0x42b   :  { %11706 = vmatmul.mubr.bf16.gmra.mrb[216].mxu1 %v11182_v14  ;;  %v6606_v1 = vsel %vm13465_vm5, %v6604_v21, %v6605_v45  ;;  %v6611_v14 = vrot.slane %v6609_v57, 4  ;;  %v11154_v45 = vrot.slane %v6347_v48, 10  ;;  %v5747_v48 = vld [vmem:[#allocation2 + $0x9c] sm:$0xe]  ;;  %v6632_v56 = vrot.slane %v6630_v23, 4 }
 0x42c   :  { %11709 = vmatprep.mubr.bf16.mxu1 %v11183_v2  ;;  %v6349_v2 = vld [vmem:[#allocation2 + $0x134] sm:$0x3] }
 0x42d   :  { %v6612_v21 = vrot.slane %v6349_v2, 6 }
 0x42e   :  { %8676 = vmatmul.mubr.bf16.gmra.mrb[84].mxu0 %v12377_v55  ;;  %v6616_v55 = vrot.slane %v6351_v12, 6  ;;  %v5977_v12 = vrot.slane %v5748_v8, 5  ;;  %v6625_v8 = vrot.slane %v6623_v5, 4 }
 0x42f   :  { %8683 = vmatprep.mubr.bf16.mxu0 %v11111_v27  ;;  %v6603_v27 = vsel %vm13465_vm5, %v11153_v0, %v6602_v30  ;;  %v11081_v30 = vrot.slane %v5744_v47, 9  ;;  %v6613_v54 = vsel %vm13465_vm5, %v6611_v14, %v6612_v21  ;;  %v11155_v0 = vrot.slane %v6350_v51, 10  ;;  %v6356_v51 = vld [vmem:[#allocation2 + $0x150] sm:$0xc] }
 0x430   :  { %v11185_v28 = vcombine.low %v6603_v27, %v6606_v1  ;;  %v6618_v60 = vrot.slane %v6616_v55, 4  ;;  %v12379_v1 = vld [vmem:[#allocation2 + $0x84] sm:$0xff]   ;;  %v5979_v14 = vrot.slane %v5977_v12, 4  ;;  %v6626_v21 = vrot.slane %v6355_v44, 6 }
 0x431   :  { %v5749_v27 = vld [vmem:[#allocation2 + $0xa4] sm:$0x1]  ;;  %v6617_v50 = vsel %vm13465_vm5, %v11155_v0, %v6616_v55  ;;  %v11082_v55 = vrot.slane %v5747_v48, 9 }
 0x432   :  { %v5980_v36 = vrot.slane %v5749_v27, 5 }
 0x433   :  { %11710 = vmatmul.mubr.bf16.gmra.mrb[220].mxu1 %v11184_v58  ;;  %v6620_v58 = vsel %vm13465_vm5, %v6618_v60, %v6619_v52  ;;  %v5751_v60 = vld [vmem:[#allocation2 + $0xac] sm:$0xf] }
 0x434   :  { %11713 = vmatprep.mubr.bf16.mxu1 %v11185_v28  ;;  %v6358_v28 = vld [vmem:[#allocation2 + $0x158] sm:$0x3]  ;;  %v11187_v47 = vcombine.low %v6617_v50, %v6620_v58  ;;  %v11157_v58 = vrot.slane %v6356_v51, 10  ;;  %v5752_v50 = vld [vmem:[#allocation2 + $0xb0] sm:$0x1] }
 0x435   :  { %v6633_v52 = vrot.slane %v6358_v28, 6  ;;  %v6362_v51 = vld [vmem:[#allocation2 + $0x168] sm:$0xc] }
 0x436   :  { %8684 = vmatmul.mubr.bf16.gmra.mrb[88].mxu0 %v12378_v25  ;;  %v5971_v25 = vsel %vm13373_vm2, %v11081_v30, %v5970_v38  ;;  %v6353_v38 = vld [vmem:[#allocation2 + $0x144] sm:$0xc]  ;;  %v5981_v30 = vsel %vm13373_vm2, %v5979_v14, %v5980_v36  ;;  %v6631_v28 = vsel %vm13465_vm5, %v11157_v58, %v6630_v23  ;;  %v6361_v14 = vld [vmem:[#allocation2 + $0x164] sm:$0x3] }
 0x437   :  { %8691 = vmatprep.mubr.bf16.mxu0 %v11112_v31  ;;  %v6610_v31 = vsel %vm13465_vm5, %v11154_v45, %v6609_v57  ;;  %v11113_v20 = vcombine.low %v5971_v25, %v5974_v53  ;;  %v6360_v57 = vld [vmem:[#allocation2 + $0x160] sm:$0xf]  ;;  %v5984_v53 = vrot.slane %v5751_v60, 5  ;;  %v11156_v45 = vrot.slane %v6353_v38, 10  ;;  %v12380_v25 = vld [vmem:[#allocation2 + $0x90] sm:$0xff]  }
 0x438   :  { %v11186_v2 = vcombine.low %v6610_v31, %v6613_v54  ;;  %v6627_v54 = vsel %vm13465_vm5, %v6625_v8, %v6626_v21  ;;  %v6637_v0 = vrot.slane %v6360_v57, 6  ;;  %v5978_v31 = vsel %vm13373_vm2, %v11082_v55, %v5977_v12  ;;  %v5750_v38 = vld [vmem:[#allocation2 + $0xa8] sm:$0xe]  ;;  %v6359_v12 = vld [vmem:[#allocation2 + $0x15c] sm:$0xc] }
 0x439   :  { %v6624_v27 = vsel %vm13465_vm5, %v11156_v45, %v6623_v5  ;;  %v5986_v8 = vrot.slane %v5984_v53, 4  ;;  %v5987_v57 = vrot.slane %v5752_v50, 5  ;;  %v6366_v5 = vld [vmem:[#allocation2 + $0x178] sm:$0xf]  ;;  %v6640_v21 = vrot.slane %v6361_v14, 6 }
 0x43a   :  { %v11188_v44 = vcombine.low %v6624_v27, %v6627_v54  ;;  %v6639_v60 = vrot.slane %v6637_v0, 4  ;;  %v11083_v23 = vrot.slane %v5750_v38, 9  ;;  %v11158_v45 = vrot.slane %v6359_v12, 10  ;;  %v5753_v12 = vld [vmem:[#allocation2 + $0xb4] sm:$0xe] }
 0x43b   :  { %11714 = vmatmul.mubr.bf16.gmra.mrb[224].mxu1 %v11186_v2  ;;  %v11114_v2 = vcombine.low %v5978_v31, %v5981_v30  ;;  %v5988_v55 = vsel %vm13373_vm2, %v5986_v8, %v5987_v57  ;;  %v6651_v58 = vrot.slane %v6366_v5, 6  ;;  %v12381_v31 = vld [vmem:[#allocation2 + $0x9c] sm:$0xff]   ;;  %v6372_v5 = vld [vmem:[#allocation2 + $0x190] sm:$0xf] }
 0x43c   :  { %11717 = vmatprep.mubr.bf16.mxu1 %v11187_v47  ;;  %v6364_v47 = vld [vmem:[#allocation2 + $0x170] sm:$0x3]  ;;  %v6641_v54 = vsel %vm13465_vm5, %v6639_v60, %v6640_v21  ;;  %v5985_v27 = vsel %vm13373_vm2, %v11083_v23, %v5984_v53  ;;  %v6638_v50 = vsel %vm13465_vm5, %v11158_v45, %v6637_v0  ;;  %v6367_v8 = vld [vmem:[#allocation2 + $0x17c] sm:$0x3]  ;;  %v6365_v53 = vld [vmem:[#allocation2 + $0x174] sm:$0xc] }
 0x43d   :  { %v11190_v14 = vcombine.low %v6638_v50, %v6641_v54  ;;  %v6654_v21 = vrot.slane %v6367_v8, 6  ;;  %v11160_v54 = vrot.slane %v6365_v53, 10  ;;  %v6373_v53 = vld [vmem:[#allocation2 + $0x194] sm:$0x3] }
 0x43e   :  { %8692 = vmatmul.mubr.bf16.gmra.mrb[92].mxu0 %v12379_v1  ;;  %v6634_v1 = vsel %vm13465_vm5, %v6632_v56, %v6633_v52  ;;  %v5754_v56 = vld [vmem:[#allocation2 + $0xb8] sm:$0xf]  ;;  %v6647_v52 = vrot.slane %v6364_v47, 6 }
 0x43f   :  { %8699 = vmatprep.mubr.bf16.mxu0 %v11113_v20  ;;  %v6644_v20 = vrot.slane %v6363_v59, 6  ;;  %v11189_v48 = vcombine.low %v6631_v28, %v6634_v1  ;;  %v6369_v59 = vld [vmem:[#allocation2 + $0x184] sm:$0xf]  ;;  %v5991_v30 = vrot.slane %v5754_v56, 5  ;;  %v11159_v1 = vrot.slane %v6362_v51, 10 }
 0x440   :  { %v5755_v28 = vld [vmem:[#allocation2 + $0xbc] sm:$0x1]  ;;  %v6653_v56 = vrot.slane %v6651_v58, 4  ;;  %v6368_v51 = vld [vmem:[#allocation2 + $0x180] sm:$0xc] }
 0x441   :  { %v6646_v36 = vrot.slane %v6644_v20, 4  ;;  %v6645_v47 = vsel %vm13465_vm5, %v11159_v1, %v6644_v20  ;;  %v5993_v60 = vrot.slane %v5991_v30, 4  ;;  %v5994_v0 = vrot.slane %v5755_v28, 5 }
 0x442   :  { %v6655_v1 = vsel %vm13465_vm5, %v6653_v56, %v6654_v21  ;;  %v5756_v21 = vld [vmem:[#allocation2 + $0xc0] sm:$0xe] }
 0x443   :  { %11718 = vmatmul.mubr.bf16.gmra.mrb[228].mxu1 %v11188_v44  ;;  %v11115_v44 = vcombine.low %v5985_v27, %v5988_v55  ;;  %v5995_v23 = vsel %vm13373_vm2, %v5993_v60, %v5994_v0  ;;  %v11161_v27 = vrot.slane %v6368_v51, 10  ;;  %v5758_v60 = vld [vmem:[#allocation2 + $0xc8] sm:$0x1]  ;;  %v16062_v51 = vld [vmem:[#allocation2 + $0xd0] sm:$0xf] }
 0x444   :  { %11721 = vmatprep.mubr.bf16.mxu1 %v11189_v48  ;;  %v6370_v48 = vld [vmem:[#allocation2 + $0x188] sm:$0x3] }
 0x445   :  { %v6661_v20 = vrot.slane %v6370_v48, 6 }
 0x446   :  { %8700 = vmatmul.mubr.bf16.gmra.mrb[96].mxu0 %v12380_v25  ;;  %v6648_v25 = vsel %vm13465_vm5, %v6646_v36, %v6647_v52  ;;  %v16043_v36 = vld [vmem:[#allocation2 + $0xc4] sm:$0xf]  ;;  %v11084_v52 = vrot.slane %v5753_v12, 9 }
 0x447   :  { %8707 = vmatprep.mubr.bf16.mxu0 %v11114_v2  ;;  %v6658_v2 = vrot.slane %v6369_v59, 6  ;;  %v11191_v38 = vcombine.low %v6645_v47, %v6648_v25  ;;  %v6375_v59 = vld [vmem:[#allocation2 + $0x19c] sm:$0xf]  ;;  %v5998_v55 = vrot.slane %v16043_v36, 5  ;;  %v6665_v25 = vrot.slane %v6372_v5, 6 }
 0x448   :  { %v5992_v28 = vsel %vm13373_vm2, %v11084_v52, %v5991_v30  ;;  %v6652_v47 = vsel %vm13465_vm5, %v11160_v54, %v6651_v58  ;;  %v6371_v36 = vld [vmem:[#allocation2 + $0x18c] sm:$0xc]  ;;  %v16066_v52 = vld [vmem:[#allocation2 + $0x1b4] sm:$0xf] }
 0x449   :  { %v6660_v57 = vrot.slane %v6658_v2, 4  ;;  %v11116_v48 = vcombine.low %v5992_v28, %v5995_v23  ;;  %v6659_v56 = vsel %vm13465_vm5, %v11161_v27, %v6658_v2  ;;  %v6000_v0 = vrot.slane %v5998_v55, 4  ;;  %v6374_v23 = vld [vmem:[#allocation2 + $0x198] sm:$0xc] }
 0x44a   :  { %v6667_v30 = vrot.slane %v6665_v25, 4  ;;  %v6668_v2 = vrot.slane %v6373_v53, 6  ;;  %v6005_v27 = vrot.slane %v16062_v51, 5 }
 0x44b   :  { %11722 = vmatmul.mubr.bf16.gmra.mrb[232].mxu1 %v11190_v14  ;;  %v6662_v50 = vsel %vm13465_vm5, %v6660_v57, %v6661_v20  ;;  %v6672_v14 = vrot.slane %v6375_v59, 6  ;;  %v6376_v57 = vld [vmem:[#allocation2 + $0x1a0] sm:$0x3]  ;;  %v6001_v59 = vrot.slane %v5758_v60, 5  ;;  %v16064_v20 = vld [vmem:[#allocation2 + $0x1a8] sm:$0xf] }
 0x44c   :  { %11725 = vmatprep.mubr.bf16.mxu1 %v11191_v38  ;;  %v11192_v38 = vcombine.low %v6652_v47, %v6655_v1  ;;  %v11193_v5 = vcombine.low %v6659_v56, %v6662_v50  ;;  %v6675_v54 = vrot.slane %v6376_v57, 6  ;;  %v11085_v1 = vrot.slane %v5756_v21, 9 }
 0x44d   :  { %v16048_v45 = vpop.f32.mrb[128].mxu1  ;;  %v6674_v58 = vrot.slane %v6672_v14, 4  ;;  %v6669_v28 = vsel %vm13465_vm5, %v6667_v30, %v6668_v2  ;;  %v6679_v47 = vrot.slane %v16064_v20, 6  ;;  %v5763_v30 = vld [vmem:[#allocation2 + $0xdc] sm:$0xf] }
 0x44e   :  { %8708 = vmatmul.mubr.bf16.gmra.mrb[100].mxu0 %v12381_v31  ;;  %v8189_v31 = vpop.f32.mrb[129].mxu1  ;;  %v5999_v53 = vsel %vm13373_vm2, %v11085_v1, %v5998_v55  ;;  %v6379_v20 = vld [vmem:[#allocation2 + $0x1ac] sm:$0x3]  ;;  %v6377_v55 = vld [vmem:[#allocation2 + $0x1a4] sm:$0xc] }
 0x44f   :  { %8715 = vmatprep.mubr.bf16.mxu0 %v11115_v44  ;;  %v12382_v44 = vld [vmem:[#allocation2 + $0xa8] sm:$0xff]   ;;  %v16058_v8 = vpop.f32.mrb[130].mxu1  ;;  %v6002_v31 = vsel %vm13373_vm2, %v6000_v0, %v6001_v59  ;;  %v6676_v56 = vsel %vm13465_vm5, %v6674_v58, %v6675_v54  ;;  %v6382_v58 = vld [vmem:[#allocation2 + $0x1b8] sm:$0x3]  ;;  %v6380_v1 = vld [vmem:[#allocation2 + $0x1b0] sm:$0xc] }
 0x450   :  { %v8192_v12 = vpop.f32.mrb[131].mxu1  ;;  %v11117_v0 = vcombine.low %v5999_v53, %v6002_v31  ;;  %v6689_v53 = vrot.slane %v6382_v58, 6 }
 0x451   :  { %v12383_v12 = vld [vmem:[#allocation2 + $0xb4] sm:$0xff]  }
 0x453   :  { %11726 = vmatmul.mubr.bf16.gmra.mrb[236].mxu1 %v11192_v38  ;;  %v11163_v38 = vrot.slane %v6374_v23, 10  ;;  %v6681_v23 = vrot.slane %v6679_v47, 4 }
 0x454   :  { %11729 = vmatprep.mubr.bf16.mxu1 %v11193_v5  ;;  %v5761_v5 = vld [vmem:[#allocation2 + $0xd4] sm:$0x1] }
 0x455   :  { %v16071_v50 = vpop.f32.mrb[132].mxu1  ;;  %v6673_v51 = vsel %vm13465_vm5, %v11163_v38, %v6672_v14  ;;  %v6008_v31 = vrot.slane %v5761_v5, 5  ;;  %v5762_v14 = vld [vmem:[#allocation2 + $0xd8] sm:$0xe]  ;;  %v5764_v38 = vld [vmem:[#allocation2 + $0xe0] sm:$0x1] }
 0x456   :  { %8716 = vmatmul.mubr.bf16.gmra.mrb[104].mxu0 %v12382_v44  ;;  %18858 = vst [vmem:[#allocation67_spill] sm:$0xff] %v16071_v50  ;;  %v11162_v44 = vrot.slane %v6371_v36, 10  ;;  %v8197_v60 = vpop.f32.mrb[133].mxu1  ;;  %v11195_v2 = vcombine.low %v6673_v51, %v6676_v56 }
 0x457   :  { %8723 = vmatprep.mubr.bf16.mxu0 %v11116_v48  ;;  %v6686_v48 = vrot.slane %v16066_v52, 6  ;;  %v16083_v36 = vpop.f32.mrb[134].mxu1  ;;  %v6007_v52 = vrot.slane %v6005_v27, 4  ;;  %v6012_v60 = vrot.slane %v5763_v30, 5 }
 0x458   :  { %v6666_v57 = vsel %vm13465_vm5, %v11162_v44, %v6665_v25  ;;  %18859 = vst [vmem:[#allocation71_spill] sm:$0xff] %v16083_v36  ;;  %v8200_v59 = vpop.f32.mrb[135].mxu1  ;;  %v5759_v25 = vld [vmem:[#allocation2 + $0xcc] sm:$0xe]  ;;  %v6384_v44 = vld [vmem:[#allocation2 + $0x1c0] sm:$0xf] }
 0x459   :  { %v11194_v21 = vcombine.low %v6666_v57, %v6669_v28  ;;  %v6688_v54 = vrot.slane %v6686_v48, 4  ;;  %v6682_v28 = vrot.slane %v6379_v20, 6  ;;  %v11086_v57 = vrot.slane %v5759_v25, 9  ;;  %v12384_v20 = vld [vmem:[#allocation2 + $0xc0] sm:$0xff]  }
 0x45a   :  { %v6009_v56 = vsel %vm13373_vm2, %v6007_v52, %v6008_v31  ;;  %v6693_v30 = vrot.slane %v6384_v44, 6  ;;  %v6015_v25 = vrot.slane %v5764_v38, 5  ;;  %v6385_v44 = vld [vmem:[#allocation2 + $0x1c4] sm:$0x3] }
 0x45b   :  { %11730 = vmatmul.mubr.bf16.gmra.mrb[240].mxu1 %v11194_v21  ;;  %v6683_v51 = vsel %vm13465_vm5, %v6681_v23, %v6682_v28  ;;  %v11165_v21 = vrot.slane %v6380_v1, 10  ;;  %v6690_v5 = vsel %vm13465_vm5, %v6688_v54, %v6689_v53  ;;  %v6006_v58 = vsel %vm13373_vm2, %v11086_v57, %v6005_v27  ;;  %v5766_v23 = vld [vmem:[#allocation2 + $0xe8] sm:$0xf] }
 0x45c   :  { %11733 = vmatprep.mubr.bf16.mxu1 %v11195_v2  ;;  %v11087_v2 = vrot.slane %v5762_v14, 9  ;;  %v11118_v31 = vcombine.low %v6006_v58, %v6009_v56  ;;  %v6695_v27 = vrot.slane %v6693_v30, 4  ;;  %v6383_v14 = vld [vmem:[#allocation2 + $0x1bc] sm:$0xc]  ;;  %v6696_v57 = vrot.slane %v6385_v44, 6  ;;  %v12385_v58 = vld [vmem:[#allocation2 + $0xcc] sm:$0xff]  }
 0x45d   :  { %v6687_v54 = vsel %vm13465_vm5, %v11165_v21, %v6686_v48  ;;  %v5765_v56 = vld [vmem:[#allocation2 + $0xe4] sm:$0xe]  ;;  %v11166_v48 = vrot.slane %v6383_v14, 10  ;;  %v12386_v44 = vld [vmem:[#allocation2 + $0xd8] sm:$0xff]  }
 0x45e   :  { %8724 = vmatmul.mubr.bf16.gmra.mrb[108].mxu0 %v12383_v12  ;;  %v11164_v12 = vrot.slane %v6377_v55, 10  ;;  %v6014_v55 = vrot.slane %v6012_v60, 4  ;;  %v11197_v53 = vcombine.low %v6687_v54, %v6690_v5  ;;  %v6013_v38 = vsel %vm13373_vm2, %v11087_v2, %v6012_v60 }
 0x45f   :  { %8731 = vmatprep.mubr.bf16.mxu0 %v11117_v0  ;;  %v16089_v0 = vpop.f32.mrb[136].mxu1  ;;  %v6697_v21 = vsel %vm13465_vm5, %v6695_v27, %v6696_v57 }
 0x460   :  { %18860 = vst [vmem:[#allocation74_spill] sm:$0xff] %v16089_v0  ;;  %v8205_v59 = vpop.f32.mrb[137].mxu1  ;;  %v6680_v52 = vsel %vm13465_vm5, %v11164_v12, %v6679_v47  ;;  %v6016_v47 = vsel %vm13373_vm2, %v6014_v55, %v6015_v25  ;;  %v6019_v12 = vrot.slane %v5766_v23, 5  ;;  %v6694_v55 = vsel %vm13465_vm5, %v11166_v48, %v6693_v30  ;;  %v5770_v30 = vld [vmem:[#allocation2 + $0x128] sm:$0x1] }
 0x461   :  { %v16097_v36 = vpop.f32.mrb[138].mxu1  ;;  %v11196_v28 = vcombine.low %v6680_v52, %v6683_v51  ;;  %v5767_v51 = vld [vmem:[#allocation2 + $0xec] sm:$0x1]  ;;  %v11119_v5 = vcombine.low %v6013_v38, %v6016_v47  ;;  %v11088_v52 = vrot.slane %v5765_v56, 9  ;;  %v11198_v23 = vcombine.low %v6694_v55, %v6697_v21  ;;  %v5768_v48 = vld [vmem:[#allocation2 + $0x120] sm:$0xe] }
 0x462   :  { %18861 = vst [vmem:[#allocation77_spill] sm:$0xff] %v16097_v36  ;;  %v8208_v1 = vpop.f32.mrb[139].mxu1  ;;  %v6022_v60 = vrot.slane %v5767_v51, 5  ;;  %v5772_v51 = vld [vmem:[#allocation2 + $0x130] sm:$0xf]  ;;  %v6029_v21 = vrot.slane %v5770_v30, 5 }
 0x463   :  { %11734 = vmatmul.mubr.bf16.gmra.mrb[244].mxu1 %v11196_v28  ;;  %v5769_v1 = vld [vmem:[#allocation2 + $0x124] sm:$0xf]  ;;  %v6020_v28 = vsel %vm13373_vm2, %v11088_v52, %v6019_v12 }
 0x464   :  { %11737 = vmatprep.mubr.bf16.mxu1 %v11197_v53  ;;  %v6026_v53 = vrot.slane %v5769_v1, 5  ;;  %v6386_v1 = vld [vmem:[#allocation2 + $0x1c8] sm:$0xc] }
 0x465   :  { %v16107_v59 = vpop.f32.mrb[140].mxu1  ;;  %v11167_v30 = vrot.slane %v6386_v1, 10 }
 0x466   :  { %8732 = vmatmul.mubr.bf16.gmra.mrb[112].mxu0 %v12384_v20  ;;  %18862 = vst [vmem:[#allocation82_spill] sm:$0xff] %v16107_v59  ;;  %v8213_v20 = vpop.f32.mrb[141].mxu1  ;;  %v6028_v56 = vrot.slane %v6026_v53, 4 }
 0x467   :  { %8739 = vmatprep.mubr.bf16.mxu0 %v11118_v31  ;;  %v6021_v31 = vrot.slane %v6019_v12, 4  ;;  %v16111_v2 = vpop.f32.mrb[142].mxu1  ;;  %v6033_v12 = vrot.slane %v5772_v51, 5  ;;  %v11089_v20 = vrot.slane %v5768_v48, 9  ;;  %v6389_v48 = vld [vmem:[#allocation2 + $0x1d4] sm:$0xc] }
 0x468   :  { %18863 = vst [vmem:[#allocation83_spill] sm:$0xff] %v16111_v2  ;;  %v8216_v25 = vpop.f32.mrb[143].mxu1 }
 0x469   :  { %v6023_v54 = vsel %vm13373_vm2, %v6021_v31, %v6022_v60  ;;  %v5773_v31 = vld [vmem:[#allocation2 + $0x134] sm:$0x1]  ;;  %v6027_v55 = vsel %vm13373_vm2, %v11089_v20, %v6026_v53  ;;  %v5771_v25 = vld [vmem:[#allocation2 + $0x12c] sm:$0xe] }
 0x46a   :  { %v11120_v14 = vcombine.low %v6020_v28, %v6023_v54  ;;  %v6387_v28 = vld [vmem:[#allocation2 + $0x1cc] sm:$0xf] }
 0x46b   :  { %11738 = vmatmul.mubr.bf16.gmra.mrb[248].mxu1 %v11198_v23  ;;  %v5775_v23 = vld [vmem:[#allocation2 + $0x13c] sm:$0xf] }
 0x46d   :  { %v16119_v27 = vpop.f32.mrb[144].mxu1 }
 0x46e   :  { %8740 = vmatmul.mubr.bf16.gmra.mrb[116].mxu0 %v12385_v58  ;;  %18864 = vst [vmem:[#allocation115_spill] sm:$0xff] %v16119_v27  ;;  %v8221_v38 = vpop.f32.mrb[145].mxu1  ;;  %v6030_v58 = vsel %vm13373_vm2, %v6028_v56, %v6029_v21  ;;  %v6390_v21 = vld [vmem:[#allocation2 + $0x1d8] sm:$0xf] }
 0x46f   :  { %8747 = vmatprep.mubr.bf16.mxu0 %v11119_v5  ;;  %v16121_v47 = vpop.f32.mrb[146].mxu1  ;;  %v12387_v5 = vld [vmem:[#allocation2 + $0xe4] sm:$0xff]   ;;  %v6388_v38 = vld [vmem:[#allocation2 + $0x1d0] sm:$0x3]  ;;  %v6707_v27 = vrot.slane %v6390_v21, 6 }
 0x470   :  { %18865 = vst [vmem:[#allocation117_spill] sm:$0xff] %v16121_v47  ;;  %v8224_v57 = vpop.f32.mrb[147].mxu1  ;;  %v6703_v56 = vrot.slane %v6388_v38, 6  ;;  %v6036_v47 = vrot.slane %v5773_v31, 5  ;;  %v5778_v21 = vld [vmem:[#allocation2 + $0x148] sm:$0xf] }
 0x471   :  { %v6700_v57 = vrot.slane %v6387_v28, 6  ;;  %v6709_v38 = vrot.slane %v6707_v27, 4 }
 0x473   :  { %v6701_v53 = vsel %vm13465_vm5, %v11167_v30, %v6700_v57  ;;  %v6702_v20 = vrot.slane %v6700_v57, 4 }
 0x475   :  { %v16125_v52 = vpop.f32.mrb[148].mxu1  ;;  %v6704_v1 = vsel %vm13465_vm5, %v6702_v20, %v6703_v56 }
 0x476   :  { %8748 = vmatmul.mubr.bf16.gmra.mrb[120].mxu0 %v12386_v44  ;;  %18866 = vst [vmem:[#allocation29_spill] sm:$0xff] %v16125_v52  ;;  %v8229_v60 = vpop.f32.mrb[149].mxu1  ;;  %v11121_v44 = vcombine.low %v6027_v55, %v6030_v58  ;;  %v11168_v52 = vrot.slane %v6389_v48, 10  ;;  %v11090_v58 = vrot.slane %v5771_v25, 9  ;;  %v6040_v55 = vrot.slane %v5775_v23, 5 }
 0x477   :  { %8755 = vmatprep.mubr.bf16.mxu0 %v11120_v14  ;;  %v16129_v54 = vpop.f32.mrb[150].mxu1  ;;  %v6035_v14 = vrot.slane %v6033_v12, 4  ;;  %v6391_v60 = vld [vmem:[#allocation2 + $0x1dc] sm:$0x3]  ;;  %v11199_v28 = vcombine.low %v6701_v53, %v6704_v1 }
 0x478   :  { %18867 = vst [vmem:[#allocation26_spill] sm:$0xff] %v16129_v54  ;;  %v8232_v51 = vpop.f32.mrb[151].mxu1  ;;  %v6710_v54 = vrot.slane %v6391_v60, 6  ;;  %v6034_v31 = vsel %vm13373_vm2, %v11090_v58, %v6033_v12  ;;  %v6047_v60 = vrot.slane %v5778_v21, 5  ;;  %v12389_v58 = vld [vmem:[#allocation2 + $0x12c] sm:$0xff]  }
 0x479   :  { %v12388_v51 = vld [vmem:[#allocation2 + $0x120] sm:$0xff]   ;;  %11741 = vmatprep.mubr.bf16.mxu1 %v11199_v28 }
 0x47a   :  { %v6711_v25 = vsel %vm13465_vm5, %v6709_v38, %v6710_v54 }
 0x47d   :  { %v16139_v30 = vpop.f32.mrb[152].mxu1 }
 0x47e   :  { %8756 = vmatmul.mubr.bf16.gmra.mrb[124].mxu0 %v12387_v5  ;;  %v6037_v5 = vsel %vm13373_vm2, %v6035_v14, %v6036_v47  ;;  %18868 = vst [vmem:[#allocation31_spill] sm:$0xff] %v16139_v30  ;;  %v8237_v57 = vpop.f32.mrb[153].mxu1  ;;  %v5776_v47 = vld [vmem:[#allocation2 + $0x140] sm:$0x1]  ;;  %v12400_v30 = vld [vmem:[#allocation2 + $0x1b0] sm:$0xff]  }
 0x47f   :  { %8763 = vmatprep.mubr.bf16.mxu0 %v11121_v44  ;;  %v6708_v44 = vsel %vm13465_vm5, %v11168_v52, %v6707_v27  ;;  %v16145_v23 = vpop.f32.mrb[154].mxu1  ;;  %v11122_v56 = vcombine.low %v6034_v31, %v6037_v5  ;;  %v6042_v52 = vrot.slane %v6040_v55, 4  ;;  %v5774_v27 = vld [vmem:[#allocation2 + $0x138] sm:$0xe]  ;;  %v6043_v53 = vrot.slane %v5776_v47, 5 }
 0x480   :  { %18869 = vst [vmem:[#allocation103_spill] sm:$0xff] %v16145_v23  ;;  %v11200_v14 = vcombine.low %v6708_v44, %v6711_v25  ;;  %v8240_v48 = vpop.f32.mrb[155].mxu1  ;;  %v11091_v20 = vrot.slane %v5774_v27, 9  ;;  %v5779_v44 = vld [vmem:[#allocation2 + $0x14c] sm:$0x1]  ;;  %v6049_v57 = vrot.slane %v6047_v60, 4 }
 0x481   :  { %v6044_v12 = vsel %vm13373_vm2, %v6042_v52, %v6043_v53  ;;  %v5781_v31 = vld [vmem:[#allocation2 + $0x154] sm:$0xf]  ;;  %v6050_v25 = vrot.slane %v5779_v44, 5  ;;  %v5812_v23 = vld [vmem:[#allocation2 + $0x1d0] sm:$0x1] }
 0x482   :  { %11742 = vmatmul.mubr.bf16.gmra.mrb[252].mxu1 %v11200_v14  ;;  %v6041_v1 = vsel %vm13373_vm2, %v11091_v20, %v6040_v55  ;;  %v6054_v14 = vrot.slane %v5781_v31, 5  ;;  %v12390_v55 = vld [vmem:[#allocation2 + $0x138] sm:$0xff]  }
 0x483   :  { %v11123_v28 = vcombine.low %v6041_v1, %v6044_v12  ;;  %v6051_v47 = vsel %vm13373_vm2, %v6049_v57, %v6050_v25  ;;  %v5782_v20 = vld [vmem:[#allocation2 + $0x158] sm:$0x1]  ;;  %v5784_v1 = vld [vmem:[#allocation2 + $0x160] sm:$0xf] }
 0x484   :  { %v6061_v57 = vrot.slane %v5784_v1, 5 }
 0x485   :  { %v16149_v62 = vpop.f32.mrb[156].mxu1 }
 0x486   :  { %8764 = vmatmul.mubr.bf16.gmra.mrb[128].mxu0 %v12388_v51  ;;  %18870 = vst [vmem:[#allocation106_spill] sm:$0xff] %v16149_v62  ;;  %v8245_v54 = vpop.f32.mrb[157].mxu1  ;;  %v5777_v51 = vld [vmem:[#allocation2 + $0x144] sm:$0xe] }
 0x487   :  { %8771 = vmatprep.mubr.bf16.mxu0 %v11122_v56  ;;  %v16153_v5 = vpop.f32.mrb[158].mxu1  ;;  %v11092_v56 = vrot.slane %v5777_v51, 9  ;;  %v6056_v54 = vrot.slane %v6054_v14, 4 }
 0x488   :  { %18871 = vst [vmem:[#allocation120_spill] sm:$0xff] %v16153_v5  ;;  %v8248_v38 = vpop.f32.mrb[159].mxu1  ;;  %v12399_v5 = vld [vmem:[#allocation2 + $0x1a4] sm:$0xff]  }
 0x489   :  { %v6048_v27 = vsel %vm13373_vm2, %v11092_v56, %v6047_v60  ;;  %v12391_v60 = vld [vmem:[#allocation2 + $0x144] sm:$0xff]  }
 0x48a   :  { %v11124_v53 = vcombine.low %v6048_v27, %v6051_v47  ;;  %v6063_v27 = vrot.slane %v6061_v57, 4 }
 0x48d   :  { %v16157_v48 = vpop.f32.mrb[160].mxu1 }
 0x48e   :  { %8772 = vmatmul.mubr.bf16.gmra.mrb[132].mxu0 %v12389_v58  ;;  %18872 = vst [vmem:[#allocation119_spill] sm:$0xff] %v16157_v48  ;;  %v8253_v52 = vpop.f32.mrb[161].mxu1  ;;  %v5780_v58 = vld [vmem:[#allocation2 + $0x150] sm:$0xe] }
 0x48f   :  { %8779 = vmatprep.mubr.bf16.mxu0 %v11123_v28  ;;  %v16161_v21 = vpop.f32.mrb[162].mxu1  ;;  %v6057_v28 = vrot.slane %v5782_v20, 5  ;;  %v11093_v44 = vrot.slane %v5780_v58, 9  ;;  %v5785_v52 = vld [vmem:[#allocation2 + $0x164] sm:$0x1] }
 0x490   :  { %18873 = vst [vmem:[#allocation118_spill] sm:$0xff] %v16161_v21  ;;  %v8256_v12 = vpop.f32.mrb[163].mxu1  ;;  %v5787_v20 = vld [vmem:[#allocation2 + $0x16c] sm:$0xf] }
 0x491   :  { %v6058_v38 = vsel %vm13373_vm2, %v6056_v54, %v6057_v28  ;;  %v6055_v25 = vsel %vm13373_vm2, %v11093_v44, %v6054_v14  ;;  %v6064_v12 = vrot.slane %v5785_v52, 5  ;;  %v6068_v1 = vrot.slane %v5787_v20, 5  ;;  %v12392_v14 = vld [vmem:[#allocation2 + $0x150] sm:$0xff]   ;;  %v5786_v52 = vld [vmem:[#allocation2 + $0x168] sm:$0xe] }
 0x492   :  { %v11125_v47 = vcombine.low %v6055_v25, %v6058_v38  ;;  %v5788_v25 = vld [vmem:[#allocation2 + $0x170] sm:$0x1] }
 0x493   :  { %v6065_v58 = vsel %vm13373_vm2, %v6063_v27, %v6064_v12  ;;  %v11095_v27 = vrot.slane %v5786_v52, 9  ;;  %v5793_v52 = vld [vmem:[#allocation2 + $0x184] sm:$0xf] }
 0x495   :  { %v16165_v51 = vpop.f32.mrb[164].mxu1 }
 0x496   :  { %8780 = vmatmul.mubr.bf16.gmra.mrb[136].mxu0 %v12390_v55  ;;  %18874 = vst [vmem:[#allocation109_spill] sm:$0xff] %v16165_v51  ;;  %v8261_v31 = vpop.f32.mrb[165].mxu1  ;;  %v12398_v51 = vld [vmem:[#allocation2 + $0x198] sm:$0xff]  }
 0x497   :  { %8787 = vmatprep.mubr.bf16.mxu0 %v11124_v53  ;;  %v16169_v56 = vpop.f32.mrb[166].mxu1  ;;  %v5783_v53 = vld [vmem:[#allocation2 + $0x15c] sm:$0xe] }
 0x498   :  { %18875 = vst [vmem:[#allocation105_spill] sm:$0xff] %v16169_v56  ;;  %v8264_v55 = vpop.f32.mrb[167].mxu1  ;;  %v11094_v54 = vrot.slane %v5783_v53, 9  ;;  %v5790_v53 = vld [vmem:[#allocation2 + $0x178] sm:$0xf]  ;;  %v6071_v56 = vrot.slane %v5788_v25, 5 }
 0x499   :  { %v6070_v55 = vrot.slane %v6068_v1, 4  ;;  %v6075_v12 = vrot.slane %v5790_v53, 5  ;;  %v5789_v25 = vld [vmem:[#allocation2 + $0x174] sm:$0xe] }
 0x49a   :  { %v6062_v44 = vsel %vm13373_vm2, %v11094_v54, %v6061_v57  ;;  %v12393_v57 = vld [vmem:[#allocation2 + $0x15c] sm:$0xff]   ;;  %v6069_v54 = vsel %vm13373_vm2, %v11095_v27, %v6068_v1  ;;  %v12394_v1 = vld [vmem:[#allocation2 + $0x168] sm:$0xff]  }
 0x49b   :  { %v6072_v20 = vsel %vm13373_vm2, %v6070_v55, %v6071_v56  ;;  %v11096_v56 = vrot.slane %v5789_v25, 9  ;;  %v5796_v25 = vld [vmem:[#allocation2 + $0x190] sm:$0xf] }
 0x49d   :  { %v6076_v27 = vsel %vm13373_vm2, %v11096_v56, %v6075_v12 }
 0x49e   :  { %8788 = vmatmul.mubr.bf16.gmra.mrb[140].mxu0 %v12391_v60  ;;  %v16173_v28 = vpop.f32.mrb[168].mxu1  ;;  %v11126_v60 = vcombine.low %v6062_v44, %v6065_v58  ;;  %v5791_v44 = vld [vmem:[#allocation2 + $0x17c] sm:$0x1] }
 0x49f   :  { %8795 = vmatprep.mubr.bf16.mxu0 %v11125_v47  ;;  %18876 = vst [vmem:[#allocation107_spill] sm:$0xff] %v16173_v28  ;;  %v8269_v31 = vpop.f32.mrb[169].mxu1 }
 0x4a0   :  { %v16177_v38 = vpop.f32.mrb[170].mxu1 }
 0x4a1   :  { %18877 = vst [vmem:[#allocation112_spill] sm:$0xff] %v16177_v38  ;;  %v8272_v47 = vpop.f32.mrb[171].mxu1  ;;  %v6078_v38 = vrot.slane %v5791_v44, 5  ;;  %v5792_v44 = vld [vmem:[#allocation2 + $0x180] sm:$0xe] }
 0x4a2   :  { %v6077_v47 = vrot.slane %v6075_v12, 4  ;;  %v12395_v12 = vld [vmem:[#allocation2 + $0x174] sm:$0xff]  }
 0x4a4   :  { %v6079_v55 = vsel %vm13373_vm2, %v6077_v47, %v6078_v38  ;;  %v11097_v38 = vrot.slane %v5792_v44, 9  ;;  %v5799_v44 = vld [vmem:[#allocation2 + $0x19c] sm:$0xf] }
 0x4a6   :  { %8796 = vmatmul.mubr.bf16.gmra.mrb[144].mxu0 %v12392_v14  ;;  %v16181_v31 = vpop.f32.mrb[172].mxu1  ;;  %v11127_v14 = vcombine.low %v6069_v54, %v6072_v20  ;;  %v5794_v54 = vld [vmem:[#allocation2 + $0x188] sm:$0x1] }
 0x4a7   :  { %8803 = vmatprep.mubr.bf16.mxu0 %v11126_v60  ;;  %18878 = vst [vmem:[#allocation121_spill] sm:$0xff] %v16181_v31  ;;  %v8277_v28 = vpop.f32.mrb[173].mxu1 }
 0x4a8   :  { %v16185_v58 = vpop.f32.mrb[174].mxu1  ;;  %v6082_v28 = vrot.slane %v5793_v52, 5 }
 0x4a9   :  { %18879 = vst [vmem:[#allocation110_spill] sm:$0xff] %v16185_v58  ;;  %v8280_v60 = vpop.f32.mrb[175].mxu1  ;;  %v6085_v58 = vrot.slane %v5794_v54, 5  ;;  %v5795_v54 = vld [vmem:[#allocation2 + $0x18c] sm:$0xe] }
 0x4aa   :  { %v6084_v60 = vrot.slane %v6082_v28, 4  ;;  %v6083_v56 = vsel %vm13373_vm2, %v11097_v38, %v6082_v28  ;;  %v12396_v28 = vld [vmem:[#allocation2 + $0x180] sm:$0xff]  }
 0x4ac   :  { %v6086_v47 = vsel %vm13373_vm2, %v6084_v60, %v6085_v58  ;;  %v11098_v58 = vrot.slane %v5795_v54, 9  ;;  %v5802_v54 = vld [vmem:[#allocation2 + $0x1a8] sm:$0xf] }
 0x4ae   :  { %8804 = vmatmul.mubr.bf16.gmra.mrb[148].mxu0 %v12393_v57  ;;  %v16189_v53 = vpop.f32.mrb[176].mxu1  ;;  %v11128_v57 = vcombine.low %v6076_v27, %v6079_v55  ;;  %v5797_v27 = vld [vmem:[#allocation2 + $0x194] sm:$0x1] }
 0x4af   :  { %8811 = vmatprep.mubr.bf16.mxu0 %v11127_v14  ;;  %18880 = vst [vmem:[#allocation116_spill] sm:$0xff] %v16189_v53  ;;  %v8285_v31 = vpop.f32.mrb[177].mxu1 }
 0x4b0   :  { %v16193_v20 = vpop.f32.mrb[178].mxu1  ;;  %v6089_v31 = vrot.slane %v5796_v25, 5 }
 0x4b1   :  { %18881 = vst [vmem:[#allocation123_spill] sm:$0xff] %v16193_v20  ;;  %v8288_v14 = vpop.f32.mrb[179].mxu1  ;;  %v6092_v20 = vrot.slane %v5797_v27, 5  ;;  %v5798_v27 = vld [vmem:[#allocation2 + $0x198] sm:$0xe] }
 0x4b2   :  { %v6091_v14 = vrot.slane %v6089_v31, 4  ;;  %v6090_v38 = vsel %vm13373_vm2, %v11098_v58, %v6089_v31  ;;  %v12397_v31 = vld [vmem:[#allocation2 + $0x18c] sm:$0xff]  }
 0x4b4   :  { %v6093_v60 = vsel %vm13373_vm2, %v6091_v14, %v6092_v20  ;;  %v11099_v20 = vrot.slane %v5798_v27, 9  ;;  %v5805_v27 = vld [vmem:[#allocation2 + $0x1b4] sm:$0xf] }
 0x4b6   :  { %8812 = vmatmul.mubr.bf16.gmra.mrb[152].mxu0 %v12394_v1  ;;  %v16197_v52 = vpop.f32.mrb[180].mxu1  ;;  %v11129_v1 = vcombine.low %v6083_v56, %v6086_v47  ;;  %v5800_v56 = vld [vmem:[#allocation2 + $0x1a0] sm:$0x1] }
 0x4b7   :  { %8819 = vmatprep.mubr.bf16.mxu0 %v11128_v57  ;;  %18882 = vst [vmem:[#allocation125_spill] sm:$0xff] %v16197_v52  ;;  %v8293_v53 = vpop.f32.mrb[181].mxu1 }
 0x4b8   :  { %v16201_v55 = vpop.f32.mrb[182].mxu1  ;;  %v6096_v53 = vrot.slane %v5799_v44, 5 }
 0x4b9   :  { %18883 = vst [vmem:[#allocation122_spill] sm:$0xff] %v16201_v55  ;;  %v8296_v57 = vpop.f32.mrb[183].mxu1  ;;  %v6099_v55 = vrot.slane %v5800_v56, 5  ;;  %v5801_v56 = vld [vmem:[#allocation2 + $0x1a4] sm:$0xe] }
 0x4ba   :  { %v6098_v57 = vrot.slane %v6096_v53, 4  ;;  %v6097_v58 = vsel %vm13373_vm2, %v11099_v20, %v6096_v53 }
 0x4bc   :  { %v6100_v14 = vsel %vm13373_vm2, %v6098_v57, %v6099_v55  ;;  %v11100_v55 = vrot.slane %v5801_v56, 9 }
 0x4be   :  { %8820 = vmatmul.mubr.bf16.gmra.mrb[156].mxu0 %v12395_v12  ;;  %v16205_v25 = vpop.f32.mrb[184].mxu1  ;;  %v11130_v12 = vcombine.low %v6090_v38, %v6093_v60  ;;  %v5803_v38 = vld [vmem:[#allocation2 + $0x1ac] sm:$0x1] }
 0x4bf   :  { %8827 = vmatprep.mubr.bf16.mxu0 %v11129_v1  ;;  %18884 = vst [vmem:[#allocation124_spill] sm:$0xff] %v16205_v25  ;;  %v8301_v52 = vpop.f32.mrb[185].mxu1 }
 0x4c0   :  { %v16209_v47 = vpop.f32.mrb[186].mxu1  ;;  %v6103_v52 = vrot.slane %v5802_v54, 5 }
 0x4c1   :  { %18885 = vst [vmem:[#allocation127_spill] sm:$0xff] %v16209_v47  ;;  %v8304_v1 = vpop.f32.mrb[187].mxu1  ;;  %v6106_v47 = vrot.slane %v5803_v38, 5  ;;  %v5808_v38 = vld [vmem:[#allocation2 + $0x1c0] sm:$0xf] }
 0x4c2   :  { %v6105_v1 = vrot.slane %v6103_v52, 4  ;;  %v6104_v53 = vsel %vm13373_vm2, %v11100_v55, %v6103_v52  ;;  %v6117_v48 = vrot.slane %v5808_v38, 5 }
 0x4c4   :  { %v6107_v57 = vsel %vm13373_vm2, %v6105_v1, %v6106_v47  ;;  %v6119_v62 = vrot.slane %v6117_v48, 4 }
 0x4c6   :  { %8828 = vmatmul.mubr.bf16.gmra.mrb[160].mxu0 %v12396_v28  ;;  %v16213_v44 = vpop.f32.mrb[188].mxu1  ;;  %v11131_v28 = vcombine.low %v6097_v58, %v6100_v14  ;;  %v11132_v14 = vcombine.low %v6104_v53, %v6107_v57  ;;  %v5806_v58 = vld [vmem:[#allocation2 + $0x1b8] sm:$0x1] }
 0x4c7   :  { %8835 = vmatprep.mubr.bf16.mxu0 %v11130_v12  ;;  %18886 = vst [vmem:[#allocation28_spill] sm:$0xff] %v16213_v44  ;;  %v8309_v25 = vpop.f32.mrb[189].mxu1  ;;  %v6113_v56 = vrot.slane %v5806_v58, 5 }
 0x4c8   :  { %v16217_v60 = vpop.f32.mrb[190].mxu1  ;;  %v6110_v25 = vrot.slane %v5805_v27, 5 }
 0x4c9   :  { %18887 = vst [vmem:[#allocation126_spill] sm:$0xff] %v16217_v60  ;;  %v8312_v12 = vpop.f32.mrb[191].mxu1 }
 0x4ca   :  { %v5804_v12 = vld [vmem:[#allocation2 + $0x1b0] sm:$0xe] }
 0x4cb   :  { %v11101_v27 = vrot.slane %v5804_v12, 9  ;;  %v5809_v12 = vld [vmem:[#allocation2 + $0x1c4] sm:$0x1] }
 0x4cd   :  { %v6111_v58 = vsel %vm13373_vm2, %v11101_v27, %v6110_v25 }
 0x4ce   :  { %8836 = vmatmul.mubr.bf16.gmra.mrb[164].mxu0 %v12397_v31  ;;  %v11683_v54 = vpop.f32.mrb[192].mxu1 }
 0x4cf   :  { %8843 = vmatprep.mubr.bf16.mxu0 %v11131_v28  ;;  %v8926_v44 = vpop.f32.mrb[193].mxu1  ;;  %v6112_v28 = vrot.slane %v6110_v25, 4 }
 0x4d0   :  { %v11684_v20 = vpop.f32.mrb[194].mxu1 }
 0x4d1   :  { %v8929_v31 = vpop.f32.mrb[195].mxu1  ;;  %v6114_v21 = vsel %vm13373_vm2, %v6112_v28, %v6113_v56  ;;  %v5807_v56 = vld [vmem:[#allocation2 + $0x1bc] sm:$0xe] }
 0x4d6   :  { %8844 = vmatmul.mubr.bf16.gmra.mrb[168].mxu0 %v12398_v51  ;;  %v16226_v52 = vpop.f32.mrb[196].mxu1 }
 0x4d7   :  { %8851 = vmatprep.mubr.bf16.mxu0 %v11132_v14  ;;  %v8942_v57 = vpop.f32.mrb[197].mxu1 }
 0x4d9   :  { %v8637_v60 = vpop.f32.mrb[64].mxu0 }
 0x4da   :  { %v11857_v47 = vadd.f32 %v8637_v60, %v15317_v39  ;;  %v8639_v1 = vpop.f32.mrb[65].mxu0  ;;  %v16233_v39 = vpop.f32.mrb[198].mxu1  ;;  %v11133_v60 = vcombine.low %v6111_v58, %v6114_v21 }
 0x4db   :  { %v8640_v55 = vpop.f32.mrb[66].mxu0  ;;  %v5811_v1 = vld [vmem:[#allocation2 + $0x1cc] sm:$0xf]  ;;  %v8945_v28 = vpop.f32.mrb[199].mxu1 }
 0x4dc   :  { %v16228_v53 = vadd.f32 %v11857_v47, %v8926_v44  ;;  %v11858_v51 = vadd.f32 %v8640_v55, %v15319_v32  ;;  %v8642_v14 = vpop.f32.mrb[67].mxu0  ;;  %v6120_v44 = vrot.slane %v5809_v12, 5  ;;  %v5810_v47 = vld [vmem:[#allocation2 + $0x1c8] sm:$0xe]  ;;  %v6124_v32 = vrot.slane %v5811_v1, 5 }
 0x4dd   :  { %v11102_v14 = vrot.slane %v5807_v56, 9 }
 0x4de   :  { %18888 = vst [vmem:[#allocation27_spill] sm:$0xff] %v16228_v53  ;;  %v16235_v38 = vadd.f32 %v11858_v51, %v8929_v31  ;;  %8852 = vmatmul.mubr.bf16.gmra.mrb[172].mxu0 %v12399_v5  ;;  %v6121_v21 = vsel %vm13373_vm2, %v6119_v62, %v6120_v44  ;;  %v16240_v58 = vpop.f32.mrb[200].mxu1  ;;  %v11103_v51 = vrot.slane %v5810_v47, 9  ;;  %v5814_v44 = vld [vmem:[#allocation2 + $0x1d8] sm:$0xf] }
 0x4df   :  { %8859 = vmatprep.mubr.bf16.mxu0 %v11133_v60  ;;  %v6118_v5 = vsel %vm13373_vm2, %v11102_v14, %v6117_v48  ;;  %v16244_v60 = vpop.f32.mrb[201].mxu1  ;;  %v6131_v47 = vrot.slane %v5814_v44, 5 }
 0x4e0   :  { %18889 = vst [vmem:[#allocation19_spill] sm:$0xff] %v16235_v38  ;;  %v11134_v62 = vcombine.low %v6118_v5, %v6121_v21  ;;  %v6125_v48 = vsel %vm13373_vm2, %v11103_v51, %v6124_v32 }
 0x4e1   :  { %v8645_v55 = vpop.f32.mrb[68].mxu0 }
 0x4e2   :  { %v11859_v25 = vadd.f32 %v8645_v55, %v15329_v49  ;;  %v8647_v27 = vpop.f32.mrb[69].mxu0  ;;  %v6126_v49 = vrot.slane %v6124_v32, 4  ;;  %v6127_v55 = vrot.slane %v5812_v23, 5 }
 0x4e3   :  { %v8648_v31 = vpop.f32.mrb[70].mxu0  ;;  %v16249_v27 = vpop.f32.mrb[202].mxu1 }
 0x4e4   :  { %v16246_v12 = vadd.f32 %v11859_v25, %v11683_v54  ;;  %v11860_v1 = vadd.f32 %v8648_v31, %v15335_v7  ;;  %v8650_v56 = vpop.f32.mrb[71].mxu0  ;;  %v8961_v2 = vpop.f32.mrb[203].mxu1  ;;  %v6128_v54 = vsel %vm13373_vm2, %v6126_v49, %v6127_v55  ;;  %v5813_v7 = vld [vmem:[#allocation2 + $0x1d4] sm:$0xe]  ;;  %v5815_v25 = vld [vmem:[#allocation2 + $0x1dc] sm:$0x1] }
 0x4e5   :  { %v6133_v49 = vrot.slane %v6131_v47, 4  ;;  %v6134_v55 = vrot.slane %v5815_v25, 5 }
 0x4e6   :  { %18890 = vst [vmem:[#allocation21_spill] sm:$0xff] %v16246_v12  ;;  %v16251_v59 = vadd.f32 %v11860_v1, %v11684_v20  ;;  %8860 = vmatmul.mubr.bf16.gmra.mrb[176].mxu0 %v12400_v30  ;;  %v16258_v21 = vpop.f32.mrb[204].mxu1  ;;  %v11135_v20 = vcombine.low %v6125_v48, %v6128_v54  ;;  %v11104_v1 = vrot.slane %v5813_v7, 9  ;;  %v12402_v7 = vld [vmem:[#allocation2 + $0x1c8] sm:$0xff]  }
 0x4e7   :  { %8867 = vmatprep.mubr.bf16.mxu0 %v11134_v62  ;;  %v8974_v30 = vpop.f32.mrb[205].mxu1  ;;  %v12401_v62 = vld [vmem:[#allocation2 + $0x1bc] sm:$0xff]  }
 0x4e8   :  { %18891 = vst [vmem:[#allocation18_spill] sm:$0xff] %v16251_v59  ;;  %v16263_v44 = vpop.f32.mrb[206].mxu1 }
 0x4e9   :  { %v8653_v14 = vpop.f32.mrb[72].mxu0  ;;  %v8977_v36 = vpop.f32.mrb[207].mxu1 }
 0x4ea   :  { %v11861_v23 = vadd.f32 %v8653_v14, %v15555_v37  ;;  %v8655_v31 = vpop.f32.mrb[73].mxu0  ;;  %v6132_v37 = vsel %vm13373_vm2, %v11104_v1, %v6131_v47 }
 0x4eb   :  { %v8656_v5 = vpop.f32.mrb[74].mxu0 }
 0x4ec   :  { %v16260_v56 = vadd.f32 %v11861_v23, %v8942_v57  ;;  %v11862_v32 = vadd.f32 %v8656_v5, %v15564_v24  ;;  %v8658_v51 = vpop.f32.mrb[75].mxu0  ;;  %v6135_v57 = vsel %vm13373_vm2, %v6133_v49, %v6134_v55 }
 0x4ed   :  { %v11136_v23 = vcombine.low %v6132_v37, %v6135_v57 }
 0x4ee   :  { %18892 = vst [vmem:[#allocation20_spill] sm:$0xff] %v16260_v56  ;;  %v16265_v0 = vadd.f32 %v11862_v32, %v8945_v28  ;;  %8868 = vmatmul.mubr.bf16.gmra.mrb[180].mxu0 %v12401_v62  ;;  %v16272_v14 = vpop.f32.mrb[208].mxu1  ;;  %v12403_v62 = vld [vmem:[#allocation2 + $0x1d4] sm:$0xff]  }
 0x4ef   :  { %8875 = vmatprep.mubr.bf16.mxu0 %v11135_v20  ;;  %v16274_v31 = vpop.f32.mrb[209].mxu1 }
 0x4f0   :  { %18893 = vst [vmem:[#allocation23_spill] sm:$0xff] %v16265_v0  ;;  %v16280_v20 = vpop.f32.mrb[210].mxu1 }
 0x4f1   :  { %v8661_v48 = vpop.f32.mrb[76].mxu0  ;;  %v16282_v41 = vpop.f32.mrb[211].mxu1 }
 0x4f2   :  { %v11863_v24 = vadd.f32 %v8661_v48, %v15572_v63  ;;  %v8663_v54 = vpop.f32.mrb[77].mxu0 }
 0x4f3   :  { %v8664_v25 = vpop.f32.mrb[78].mxu0 }
 0x4f4   :  { %v16277_v28 = vadd.f32 %v11863_v24, %v16226_v52  ;;  %v11864_v5 = vadd.f32 %v8664_v25, %v15580_v4  ;;  %v8666_v47 = vpop.f32.mrb[79].mxu0 }
 0x4f6   :  { %v16285_v63 = vadd.f32 %v11864_v5, %v16233_v39  ;;  %8876 = vmatmul.mubr.bf16.gmra.mrb[184].mxu0 %v12402_v7  ;;  %v16288_v49 = vpop.f32.mrb[212].mxu1 }
 0x4f7   :  { %8883 = vmatprep.mubr.bf16.mxu0 %v11136_v23  ;;  %v16290_v55 = vpop.f32.mrb[213].mxu1 }
 0x4f8   :  { %18894 = vst [vmem:[#allocation25_spill] sm:$0xff] %v16285_v63  ;;  %v16296_v39 = vpop.f32.mrb[214].mxu1 }
 0x4f9   :  { %v8669_v1 = vpop.f32.mrb[80].mxu0  ;;  %v16298_v48 = vpop.f32.mrb[215].mxu1 }
 0x4fa   :  { %v11865_v32 = vadd.f32 %v8669_v1, %v15589_v43  ;;  %v8671_v51 = vpop.f32.mrb[81].mxu0 }
 0x4fb   :  { %v8672_v52 = vpop.f32.mrb[82].mxu0 }
 0x4fc   :  { %v16293_v4 = vadd.f32 %v11865_v32, %v16244_v60  ;;  %v11866_v37 = vadd.f32 %v8672_v52, %v15595_v46  ;;  %v8674_v57 = vpop.f32.mrb[83].mxu0 }
 0x4fe   :  { %v16300_v24 = vadd.f32 %v11866_v37, %v8961_v2  ;;  %8884 = vmatmul.mubr.bf16.gmra.mrb[188].mxu0 %v12403_v62  ;;  %v16303_v25 = vpop.f32.mrb[216].mxu1 }
 0x4ff   :  { %v16305_v5 = vpop.f32.mrb[217].mxu1 }
 0x500   :  { %18895 = vst [vmem:[#allocation22_spill] sm:$0xff] %v16300_v24  ;;  %v16311_v1 = vpop.f32.mrb[218].mxu1 }
 0x501   :  { %v8677_v43 = vpop.f32.mrb[84].mxu0  ;;  %v16313_v2 = vpop.f32.mrb[219].mxu1 }
 0x502   :  { %v11867_v54 = vadd.f32 %v8677_v43, %v15611_v16  ;;  %v8679_v7 = vpop.f32.mrb[85].mxu0 }
 0x503   :  { %v8680_v23 = vpop.f32.mrb[86].mxu0 }
 0x504   :  { %v16308_v60 = vadd.f32 %v11867_v54, %v16240_v58  ;;  %v11868_v46 = vadd.f32 %v8680_v23, %v15617_v29  ;;  %v8682_v47 = vpop.f32.mrb[87].mxu0  ;;  %v12404_v23 = vld [vmem:[#allocation10] sm:$0xff]  }
 0x505   :  { %11745 = vmatprep.subr.bf16.mxu1 %v12404_v23 }
 0x506   :  { %18896 = vst [vmem:[#allocation24_spill] sm:$0xff] %v16308_v60  ;;  %v16316_v32 = vadd.f32 %v11868_v46, %v16249_v27  ;;  %v16319_v52 = vpop.f32.mrb[220].mxu1  ;;  %11746 = vmatpush3.bf16.msra.mxu1 %v12404_v23 }
 0x507   :  { %v16324_v29 = vpop.f32.mrb[221].mxu1 }
 0x508   :  { %18897 = vst [vmem:[#allocation40_spill] sm:$0xff] %v16316_v32  ;;  %v16326_v54 = vpop.f32.mrb[222].mxu1 }
 0x509   :  { %v8685_v16 = vpop.f32.mrb[88].mxu0  ;;  %v16330_v27 = vpop.f32.mrb[223].mxu1 }
 0x50a   :  { %v11869_v51 = vadd.f32 %v8685_v16, %v15636_v3  ;;  %v8687_v62 = vpop.f32.mrb[89].mxu0 }
 0x50b   :  { %v8688_v37 = vpop.f32.mrb[90].mxu0 }
 0x50c   :  { %v16321_v57 = vadd.f32 %v11869_v51, %v8974_v30  ;;  %v11870_v58 = vadd.f32 %v8688_v37, %v15643_v26  ;;  %v8690_v43 = vpop.f32.mrb[91].mxu0 }
 0x50e   :  { %18898 = vst [vmem:[#allocation44_spill] sm:$0xff] %v16321_v57  ;;  %v16328_v7 = vadd.f32 %v11870_v58, %v8977_v36  ;;  %v16333_v16 = vpop.f32.mrb[224].mxu1 }
 0x50f   :  { %18900 = vst [vmem:[#allocation42_spill] sm:$0xff] %v16333_v16  ;;  %v16335_v26 = vpop.f32.mrb[225].mxu1 }
 0x510   :  { %18899 = vst [vmem:[#allocation38_spill] sm:$0xff] %v16328_v7  ;;  %v16341_v37 = vpop.f32.mrb[226].mxu1 }
 0x511   :  { %v8693_v46 = vpop.f32.mrb[92].mxu0  ;;  %v16343_v58 = vpop.f32.mrb[227].mxu1 }
 0x512   :  { %v11871_v3 = vadd.f32 %v8693_v46, %v15657_v17  ;;  %v8695_v47 = vpop.f32.mrb[93].mxu0 }
 0x513   :  { %v8696_v30 = vpop.f32.mrb[94].mxu0 }
 0x514   :  { %v16338_v51 = vadd.f32 %v11871_v3, %v16258_v21  ;;  %v11872_v36 = vadd.f32 %v8696_v30, %v15666_v6  ;;  %v8698_v62 = vpop.f32.mrb[95].mxu0 }
 0x515   :  { %v9252_v62 = vmul.f32 %v16228_v53, %v16228_v53 }
 0x516   :  { %v16346_v17 = vadd.f32 %v11872_v36, %v16263_v44  ;;  %v16349_v23 = vpop.f32.mrb[228].mxu1  ;;  %v9253_v44 = vmul.f32 %v16235_v38, %v16235_v38 }
 0x517   :  { %18901 = vst [vmem:[#allocation48_spill] sm:$0xff] %v16349_v23  ;;  %v16351_v50 = vpop.f32.mrb[229].mxu1 }
 0x518   :  { %v16357_v30 = vpop.f32.mrb[230].mxu1 }
 0x519   :  { %v8701_v43 = vpop.f32.mrb[96].mxu0  ;;  %18902 = vst [vmem:[#allocation52_spill] sm:$0xff] %v16357_v30  ;;  %v16361_v36 = vpop.f32.mrb[231].mxu1 }
 0x51a   :  { %v11873_v46 = vadd.f32 %v8701_v43, %v15682_v13  ;;  %v8703_v47 = vpop.f32.mrb[97].mxu0  ;;  %18903 = vst [vmem:[#allocation46_spill] sm:$0xff] %v16361_v36 }
 0x51b   :  { %v8704_v16 = vpop.f32.mrb[98].mxu0 }
 0x51c   :  { %v16354_v21 = vadd.f32 %v11873_v46, %v16274_v31  ;;  %v11874_v6 = vadd.f32 %v8704_v16, %v15691_v61  ;;  %v8706_v3 = vpop.f32.mrb[99].mxu0  ;;  %v9183_v31 = vadd.f32 %v16235_v38, %v16228_v53  ;;  %v9254_v61 = vmul.f32 %v16246_v12, %v16246_v12  ;;  %v12405_v16 = vld [vmem:[#allocation10 + $0x8] sm:$0xff]  }
 0x51d   :  { %v9316_v46 = vadd.f32 %v9253_v44, %v9252_v62  ;;  %11747 = vmatprep.subr.bf16.mxu1 %v12405_v16  ;;  %v9255_v38 = vmul.f32 %v16251_v59, %v16251_v59 }
 0x51e   :  { %v16364_v13 = vadd.f32 %v11874_v6, %v16282_v41  ;;  %v9184_v47 = vadd.f32 %v9183_v31, %v16246_v12  ;;  %v16374_v41 = vpop.f32.mrb[232].mxu1  ;;  %11748 = vmatpush3.bf16.msra.mxu1 %v12405_v16 }
 0x51f   :  { %v9317_v23 = vadd.f32 %v9316_v46, %v9254_v61  ;;  %v16378_v53 = vpop.f32.mrb[233].mxu1 }
 0x520   :  { %v16384_v31 = vpop.f32.mrb[234].mxu1 }
 0x521   :  { %v8709_v43 = vpop.f32.mrb[100].mxu0  ;;  %v16389_v16 = vpop.f32.mrb[235].mxu1 }
 0x522   :  { %v11875_v3 = vadd.f32 %v8709_v43, %v15707_v19  ;;  %v8711_v30 = vpop.f32.mrb[101].mxu0  ;;  %v9185_v19 = vadd.f32 %v9184_v47, %v16251_v59  ;;  %v9318_v43 = vadd.f32 %v9317_v23, %v9255_v38 }
 0x523   :  { %v8712_v6 = vpop.f32.mrb[102].mxu0  ;;  %v9256_v30 = vmul.f32 %v16260_v56, %v16260_v56 }
 0x524   :  { %v16381_v36 = vadd.f32 %v11875_v3, %v16272_v14  ;;  %v11876_v44 = vadd.f32 %v8712_v6, %v15716_v34  ;;  %v8714_v62 = vpop.f32.mrb[103].mxu0  ;;  %v9186_v46 = vadd.f32 %v9185_v19, %v16260_v56  ;;  %v9257_v34 = vmul.f32 %v16265_v0, %v16265_v0  ;;  %v12406_v56 = vld [vmem:[#allocation10 + $0x10] sm:$0xff]  }
 0x525   :  { %v9319_v3 = vadd.f32 %v9318_v43, %v9256_v30  ;;  %11749 = vmatprep.subr.bf16.mxu1 %v12406_v56 }
 0x526   :  { %v16392_v61 = vadd.f32 %v11876_v44, %v16280_v20  ;;  %v16398_v47 = vpop.f32.mrb[236].mxu1  ;;  %v9187_v12 = vadd.f32 %v9186_v46, %v16265_v0  ;;  %v9258_v20 = vmul.f32 %v16277_v28, %v16277_v28  ;;  %v9259_v0 = vmul.f32 %v16285_v63, %v16285_v63  ;;  %11750 = vmatpush3.bf16.msra.mxu1 %v12406_v56 }
 0x527   :  { %v16403_v44 = vpop.f32.mrb[237].mxu1 }
 0x528   :  { %v16409_v30 = vpop.f32.mrb[238].mxu1  ;;  %v9188_v43 = vadd.f32 %v9187_v12, %v16277_v28 }
 0x529   :  { %v8717_v14 = vpop.f32.mrb[104].mxu0 }
 0x52a   :  { %v11877_v6 = vadd.f32 %v8717_v14, %v15724_v15  ;;  %v8719_v62 = vpop.f32.mrb[105].mxu0  ;;  %v9320_v15 = vadd.f32 %v9319_v3, %v9257_v34  ;;  %v16412_v14 = vpop.f32.mrb[239].mxu1 }
 0x52b   :  { %v8720_v59 = vpop.f32.mrb[106].mxu0 }
 0x52c   :  { %v16406_v38 = vadd.f32 %v11877_v6, %v16290_v55  ;;  %v11878_v23 = vadd.f32 %v8720_v59, %v15732_v18  ;;  %v8722_v19 = vpop.f32.mrb[107].mxu0  ;;  %v9321_v62 = vadd.f32 %v9320_v15, %v9258_v20  ;;  %v9189_v6 = vadd.f32 %v9188_v43, %v16285_v63 }
 0x52d   :  { %v9260_v18 = vmul.f32 %v16293_v4, %v16293_v4 }
 0x52e   :  { %v16415_v46 = vadd.f32 %v11878_v23, %v16298_v48  ;;  %v16423_v12 = vpop.f32.mrb[240].mxu1  ;;  %v9322_v48 = vadd.f32 %v9321_v62, %v9259_v0  ;;  %v9190_v20 = vadd.f32 %v9189_v6, %v16293_v4 }
 0x52f   :  { %v16426_v23 = vpop.f32.mrb[241].mxu1 }
 0x530   :  { %18904 = vst [vmem:[#allocation50_spill] sm:$0xff] %v16415_v46  ;;  %v16432_v63 = vpop.f32.mrb[242].mxu1  ;;  %v9191_v56 = vadd.f32 %v9190_v20, %v16300_v24 }
 0x531   :  { %v8725_v55 = vpop.f32.mrb[108].mxu0 }
 0x532   :  { %v11879_v59 = vadd.f32 %v8725_v55, %v15742_v9  ;;  %v8727_v3 = vpop.f32.mrb[109].mxu0  ;;  %v9323_v9 = vadd.f32 %v9322_v48, %v9260_v18  ;;  %v9261_v55 = vmul.f32 %v16300_v24, %v16300_v24 }
 0x533   :  { %v8728_v34 = vpop.f32.mrb[110].mxu0  ;;  %v16436_v3 = vpop.f32.mrb[243].mxu1 }
 0x534   :  { %v16429_v19 = vadd.f32 %v11879_v59, %v16288_v49  ;;  %v11880_v15 = vadd.f32 %v8728_v34, %v15751_v11  ;;  %v8730_v43 = vpop.f32.mrb[111].mxu0  ;;  %v9262_v49 = vmul.f32 %v16308_v60, %v16308_v60  ;;  %v9324_v6 = vadd.f32 %v9323_v9, %v9261_v55 }
 0x535   :  { %v9192_v11 = vadd.f32 %v9191_v56, %v16308_v60  ;;  %v9264_v56 = vmul.f32 %v16321_v57, %v16321_v57 }
 0x536   :  { %18905 = vst [vmem:[#allocation56_spill] sm:$0xff] %v16429_v19  ;;  %v16439_v0 = vadd.f32 %v11880_v15, %v16296_v39  ;;  %v16446_v34 = vpop.f32.mrb[244].mxu1  ;;  %v9325_v43 = vadd.f32 %v9324_v6, %v9262_v49  ;;  %v9263_v39 = vmul.f32 %v16316_v32, %v16316_v32 }
 0x537   :  { %v16450_v15 = vpop.f32.mrb[245].mxu1 }
 0x538   :  { %18906 = vst [vmem:[#allocation60_spill] sm:$0xff] %v16439_v0  ;;  %v16456_v55 = vpop.f32.mrb[246].mxu1  ;;  %v9326_v6 = vadd.f32 %v9325_v43, %v9263_v39 }
 0x539   :  { %v8733_v62 = vpop.f32.mrb[112].mxu0 }
 0x53a   :  { %v11881_v59 = vadd.f32 %v8733_v62, %v15762_v22  ;;  %v8735_v18 = vpop.f32.mrb[113].mxu0  ;;  %v9193_v22 = vadd.f32 %v9192_v11, %v16316_v32  ;;  %v16461_v62 = vpop.f32.mrb[247].mxu1  ;;  %v9327_v60 = vadd.f32 %v9326_v6, %v9264_v56 }
 0x53b   :  { %v8736_v48 = vpop.f32.mrb[114].mxu0 }
 0x53c   :  { %v16453_v20 = vadd.f32 %v11881_v59, %v16305_v5  ;;  %v11882_v24 = vadd.f32 %v8736_v48, %v15770_v35  ;;  %v8738_v9 = vpop.f32.mrb[115].mxu0  ;;  %v9194_v18 = vadd.f32 %v9193_v22, %v16321_v57  ;;  %v12407_v5 = vld [vmem:[#allocation10 + $0x18] sm:$0xff]   ;;  %v9265_v35 = vmul.f32 %v16328_v7, %v16328_v7 }
 0x53d   :  { %11751 = vmatprep.subr.bf16.mxu1 %v12407_v5 }
 0x53e   :  { %v16464_v49 = vadd.f32 %v11882_v24, %v16313_v2  ;;  %v16470_v9 = vpop.f32.mrb[248].mxu1  ;;  %11752 = vmatpush3.bf16.msra.mxu1 %v12407_v5  ;;  %v9195_v24 = vadd.f32 %v9194_v18, %v16328_v7  ;;  %v9266_v2 = vmul.f32 %v16338_v51, %v16338_v51  ;;  %v9328_v6 = vadd.f32 %v9327_v60, %v9265_v35  ;;  %v12408_v35 = vld [vmem:[#allocation10 + $0x20] sm:$0xff]  }
 0x53f   :  { %v16475_v43 = vpop.f32.mrb[249].mxu1  ;;  %v9267_v7 = vmul.f32 %v16346_v17, %v16346_v17  ;;  %11753 = vmatprep.subr.bf16.mxu1 %v12408_v35 }
 0x540   :  { %v9329_v5 = vadd.f32 %v9328_v6, %v9266_v2 }
 0x541   :  { %v8741_v59 = vpop.f32.mrb[116].mxu0 }
 0x542   :  { %v11883_v48 = vadd.f32 %v8741_v59, %v15778_v10  ;;  %v8743_v11 = vpop.f32.mrb[117].mxu0  ;;  %v16481_v10 = vpop.f32.mrb[250].mxu1  ;;  %v9196_v59 = vadd.f32 %v9195_v24, %v16338_v51  ;;  %v9330_v24 = vadd.f32 %v9329_v5, %v9267_v7  ;;  %11754 = vmatpush3.bf16.msra.mxu1 %v12408_v35  ;;  %v9270_v7 = vmul.f32 %v16381_v36, %v16381_v36 }
 0x543   :  { %v8744_v32 = vpop.f32.mrb[118].mxu0  ;;  %v16484_v11 = vpop.f32.mrb[251].mxu1 }
 0x544   :  { %v16478_v39 = vadd.f32 %v11883_v48, %v16303_v25  ;;  %v11884_v22 = vadd.f32 %v8744_v32, %v15786_v42  ;;  %v8746_v56 = vpop.f32.mrb[119].mxu0  ;;  %v9197_v25 = vadd.f32 %v9196_v59, %v16346_v17  ;;  %v9268_v42 = vmul.f32 %v16354_v21, %v16354_v21 }
 0x545   :  { %v9269_v59 = vmul.f32 %v16364_v13, %v16364_v13 }
 0x546   :  { %v16487_v18 = vadd.f32 %v11884_v22, %v16311_v1  ;;  %v9198_v56 = vadd.f32 %v9197_v25, %v16354_v21  ;;  %v9331_v6 = vadd.f32 %v9330_v24, %v9268_v42  ;;  %v18911_v24 = vld [vmem:[#allocation63_spill] sm:$0xff] }
 0x548   :  { %18907 = vst [vmem:[#allocation54_spill] sm:$0xff] %v16487_v18 }
 0x549   :  { %v8749_v57 = vpop.f32.mrb[120].mxu0 }
 0x54a   :  { %v11885_v32 = vadd.f32 %v8749_v57, %v15794_v33  ;;  %v8751_v60 = vpop.f32.mrb[121].mxu0  ;;  %v9199_v57 = vadd.f32 %v9198_v56, %v16364_v13 }
 0x54b   :  { %v8752_v48 = vpop.f32.mrb[122].mxu0 }
 0x54c   :  { %v16497_v1 = vadd.f32 %v11885_v32, %v16324_v29  ;;  %v11886_v2 = vadd.f32 %v8752_v48, %v15802_v40  ;;  %v8754_v22 = vpop.f32.mrb[123].mxu0  ;;  %v9332_v29 = vadd.f32 %v9331_v6, %v9269_v59  ;;  %v9200_v25 = vadd.f32 %v9199_v57, %v16381_v36  ;;  %v18910_v40 = vld [vmem:[#allocation69_spill] sm:$0xff] }
 0x54d   :  { %v9271_v48 = vmul.f32 %v16392_v61, %v16392_v61  ;;  %v9272_v6 = vmul.f32 %v16406_v38, %v16406_v38 }
 0x54e   :  { %18908 = vst [vmem:[#allocation58_spill] sm:$0xff] %v16497_v1  ;;  %v16503_v33 = vadd.f32 %v11886_v2, %v16330_v27  ;;  %v9333_v42 = vadd.f32 %v9332_v29, %v9270_v7  ;;  %v9201_v22 = vadd.f32 %v9200_v25, %v16392_v61 }
 0x550   :  { %18909 = vst [vmem:[#allocation64_spill] sm:$0xff] %v16503_v33  ;;  %v9334_v57 = vadd.f32 %v9333_v42, %v9271_v48  ;;  %v9202_v7 = vadd.f32 %v9201_v22, %v16406_v38 }
 0x551   :  { %v8757_v5 = vpop.f32.mrb[124].mxu0 }
 0x552   :  { %v11887_v32 = vadd.f32 %v8757_v5, %v18910_v40  ;;  %v8759_v60 = vpop.f32.mrb[125].mxu0  ;;  %v9335_v29 = vadd.f32 %v9334_v57, %v9272_v6 }
 0x553   :  { %v8760_v35 = vpop.f32.mrb[126].mxu0 }
 0x554   :  { %v16513_v27 = vadd.f32 %v11887_v32, %v16319_v52  ;;  %v11888_v56 = vadd.f32 %v8760_v35, %v18911_v24  ;;  %v8762_v2 = vpop.f32.mrb[127].mxu0  ;;  %v9273_v52 = vmul.f32 %v16415_v46, %v16415_v46  ;;  %v9203_v24 = vadd.f32 %v9202_v7, %v16415_v46 }
 0x555   :  { %v16526_v60 = vpop.f32.mrb[252].mxu1 }
 0x556   :  { %v16520_v59 = vadd.f32 %v11888_v56, %v16326_v54  ;;  %v16528_v35 = vpop.f32.mrb[253].mxu1  ;;  %v9274_v54 = vmul.f32 %v16429_v19, %v16429_v19  ;;  %v9336_v22 = vadd.f32 %v9335_v29, %v9273_v52  ;;  %v9204_v6 = vadd.f32 %v9203_v24, %v16429_v19  ;;  %v18913_v24 = vld [vmem:[#allocation42_spill] sm:$0xff] }
 0x557   :  { %v16537_v2 = vpop.f32.mrb[254].mxu1 }
 0x558   :  { %v9337_v7 = vadd.f32 %v9336_v22, %v9274_v54  ;;  %v18914_v54 = vld [vmem:[#allocation71_spill] sm:$0xff] }
 0x559   :  { %v8765_v5 = vpop.f32.mrb[128].mxu0 }
 0x55a   :  { %v11889_v40 = vadd.f32 %v8765_v5, %v16048_v45  ;;  %v8767_v32 = vpop.f32.mrb[129].mxu0  ;;  %v16539_v45 = vpop.f32.mrb[255].mxu1  ;;  %v9275_v5 = vmul.f32 %v16439_v0, %v16439_v0 }
 0x55b   :  { %v8768_v25 = vpop.f32.mrb[130].mxu0 }
 0x55c   :  { %v16534_v42 = vadd.f32 %v11889_v40, %v16335_v26  ;;  %v11890_v48 = vadd.f32 %v8768_v25, %v16058_v8  ;;  %v8770_v56 = vpop.f32.mrb[131].mxu0  ;;  %v9205_v26 = vadd.f32 %v9204_v6, %v16439_v0  ;;  %v9276_v8 = vmul.f32 %v16453_v20, %v16453_v20  ;;  %v18912_v40 = vld [vmem:[#allocation67_spill] sm:$0xff] }
 0x55d   :  { %v9338_v29 = vadd.f32 %v9337_v7, %v9275_v5  ;;  %v9277_v6 = vmul.f32 %v16464_v49, %v16464_v49  ;;  %v9278_v7 = vmul.f32 %v16478_v39, %v16478_v39 }
 0x55e   :  { %v16543_v57 = vadd.f32 %v11890_v48, %v16343_v58  ;;  %v9206_v52 = vadd.f32 %v9205_v26, %v16453_v20 }
 0x55f   :  { %v9339_v19 = vadd.f32 %v9338_v29, %v9276_v8  ;;  %v9279_v29 = vmul.f32 %v16487_v18, %v16487_v18 }
 0x561   :  { %v8773_v32 = vpop.f32.mrb[132].mxu0  ;;  %v9340_v26 = vadd.f32 %v9339_v19, %v9277_v6  ;;  %v9280_v19 = vmul.f32 %v16497_v1, %v16497_v1  ;;  %v18917_v6 = vld [vmem:[#allocation46_spill] sm:$0xff] }
 0x562   :  { %v11891_v25 = vadd.f32 %v8773_v32, %v18912_v40  ;;  %v8775_v56 = vpop.f32.mrb[133].mxu0  ;;  %v9207_v32 = vadd.f32 %v9206_v52, %v16464_v49 }
 0x563   :  { %v8776_v46 = vpop.f32.mrb[134].mxu0  ;;  %v9341_v8 = vadd.f32 %v9340_v26, %v9278_v7 }
 0x564   :  { %v16553_v58 = vadd.f32 %v11891_v25, %v18913_v24  ;;  %v11892_v48 = vadd.f32 %v8776_v46, %v18914_v54  ;;  %v8778_v22 = vpop.f32.mrb[135].mxu0  ;;  %v9208_v40 = vadd.f32 %v9207_v32, %v16478_v39  ;;  %v18915_v25 = vld [vmem:[#allocation74_spill] sm:$0xff]  ;;  %v18916_v54 = vld [vmem:[#allocation77_spill] sm:$0xff] }
 0x566   :  { %v16559_v0 = vadd.f32 %v11892_v48, %v16341_v37  ;;  %v9209_v22 = vadd.f32 %v9208_v40, %v16487_v18  ;;  %v18919_v18 = vld [vmem:[#allocation48_spill] sm:$0xff] }
 0x568   :  { %v9210_v7 = vadd.f32 %v9209_v22, %v16497_v1 }
 0x569   :  { %v8781_v5 = vpop.f32.mrb[136].mxu0 }
 0x56a   :  { %v11893_v56 = vadd.f32 %v8781_v5, %v18915_v25  ;;  %v8783_v46 = vpop.f32.mrb[137].mxu0  ;;  %v9342_v5 = vadd.f32 %v9341_v8, %v9279_v29  ;;  %v9211_v40 = vadd.f32 %v9210_v7, %v16503_v33  ;;  %v18920_v8 = vld [vmem:[#allocation83_spill] sm:$0xff] }
 0x56b   :  { %v8784_v24 = vpop.f32.mrb[138].mxu0 }
 0x56c   :  { %v16569_v37 = vadd.f32 %v11893_v56, %v16351_v50  ;;  %v11894_v52 = vadd.f32 %v8784_v24, %v18916_v54  ;;  %v8786_v48 = vpop.f32.mrb[139].mxu0  ;;  %v9343_v25 = vadd.f32 %v9342_v5, %v9280_v19  ;;  %v9281_v50 = vmul.f32 %v16503_v33, %v16503_v33  ;;  %v18918_v56 = vld [vmem:[#allocation82_spill] sm:$0xff]  ;;  %v18921_v5 = vld [vmem:[#allocation52_spill] sm:$0xff] }
 0x56d   :  { %v9282_v48 = vmul.f32 %v16513_v27, %v16513_v27  ;;  %v9212_v19 = vadd.f32 %v9211_v40, %v16513_v27 }
 0x56e   :  { %v16576_v32 = vadd.f32 %v11894_v52, %v18917_v6  ;;  %v9344_v6 = vadd.f32 %v9343_v25, %v9281_v50 }
 0x571   :  { %v8789_v26 = vpop.f32.mrb[140].mxu0 }
 0x572   :  { %v11895_v46 = vadd.f32 %v8789_v26, %v18918_v56  ;;  %v8791_v24 = vpop.f32.mrb[141].mxu0  ;;  %v9345_v26 = vadd.f32 %v9344_v6, %v9282_v48  ;;  %v9283_v56 = vmul.f32 %v16520_v59, %v16520_v59  ;;  %v18923_v48 = vld [vmem:[#allocation117_spill] sm:$0xff] }
 0x573   :  { %v8792_v54 = vpop.f32.mrb[142].mxu0  ;;  %v9213_v24 = vadd.f32 %v9212_v19, %v16520_v59  ;;  %v9285_v19 = vmul.f32 %v16543_v57, %v16543_v57 }
 0x574   :  { %v16586_v52 = vadd.f32 %v11895_v46, %v18919_v18  ;;  %v11896_v29 = vadd.f32 %v8792_v54, %v18920_v8  ;;  %v8794_v22 = vpop.f32.mrb[143].mxu0  ;;  %v9284_v18 = vmul.f32 %v16534_v42, %v16534_v42  ;;  %v18922_v46 = vld [vmem:[#allocation115_spill] sm:$0xff]  ;;  %v9346_v25 = vadd.f32 %v9345_v26, %v9283_v56 }
 0x575   :  { %v9214_v50 = vadd.f32 %v9213_v24, %v16534_v42  ;;  %v9286_v26 = vmul.f32 %v16553_v58, %v16553_v58 }
 0x576   :  { %v16591_v1 = vadd.f32 %v11896_v29, %v18921_v5  ;;  %v9347_v6 = vadd.f32 %v9346_v25, %v9284_v18  ;;  %v9287_v25 = vmul.f32 %v16559_v0, %v16559_v0 }
 0x578   :  { %v9348_v24 = vadd.f32 %v9347_v6, %v9285_v19  ;;  %v9288_v6 = vmul.f32 %v16569_v37, %v16569_v37 }
 0x579   :  { %v8797_v7 = vpop.f32.mrb[144].mxu0 }
 0x57a   :  { %v11897_v33 = vadd.f32 %v8797_v7, %v18922_v46  ;;  %v8799_v54 = vpop.f32.mrb[145].mxu0  ;;  %v9215_v7 = vadd.f32 %v9214_v50, %v16543_v57  ;;  %v9349_v18 = vadd.f32 %v9348_v24, %v9286_v26 }
 0x57b   :  { %v8800_v8 = vpop.f32.mrb[146].mxu0 }
 0x57c   :  { %v16601_v40 = vadd.f32 %v11897_v33, %v16378_v53  ;;  %v11898_v29 = vadd.f32 %v8800_v8, %v18923_v48  ;;  %v8802_v22 = vpop.f32.mrb[147].mxu0  ;;  %v9216_v53 = vadd.f32 %v9215_v7, %v16553_v58  ;;  %v18924_v33 = vld [vmem:[#allocation29_spill] sm:$0xff]  ;;  %v18925_v48 = vld [vmem:[#allocation26_spill] sm:$0xff]  ;;  %v9350_v7 = vadd.f32 %v9349_v18, %v9287_v25  ;;  %v18927_v18 = vld [vmem:[#allocation103_spill] sm:$0xff] }
 0x57e   :  { %v16607_v5 = vadd.f32 %v11898_v29, %v16389_v16  ;;  %v9217_v22 = vadd.f32 %v9216_v53, %v16559_v0  ;;  %v9351_v24 = vadd.f32 %v9350_v7, %v9288_v6 }
 0x580   :  { %v9218_v26 = vadd.f32 %v9217_v22, %v16569_v37 }
 0x581   :  { %v8805_v56 = vpop.f32.mrb[148].mxu0 }
 0x582   :  { %v11899_v46 = vadd.f32 %v8805_v56, %v18924_v33  ;;  %v8807_v54 = vpop.f32.mrb[149].mxu0  ;;  %v18926_v33 = vld [vmem:[#allocation31_spill] sm:$0xff]  ;;  %v9219_v53 = vadd.f32 %v9218_v26, %v16576_v32 }
 0x583   :  { %v8808_v8 = vpop.f32.mrb[150].mxu0 }
 0x584   :  { %v16617_v16 = vadd.f32 %v11899_v46, %v16374_v41  ;;  %v11900_v50 = vadd.f32 %v8808_v8, %v18925_v48  ;;  %v8810_v29 = vpop.f32.mrb[151].mxu0  ;;  %v9289_v41 = vmul.f32 %v16576_v32, %v16576_v32  ;;  %v9290_v48 = vmul.f32 %v16586_v52, %v16586_v52 }
 0x585   :  { %v9220_v22 = vadd.f32 %v9219_v53, %v16586_v52  ;;  %v18930_v53 = vld [vmem:[#allocation120_spill] sm:$0xff] }
 0x586   :  { %v16624_v19 = vadd.f32 %v11900_v50, %v16384_v31  ;;  %v9352_v29 = vadd.f32 %v9351_v24, %v9289_v41 }
 0x588   :  { %v9353_v7 = vadd.f32 %v9352_v29, %v9290_v48  ;;  %v9293_v29 = vmul.f32 %v16607_v5, %v16607_v5 }
 0x589   :  { %v8813_v56 = vpop.f32.mrb[152].mxu0 }
 0x58a   :  { %v11901_v46 = vadd.f32 %v8813_v56, %v18926_v33  ;;  %v8815_v54 = vpop.f32.mrb[153].mxu0  ;;  %v9291_v56 = vmul.f32 %v16591_v1, %v16591_v1  ;;  %v9221_v33 = vadd.f32 %v9220_v22, %v16591_v1 }
 0x58b   :  { %v8816_v8 = vpop.f32.mrb[154].mxu0 }
 0x58c   :  { %v16634_v31 = vadd.f32 %v11901_v46, %v16403_v44  ;;  %v11902_v25 = vadd.f32 %v8816_v8, %v18927_v18  ;;  %v8818_v50 = vpop.f32.mrb[155].mxu0  ;;  %v9292_v44 = vmul.f32 %v16601_v40, %v16601_v40  ;;  %v18929_v46 = vld [vmem:[#allocation106_spill] sm:$0xff]  ;;  %v9354_v24 = vadd.f32 %v9353_v7, %v9291_v56 }
 0x58d   :  { %v9222_v41 = vadd.f32 %v9221_v33, %v16601_v40  ;;  %v9294_v7 = vmul.f32 %v16617_v16, %v16617_v16 }
 0x58e   :  { %v16639_v6 = vadd.f32 %v11902_v25, %v16412_v14  ;;  %v9355_v50 = vadd.f32 %v9354_v24, %v9292_v44  ;;  %v9295_v24 = vmul.f32 %v16624_v19, %v16624_v19 }
 0x590   :  { %18928 = vst [vmem:[#allocation68_spill] sm:$0xff] %v16639_v6  ;;  %v9356_v33 = vadd.f32 %v9355_v50, %v9293_v29  ;;  %v9296_v50 = vmul.f32 %v16634_v31, %v16634_v31 }
 0x591   :  { %v8821_v26 = vpop.f32.mrb[156].mxu0 }
 0x592   :  { %v11903_v54 = vadd.f32 %v8821_v26, %v18929_v46  ;;  %v8823_v8 = vpop.f32.mrb[157].mxu0  ;;  %v9223_v26 = vadd.f32 %v9222_v41, %v16607_v5  ;;  %v18932_v46 = vld [vmem:[#allocation119_spill] sm:$0xff]  ;;  %v9357_v44 = vadd.f32 %v9356_v33, %v9294_v7 }
 0x593   :  { %v8824_v18 = vpop.f32.mrb[158].mxu0 }
 0x594   :  { %v16649_v14 = vadd.f32 %v11903_v54, %v16398_v47  ;;  %v11904_v48 = vadd.f32 %v8824_v18, %v18930_v53  ;;  %v8826_v25 = vpop.f32.mrb[159].mxu0  ;;  %v9224_v47 = vadd.f32 %v9223_v26, %v16617_v16  ;;  %v18933_v53 = vld [vmem:[#allocation118_spill] sm:$0xff]  ;;  %v9358_v26 = vadd.f32 %v9357_v44, %v9295_v24  ;;  %v18935_v24 = vld [vmem:[#allocation105_spill] sm:$0xff] }
 0x596   :  { %v16655_v22 = vadd.f32 %v11904_v48, %v16409_v30  ;;  %v9225_v25 = vadd.f32 %v9224_v47, %v16624_v19  ;;  %v9359_v33 = vadd.f32 %v9358_v26, %v9296_v50  ;;  %v12410_v47 = vld [vmem:[#allocation10 + $0x30] sm:$0xff]  }
 0x598   :  { %18931 = vst [vmem:[#allocation62_spill] sm:$0xff] %v16655_v22  ;;  %v9226_v7 = vadd.f32 %v9225_v25, %v16634_v31 }
 0x599   :  { %v8829_v56 = vpop.f32.mrb[160].mxu0 }
 0x59a   :  { %v11905_v54 = vadd.f32 %v8829_v56, %v18932_v46  ;;  %v8831_v8 = vpop.f32.mrb[161].mxu0  ;;  %v18934_v46 = vld [vmem:[#allocation109_spill] sm:$0xff] }
 0x59b   :  { %v8832_v18 = vpop.f32.mrb[162].mxu0 }
 0x59c   :  { %v16665_v30 = vadd.f32 %v11905_v54, %v16426_v23  ;;  %v11906_v41 = vadd.f32 %v8832_v18, %v18933_v53  ;;  %v8834_v48 = vpop.f32.mrb[163].mxu0  ;;  %v9297_v23 = vmul.f32 %v16639_v6, %v16639_v6  ;;  %v12409_v53 = vld [vmem:[#allocation10 + $0x28] sm:$0xff]  }
 0x59d   :  { %v9227_v48 = vadd.f32 %v9226_v7, %v16639_v6  ;;  %11755 = vmatprep.subr.bf16.mxu1 %v12409_v53 }
 0x59e   :  { %v16672_v29 = vadd.f32 %v11906_v41, %v16436_v3  ;;  %v9298_v3 = vmul.f32 %v16649_v14, %v16649_v14  ;;  %v9360_v50 = vadd.f32 %v9359_v33, %v9297_v23  ;;  %11756 = vmatpush3.bf16.msra.mxu1 %v12409_v53 }
 0x59f   :  { %v9228_v26 = vadd.f32 %v9227_v48, %v16649_v14  ;;  %11757 = vmatprep.subr.bf16.mxu1 %v12410_v47 }
 0x5a0   :  { %v9361_v7 = vadd.f32 %v9360_v50, %v9298_v3 }
 0x5a1   :  { %v8837_v56 = vpop.f32.mrb[164].mxu0 }
 0x5a2   :  { %v11907_v54 = vadd.f32 %v8837_v56, %v18934_v46  ;;  %v8839_v8 = vpop.f32.mrb[165].mxu0  ;;  %v12411_v46 = vld [vmem:[#allocation10 + $0x38] sm:$0xff]   ;;  %11758 = vmatpush3.bf16.msra.mxu1 %v12410_v47 }
 0x5a3   :  { %v8840_v18 = vpop.f32.mrb[166].mxu0  ;;  %v9299_v8 = vmul.f32 %v16655_v22, %v16655_v22  ;;  %11759 = vmatprep.subr.bf16.mxu1 %v12411_v46 }
 0x5a4   :  { %v16682_v44 = vadd.f32 %v11907_v54, %v16423_v12  ;;  %v11908_v41 = vadd.f32 %v8840_v18, %v18935_v24  ;;  %v8842_v25 = vpop.f32.mrb[167].mxu0  ;;  %v9229_v12 = vadd.f32 %v9228_v26, %v16655_v22  ;;  %v9300_v54 = vmul.f32 %v16665_v30, %v16665_v30  ;;  %v18936_v18 = vld [vmem:[#allocation107_spill] sm:$0xff]  ;;  %v18937_v24 = vld [vmem:[#allocation112_spill] sm:$0xff] }
 0x5a5   :  { %v9301_v26 = vmul.f32 %v16672_v29, %v16672_v29 }
 0x5a6   :  { %v16687_v56 = vadd.f32 %v11908_v41, %v16432_v63  ;;  %v9362_v63 = vadd.f32 %v9361_v7, %v9299_v8  ;;  %v9230_v53 = vadd.f32 %v9229_v12, %v16665_v30  ;;  %11760 = vmatpush3.bf16.msra.mxu1 %v12411_v46  ;;  %v9302_v47 = vmul.f32 %v16682_v44, %v16682_v44  ;;  %v18938_v12 = vld [vmem:[#allocation121_spill] sm:$0xff]  ;;  %v18939_v46 = vld [vmem:[#allocation110_spill] sm:$0xff] }
 0x5a8   :  { %v9363_v50 = vadd.f32 %v9362_v63, %v9300_v54 }
 0x5a9   :  { %v8845_v6 = vpop.f32.mrb[168].mxu0 }
 0x5aa   :  { %v11909_v33 = vadd.f32 %v8845_v6, %v18936_v18  ;;  %v8847_v23 = vpop.f32.mrb[169].mxu0  ;;  %v9231_v6 = vadd.f32 %v9230_v53, %v16672_v29  ;;  %v9364_v8 = vadd.f32 %v9363_v50, %v9301_v26 }
 0x5ab   :  { %v8848_v48 = vpop.f32.mrb[170].mxu0 }
 0x5ac   :  { %v16697_v3 = vadd.f32 %v11909_v33, %v16450_v15  ;;  %v11910_v41 = vadd.f32 %v8848_v48, %v18937_v24  ;;  %v8850_v25 = vpop.f32.mrb[171].mxu0  ;;  %v9232_v15 = vadd.f32 %v9231_v6, %v16682_v44  ;;  %v9365_v23 = vadd.f32 %v9364_v8, %v9302_v47 }
 0x5ad   :  { %v9303_v48 = vmul.f32 %v16687_v56, %v16687_v56 }
 0x5ae   :  { %v16703_v22 = vadd.f32 %v11910_v41, %v16461_v62  ;;  %v9233_v24 = vadd.f32 %v9232_v15, %v16687_v56  ;;  %v9304_v41 = vmul.f32 %v16697_v3, %v16697_v3 }
 0x5af   :  { %v9366_v50 = vadd.f32 %v9365_v23, %v9303_v48 }
 0x5b0   :  { %v9234_v26 = vadd.f32 %v9233_v24, %v16697_v3 }
 0x5b1   :  { %v8853_v7 = vpop.f32.mrb[172].mxu0  ;;  %v9367_v47 = vadd.f32 %v9366_v50, %v9304_v41 }
 0x5b2   :  { %v11911_v18 = vadd.f32 %v8853_v7, %v18938_v12  ;;  %v8855_v33 = vpop.f32.mrb[173].mxu0  ;;  %v18940_v7 = vld [vmem:[#allocation116_spill] sm:$0xff]  ;;  %v9235_v15 = vadd.f32 %v9234_v26, %v16703_v22 }
 0x5b3   :  { %v8856_v54 = vpop.f32.mrb[174].mxu0 }
 0x5b4   :  { %v16713_v62 = vadd.f32 %v11911_v18, %v16446_v34  ;;  %v11912_v63 = vadd.f32 %v8856_v54, %v18939_v46  ;;  %v8858_v53 = vpop.f32.mrb[175].mxu0  ;;  %v9305_v34 = vmul.f32 %v16703_v22, %v16703_v22  ;;  %v18941_v54 = vld [vmem:[#allocation123_spill] sm:$0xff] }
 0x5b6   :  { %v16720_v25 = vadd.f32 %v11912_v63, %v16456_v55  ;;  %v9306_v33 = vmul.f32 %v16713_v62, %v16713_v62  ;;  %v9368_v46 = vadd.f32 %v9367_v47, %v9305_v34  ;;  %v9236_v63 = vadd.f32 %v9235_v15, %v16713_v62 }
 0x5b8   :  { %v9369_v24 = vadd.f32 %v9368_v46, %v9306_v33  ;;  %v9307_v41 = vmul.f32 %v16720_v25, %v16720_v25  ;;  %v9237_v26 = vadd.f32 %v9236_v63, %v16720_v25 }
 0x5b9   :  { %v8861_v6 = vpop.f32.mrb[176].mxu0 }
 0x5ba   :  { %v11913_v8 = vadd.f32 %v8861_v6, %v18940_v7  ;;  %v8863_v12 = vpop.f32.mrb[177].mxu0  ;;  %v18942_v6 = vld [vmem:[#allocation125_spill] sm:$0xff]  ;;  %v9370_v47 = vadd.f32 %v9369_v24, %v9307_v41 }
 0x5bb   :  { %v8864_v18 = vpop.f32.mrb[178].mxu0 }
 0x5bc   :  { %v16730_v55 = vadd.f32 %v11913_v8, %v16475_v43  ;;  %v11914_v23 = vadd.f32 %v8864_v18, %v18941_v54  ;;  %v8866_v48 = vpop.f32.mrb[179].mxu0  ;;  %v18944_v18 = vld [vmem:[#allocation122_spill] sm:$0xff] }
 0x5be   :  { %v16735_v53 = vadd.f32 %v11914_v23, %v16484_v11  ;;  %v9308_v43 = vmul.f32 %v16730_v55, %v16730_v55  ;;  %v9238_v34 = vadd.f32 %v9237_v26, %v16730_v55 }
 0x5c0   :  { %v9371_v54 = vadd.f32 %v9370_v47, %v9308_v43  ;;  %v9309_v23 = vmul.f32 %v16735_v53, %v16735_v53  ;;  %v9239_v46 = vadd.f32 %v9238_v34, %v16735_v53 }
 0x5c1   :  { %v8869_v50 = vpop.f32.mrb[180].mxu0 }
 0x5c2   :  { %v11915_v7 = vadd.f32 %v8869_v50, %v18942_v6  ;;  %v8871_v8 = vpop.f32.mrb[181].mxu0  ;;  %v9372_v41 = vadd.f32 %v9371_v54, %v9309_v23  ;;  %v18946_v50 = vld [vmem:[#allocation124_spill] sm:$0xff] }
 0x5c3   :  { %v8872_v12 = vpop.f32.mrb[182].mxu0 }
 0x5c4   :  { %v16745_v11 = vadd.f32 %v11915_v7, %v16470_v9  ;;  %v11916_v15 = vadd.f32 %v8872_v12, %v18944_v18  ;;  %v8874_v33 = vpop.f32.mrb[183].mxu0  ;;  %v18947_v12 = vld [vmem:[#allocation127_spill] sm:$0xff] }
 0x5c6   :  { %18943 = vst [vmem:[#allocation66_spill] sm:$0xff] %v16745_v11  ;;  %v16751_v48 = vadd.f32 %v11916_v15, %v16481_v10  ;;  %v9310_v63 = vmul.f32 %v16745_v11, %v16745_v11  ;;  %v9240_v9 = vadd.f32 %v9239_v46, %v16745_v11 }
 0x5c8   :  { %18945 = vst [vmem:[#allocation72_spill] sm:$0xff] %v16751_v48  ;;  %v9373_v43 = vadd.f32 %v9372_v41, %v9310_v63  ;;  %v9311_v8 = vmul.f32 %v16751_v48, %v16751_v48  ;;  %v9241_v18 = vadd.f32 %v9240_v9, %v16751_v48  ;;  %v18950_v41 = vld [vmem:[#allocation28_spill] sm:$0xff] }
 0x5c9   :  { %v8877_v24 = vpop.f32.mrb[184].mxu0 }
 0x5ca   :  { %v11917_v26 = vadd.f32 %v8877_v24, %v18946_v50  ;;  %v8879_v6 = vpop.f32.mrb[185].mxu0  ;;  %v9374_v23 = vadd.f32 %v9373_v43, %v9311_v8 }
 0x5cb   :  { %v8880_v7 = vpop.f32.mrb[186].mxu0 }
 0x5cc   :  { %v11918_v10 = vadd.f32 %v8880_v7, %v18947_v12  ;;  %v16762_v47 = vadd.f32 %v11917_v26, %v16528_v35  ;;  %v8882_v34 = vpop.f32.mrb[187].mxu0  ;;  %v18951_v7 = vld [vmem:[#allocation126_spill] sm:$0xff] }
 0x5ce   :  { %18948 = vst [vmem:[#allocation75_spill] sm:$0xff] %v16762_v47  ;;  %v9312_v15 = vmul.f32 %v16762_v47, %v16762_v47  ;;  %v16768_v33 = vadd.f32 %v11918_v10, %v16539_v45  ;;  %v9242_v54 = vadd.f32 %v9241_v18, %v16762_v47 }
 0x5d0   :  { %18949 = vst [vmem:[#allocation70_spill] sm:$0xff] %v16768_v33  ;;  %v9375_v63 = vadd.f32 %v9374_v23, %v9312_v15  ;;  %v9313_v24 = vmul.f32 %v16768_v33, %v16768_v33  ;;  %v9243_v9 = vadd.f32 %v9242_v54, %v16768_v33 }
 0x5d1   :  { %v8885_v46 = vpop.f32.mrb[188].mxu0 }
 0x5d2   :  { %v11919_v35 = vadd.f32 %v8885_v46, %v18950_v41  ;;  %v8887_v50 = vpop.f32.mrb[189].mxu0  ;;  %v9376_v10 = vadd.f32 %v9375_v63, %v9313_v24 }
 0x5d3   :  { %v8888_v26 = vpop.f32.mrb[190].mxu0 }
 0x5d4   :  { %v9175_v6 = vadd.f32 %v11919_v35, %v16526_v60  ;;  %v11920_v12 = vadd.f32 %v8888_v26, %v18951_v7  ;;  %v8890_v45 = vpop.f32.mrb[191].mxu0 }
 0x5d6   :  { %v9244_v34 = vadd.f32 %v9243_v9, %v9175_v6  ;;  %v9314_v18 = vmul.f32 %v9175_v6, %v9175_v6  ;;  %v9178_v43 = vadd.f32 %v11920_v12, %v16537_v2 }
 0x5d8   :  { %v9377_v8 = vadd.f32 %v9376_v10, %v9314_v18  ;;  %v9245_v15 = vadd.f32 %v9244_v34, %v9178_v43  ;;  %v9315_v23 = vmul.f32 %v9178_v43, %v9178_v43  ;;  %v18952_v18 = vld [vmem:[#allocation111_spill] sm:$0xff] }
 0x5da   :  { %v9246_v47 = vrot.slane %v9245_v15, 4  ;;  %v9378_v48 = vadd.f32 %v9377_v8, %v9315_v23 }
 0x5dc   :  { %v9247_v46 = vadd.f32 %v9246_v47, %v9245_v15  ;;  %v9379_v41 = vrot.slane %v9378_v48, 4  ;;  %v9181_v47 = vld [vmem:[%s18235_s5] sm:$0x1] }
 0x5de   :  { %v9248_v50 = vrot.slane %v9247_v46, 2  ;;  %v9380_v11 = vadd.f32 %v9379_v41, %v9378_v48  ;;  %v18953_v41 = vld [vmem:[#allocation27_spill] sm:$0xff] }
 0x5e0   :  { %v9249_v54 = vadd.f32 %v9248_v50, %v9247_v46  ;;  %v9381_v33 = vrot.slane %v9380_v11, 2 }
 0x5e2   :  { %v9250_v60 = vrot.slane %v9249_v54, 1  ;;  %v9382_v35 = vadd.f32 %v9381_v33, %v9380_v11  ;;  %v9182_v11 = vld [vmem:[%s18236_s6] sm:$0x1] }
 0x5e4   :  { %v9251_v26 = vadd.f32 %v9250_v60, %v9249_v54  ;;  %v9383_v7 = vrot.slane %v9382_v35, 1  ;;  %v18954_v54 = vld [vmem:[#allocation19_spill] sm:$0xff] }
 0x5e6   :  { %v9384_v63 = vadd.f32 %v9383_v7, %v9382_v35  ;;  %v9385_v24 = vmul.f32 0.001953125, %v9251_v26  ;;  %v18955_v35 = vld [vmem:[#allocation21_spill] sm:$0xff]  ;;  %v18956_v7 = vld [vmem:[#allocation18_spill] sm:$0xff] }
 0x5e8   :  { %v9386_v9 = vmul.f32 0.001953125, %v9384_v63  ;;  %v9387_v45 = vmul.f32 %v9385_v24, %v9385_v24 }
 0x5ea   :  { %v9388_v2 = vsub.f32 %v9386_v9, %v9387_v45  ;;  %v18958_v9 = vld [vmem:[#allocation23_spill] sm:$0xff] }
 0x5ec   :  { %v9389_v12 = vmax.f32 %v9388_v2, 0.0 }
 0x5ee   :  { %v9390_v10 = vadd.f32 1e-05, %v9389_v12  ;;  %v18959_v12 = vld [vmem:[#allocation25_spill] sm:$0xff] }
 0x5f0   :  { %12416 = vrsqrt.f32 %v9390_v10 }
 0x5fa   :  { %v12417_v34 = vpop.eup %12416 }
 0x5fb   :  { %v9392_v48 = vmul.f32 %v12417_v34, %v9181_v47  ;;  %v18960_v34 = vld [vmem:[#allocation22_spill] sm:$0xff] }
 0x5fd   :  { %v9393_v33 = vmul.f32 %v9392_v48, %v9385_v24  ;;  %v16785_v8 = vrot.slane %v9392_v48, %v18952_v18  ;;  %v18957_v24 = vld [vmem:[#allocation20_spill] sm:$0xff] }
 0x5ff   :  { %v9394_v15 = vsub.f32 %v9182_v11, %v9393_v33  ;;  %v9461_v23 = vmul.f32 %v16785_v8, %v9175_v6  ;;  %v9462_v46 = vmul.f32 %v16785_v8, %v9178_v43  ;;  %v16791_v50 = vmul.f32 %v16785_v8, %v18953_v41  ;;  %v18961_v11 = vld [vmem:[#allocation24_spill] sm:$0xff] }
 0x600   :  { %v16795_v60 = vmul.f32 %v16785_v8, %v18954_v54  ;;  %v16799_v26 = vmul.f32 %v16785_v8, %v18955_v35  ;;  %v16803_v63 = vmul.f32 %v16785_v8, %v18956_v7  ;;  %v16807_v6 = vmul.f32 %v16785_v8, %v18957_v24  ;;  %v18963_v35 = vld [vmem:[#allocation44_spill] sm:$0xff] }
 0x601   :  { %v16810_v43 = vrot.slane %v9394_v15, %v18952_v18  ;;  %v16814_v45 = vmul.f32 %v16785_v8, %v18958_v9  ;;  %v16818_v2 = vmul.f32 %v16785_v8, %v16277_v28  ;;  %v16822_v10 = vmul.f32 %v16785_v8, %v18959_v12  ;;  %v18962_v15 = vld [vmem:[#allocation40_spill] sm:$0xff] }
 0x602   :  { %v16826_v47 = vmul.f32 %v16785_v8, %v16293_v4  ;;  %v16830_v48 = vmul.f32 %v16785_v8, %v18960_v34  ;;  %v9409_v33 = vmul.f32 %v16785_v8, %v18961_v11  ;;  %v9410_v41 = vmul.f32 %v16785_v8, %v18962_v15  ;;  %v18964_v4 = vld [vmem:[#allocation38_spill] sm:$0xff]  ;;  %v18969_v18 = vld [vmem:[#allocation60_spill] sm:$0xff] }
 0x603   :  { %v9531_v28 = vadd.f32 %v16810_v43, %v9461_v23  ;;  %v9532_v54 = vadd.f32 %v16810_v43, %v9462_v46  ;;  %v16840_v7 = vmul.f32 %v16785_v8, %v18963_v35  ;;  %v16844_v24 = vmul.f32 %v16785_v8, %v18964_v4  ;;  %v18968_v4 = vld [vmem:[#allocation56_spill] sm:$0xff] }
 0x604   :  { %v9413_v9 = vmul.f32 %v16785_v8, %v16338_v51  ;;  %v9414_v12 = vmul.f32 %v16785_v8, %v16346_v17  ;;  %v16852_v34 = vmul.f32 %v16785_v8, %v16354_v21  ;;  %v16856_v23 = vmul.f32 %v16785_v8, %v16364_v13  ;;  %v18966_v17 = vld [vmem:[#allocation50_spill] sm:$0xff] }
 0x605   :  { %v9595_v46 = vmax.f32 %v9531_v28, 0.0  ;;  %v9596_v11 = vmax.f32 %v9532_v54, 0.0  ;;  %v9417_v15 = vmul.f32 %v16785_v8, %v16381_v36  ;;  %v9418_v35 = vmul.f32 %v16785_v8, %v16392_v61 }
 0x606   :  { %v16864_v51 = vmul.f32 %v16785_v8, %v16406_v38  ;;  %v16868_v21 = vmul.f32 %v16785_v8, %v18966_v17  ;;  %v9421_v13 = vmul.f32 %v16785_v8, %v18968_v4  ;;  %v9422_v28 = vmul.f32 %v16785_v8, %v18969_v18  ;;  %v18971_v17 = vld [vmem:[#allocation54_spill] sm:$0xff]  ;;  %v18973_v18 = vld [vmem:[#allocation64_spill] sm:$0xff] }
 0x607   :  { %v16874_v54 = vpack.c.bf16 %v9596_v11, %v9595_v46  ;;  %v16878_v36 = vmul.f32 %v16785_v8, %v16453_v20  ;;  %v16882_v61 = vmul.f32 %v16785_v8, %v16464_v49  ;;  %v9425_v38 = vmul.f32 %v16785_v8, %v16478_v39  ;;  %v18972_v4 = vld [vmem:[#allocation58_spill] sm:$0xff] }
 0x608   :  { %18965 = vst [vmem:[#allocation73_spill] sm:$0xff] %v16864_v51  ;;  %18967 = vst [vmem:[#allocation79_spill] sm:$0xff] %v16868_v21  ;;  %v9426_v21 = vmul.f32 %v16785_v8, %v18971_v17  ;;  %v16890_v51 = vmul.f32 %v16785_v8, %v18972_v4  ;;  %v16894_v46 = vmul.f32 %v16785_v8, %v18973_v18  ;;  %v18982_v18 = vld [vmem:[#allocation68_spill] sm:$0xff] }
 0x609   :  { %18970 = vst [vmem:[#allocation81_spill] sm:$0xff] %v16874_v54  ;;  %v9429_v20 = vmul.f32 %v16785_v8, %v16513_v27  ;;  %v9430_v49 = vmul.f32 %v16785_v8, %v16520_v59  ;;  %v16902_v39 = vmul.f32 %v16785_v8, %v16534_v42  ;;  %v16906_v11 = vmul.f32 %v16785_v8, %v16543_v57  ;;  %v18984_v54 = vld [vmem:[#allocation62_spill] sm:$0xff] }
 0x60a   :  { %18974 = vst [vmem:[#allocation78_spill] sm:$0xff] %v16894_v46  ;;  %v9433_v17 = vmul.f32 %v16785_v8, %v16553_v58  ;;  %v9434_v4 = vmul.f32 %v16785_v8, %v16559_v0  ;;  %v16914_v27 = vmul.f32 %v16785_v8, %v16569_v37  ;;  %v16918_v59 = vmul.f32 %v16785_v8, %v16576_v32 }
 0x60b   :  { %18975 = vst [vmem:[#allocation80_spill] sm:$0xff] %v16902_v39  ;;  %18976 = vst [vmem:[#allocation85_spill] sm:$0xff] %v16906_v11  ;;  %v9437_v42 = vmul.f32 %v16785_v8, %v16586_v52  ;;  %v9438_v57 = vmul.f32 %v16785_v8, %v16591_v1  ;;  %v16926_v58 = vmul.f32 %v16785_v8, %v16601_v40 }
 0x60c   :  { %18977 = vst [vmem:[#allocation87_spill] sm:$0xff] %v16914_v27  ;;  %18978 = vst [vmem:[#allocation84_spill] sm:$0xff] %v16918_v59  ;;  %v16930_v0 = vmul.f32 %v16785_v8, %v16607_v5  ;;  %v9441_v37 = vmul.f32 %v16785_v8, %v16617_v16  ;;  %v9442_v32 = vmul.f32 %v16785_v8, %v16624_v19 }
 0x60d   :  { %18979 = vst [vmem:[#allocation86_spill] sm:$0xff] %v16926_v58  ;;  %v16938_v52 = vmul.f32 %v16785_v8, %v16634_v31  ;;  %v16942_v1 = vmul.f32 %v16785_v8, %v18982_v18  ;;  %v9445_v40 = vmul.f32 %v16785_v8, %v16649_v14  ;;  %v9446_v5 = vmul.f32 %v16785_v8, %v18984_v54 }
 0x60e   :  { %18980 = vst [vmem:[#allocation92_spill] sm:$0xff] %v16930_v0  ;;  %v16950_v16 = vmul.f32 %v16785_v8, %v16665_v30  ;;  %v16954_v19 = vmul.f32 %v16785_v8, %v16672_v29  ;;  %v9449_v31 = vmul.f32 %v16785_v8, %v16682_v44  ;;  %v9450_v18 = vmul.f32 %v16785_v8, %v16687_v56 }
 0x60f   :  { %18981 = vst [vmem:[#allocation95_spill] sm:$0xff] %v16938_v52  ;;  %18983 = vst [vmem:[#allocation91_spill] sm:$0xff] %v16942_v1  ;;  %v16962_v14 = vmul.f32 %v16785_v8, %v16697_v3  ;;  %v16966_v54 = vmul.f32 %v16785_v8, %v16703_v22  ;;  %v9453_v30 = vmul.f32 %v16785_v8, %v16713_v62  ;;  %v18991_v3 = vld [vmem:[#allocation66_spill] sm:$0xff] }
 0x610   :  { %18985 = vst [vmem:[#allocation94_spill] sm:$0xff] %v16950_v16  ;;  %18986 = vst [vmem:[#allocation97_spill] sm:$0xff] %v16954_v19  ;;  %v9454_v29 = vmul.f32 %v16785_v8, %v16720_v25  ;;  %v16974_v44 = vmul.f32 %v16785_v8, %v16730_v55  ;;  %v16978_v56 = vmul.f32 %v16785_v8, %v16735_v53  ;;  %v18992_v19 = vld [vmem:[#allocation72_spill] sm:$0xff]  ;;  %v18995_v16 = vld [vmem:[#allocation70_spill] sm:$0xff] }
 0x611   :  { %18987 = vst [vmem:[#allocation100_spill] sm:$0xff] %v16962_v14  ;;  %18988 = vst [vmem:[#allocation96_spill] sm:$0xff] %v16966_v54  ;;  %v9457_v14 = vmul.f32 %v16785_v8, %v18991_v3  ;;  %v9458_v22 = vmul.f32 %v16785_v8, %v18992_v19  ;;  %v18993_v54 = vld [vmem:[#allocation75_spill] sm:$0xff]  ;;  %v16990_v25 = vmul.f32 %v16785_v8, %v18995_v16 }
 0x612   :  { %18989 = vst [vmem:[#allocation99_spill] sm:$0xff] %v16974_v44  ;;  %18990 = vst [vmem:[#allocation102_spill] sm:$0xff] %v16978_v56  ;;  %v16986_v62 = vmul.f32 %v16785_v8, %v18993_v54  ;;  %v9471_v55 = vadd.f32 %v16810_v43, %v16799_v26  ;;  %v9472_v53 = vadd.f32 %v16810_v43, %v16803_v63 }
 0x613   :  { %18996 = vst [vmem:[#allocation101_spill] sm:$0xff] %v16990_v25  ;;  %v9475_v3 = vadd.f32 %v16810_v43, %v16818_v2  ;;  %v9476_v19 = vadd.f32 %v16810_v43, %v16822_v10  ;;  %v9479_v56 = vadd.f32 %v16810_v43, %v9409_v33  ;;  %v9480_v54 = vadd.f32 %v16810_v43, %v9410_v41 }
 0x614   :  { %18994 = vst [vmem:[#allocation104_spill] sm:$0xff] %v16986_v62  ;;  %v9483_v62 = vadd.f32 %v16810_v43, %v9413_v9  ;;  %v9484_v8 = vadd.f32 %v16810_v43, %v9414_v12  ;;  %v9487_v16 = vadd.f32 %v16810_v43, %v9417_v15  ;;  %v9488_v26 = vadd.f32 %v16810_v43, %v9418_v35 }
 0x615   :  { %v9491_v63 = vadd.f32 %v16810_v43, %v9421_v13  ;;  %v9492_v25 = vadd.f32 %v16810_v43, %v9422_v28  ;;  %v9495_v2 = vadd.f32 %v16810_v43, %v9425_v38  ;;  %v9496_v10 = vadd.f32 %v16810_v43, %v9426_v21 }
 0x616   :  { %v9499_v33 = vadd.f32 %v16810_v43, %v9429_v20  ;;  %v9500_v41 = vadd.f32 %v16810_v43, %v9430_v49  ;;  %v9503_v9 = vadd.f32 %v16810_v43, %v9433_v17  ;;  %v9504_v12 = vadd.f32 %v16810_v43, %v9434_v4 }
 0x617   :  { %v9507_v15 = vadd.f32 %v16810_v43, %v9437_v42  ;;  %v9508_v35 = vadd.f32 %v16810_v43, %v9438_v57  ;;  %v9511_v13 = vadd.f32 %v16810_v43, %v9441_v37  ;;  %v9512_v28 = vadd.f32 %v16810_v43, %v9442_v32 }
 0x618   :  { %v9515_v38 = vadd.f32 %v16810_v43, %v9445_v40  ;;  %v9516_v21 = vadd.f32 %v16810_v43, %v9446_v5  ;;  %v9519_v20 = vadd.f32 %v16810_v43, %v9449_v31  ;;  %v9520_v49 = vadd.f32 %v16810_v43, %v9450_v18 }
 0x619   :  { %v9523_v17 = vadd.f32 %v16810_v43, %v9453_v30  ;;  %v9524_v4 = vadd.f32 %v16810_v43, %v9454_v29  ;;  %v9527_v42 = vadd.f32 %v16810_v43, %v9457_v14  ;;  %v9528_v57 = vadd.f32 %v16810_v43, %v9458_v22 }
 0x61a   :  { %v9535_v44 = vmax.f32 %v9471_v55, 0.0  ;;  %v9536_v37 = vmax.f32 %v9472_v53, 0.0  ;;  %v9539_v1 = vmax.f32 %v9475_v3, 0.0  ;;  %v9540_v32 = vmax.f32 %v9476_v19, 0.0 }
 0x61b   :  { %v9543_v52 = vmax.f32 %v9479_v56, 0.0  ;;  %v9544_v40 = vmax.f32 %v9480_v54, 0.0  ;;  %v9547_v0 = vmax.f32 %v9483_v62, 0.0  ;;  %v9548_v5 = vmax.f32 %v9484_v8, 0.0 }
 0x61c   :  { %v9551_v58 = vmax.f32 %v9487_v16, 0.0  ;;  %v9552_v31 = vmax.f32 %v9488_v26, 0.0  ;;  %v9555_v59 = vmax.f32 %v9491_v63, 0.0  ;;  %v9556_v18 = vmax.f32 %v9492_v25, 0.0 }
 0x61d   :  { %v9559_v27 = vmax.f32 %v9495_v2, 0.0  ;;  %v9560_v30 = vmax.f32 %v9496_v10, 0.0  ;;  %v9563_v11 = vmax.f32 %v9499_v33, 0.0  ;;  %v9564_v29 = vmax.f32 %v9500_v41, 0.0 }
 0x61e   :  { %v9567_v39 = vmax.f32 %v9503_v9, 0.0  ;;  %v9568_v14 = vmax.f32 %v9504_v12, 0.0  ;;  %v9571_v46 = vmax.f32 %v9507_v15, 0.0  ;;  %v9572_v22 = vmax.f32 %v9508_v35, 0.0 }
 0x61f   :  { %v9575_v55 = vmax.f32 %v9511_v13, 0.0  ;;  %v9576_v53 = vmax.f32 %v9512_v28, 0.0  ;;  %v9579_v3 = vmax.f32 %v9515_v38, 0.0  ;;  %v9580_v19 = vmax.f32 %v9516_v21, 0.0 }
 0x620   :  { %v9583_v56 = vmax.f32 %v9519_v20, 0.0  ;;  %v9584_v54 = vmax.f32 %v9520_v49, 0.0  ;;  %v9587_v62 = vmax.f32 %v9523_v17, 0.0  ;;  %v9588_v8 = vmax.f32 %v9524_v4, 0.0 }
 0x621   :  { %v9591_v16 = vmax.f32 %v9527_v42, 0.0  ;;  %v9592_v26 = vmax.f32 %v9528_v57, 0.0  ;;  %v9598_v63 = vpack.c.bf16 %v9536_v37, %v9535_v44  ;;  %v17026_v25 = vpack.c.bf16 %v9540_v32, %v9539_v1  ;;  %v18997_v37 = vld [vmem:[#allocation73_spill] sm:$0xff] }
 0x622   :  { %v17028_v2 = vpack.c.bf16 %v9544_v40, %v9543_v52  ;;  %v17030_v10 = vpack.c.bf16 %v9548_v5, %v9547_v0  ;;  %v17032_v33 = vpack.c.bf16 %v9552_v31, %v9551_v58  ;;  %v17034_v41 = vpack.c.bf16 %v9556_v18, %v9555_v59  ;;  %v18998_v40 = vld [vmem:[#allocation79_spill] sm:$0xff] }
 0x623   :  { %v17036_v9 = vpack.c.bf16 %v9560_v30, %v9559_v27  ;;  %v17038_v12 = vpack.c.bf16 %v9564_v29, %v9563_v11  ;;  %v17040_v15 = vpack.c.bf16 %v9568_v14, %v9567_v39  ;;  %v17042_v35 = vpack.c.bf16 %v9572_v22, %v9571_v46  ;;  %v18999_v22 = vld [vmem:[#allocation78_spill] sm:$0xff] }
 0x624   :  { %v17044_v13 = vpack.c.bf16 %v9576_v53, %v9575_v55  ;;  %v17046_v1 = vpack.c.bf16 %v9580_v19, %v9579_v3  ;;  %v17048_v52 = vpack.c.bf16 %v9584_v54, %v9583_v56  ;;  %v17050_v0 = vpack.c.bf16 %v9588_v8, %v9587_v62  ;;  %v19000_v53 = vld [vmem:[#allocation80_spill] sm:$0xff]  ;;  %v19001_v54 = vld [vmem:[#allocation85_spill] sm:$0xff] }
 0x625   :  { %v17052_v58 = vpack.c.bf16 %v9592_v26, %v9591_v16  ;;  %v9469_v27 = vadd.f32 %v16810_v43, %v16791_v50  ;;  %v9470_v11 = vadd.f32 %v16810_v43, %v16795_v60  ;;  %v9473_v46 = vadd.f32 %v16810_v43, %v16807_v6  ;;  %v19002_v26 = vld [vmem:[#allocation87_spill] sm:$0xff] }
 0x626   :  { %v9474_v39 = vadd.f32 %v16810_v43, %v16814_v45  ;;  %v9477_v59 = vadd.f32 %v16810_v43, %v16826_v47  ;;  %v9478_v44 = vadd.f32 %v16810_v43, %v16830_v48  ;;  %v9481_v50 = vadd.f32 %v16810_v43, %v16840_v7 }
 0x627   :  { %v9533_v28 = vmax.f32 %v9469_v27, 0.0  ;;  %v9534_v38 = vmax.f32 %v9470_v11, 0.0  ;;  %v9482_v60 = vadd.f32 %v16810_v43, %v16844_v24  ;;  %v9537_v21 = vmax.f32 %v9473_v46, 0.0  ;;  %v19003_v11 = vld [vmem:[#allocation84_spill] sm:$0xff] }
 0x628   :  { %v9538_v20 = vmax.f32 %v9474_v39, 0.0  ;;  %v9541_v6 = vmax.f32 %v9477_v59, 0.0  ;;  %v9542_v49 = vmax.f32 %v9478_v44, 0.0  ;;  %v9545_v45 = vmax.f32 %v9481_v50, 0.0  ;;  %v19004_v39 = vld [vmem:[#allocation86_spill] sm:$0xff] }
 0x629   :  { %v9597_v17 = vpack.c.bf16 %v9534_v38, %v9533_v28  ;;  %v9546_v4 = vmax.f32 %v9482_v60, 0.0  ;;  %v9485_v47 = vadd.f32 %v16810_v43, %v16852_v34  ;;  %v9486_v57 = vadd.f32 %v16810_v43, %v16856_v23  ;;  %v19005_v38 = vld [vmem:[#allocation92_spill] sm:$0xff]  ;;  %v19006_v60 = vld [vmem:[#allocation95_spill] sm:$0xff] }
 0x62a   :  { %v9599_v42 = vpack.c.bf16 %v9538_v20, %v9537_v21  ;;  %v9601_v48 = vpack.c.bf16 %v9542_v49, %v9541_v6  ;;  %v9489_v7 = vadd.f32 %v16810_v43, %v18997_v37  ;;  %v9490_v5 = vadd.f32 %v16810_v43, %v18998_v40  ;;  %v19009_v37 = vld [vmem:[#allocation97_spill] sm:$0xff] }
 0x62b   :  { %11761 = vmatprep.mubr.bf16.mxu1 %v9597_v17  ;;  %v9603_v24 = vpack.c.bf16 %v9546_v4, %v9545_v45  ;;  %v9549_v32 = vmax.f32 %v9485_v47, 0.0  ;;  %v9493_v31 = vadd.f32 %v16810_v43, %v16878_v36  ;;  %v9550_v18 = vmax.f32 %v9486_v57, 0.0  ;;  %v19007_v17 = vld [vmem:[#allocation91_spill] sm:$0xff] }
 0x62c   :  { %11762 = vmatmul.mubr.bf16.vlgmr.msra.gmra.mrb[0].mxu1 %v9598_v63  ;;  %v9553_v34 = vmax.f32 %v9489_v7, 0.0  ;;  %v9494_v30 = vadd.f32 %v16810_v43, %v16882_v61  ;;  %v9497_v23 = vadd.f32 %v16810_v43, %v16890_v51  ;;  %v9554_v29 = vmax.f32 %v9490_v5, 0.0  ;;  %v19010_v5 = vld [vmem:[#allocation100_spill] sm:$0xff] }
 0x62d   :  { %11765 = vmatprep.mubr.bf16.mxu1 %v9599_v42  ;;  %v9557_v14 = vmax.f32 %v9493_v31, 0.0  ;;  %v9498_v55 = vadd.f32 %v16810_v43, %v18999_v22  ;;  %v9501_v3 = vadd.f32 %v16810_v43, %v19000_v53  ;;  %v9605_v19 = vpack.c.bf16 %v9550_v18, %v9549_v32  ;;  %v19008_v42 = vld [vmem:[#allocation94_spill] sm:$0xff]  ;;  %v19011_v18 = vld [vmem:[#allocation96_spill] sm:$0xff] }
 0x62e   :  { %v9558_v36 = vmax.f32 %v9494_v30, 0.0  ;;  %v9561_v56 = vmax.f32 %v9497_v23, 0.0  ;;  %v9502_v62 = vadd.f32 %v16810_v43, %v19001_v54  ;;  %v9607_v8 = vpack.c.bf16 %v9554_v29, %v9553_v34 }
 0x62f   :  { %v9562_v61 = vmax.f32 %v9498_v55, 0.0  ;;  %v9565_v16 = vmax.f32 %v9501_v3, 0.0  ;;  %v9505_v51 = vadd.f32 %v16810_v43, %v19002_v26  ;;  %v9506_v46 = vadd.f32 %v16810_v43, %v19003_v11 }
 0x630   :  { %v9609_v63 = vpack.c.bf16 %v9558_v36, %v9557_v14  ;;  %v9566_v27 = vmax.f32 %v9502_v62, 0.0  ;;  %v9509_v59 = vadd.f32 %v16810_v43, %v19004_v39  ;;  %v9510_v50 = vadd.f32 %v16810_v43, %v19005_v38  ;;  %v19012_v14 = vld [vmem:[#allocation99_spill] sm:$0xff]  ;;  %v19013_v36 = vld [vmem:[#allocation102_spill] sm:$0xff]  ;;  %v19014_v62 = vld [vmem:[#allocation104_spill] sm:$0xff] }
 0x631   :  { %v9611_v44 = vpack.c.bf16 %v9562_v61, %v9561_v56  ;;  %v9569_v28 = vmax.f32 %v9505_v51, 0.0  ;;  %v9513_v21 = vadd.f32 %v16810_v43, %v19006_v60  ;;  %v9570_v6 = vmax.f32 %v9506_v46, 0.0 }
 0x632   :  { %v9613_v20 = vpack.c.bf16 %v9566_v27, %v9565_v16  ;;  %v9573_v49 = vmax.f32 %v9509_v59, 0.0  ;;  %v9514_v45 = vadd.f32 %v16810_v43, %v19007_v17  ;;  %v9574_v4 = vmax.f32 %v9510_v50, 0.0  ;;  %v19015_v16 = vld [vmem:[#allocation101_spill] sm:$0xff] }
 0x633   :  { %v9577_v47 = vmax.f32 %v9513_v21, 0.0  ;;  %v9517_v57 = vadd.f32 %v16810_v43, %v19008_v42  ;;  %v9518_v7 = vadd.f32 %v16810_v43, %v19009_v37  ;;  %v9615_v32 = vpack.c.bf16 %v9570_v6, %v9569_v28 }
 0x634   :  { %11766 = vmatmul.mubr.bf16.gmra.mrb[4].mxu1 %v17026_v25  ;;  %v9578_v40 = vmax.f32 %v9514_v45, 0.0  ;;  %v9521_v31 = vadd.f32 %v16810_v43, %v19010_v5  ;;  %v9522_v34 = vadd.f32 %v16810_v43, %v19011_v18  ;;  %v9617_v30 = vpack.c.bf16 %v9574_v4, %v9573_v49 }
 0x635   :  { %11769 = vmatprep.mubr.bf16.mxu1 %v9601_v48  ;;  %v9581_v23 = vmax.f32 %v9517_v57, 0.0  ;;  %v9582_v29 = vmax.f32 %v9518_v7, 0.0  ;;  %v9525_v22 = vadd.f32 %v16810_v43, %v19012_v14  ;;  %v9526_v25 = vadd.f32 %v16810_v43, %v19013_v36 }
 0x636   :  { %v9619_v55 = vpack.c.bf16 %v9578_v40, %v9577_v47  ;;  %v9585_v53 = vmax.f32 %v9521_v31, 0.0  ;;  %v9586_v3 = vmax.f32 %v9522_v34, 0.0  ;;  %v9529_v61 = vadd.f32 %v16810_v43, %v19014_v62 }
 0x637   :  { %v9621_v56 = vpack.c.bf16 %v9582_v29, %v9581_v23  ;;  %v9589_v54 = vmax.f32 %v9525_v22, 0.0  ;;  %v9530_v48 = vadd.f32 %v16810_v43, %v19015_v16  ;;  %v9590_v51 = vmax.f32 %v9526_v25, 0.0  ;;  %v19016_v43 = vld [vmem:[#allocation81_spill] sm:$0xff] }
 0x638   :  { %v9623_v26 = vpack.c.bf16 %v9586_v3, %v9585_v53  ;;  %v9593_v27 = vmax.f32 %v9529_v61, 0.0 }
 0x639   :  { %v9594_v11 = vmax.f32 %v9530_v48, 0.0  ;;  %v9625_v46 = vpack.c.bf16 %v9590_v51, %v9589_v54 }
 0x63b   :  { %v9627_v39 = vpack.c.bf16 %v9594_v11, %v9593_v27 }
 0x63c   :  { %11770 = vmatmul.mubr.bf16.gmra.mrb[8].mxu1 %v17028_v2 }
 0x63d   :  { %11773 = vmatprep.mubr.bf16.mxu1 %v9603_v24 }
 0x644   :  { %11774 = vmatmul.mubr.bf16.gmra.mrb[12].mxu1 %v17030_v10 }
 0x645   :  { %11777 = vmatprep.mubr.bf16.mxu1 %v9605_v19 }
 0x64c   :  { %11778 = vmatmul.mubr.bf16.gmra.mrb[16].mxu1 %v17032_v33 }
 0x64d   :  { %11781 = vmatprep.mubr.bf16.mxu1 %v9607_v8 }
 0x654   :  { %11782 = vmatmul.mubr.bf16.gmra.mrb[20].mxu1 %v17034_v41 }
 0x655   :  { %11785 = vmatprep.mubr.bf16.mxu1 %v9609_v63 }
 0x65c   :  { %11786 = vmatmul.mubr.bf16.gmra.mrb[24].mxu1 %v17036_v9 }
 0x65d   :  { %11789 = vmatprep.mubr.bf16.mxu1 %v9611_v44 }
 0x664   :  { %11790 = vmatmul.mubr.bf16.gmra.mrb[28].mxu1 %v17038_v12 }
 0x665   :  { %11793 = vmatprep.mubr.bf16.mxu1 %v9613_v20 }
 0x66c   :  { %11794 = vmatmul.mubr.bf16.gmra.mrb[32].mxu1 %v17040_v15 }
 0x66d   :  { %11797 = vmatprep.mubr.bf16.mxu1 %v9615_v32 }
 0x674   :  { %11798 = vmatmul.mubr.bf16.gmra.mrb[36].mxu1 %v17042_v35 }
 0x675   :  { %11801 = vmatprep.mubr.bf16.mxu1 %v9617_v30 }
 0x67c   :  { %11802 = vmatmul.mubr.bf16.gmra.mrb[40].mxu1 %v17044_v13 }
 0x67d   :  { %11805 = vmatprep.mubr.bf16.mxu1 %v9619_v55 }
 0x684   :  { %11806 = vmatmul.mubr.bf16.gmra.mrb[44].mxu1 %v17046_v1 }
 0x685   :  { %11809 = vmatprep.mubr.bf16.mxu1 %v9621_v56 }
 0x68c   :  { %11810 = vmatmul.mubr.bf16.gmra.mrb[48].mxu1 %v17048_v52 }
 0x68d   :  { %11813 = vmatprep.mubr.bf16.mxu1 %v9623_v26 }
 0x694   :  { %11814 = vmatmul.mubr.bf16.gmra.mrb[52].mxu1 %v17050_v0 }
 0x695   :  { %11817 = vmatprep.mubr.bf16.mxu1 %v9625_v46 }
 0x69c   :  { %11818 = vmatmul.mubr.bf16.gmra.mrb[56].mxu1 %v17052_v58 }
 0x69d   :  { %11821 = vmatprep.mubr.bf16.mxu1 %v9627_v39 }
 0x6a4   :  { %11822 = vmatmul.mubr.bf16.gmra.mrb[60].mxu1 %v19016_v43 }
 0x6ff   :  { %v17133_v2 = vpop.f32.mrb[0].mxu1 }
 0x700   :  { %v17135_v10 = vpop.f32.mrb[1].mxu1  ;;  %v10055_v35 = vmul.f32 %v17133_v2, %v17133_v2 }
 0x701   :  { %v17137_v33 = vpop.f32.mrb[2].mxu1  ;;  %v10053_v9 = vmul.f32 %v17135_v10, %v17135_v10 }
 0x702   :  { %v17139_v41 = vpop.f32.mrb[3].mxu1  ;;  %v10056_v52 = vmul.f32 %v17137_v33, %v17137_v33 }
 0x703   :  { %v9984_v12 = vadd.f32 %v17139_v41, %v17135_v10  ;;  %v10054_v15 = vmul.f32 %v17139_v41, %v17139_v41 }
 0x705   :  { %v9985_v13 = vadd.f32 %v17133_v2, %v9984_v12  ;;  %v10117_v1 = vadd.f32 %v10054_v15, %v10053_v9 }
 0x707   :  { %v10118_v0 = vadd.f32 %v10117_v1, %v10055_v35  ;;  %v17152_v58 = vpop.f32.mrb[4].mxu1  ;;  %v9986_v24 = vadd.f32 %v17137_v33, %v9985_v13 }
 0x708   :  { %v17155_v19 = vpop.f32.mrb[5].mxu1  ;;  %v10059_v21 = vmul.f32 %v17152_v58, %v17152_v58 }
 0x709   :  { %v9987_v8 = vadd.f32 %v9986_v24, %v17155_v19  ;;  %v10057_v63 = vmul.f32 %v17155_v19, %v17155_v19  ;;  %v10119_v59 = vadd.f32 %v10118_v0, %v10056_v52  ;;  %v17160_v44 = vpop.f32.mrb[6].mxu1 }
 0x70a   :  { %v17162_v28 = vpop.f32.mrb[7].mxu1  ;;  %v10060_v49 = vmul.f32 %v17160_v44, %v17160_v44 }
 0x70b   :  { %v10120_v38 = vadd.f32 %v10119_v59, %v10057_v63  ;;  %v9988_v50 = vadd.f32 %v9987_v8, %v17162_v28  ;;  %v10058_v60 = vmul.f32 %v17162_v28, %v17162_v28 }
 0x70d   :  { %v9989_v20 = vadd.f32 %v17152_v58, %v9988_v50  ;;  %v10121_v6 = vadd.f32 %v10120_v38, %v10058_v60 }
 0x70f   :  { %v10122_v17 = vadd.f32 %v10121_v6, %v10059_v21  ;;  %v17172_v45 = vpop.f32.mrb[8].mxu1  ;;  %v9990_v4 = vadd.f32 %v17160_v44, %v9989_v20 }
 0x710   :  { %v17175_v47 = vpop.f32.mrb[9].mxu1  ;;  %v10063_v18 = vmul.f32 %v17172_v45, %v17172_v45 }
 0x711   :  { %v9991_v42 = vadd.f32 %v9990_v4, %v17175_v47  ;;  %v10061_v57 = vmul.f32 %v17175_v47, %v17175_v47  ;;  %v10123_v37 = vadd.f32 %v10122_v17, %v10060_v49  ;;  %v17180_v7 = vpop.f32.mrb[10].mxu1 }
 0x712   :  { %v17182_v32 = vpop.f32.mrb[11].mxu1  ;;  %v10064_v23 = vmul.f32 %v17180_v7, %v17180_v7 }
 0x713   :  { %v10124_v40 = vadd.f32 %v10123_v37, %v10061_v57  ;;  %v9992_v5 = vadd.f32 %v9991_v42, %v17182_v32  ;;  %v10062_v31 = vmul.f32 %v17182_v32, %v17182_v32 }
 0x715   :  { %v9993_v34 = vadd.f32 %v17172_v45, %v9992_v5  ;;  %v10125_v30 = vadd.f32 %v10124_v40, %v10062_v31 }
 0x717   :  { %v10126_v29 = vadd.f32 %v10125_v30, %v10063_v18  ;;  %v17192_v14 = vpop.f32.mrb[12].mxu1  ;;  %v9994_v22 = vadd.f32 %v17180_v7, %v9993_v34 }
 0x718   :  { %v17195_v55 = vpop.f32.mrb[13].mxu1  ;;  %v10067_v16 = vmul.f32 %v17192_v14, %v17192_v14 }
 0x719   :  { %v9995_v53 = vadd.f32 %v9994_v22, %v17195_v55  ;;  %v10065_v3 = vmul.f32 %v17195_v55, %v17195_v55  ;;  %v10127_v36 = vadd.f32 %v10126_v29, %v10064_v23  ;;  %v17200_v25 = vpop.f32.mrb[14].mxu1 }
 0x71a   :  { %v17202_v56 = vpop.f32.mrb[15].mxu1  ;;  %v10068_v51 = vmul.f32 %v17200_v25, %v17200_v25 }
 0x71b   :  { %v10128_v54 = vadd.f32 %v10127_v36, %v10065_v3  ;;  %v9996_v62 = vadd.f32 %v9995_v53, %v17202_v56  ;;  %v10066_v61 = vmul.f32 %v17202_v56, %v17202_v56 }
 0x71d   :  { %v9997_v48 = vadd.f32 %v17192_v14, %v9996_v62  ;;  %v10129_v26 = vadd.f32 %v10128_v54, %v10066_v61 }
 0x71f   :  { %v10130_v27 = vadd.f32 %v10129_v26, %v10067_v16  ;;  %v17212_v11 = vpop.f32.mrb[16].mxu1  ;;  %v9998_v46 = vadd.f32 %v17200_v25, %v9997_v48 }
 0x720   :  { %v17215_v39 = vpop.f32.mrb[17].mxu1  ;;  %v10071_v0 = vmul.f32 %v17212_v11, %v17212_v11 }
 0x721   :  { %v9999_v43 = vadd.f32 %v9998_v46, %v17215_v39  ;;  %v10069_v9 = vmul.f32 %v17215_v39, %v17215_v39  ;;  %v10131_v12 = vadd.f32 %v10130_v27, %v10068_v51  ;;  %v17220_v15 = vpop.f32.mrb[18].mxu1 }
 0x722   :  { %v17222_v35 = vpop.f32.mrb[19].mxu1  ;;  %v10072_v63 = vmul.f32 %v17220_v15, %v17220_v15 }
 0x723   :  { %v10132_v13 = vadd.f32 %v10131_v12, %v10069_v9  ;;  %v10000_v1 = vadd.f32 %v9999_v43, %v17222_v35  ;;  %v10070_v52 = vmul.f32 %v17222_v35, %v17222_v35 }
 0x725   :  { %v10001_v24 = vadd.f32 %v17212_v11, %v10000_v1  ;;  %v10133_v8 = vadd.f32 %v10132_v13, %v10070_v52 }
 0x727   :  { %v10134_v59 = vadd.f32 %v10133_v8, %v10071_v0  ;;  %v17232_v38 = vpop.f32.mrb[20].mxu1  ;;  %v10002_v50 = vadd.f32 %v17220_v15, %v10001_v24 }
 0x728   :  { %v17235_v60 = vpop.f32.mrb[21].mxu1  ;;  %v10075_v37 = vmul.f32 %v17232_v38, %v17232_v38 }
 0x729   :  { %v10003_v21 = vadd.f32 %v10002_v50, %v17235_v60  ;;  %v10073_v20 = vmul.f32 %v17235_v60, %v17235_v60  ;;  %v10135_v6 = vadd.f32 %v10134_v59, %v10072_v63  ;;  %v17240_v49 = vpop.f32.mrb[22].mxu1 }
 0x72a   :  { %v17242_v17 = vpop.f32.mrb[23].mxu1  ;;  %v10076_v31 = vmul.f32 %v17240_v49, %v17240_v49 }
 0x72b   :  { %v10136_v4 = vadd.f32 %v10135_v6, %v10073_v20  ;;  %v10004_v42 = vadd.f32 %v10003_v21, %v17242_v17  ;;  %v10074_v57 = vmul.f32 %v17242_v17, %v17242_v17 }
 0x72d   :  { %v10005_v40 = vadd.f32 %v17232_v38, %v10004_v42  ;;  %v10137_v5 = vadd.f32 %v10136_v4, %v10074_v57 }
 0x72f   :  { %v10138_v18 = vadd.f32 %v10137_v5, %v10075_v37  ;;  %v17252_v34 = vpop.f32.mrb[24].mxu1  ;;  %v10006_v30 = vadd.f32 %v17240_v49, %v10005_v40 }
 0x730   :  { %v17255_v23 = vpop.f32.mrb[25].mxu1  ;;  %v10079_v16 = vmul.f32 %v17252_v34, %v17252_v34 }
 0x731   :  { %v10007_v29 = vadd.f32 %v10006_v30, %v17255_v23  ;;  %v10077_v22 = vmul.f32 %v17255_v23, %v17255_v23  ;;  %v10139_v53 = vadd.f32 %v10138_v18, %v10076_v31  ;;  %v17260_v3 = vpop.f32.mrb[26].mxu1 }
 0x732   :  { %v17262_v36 = vpop.f32.mrb[27].mxu1  ;;  %v10080_v51 = vmul.f32 %v17260_v3, %v17260_v3 }
 0x733   :  { %v10140_v54 = vadd.f32 %v10139_v53, %v10077_v22  ;;  %v10008_v62 = vadd.f32 %v10007_v29, %v17262_v36  ;;  %v10078_v61 = vmul.f32 %v17262_v36, %v17262_v36 }
 0x735   :  { %v10009_v48 = vadd.f32 %v17252_v34, %v10008_v62  ;;  %v10141_v26 = vadd.f32 %v10140_v54, %v10078_v61 }
 0x737   :  { %v10142_v27 = vadd.f32 %v10141_v26, %v10079_v16  ;;  %v17272_v46 = vpop.f32.mrb[28].mxu1  ;;  %v10010_v43 = vadd.f32 %v17260_v3, %v10009_v48 }
 0x738   :  { %v17275_v9 = vpop.f32.mrb[29].mxu1  ;;  %v10083_v59 = vmul.f32 %v17272_v46, %v17272_v46 }
 0x739   :  { %v10011_v12 = vadd.f32 %v10010_v43, %v17275_v9  ;;  %v10081_v13 = vmul.f32 %v17275_v9, %v17275_v9  ;;  %v10143_v1 = vadd.f32 %v10142_v27, %v10080_v51  ;;  %v17280_v52 = vpop.f32.mrb[30].mxu1 }
 0x73a   :  { %v17282_v0 = vpop.f32.mrb[31].mxu1  ;;  %v10084_v20 = vmul.f32 %v17280_v52, %v17280_v52 }
 0x73b   :  { %v10144_v24 = vadd.f32 %v10143_v1, %v10081_v13  ;;  %v10012_v8 = vadd.f32 %v10011_v12, %v17282_v0  ;;  %v10082_v63 = vmul.f32 %v17282_v0, %v17282_v0 }
 0x73d   :  { %v10013_v50 = vadd.f32 %v17272_v46, %v10012_v8  ;;  %v10145_v21 = vadd.f32 %v10144_v24, %v10082_v63 }
 0x73f   :  { %v10146_v6 = vadd.f32 %v10145_v21, %v10083_v59  ;;  %v17292_v4 = vpop.f32.mrb[32].mxu1  ;;  %v10014_v42 = vadd.f32 %v17280_v52, %v10013_v50 }
 0x740   :  { %v17295_v57 = vpop.f32.mrb[33].mxu1  ;;  %v10087_v53 = vmul.f32 %v17292_v4, %v17292_v4 }
 0x741   :  { %v10015_v37 = vadd.f32 %v10014_v42, %v17295_v57  ;;  %v10085_v40 = vmul.f32 %v17295_v57, %v17295_v57  ;;  %v10147_v5 = vadd.f32 %v10146_v6, %v10084_v20  ;;  %v17300_v31 = vpop.f32.mrb[34].mxu1 }
 0x742   :  { %v17302_v18 = vpop.f32.mrb[35].mxu1  ;;  %v10088_v61 = vmul.f32 %v17300_v31, %v17300_v31 }
 0x743   :  { %v10148_v30 = vadd.f32 %v10147_v5, %v10085_v40  ;;  %v10016_v29 = vadd.f32 %v10015_v37, %v17302_v18  ;;  %v10086_v22 = vmul.f32 %v17302_v18, %v17302_v18 }
 0x745   :  { %v10017_v54 = vadd.f32 %v17292_v4, %v10016_v29  ;;  %v10149_v62 = vadd.f32 %v10148_v30, %v10086_v22 }
 0x747   :  { %v10150_v16 = vadd.f32 %v10149_v62, %v10087_v53  ;;  %v17312_v48 = vpop.f32.mrb[36].mxu1  ;;  %v10018_v26 = vadd.f32 %v17300_v31, %v10017_v54 }
 0x748   :  { %19017 = vst [vmem:[#allocation55_spill] sm:$0xff] %v17312_v48  ;;  %v17315_v51 = vpop.f32.mrb[37].mxu1  ;;  %v10091_v59 = vmul.f32 %v17312_v48, %v17312_v48 }
 0x749   :  { %v10019_v27 = vadd.f32 %v10018_v26, %v17315_v51  ;;  %v10089_v43 = vmul.f32 %v17315_v51, %v17315_v51  ;;  %v10151_v12 = vadd.f32 %v10150_v16, %v10088_v61  ;;  %v17320_v13 = vpop.f32.mrb[38].mxu1 }
 0x74a   :  { %19018 = vst [vmem:[#allocation59_spill] sm:$0xff] %v17320_v13  ;;  %v17322_v1 = vpop.f32.mrb[39].mxu1  ;;  %v10092_v20 = vmul.f32 %v17320_v13, %v17320_v13 }
 0x74b   :  { %v10152_v24 = vadd.f32 %v10151_v12, %v10089_v43  ;;  %v10020_v8 = vadd.f32 %v10019_v27, %v17322_v1  ;;  %v10090_v63 = vmul.f32 %v17322_v1, %v17322_v1 }
 0x74d   :  { %v10021_v50 = vadd.f32 %v17312_v48, %v10020_v8  ;;  %v10153_v21 = vadd.f32 %v10152_v24, %v10090_v63 }
 0x74f   :  { %v10154_v6 = vadd.f32 %v10153_v21, %v10091_v59  ;;  %v17332_v42 = vpop.f32.mrb[40].mxu1  ;;  %v10022_v37 = vadd.f32 %v17320_v13, %v10021_v50 }
 0x750   :  { %19019 = vst [vmem:[#allocation65_spill] sm:$0xff] %v17332_v42  ;;  %v17335_v40 = vpop.f32.mrb[41].mxu1  ;;  %v10095_v16 = vmul.f32 %v17332_v42, %v17332_v42 }
 0x751   :  { %19020 = vst [vmem:[#allocation35_spill] sm:$0xff] %v17335_v40  ;;  %v10023_v5 = vadd.f32 %v10022_v37, %v17335_v40  ;;  %v10093_v30 = vmul.f32 %v17335_v40, %v17335_v40  ;;  %v10155_v29 = vadd.f32 %v10154_v6, %v10092_v20  ;;  %v17340_v22 = vpop.f32.mrb[42].mxu1 }
 0x752   :  { %19021 = vst [vmem:[#allocation30_spill] sm:$0xff] %v17340_v22  ;;  %v17342_v53 = vpop.f32.mrb[43].mxu1  ;;  %v10096_v43 = vmul.f32 %v17340_v22, %v17340_v22 }
 0x753   :  { %19022 = vst [vmem:[#allocation32_spill] sm:$0xff] %v17342_v53  ;;  %v10156_v54 = vadd.f32 %v10155_v29, %v10093_v30  ;;  %v10024_v62 = vadd.f32 %v10023_v5, %v17342_v53  ;;  %v10094_v61 = vmul.f32 %v17342_v53, %v17342_v53 }
 0x755   :  { %v10025_v26 = vadd.f32 %v17332_v42, %v10024_v62  ;;  %v10157_v27 = vadd.f32 %v10156_v54, %v10094_v61 }
 0x757   :  { %v10158_v12 = vadd.f32 %v10157_v27, %v10095_v16  ;;  %v17352_v24 = vpop.f32.mrb[44].mxu1  ;;  %v10026_v8 = vadd.f32 %v17340_v22, %v10025_v26 }
 0x758   :  { %19023 = vst [vmem:[#allocation37_spill] sm:$0xff] %v17352_v24  ;;  %v17355_v63 = vpop.f32.mrb[45].mxu1  ;;  %v10099_v29 = vmul.f32 %v17352_v24, %v17352_v24 }
 0x759   :  { %19024 = vst [vmem:[#allocation34_spill] sm:$0xff] %v17355_v63  ;;  %v10027_v59 = vadd.f32 %v10026_v8, %v17355_v63  ;;  %v10097_v50 = vmul.f32 %v17355_v63, %v17355_v63  ;;  %v10159_v21 = vadd.f32 %v10158_v12, %v10096_v43  ;;  %v17360_v20 = vpop.f32.mrb[46].mxu1 }
 0x75a   :  { %19025 = vst [vmem:[#allocation36_spill] sm:$0xff] %v17360_v20  ;;  %v17362_v6 = vpop.f32.mrb[47].mxu1  ;;  %v10100_v61 = vmul.f32 %v17360_v20, %v17360_v20 }
 0x75b   :  { %19026 = vst [vmem:[#allocation41_spill] sm:$0xff] %v17362_v6  ;;  %v10160_v37 = vadd.f32 %v10159_v21, %v10097_v50  ;;  %v10028_v5 = vadd.f32 %v10027_v59, %v17362_v6  ;;  %v10098_v30 = vmul.f32 %v17362_v6, %v17362_v6 }
 0x75d   :  { %v10029_v54 = vadd.f32 %v17352_v24, %v10028_v5  ;;  %v10161_v62 = vadd.f32 %v10160_v37, %v10098_v30 }
 0x75f   :  { %v10162_v16 = vadd.f32 %v10161_v62, %v10099_v29  ;;  %v17372_v26 = vpop.f32.mrb[48].mxu1  ;;  %v10030_v27 = vadd.f32 %v17360_v20, %v10029_v54 }
 0x760   :  { %19027 = vst [vmem:[#allocation45_spill] sm:$0xff] %v17372_v26  ;;  %v17375_v43 = vpop.f32.mrb[49].mxu1  ;;  %v10103_v29 = vmul.f32 %v17372_v26, %v17372_v26 }
 0x761   :  { %19028 = vst [vmem:[#allocation39_spill] sm:$0xff] %v17375_v43  ;;  %v10031_v12 = vadd.f32 %v10030_v27, %v17375_v43  ;;  %v10101_v8 = vmul.f32 %v17375_v43, %v17375_v43  ;;  %v10163_v59 = vadd.f32 %v10162_v16, %v10100_v61  ;;  %v17380_v50 = vpop.f32.mrb[50].mxu1 }
 0x762   :  { %19029 = vst [vmem:[#allocation43_spill] sm:$0xff] %v17380_v50  ;;  %v17382_v21 = vpop.f32.mrb[51].mxu1  ;;  %v10104_v27 = vmul.f32 %v17380_v50, %v17380_v50 }
 0x763   :  { %19030 = vst [vmem:[#allocation128_spill] sm:$0xff] %v17382_v21  ;;  %v10164_v37 = vadd.f32 %v10163_v59, %v10101_v8  ;;  %v10032_v5 = vadd.f32 %v10031_v12, %v17382_v21  ;;  %v10102_v30 = vmul.f32 %v17382_v21, %v17382_v21 }
 0x765   :  { %v10033_v54 = vadd.f32 %v17372_v26, %v10032_v5  ;;  %v10165_v62 = vadd.f32 %v10164_v37, %v10102_v30 }
 0x767   :  { %v10166_v61 = vadd.f32 %v10165_v62, %v10103_v29  ;;  %v17392_v16 = vpop.f32.mrb[52].mxu1  ;;  %v10034_v43 = vadd.f32 %v17380_v50, %v10033_v54 }
 0x768   :  { %19031 = vst [vmem:[#allocation113_spill] sm:$0xff] %v17392_v16  ;;  %v17395_v8 = vpop.f32.mrb[53].mxu1  ;;  %v10107_v54 = vmul.f32 %v17392_v16, %v17392_v16 }
 0x769   :  { %19032 = vst [vmem:[#allocation114_spill] sm:$0xff] %v17395_v8  ;;  %v10035_v12 = vadd.f32 %v10034_v43, %v17395_v8  ;;  %v10105_v59 = vmul.f32 %v17395_v8, %v17395_v8  ;;  %v10167_v21 = vadd.f32 %v10166_v61, %v10104_v27  ;;  %v17400_v20 = vpop.f32.mrb[54].mxu1 }
 0x76a   :  { %19033 = vst [vmem:[#allocation57_spill] sm:$0xff] %v17400_v20  ;;  %v17402_v5 = vpop.f32.mrb[55].mxu1  ;;  %v10108_v8 = vmul.f32 %v17400_v20, %v17400_v20 }
 0x76b   :  { %19034 = vst [vmem:[#allocation49_spill] sm:$0xff] %v17402_v5  ;;  %v10168_v37 = vadd.f32 %v10167_v21, %v10105_v59  ;;  %v10036_v30 = vadd.f32 %v10035_v12, %v17402_v5  ;;  %v10106_v29 = vmul.f32 %v17402_v5, %v17402_v5 }
 0x76d   :  { %v10037_v62 = vadd.f32 %v17392_v16, %v10036_v30  ;;  %v10169_v43 = vadd.f32 %v10168_v37, %v10106_v29 }
 0x76f   :  { %v10170_v27 = vadd.f32 %v10169_v43, %v10107_v54  ;;  %v17412_v61 = vpop.f32.mrb[56].mxu1  ;;  %v10038_v50 = vadd.f32 %v17400_v20, %v10037_v62 }
 0x770   :  { %19035 = vst [vmem:[#allocation51_spill] sm:$0xff] %v17412_v61  ;;  %v17415_v21 = vpop.f32.mrb[57].mxu1  ;;  %v10111_v62 = vmul.f32 %v17412_v61, %v17412_v61 }
 0x771   :  { %19036 = vst [vmem:[#allocation98_spill] sm:$0xff] %v17415_v21  ;;  %v10039_v12 = vadd.f32 %v10038_v50, %v17415_v21  ;;  %v10109_v59 = vmul.f32 %v17415_v21, %v17415_v21  ;;  %v10171_v5 = vadd.f32 %v10170_v27, %v10108_v8  ;;  %v17420_v26 = vpop.f32.mrb[58].mxu1 }
 0x772   :  { %19037 = vst [vmem:[#allocation93_spill] sm:$0xff] %v17420_v26  ;;  %v17422_v30 = vpop.f32.mrb[59].mxu1  ;;  %v10112_v21 = vmul.f32 %v17420_v26, %v17420_v26 }
 0x773   :  { %19038 = vst [vmem:[#allocation76_spill] sm:$0xff] %v17422_v30  ;;  %v10172_v37 = vadd.f32 %v10171_v5, %v10109_v59  ;;  %v10040_v29 = vadd.f32 %v10039_v12, %v17422_v30  ;;  %v10110_v54 = vmul.f32 %v17422_v30, %v17422_v30 }
 0x775   :  { %v10041_v43 = vadd.f32 %v17412_v61, %v10040_v29  ;;  %v10173_v50 = vadd.f32 %v10172_v37, %v10110_v54 }
 0x777   :  { %v10174_v8 = vadd.f32 %v10173_v50, %v10111_v62  ;;  %v17432_v27 = vpop.f32.mrb[60].mxu1  ;;  %v10042_v20 = vadd.f32 %v17420_v26, %v10041_v43 }
 0x778   :  { %19039 = vst [vmem:[#allocation108_spill] sm:$0xff] %v17432_v27  ;;  %v17435_v5 = vpop.f32.mrb[61].mxu1  ;;  %v10115_v62 = vmul.f32 %v17432_v27, %v17432_v27 }
 0x779   :  { %19040 = vst [vmem:[#allocation88_spill] sm:$0xff] %v17435_v5  ;;  %v10043_v12 = vadd.f32 %v10042_v20, %v17435_v5  ;;  %v10113_v59 = vmul.f32 %v17435_v5, %v17435_v5  ;;  %v10175_v30 = vadd.f32 %v10174_v8, %v10112_v21  ;;  %v17440_v16 = vpop.f32.mrb[62].mxu1 }
 0x77a   :  { %v9970_v29 = vpop.f32.mrb[63].mxu1  ;;  %v10116_v26 = vmul.f32 %v17440_v16, %v17440_v16 }
 0x77b   :  { %v10176_v37 = vadd.f32 %v10175_v30, %v10113_v59  ;;  %v10044_v54 = vadd.f32 %v10043_v12, %v9970_v29  ;;  %v10114_v61 = vmul.f32 %v9970_v29, %v9970_v29 }
 0x77d   :  { %v10045_v50 = vadd.f32 %v17432_v27, %v10044_v54  ;;  %v10177_v43 = vadd.f32 %v10176_v37, %v10114_v61 }
 0x77f   :  { %v10046_v20 = vadd.f32 %v17440_v16, %v10045_v50  ;;  %v10178_v24 = vadd.f32 %v10177_v43, %v10115_v62 }
 0x781   :  { %v10047_v5 = vrot.slane %v10046_v20, 4  ;;  %v10179_v21 = vadd.f32 %v10178_v24, %v10116_v26  ;;  %v9982_v24 = vld [vmem:[%s18238_s8] sm:$0x1]  ;;  %s12576_s8 = smov [#allocation13]  }
 0x783   :  { %v10048_v8 = vadd.f32 %v10047_v5, %v10046_v20  ;;  %v10180_v6 = vrot.slane %v10179_v21, 4  ;;  %v19041_v5 = vld [vmem:[#allocation111_spill] sm:$0xff] }
 0x785   :  { %v10049_v63 = vrot.slane %v10048_v8, 2  ;;  %v10181_v30 = vadd.f32 %v10180_v6, %v10179_v21 }
 0x787   :  { %v10050_v12 = vadd.f32 %v10049_v63, %v10048_v8  ;;  %v10182_v59 = vrot.slane %v10181_v30, 2  ;;  %v9983_v63 = vld [vmem:[%s18239_s9] sm:$0x1]  ;;  %s10595_s9 = sshll.u32 %s12576_s8, 4  ;;  %s10596_s9 = int_to_ptr.vmem [resolvable:$true] %s10595_s9 }
 0x788   :  { %s12538_s27 = scalar_lea.vmem %s10596_s9, 8192  ;;  %p12543_p13 = scmp.lt.s32.totalorder %s10596_s9, %s10596_s9 }
 0x789   :  { %v10051_v22 = vrot.slane %v10050_v12, 1  ;;  %v10183_v42 = vadd.f32 %v10182_v59, %v10181_v30  ;;  %v19043_v59 = vld [vmem:[#allocation59_spill] sm:$0xff]  ;;  %p12539_p12 = scmp.ne.s32.totalorder %s10596_s9, %s12538_s27  ;;  %p12544_p0 = scmp.lt.s32.totalorder %s12538_s27, %s12538_s27 }
 0x78b   :  { %v10052_v53 = vadd.f32 %v10051_v22, %v10050_v12  ;;  %v10184_v40 = vrot.slane %v10183_v42, 1  ;;  %p12545_p1 = por %p12544_p0, %p12543_p13 }
 0x78d   :  { %v10185_v54 = vadd.f32 %v10184_v40, %v10183_v42  ;;  %v10186_v61 = vmul.f32 0.001953125, %v10052_v53  ;;  %p12546_p2 = pnand %p12545_p1, %p12539_p12 }
 0x78f   :  { %v10187_v37 = vmul.f32 0.001953125, %v10185_v54  ;;  %v10188_v27 = vmul.f32 %v10186_v61, %v10186_v61  ;;  %v19044_v54 = vld [vmem:[#allocation35_spill] sm:$0xff] }
 0x791   :  { %v10189_v13 = vsub.f32 %v10187_v37, %v10188_v27  ;;  %v19046_v37 = vld [vmem:[#allocation65_spill] sm:$0xff] }
 0x793   :  { %v10190_v48 = vmax.f32 %v10189_v13, 0.0 }
 0x795   :  { %v10191_v50 = vadd.f32 1e-05, %v10190_v48 }
 0x797   :  { %12418 = vrsqrt.f32 %v10191_v50  ;;  %v19047_v50 = vld [vmem:[#allocation30_spill] sm:$0xff] }
 0x7a1   :  { %v12419_v26 = vpop.eup %12418 }
 0x7a2   :  { %v10193_v6 = vmul.f32 %v12419_v26, %v9982_v24  ;;  %v19048_v26 = vld [vmem:[#allocation34_spill] sm:$0xff] }
 0x7a4   :  { %v10194_v22 = vmul.f32 %v10193_v6, %v10186_v61  ;;  %v17455_v42 = vrot.slane %v10193_v6, %v19041_v5  ;;  %v19045_v61 = vld [vmem:[#allocation32_spill] sm:$0xff] }
 0x7a6   :  { %v10195_v40 = vsub.f32 %v9983_v63, %v10194_v22  ;;  %v10261_v53 = vmul.f32 %v17455_v42, %v9970_v29  ;;  %v17460_v48 = vmul.f32 %v17455_v42, %v17135_v10  ;;  %v17464_v13 = vmul.f32 %v17455_v42, %v17139_v41  ;;  %v19049_v63 = vld [vmem:[#allocation41_spill] sm:$0xff] }
 0x7a7   :  { %v17468_v27 = vmul.f32 %v17133_v2, %v17455_v42  ;;  %v17472_v62 = vmul.f32 %v17137_v33, %v17455_v42  ;;  %v17476_v43 = vmul.f32 %v17455_v42, %v17155_v19  ;;  %v17480_v10 = vmul.f32 %v17455_v42, %v17162_v28 }
 0x7a8   :  { %v17483_v29 = vrot.slane %v10195_v40, %v19041_v5  ;;  %v17487_v41 = vmul.f32 %v17152_v58, %v17455_v42  ;;  %v17491_v2 = vmul.f32 %v17160_v44, %v17455_v42  ;;  %v17495_v33 = vmul.f32 %v17455_v42, %v17175_v47  ;;  %v19050_v5 = vld [vmem:[#allocation37_spill] sm:$0xff] }
 0x7a9   :  { %v17499_v19 = vmul.f32 %v17455_v42, %v17182_v32  ;;  %v17503_v28 = vmul.f32 %v17172_v45, %v17455_v42  ;;  %v17507_v58 = vmul.f32 %v17180_v7, %v17455_v42  ;;  %v17511_v44 = vmul.f32 %v17455_v42, %v17195_v55  ;;  %v10395_v7 = vld [vmem:[#allocation13 + $0x1e8] sm:$0xff] }
 0x7aa   :  { %v10331_v20 = vadd.f32 %v17483_v29, %v10261_v53  ;;  %v17516_v47 = vmul.f32 %v17455_v42, %v17202_v56  ;;  %v17520_v32 = vmul.f32 %v17192_v14, %v17455_v42  ;;  %v17524_v45 = vmul.f32 %v17200_v25, %v17455_v42  ;;  %v19051_v53 = vld [vmem:[#allocation36_spill] sm:$0xff] }
 0x7ab   :  { %v17528_v21 = vmul.f32 %v17455_v42, %v17215_v39  ;;  %v17532_v55 = vmul.f32 %v17455_v42, %v17222_v35  ;;  %v17536_v56 = vmul.f32 %v17212_v11, %v17455_v42  ;;  %v17540_v14 = vmul.f32 %v17220_v15, %v17455_v42 }
 0x7ac   :  { %v10459_v8 = vadd.f32 %v10395_v7, %v10331_v20  ;;  %v17544_v25 = vmul.f32 %v17455_v42, %v17235_v60  ;;  %v17548_v39 = vmul.f32 %v17455_v42, %v17242_v17  ;;  %v17552_v35 = vmul.f32 %v17232_v38, %v17455_v42  ;;  %v19052_v7 = vld [vmem:[#allocation39_spill] sm:$0xff] }
 0x7ad   :  { %v17556_v11 = vmul.f32 %v17240_v49, %v17455_v42  ;;  %v17560_v15 = vmul.f32 %v17455_v42, %v17255_v23  ;;  %v17564_v60 = vmul.f32 %v17455_v42, %v17262_v36  ;;  %v17568_v17 = vmul.f32 %v17252_v34, %v17455_v42 }
 0x7ae   :  { %v10523_v30 = vmax.f32 %v10459_v8, 0.0  ;;  %v17572_v38 = vmul.f32 %v17260_v3, %v17455_v42  ;;  %v17576_v49 = vmul.f32 %v17455_v42, %v17275_v9  ;;  %v17580_v23 = vmul.f32 %v17455_v42, %v17282_v0 }
 0x7af   :  { %v17584_v36 = vmul.f32 %v17272_v46, %v17455_v42  ;;  %v17588_v34 = vmul.f32 %v17280_v52, %v17455_v42  ;;  %v17592_v3 = vmul.f32 %v17455_v42, %v17295_v57  ;;  %v17596_v9 = vmul.f32 %v17455_v42, %v17302_v18  ;;  %v19042_v18 = vld [vmem:[#allocation55_spill] sm:$0xff] }
 0x7b0   :  { %10587 = vst [vmem:[#allocation13 + $0x1e8] sm:$0xff] %v10523_v30  ;;  %v17600_v0 = vmul.f32 %v17292_v4, %v17455_v42  ;;  %v17604_v46 = vmul.f32 %v17300_v31, %v17455_v42  ;;  %v17608_v52 = vmul.f32 %v17455_v42, %v17315_v51  ;;  %v17612_v57 = vmul.f32 %v17455_v42, %v17322_v1  ;;  %v19053_v30 = vld [vmem:[#allocation128_spill] sm:$0xff] }
 0x7b1   :  { %v17616_v12 = vmul.f32 %v19042_v18, %v17455_v42  ;;  %v17620_v4 = vmul.f32 %v19043_v59, %v17455_v42  ;;  %v17624_v31 = vmul.f32 %v17455_v42, %v19044_v54  ;;  %v17628_v51 = vmul.f32 %v17455_v42, %v19045_v61  ;;  %v19054_v59 = vld [vmem:[#allocation45_spill] sm:$0xff]  ;;  %v19056_v61 = vld [vmem:[#allocation43_spill] sm:$0xff] }
 0x7b2   :  { %v17632_v1 = vmul.f32 %v19046_v37, %v17455_v42  ;;  %v17636_v24 = vmul.f32 %v19047_v50, %v17455_v42  ;;  %v17640_v6 = vmul.f32 %v17455_v42, %v19048_v26  ;;  %v17644_v22 = vmul.f32 %v17455_v42, %v19049_v63  ;;  %v19058_v50 = vld [vmem:[#allocation114_spill] sm:$0xff]  ;;  %v19060_v63 = vld [vmem:[#allocation49_spill] sm:$0xff] }
 0x7b3   :  { %v17648_v40 = vmul.f32 %v19050_v5, %v17455_v42  ;;  %v17652_v20 = vmul.f32 %v19051_v53, %v17455_v42  ;;  %v17656_v8 = vmul.f32 %v17455_v42, %v19052_v7  ;;  %v17660_v18 = vmul.f32 %v17455_v42, %v19053_v30  ;;  %v19062_v53 = vld [vmem:[#allocation113_spill] sm:$0xff] }
 0x7b4   :  { %v17664_v54 = vmul.f32 %v19054_v59, %v17455_v42  ;;  %v17668_v37 = vmul.f32 %v19056_v61, %v17455_v42  ;;  %v17672_v26 = vmul.f32 %v17455_v42, %v19058_v50  ;;  %v17676_v5 = vmul.f32 %v17455_v42, %v19060_v63  ;;  %v19064_v30 = vld [vmem:[#allocation57_spill] sm:$0xff] }
 0x7b5   :  { %v17680_v7 = vmul.f32 %v19062_v53, %v17455_v42  ;;  %v17684_v59 = vmul.f32 %v19064_v30, %v17455_v42 }
 0x7b6   :  { %19055 = vst [vmem:[#allocation53_spill] sm:$0xff] %v17664_v54  ;;  %19057 = vst [vmem:[#allocation89_spill] sm:$0xff] %v17668_v37  ;;  %v19066_v54 = vld [vmem:[#allocation98_spill] sm:$0xff]  ;;  %v19067_v37 = vld [vmem:[#allocation76_spill] sm:$0xff] }
 0x7b7   :  { %19059 = vst [vmem:[#allocation47_spill] sm:$0xff] %v17672_v26  ;;  %19061 = vst [vmem:[#allocation61_spill] sm:$0xff] %v17676_v5  ;;  %v17688_v61 = vmul.f32 %v17455_v42, %v19066_v54  ;;  %v17692_v50 = vmul.f32 %v17455_v42, %v19067_v37  ;;  %v19068_v26 = vld [vmem:[#allocation51_spill] sm:$0xff]  ;;  %v19069_v5 = vld [vmem:[#allocation93_spill] sm:$0xff]  ;;  %v17712_v37 = vmul.f32 %v17440_v16, %v17455_v42 }
 0x7b8   :  { %19063 = vst [vmem:[#allocation33_spill] sm:$0xff] %v17680_v7  ;;  %19065 = vst [vmem:[#allocation90_spill] sm:$0xff] %v17684_v59  ;;  %v17696_v63 = vmul.f32 %v19068_v26, %v17455_v42  ;;  %v17700_v53 = vmul.f32 %v19069_v5, %v17455_v42  ;;  %v19070_v7 = vld [vmem:[#allocation88_spill] sm:$0xff]  ;;  %v17716_v26 = vadd.f32 %v17483_v29, %v17460_v48 }
 0x7b9   :  { %v17704_v30 = vmul.f32 %v17455_v42, %v19070_v7  ;;  %v19071_v59 = vld [vmem:[#allocation108_spill] sm:$0xff]  ;;  %v17720_v5 = vadd.f32 %v17483_v29, %v17464_v13  ;;  %v17724_v7 = vadd.f32 %v17483_v29, %v17468_v27  ;;  %v17732_v16 = vadd.f32 %v17483_v29, %v17476_v43 }
 0x7ba   :  { %v17708_v54 = vmul.f32 %v19071_v59, %v17455_v42  ;;  %v17728_v59 = vadd.f32 %v17483_v29, %v17472_v62  ;;  %v17736_v42 = vadd.f32 %v17483_v29, %v17480_v10  ;;  %v17740_v48 = vadd.f32 %v17483_v29, %v17487_v41 }
 0x7bb   :  { %v17744_v13 = vadd.f32 %v17483_v29, %v17491_v2  ;;  %v17748_v27 = vadd.f32 %v17483_v29, %v17495_v33  ;;  %v17752_v62 = vadd.f32 %v17483_v29, %v17499_v19  ;;  %v17756_v43 = vadd.f32 %v17483_v29, %v17503_v28 }
 0x7bc   :  { %v17760_v10 = vadd.f32 %v17483_v29, %v17507_v58  ;;  %v17764_v41 = vadd.f32 %v17483_v29, %v17511_v44  ;;  %v17768_v2 = vadd.f32 %v17483_v29, %v17516_v47  ;;  %v17772_v33 = vadd.f32 %v17483_v29, %v17520_v32 }
 0x7bd   :  { %v17776_v19 = vadd.f32 %v17483_v29, %v17524_v45  ;;  %v17780_v28 = vadd.f32 %v17483_v29, %v17528_v21  ;;  %v17784_v58 = vadd.f32 %v17483_v29, %v17532_v55  ;;  %v17788_v44 = vadd.f32 %v17483_v29, %v17536_v56 }
 0x7be   :  { %v17792_v47 = vadd.f32 %v17483_v29, %v17540_v14  ;;  %v17796_v32 = vadd.f32 %v17483_v29, %v17544_v25  ;;  %v17800_v45 = vadd.f32 %v17483_v29, %v17548_v39  ;;  %v17804_v21 = vadd.f32 %v17483_v29, %v17552_v35 }
 0x7bf   :  { %v17808_v55 = vadd.f32 %v17483_v29, %v17556_v11  ;;  %v17812_v56 = vadd.f32 %v17483_v29, %v17560_v15  ;;  %v17816_v14 = vadd.f32 %v17483_v29, %v17564_v60  ;;  %v17820_v25 = vadd.f32 %v17483_v29, %v17568_v17 }
 0x7c0   :  { %v17824_v39 = vadd.f32 %v17483_v29, %v17572_v38  ;;  %v17828_v35 = vadd.f32 %v17483_v29, %v17576_v49  ;;  %v17832_v11 = vadd.f32 %v17483_v29, %v17580_v23  ;;  %v17836_v15 = vadd.f32 %v17483_v29, %v17584_v36 }
 0x7c1   :  { %v17840_v60 = vadd.f32 %v17483_v29, %v17588_v34  ;;  %v17844_v17 = vadd.f32 %v17483_v29, %v17592_v3  ;;  %v17848_v38 = vadd.f32 %v17483_v29, %v17596_v9  ;;  %v17852_v49 = vadd.f32 %v17483_v29, %v17600_v0 }
 0x7c2   :  { %v17856_v23 = vadd.f32 %v17483_v29, %v17604_v46  ;;  %v17860_v36 = vadd.f32 %v17483_v29, %v17608_v52  ;;  %v17864_v34 = vadd.f32 %v17483_v29, %v17612_v57  ;;  %v17868_v3 = vadd.f32 %v17483_v29, %v17616_v12 }
 0x7c3   :  { %v17872_v9 = vadd.f32 %v17483_v29, %v17620_v4  ;;  %v17876_v0 = vadd.f32 %v17483_v29, %v17624_v31  ;;  %v17880_v46 = vadd.f32 %v17483_v29, %v17628_v51  ;;  %v17884_v52 = vadd.f32 %v17483_v29, %v17632_v1 }
 0x7c4   :  { %19072 = vst [vmem:[#allocation69_spill] sm:$0xff] %v17868_v3  ;;  %v17888_v57 = vadd.f32 %v17483_v29, %v17636_v24  ;;  %v17892_v12 = vadd.f32 %v17483_v29, %v17640_v6  ;;  %v17896_v4 = vadd.f32 %v17483_v29, %v17644_v22  ;;  %v17900_v31 = vadd.f32 %v17483_v29, %v17648_v40  ;;  %v19084_v6 = vld [vmem:[#allocation53_spill] sm:$0xff] }
 0x7c5   :  { %19073 = vst [vmem:[#allocation63_spill] sm:$0xff] %v17872_v9  ;;  %19074 = vst [vmem:[#allocation67_spill] sm:$0xff] %v17876_v0  ;;  %v17904_v51 = vadd.f32 %v17483_v29, %v17652_v20  ;;  %v17908_v1 = vadd.f32 %v17483_v29, %v17656_v8  ;;  %v17912_v24 = vadd.f32 %v17483_v29, %v17660_v18  ;;  %v10337_v40 = vld [vmem:[#allocation13 + $0x18] sm:$0xff]  ;;  %v10339_v0 = vld [vmem:[#allocation13 + $0x28] sm:$0xff] }
 0x7c6   :  { %19075 = vst [vmem:[#allocation42_spill] sm:$0xff] %v17880_v46  ;;  %19076 = vst [vmem:[#allocation71_spill] sm:$0xff] %v17884_v52  ;;  %v17916_v22 = vadd.f32 %v17483_v29, %v19084_v6  ;;  %v10338_v52 = vld [vmem:[#allocation13 + $0x20] sm:$0xff]  ;;  %v10341_v46 = vld [vmem:[#allocation13 + $0x38] sm:$0xff] }
 0x7c7   :  { %19077 = vst [vmem:[#allocation74_spill] sm:$0xff] %v17888_v57  ;;  %19078 = vst [vmem:[#allocation77_spill] sm:$0xff] %v17892_v12  ;;  %v10334_v12 = vld [vmem:[#allocation13] sm:$0xff]  ;;  %v19086_v57 = vld [vmem:[#allocation89_spill] sm:$0xff] }
 0x7c8   :  { %19079 = vst [vmem:[#allocation46_spill] sm:$0xff] %v17896_v4  ;;  %19080 = vst [vmem:[#allocation82_spill] sm:$0xff] %v17900_v31  ;;  %v10336_v4 = vld [vmem:[#allocation13 + $0x10] sm:$0xff]  ;;  %v10335_v31 = vld [vmem:[#allocation13 + $0x8] sm:$0xff]  ;;  %v17920_v20 = vadd.f32 %v17483_v29, %v19086_v57  ;;  %v17967_v3 = vadd.f32 %v10334_v12, %v17716_v26 }
 0x7c9   :  { %19081 = vst [vmem:[#allocation48_spill] sm:$0xff] %v17904_v51  ;;  %19082 = vst [vmem:[#allocation83_spill] sm:$0xff] %v17908_v1  ;;  %v19088_v51 = vld [vmem:[#allocation47_spill] sm:$0xff]  ;;  %v19090_v1 = vld [vmem:[#allocation61_spill] sm:$0xff] }
 0x7ca   :  { %19083 = vst [vmem:[#allocation52_spill] sm:$0xff] %v17912_v24  ;;  %19085 = vst [vmem:[#allocation115_spill] sm:$0xff] %v17916_v22  ;;  %v17924_v8 = vadd.f32 %v17483_v29, %v19088_v51  ;;  %v17928_v18 = vadd.f32 %v17483_v29, %v19090_v1  ;;  %v19092_v24 = vld [vmem:[#allocation33_spill] sm:$0xff]  ;;  %v10340_v22 = vld [vmem:[#allocation13 + $0x30] sm:$0xff]  ;;  %v17940_v51 = vadd.f32 %v17483_v29, %v17688_v61 }
 0x7cb   :  { %19087 = vst [vmem:[#allocation117_spill] sm:$0xff] %v17920_v20  ;;  %v17932_v6 = vadd.f32 %v17483_v29, %v19092_v24  ;;  %v19094_v9 = vld [vmem:[#allocation90_spill] sm:$0xff]  ;;  %v17944_v1 = vadd.f32 %v17483_v29, %v17692_v50  ;;  %v17948_v24 = vadd.f32 %v17483_v29, %v17696_v63  ;;  %v10343_v20 = vld [vmem:[#allocation13 + $0x48] sm:$0xff]  ;;  %v17956_v61 = vadd.f32 %v17483_v29, %v17704_v30 }
 0x7cc   :  { %19089 = vst [vmem:[#allocation29_spill] sm:$0xff] %v17924_v8  ;;  %19091 = vst [vmem:[#allocation26_spill] sm:$0xff] %v17928_v18  ;;  %v17936_v57 = vadd.f32 %v17483_v29, %v19094_v9  ;;  %v10342_v18 = vld [vmem:[#allocation13 + $0x40] sm:$0xff]  ;;  %v10345_v8 = vld [vmem:[#allocation13 + $0x58] sm:$0xff]  ;;  %v17952_v9 = vadd.f32 %v17483_v29, %v17700_v53  ;;  %v17960_v50 = vadd.f32 %v17483_v29, %v17708_v54 }
 0x7cd   :  { %19093 = vst [vmem:[#allocation31_spill] sm:$0xff] %v17932_v6  ;;  %19096 = vst [vmem:[#allocation106_spill] sm:$0xff] %v17940_v51  ;;  %v10344_v6 = vld [vmem:[#allocation13 + $0x50] sm:$0xff]  ;;  %v17964_v63 = vadd.f32 %v17483_v29, %v17712_v37  ;;  %v10349_v51 = vld [vmem:[#allocation13 + $0x78] sm:$0xff]  ;;  %v17970_v53 = vadd.f32 %v10335_v31, %v17720_v5  ;;  %v17973_v30 = vadd.f32 %v10336_v4, %v17724_v7 }
 0x7ce   :  { %19095 = vst [vmem:[#allocation103_spill] sm:$0xff] %v17936_v57  ;;  %19097 = vst [vmem:[#allocation120_spill] sm:$0xff] %v17944_v1  ;;  %v10346_v1 = vld [vmem:[#allocation13 + $0x60] sm:$0xff]  ;;  %v10347_v57 = vld [vmem:[#allocation13 + $0x68] sm:$0xff]  ;;  %v17976_v54 = vadd.f32 %v10337_v40, %v17728_v59  ;;  %v17985_v26 = vadd.f32 %v10340_v22, %v17740_v48  ;;  %v17988_v5 = vadd.f32 %v10341_v46, %v17744_v13 }
 0x7cf   :  { %19098 = vst [vmem:[#allocation119_spill] sm:$0xff] %v17948_v24  ;;  %19099 = vst [vmem:[#allocation118_spill] sm:$0xff] %v17952_v9  ;;  %v10348_v24 = vld [vmem:[#allocation13 + $0x70] sm:$0xff]  ;;  %v10353_v29 = vld [vmem:[#allocation13 + $0x98] sm:$0xff]  ;;  %v17982_v9 = vadd.f32 %v10339_v0, %v17736_v42  ;;  %v17991_v31 = vadd.f32 %v10342_v18, %v17748_v27  ;;  %v17994_v40 = vadd.f32 %v10343_v20, %v17752_v62 }
 0x7d0   :  { %19100 = vst [vmem:[#allocation109_spill] sm:$0xff] %v17956_v61  ;;  %19101 = vst [vmem:[#allocation105_spill] sm:$0xff] %v17960_v50  ;;  %v10352_v50 = vld [vmem:[#allocation13 + $0x90] sm:$0xff]  ;;  %v10350_v61 = vld [vmem:[#allocation13 + $0x80] sm:$0xff]  ;;  %v18000_v42 = vadd.f32 %v10345_v8, %v17760_v10  ;;  %v18006_v22 = vadd.f32 %v10347_v57, %v17768_v2  ;;  %v18009_v27 = vadd.f32 %v10348_v24, %v17772_v33 }
 0x7d1   :  { %19102 = vst [vmem:[#allocation107_spill] sm:$0xff] %v17964_v63  ;;  %v10351_v37 = vld [vmem:[#allocation13 + $0x88] sm:$0xff]  ;;  %v17979_v63 = vadd.f32 %v10338_v52, %v17732_v16  ;;  %v10356_v7 = vld [vmem:[#allocation13 + $0xb0] sm:$0xff]  ;;  %v10354_v12 = vld [vmem:[#allocation13 + $0xa0] sm:$0xff]  ;;  %v17997_v16 = vadd.f32 %v10344_v6, %v17756_v43  ;;  %v18003_v52 = vadd.f32 %v10346_v1, %v17764_v41  ;;  %v18012_v62 = vadd.f32 %v10349_v51, %v17776_v19 }
 0x7d2   :  { %v10357_v59 = vld [vmem:[#allocation13 + $0xb8] sm:$0xff]  ;;  %v10355_v4 = vld [vmem:[#allocation13 + $0xa8] sm:$0xff]  ;;  %v10360_v48 = vld [vmem:[#allocation13 + $0xd0] sm:$0xff]  ;;  %v18015_v18 = vadd.f32 %v10350_v61, %v17780_v28  ;;  %v18018_v6 = vadd.f32 %v10351_v37, %v17784_v58  ;;  %v18021_v41 = vadd.f32 %v10352_v50, %v17788_v44  ;;  %v18024_v2 = vadd.f32 %v10353_v29, %v17792_v47 }
 0x7d3   :  { %v10358_v0 = vld [vmem:[#allocation13 + $0xc0] sm:$0xff]  ;;  %v10361_v13 = vld [vmem:[#allocation13 + $0xd8] sm:$0xff]  ;;  %v10359_v46 = vld [vmem:[#allocation13 + $0xc8] sm:$0xff]  ;;  %v18027_v1 = vadd.f32 %v10354_v12, %v17796_v32  ;;  %v18030_v24 = vadd.f32 %v10355_v4, %v17800_v45  ;;  %v18033_v28 = vadd.f32 %v10356_v7, %v17804_v21  ;;  %v18036_v58 = vadd.f32 %v10357_v59, %v17808_v55 }
 0x7d4   :  { %v10364_v43 = vld [vmem:[#allocation13 + $0xf0] sm:$0xff]  ;;  %v10362_v20 = vld [vmem:[#allocation13 + $0xe0] sm:$0xff]  ;;  %v10365_v10 = vld [vmem:[#allocation13 + $0xf8] sm:$0xff]  ;;  %v18039_v50 = vadd.f32 %v10358_v0, %v17812_v56  ;;  %v18042_v29 = vadd.f32 %v10359_v46, %v17816_v14  ;;  %v18045_v32 = vadd.f32 %v10360_v48, %v17820_v25  ;;  %v18048_v45 = vadd.f32 %v10361_v13, %v17824_v39 }
 0x7d5   :  { %v10363_v8 = vld [vmem:[#allocation13 + $0xe8] sm:$0xff]  ;;  %v10368_v33 = vld [vmem:[#allocation13 + $0x110] sm:$0xff]  ;;  %v10366_v57 = vld [vmem:[#allocation13 + $0x100] sm:$0xff]  ;;  %v18051_v55 = vadd.f32 %v10362_v20, %v17828_v35  ;;  %v18057_v56 = vadd.f32 %v10364_v43, %v17836_v15  ;;  %v18060_v14 = vadd.f32 %v10365_v10, %v17840_v60 }
 0x7d6   :  { %v10369_v19 = vld [vmem:[#allocation13 + $0x118] sm:$0xff]  ;;  %v10367_v51 = vld [vmem:[#allocation13 + $0x108] sm:$0xff]  ;;  %v10372_v44 = vld [vmem:[#allocation13 + $0x130] sm:$0xff]  ;;  %v18054_v12 = vadd.f32 %v10363_v8, %v17832_v11  ;;  %v18063_v39 = vadd.f32 %v10366_v57, %v17844_v17  ;;  %v18069_v35 = vadd.f32 %v10368_v33, %v17852_v49 }
 0x7d7   :  { %v10370_v61 = vld [vmem:[#allocation13 + $0x120] sm:$0xff]  ;;  %v10373_v47 = vld [vmem:[#allocation13 + $0x138] sm:$0xff]  ;;  %v10371_v21 = vld [vmem:[#allocation13 + $0x128] sm:$0xff]  ;;  %v18066_v48 = vadd.f32 %v10367_v51, %v17848_v38  ;;  %v18072_v11 = vadd.f32 %v10369_v19, %v17856_v23 }
 0x7d8   :  { %v10376_v37 = vld [vmem:[#allocation13 + $0x150] sm:$0xff]  ;;  %v10374_v7 = vld [vmem:[#allocation13 + $0x140] sm:$0xff]  ;;  %v10377_v25 = vld [vmem:[#allocation13 + $0x158] sm:$0xff]  ;;  %v18075_v60 = vadd.f32 %v10370_v61, %v17860_v36  ;;  %v18078_v46 = vadd.f32 %v10371_v21, %v17864_v34 }
 0x7d9   :  { %v10375_v59 = vld [vmem:[#allocation13 + $0x148] sm:$0xff]  ;;  %v10380_v4 = vld [vmem:[#allocation13 + $0x170] sm:$0xff]  ;;  %v10378_v15 = vld [vmem:[#allocation13 + $0x160] sm:$0xff] }
 0x7da   :  { %v10381_v0 = vld [vmem:[#allocation13 + $0x178] sm:$0xff]  ;;  %v10379_v13 = vld [vmem:[#allocation13 + $0x168] sm:$0xff]  ;;  %v10384_v49 = vld [vmem:[#allocation13 + $0x190] sm:$0xff] }
 0x7db   :  { %v19103_v17 = vld [vmem:[#allocation69_spill] sm:$0xff]  ;;  %v19105_v38 = vld [vmem:[#allocation63_spill] sm:$0xff]  ;;  %v10382_v10 = vld [vmem:[#allocation13 + $0x180] sm:$0xff] }
 0x7dc   :  { %v18081_v43 = vadd.f32 %v10372_v44, %v19103_v17  ;;  %v18084_v20 = vadd.f32 %v10373_v47, %v19105_v38  ;;  %v10385_v8 = vld [vmem:[#allocation13 + $0x198] sm:$0xff]  ;;  %v19107_v23 = vld [vmem:[#allocation67_spill] sm:$0xff]  ;;  %v19108_v57 = vld [vmem:[#allocation42_spill] sm:$0xff] }
 0x7dd   :  { %v18087_v33 = vadd.f32 %v10374_v7, %v19107_v23  ;;  %v18090_v19 = vadd.f32 %v10375_v59, %v19108_v57  ;;  %v19110_v36 = vld [vmem:[#allocation71_spill] sm:$0xff]  ;;  %v19112_v34 = vld [vmem:[#allocation74_spill] sm:$0xff]  ;;  %v10388_v21 = vld [vmem:[#allocation13 + $0x1b0] sm:$0xff] }
 0x7de   :  { %19104 = vst [vmem:[#allocation112_spill] sm:$0xff] %v18081_v43  ;;  %19106 = vst [vmem:[#allocation121_spill] sm:$0xff] %v18084_v20  ;;  %v18093_v51 = vadd.f32 %v10376_v37, %v19110_v36  ;;  %v18096_v61 = vadd.f32 %v10377_v25, %v19112_v34  ;;  %v10383_v44 = vld [vmem:[#allocation13 + $0x188] sm:$0xff]  ;;  %v10386_v17 = vld [vmem:[#allocation13 + $0x1a0] sm:$0xff] }
 0x7df   :  { %19109 = vst [vmem:[#allocation110_spill] sm:$0xff] %v18090_v19  ;;  %v19114_v47 = vld [vmem:[#allocation77_spill] sm:$0xff]  ;;  %v19115_v20 = vld [vmem:[#allocation46_spill] sm:$0xff]  ;;  %v19119_v59 = vld [vmem:[#allocation48_spill] sm:$0xff] }
 0x7e0   :  { %19111 = vst [vmem:[#allocation116_spill] sm:$0xff] %v18093_v51  ;;  %19113 = vst [vmem:[#allocation123_spill] sm:$0xff] %v18096_v61  ;;  %v18099_v38 = vadd.f32 %v10378_v15, %v19114_v47  ;;  %v18102_v43 = vadd.f32 %v10379_v13, %v19115_v20  ;;  %v19117_v7 = vld [vmem:[#allocation82_spill] sm:$0xff]  ;;  %v18108_v57 = vadd.f32 %v10381_v0, %v19119_v59  ;;  %v10389_v37 = vld [vmem:[#allocation13 + $0x1b8] sm:$0xff] }
 0x7e1   :  { %v18105_v23 = vadd.f32 %v10380_v4, %v19117_v7  ;;  %v10387_v36 = vld [vmem:[#allocation13 + $0x1a8] sm:$0xff]  ;;  %v10392_v51 = vld [vmem:[#allocation13 + $0x1d0] sm:$0xff]  ;;  %v19126_v13 = vld [vmem:[#allocation117_spill] sm:$0xff] }
 0x7e2   :  { %19116 = vst [vmem:[#allocation125_spill] sm:$0xff] %v18102_v43  ;;  %19120 = vst [vmem:[#allocation124_spill] sm:$0xff] %v18108_v57  ;;  %v19121_v25 = vld [vmem:[#allocation83_spill] sm:$0xff]  ;;  %v19122_v61 = vld [vmem:[#allocation52_spill] sm:$0xff]  ;;  %v18120_v20 = vadd.f32 %v10385_v8, %v19126_v13 }
 0x7e3   :  { %19118 = vst [vmem:[#allocation122_spill] sm:$0xff] %v18105_v23  ;;  %v18111_v34 = vadd.f32 %v10382_v10, %v19121_v25  ;;  %v18114_v19 = vadd.f32 %v10383_v44, %v19122_v61  ;;  %v19124_v15 = vld [vmem:[#allocation115_spill] sm:$0xff]  ;;  %v10390_v4 = vld [vmem:[#allocation13 + $0x1c0] sm:$0xff]  ;;  %v10393_v7 = vld [vmem:[#allocation13 + $0x1d8] sm:$0xff] }
 0x7e4   :  { %v18117_v47 = vadd.f32 %v10384_v49, %v19124_v15  ;;  %19127 = vst [vmem:[#allocation126_spill] sm:$0xff] %v18120_v20  ;;  %v10391_v23 = vld [vmem:[#allocation13 + $0x1c8] sm:$0xff]  ;;  %v19128_v0 = vld [vmem:[#allocation29_spill] sm:$0xff]  ;;  %v19129_v57 = vld [vmem:[#allocation26_spill] sm:$0xff] }
 0x7e5   :  { %19123 = vst [vmem:[#allocation127_spill] sm:$0xff] %v18114_v19  ;;  %v18123_v59 = vadd.f32 %v10386_v17, %v19128_v0  ;;  %v18126_v43 = vadd.f32 %v10387_v36, %v19129_v57  ;;  %v19130_v10 = vld [vmem:[#allocation31_spill] sm:$0xff]  ;;  %v10396_v49 = vld [vmem:[#allocation13 + $0x1f0] sm:$0xff]  ;;  %v10394_v15 = vld [vmem:[#allocation13 + $0x1e0] sm:$0xff] }
 0x7e6   :  { %19125 = vst [vmem:[#allocation28_spill] sm:$0xff] %v18117_v47  ;;  %v18129_v25 = vadd.f32 %v10388_v21, %v19130_v10  ;;  %v19132_v61 = vld [vmem:[#allocation103_spill] sm:$0xff]  ;;  %v10397_v47 = vld [vmem:[#allocation13 + $0x1f8] sm:$0xff]  ;;  %v19134_v8 = vld [vmem:[#allocation106_spill] sm:$0xff] }
 0x7e7   :  { %v18132_v44 = vadd.f32 %v10389_v37, %v19132_v61  ;;  %v18135_v13 = vadd.f32 %v10390_v4, %v19134_v8  ;;  %v19135_v20 = vld [vmem:[#allocation120_spill] sm:$0xff]  ;;  %v19136_v17 = vld [vmem:[#allocation119_spill] sm:$0xff]  ;;  %v19137_v57 = vld [vmem:[#allocation118_spill] sm:$0xff]  ;;  %v10462_v4 = vmax.f32 %v17967_v3, 0.0  ;;  %v10467_v8 = vmax.f32 %v17982_v9, 0.0 }
 0x7e8   :  { %19131 = vst [vmem:[#allocation27_spill] sm:$0xff] %v18129_v25  ;;  %v18138_v19 = vadd.f32 %v10391_v23, %v19135_v20  ;;  %v18141_v0 = vadd.f32 %v10392_v51, %v19136_v17  ;;  %v18144_v36 = vadd.f32 %v10393_v7, %v19137_v57  ;;  %v19138_v21 = vld [vmem:[#allocation109_spill] sm:$0xff]  ;;  %v10463_v23 = vmax.f32 %v17970_v53, 0.0 }
 0x7e9   :  { %19133 = vst [vmem:[#allocation19_spill] sm:$0xff] %v18132_v44  ;;  %v18147_v10 = vadd.f32 %v10394_v15, %v19138_v21  ;;  %v19139_v37 = vld [vmem:[#allocation105_spill] sm:$0xff]  ;;  %v19140_v44 = vld [vmem:[#allocation107_spill] sm:$0xff]  ;;  %v10464_v20 = vmax.f32 %v17973_v30, 0.0  ;;  %v10465_v51 = vmax.f32 %v17976_v54, 0.0  ;;  %v10466_v7 = vmax.f32 %v17979_v63, 0.0 }
 0x7ea   :  { %v18150_v61 = vadd.f32 %v10396_v49, %v19139_v37  ;;  %v18153_v25 = vadd.f32 %v10397_v47, %v19140_v44  ;;  %v10468_v15 = vmax.f32 %v17985_v26, 0.0  ;;  %v10469_v49 = vmax.f32 %v17988_v5, 0.0  ;;  %10526 = vst [vmem:[#allocation13] sm:$0xff] %v10462_v4  ;;  %10527 = vst [vmem:[#allocation13 + $0x8] sm:$0xff] %v10463_v23  ;;  %v19145_v44 = vld [vmem:[#allocation123_spill] sm:$0xff]  ;;  %v19147_v4 = vld [vmem:[#allocation122_spill] sm:$0xff] }
 0x7eb   :  { %v10470_v17 = vmax.f32 %v17991_v31, 0.0  ;;  %v10471_v47 = vmax.f32 %v17994_v40, 0.0  ;;  %v10472_v3 = vmax.f32 %v17997_v16, 0.0  ;;  %v10473_v53 = vmax.f32 %v18000_v42, 0.0  ;;  %10528 = vst [vmem:[#allocation13 + $0x10] sm:$0xff] %v10464_v20  ;;  %10529 = vst [vmem:[#allocation13 + $0x18] sm:$0xff] %v10465_v51 }
 0x7ec   :  { %v10474_v30 = vmax.f32 %v18003_v52, 0.0  ;;  %10530 = vst [vmem:[#allocation13 + $0x20] sm:$0xff] %v10466_v7  ;;  %v10475_v9 = vmax.f32 %v18006_v22, 0.0  ;;  %v10476_v63 = vmax.f32 %v18009_v27, 0.0  ;;  %v10477_v54 = vmax.f32 %v18012_v62, 0.0  ;;  %10531 = vst [vmem:[#allocation13 + $0x28] sm:$0xff] %v10467_v8 }
 0x7ed   :  { %v10478_v26 = vmax.f32 %v18015_v18, 0.0  ;;  %10532 = vst [vmem:[#allocation13 + $0x30] sm:$0xff] %v10468_v15  ;;  %10533 = vst [vmem:[#allocation13 + $0x38] sm:$0xff] %v10469_v49  ;;  %v10479_v5 = vmax.f32 %v18018_v6, 0.0  ;;  %v10480_v31 = vmax.f32 %v18021_v41, 0.0  ;;  %v10481_v40 = vmax.f32 %v18024_v2, 0.0 }
 0x7ee   :  { %10534 = vst [vmem:[#allocation13 + $0x40] sm:$0xff] %v10470_v17  ;;  %v10482_v16 = vmax.f32 %v18027_v1, 0.0  ;;  %10535 = vst [vmem:[#allocation13 + $0x48] sm:$0xff] %v10471_v47  ;;  %v10483_v42 = vmax.f32 %v18030_v24, 0.0  ;;  %v10484_v52 = vmax.f32 %v18033_v28, 0.0  ;;  %v10485_v22 = vmax.f32 %v18036_v58, 0.0 }
 0x7ef   :  { %10536 = vst [vmem:[#allocation13 + $0x50] sm:$0xff] %v10472_v3  ;;  %10537 = vst [vmem:[#allocation13 + $0x58] sm:$0xff] %v10473_v53  ;;  %v10486_v27 = vmax.f32 %v18039_v50, 0.0  ;;  %v10487_v62 = vmax.f32 %v18042_v29, 0.0  ;;  %v10488_v18 = vmax.f32 %v18045_v32, 0.0  ;;  %v10489_v6 = vmax.f32 %v18048_v45, 0.0 }
 0x7f0   :  { %10538 = vst [vmem:[#allocation13 + $0x60] sm:$0xff] %v10474_v30  ;;  %10539 = vst [vmem:[#allocation13 + $0x68] sm:$0xff] %v10475_v9  ;;  %v10490_v41 = vmax.f32 %v18051_v55, 0.0  ;;  %v10491_v2 = vmax.f32 %v18054_v12, 0.0  ;;  %v10492_v1 = vmax.f32 %v18057_v56, 0.0  ;;  %v10493_v24 = vmax.f32 %v18060_v14, 0.0 }
 0x7f1   :  { %10540 = vst [vmem:[#allocation13 + $0x70] sm:$0xff] %v10476_v63  ;;  %10541 = vst [vmem:[#allocation13 + $0x78] sm:$0xff] %v10477_v54  ;;  %v10494_v28 = vmax.f32 %v18063_v39, 0.0  ;;  %v10495_v58 = vmax.f32 %v18066_v48, 0.0  ;;  %v10496_v50 = vmax.f32 %v18069_v35, 0.0  ;;  %v10497_v29 = vmax.f32 %v18072_v11, 0.0 }
 0x7f2   :  { %10542 = vst [vmem:[#allocation13 + $0x80] sm:$0xff] %v10478_v26  ;;  %10543 = vst [vmem:[#allocation13 + $0x88] sm:$0xff] %v10479_v5  ;;  %v10498_v32 = vmax.f32 %v18075_v60, 0.0  ;;  %v10499_v45 = vmax.f32 %v18078_v46, 0.0  ;;  %v19141_v55 = vld [vmem:[#allocation112_spill] sm:$0xff]  ;;  %v19142_v56 = vld [vmem:[#allocation121_spill] sm:$0xff] }
 0x7f3   :  { %10544 = vst [vmem:[#allocation13 + $0x90] sm:$0xff] %v10480_v31  ;;  %10545 = vst [vmem:[#allocation13 + $0x98] sm:$0xff] %v10481_v40  ;;  %v10500_v12 = vmax.f32 %v19141_v55, 0.0  ;;  %v10501_v14 = vmax.f32 %v19142_v56, 0.0  ;;  %v10502_v39 = vmax.f32 %v18087_v33, 0.0  ;;  %v19143_v48 = vld [vmem:[#allocation110_spill] sm:$0xff] }
 0x7f4   :  { %10546 = vst [vmem:[#allocation13 + $0xa0] sm:$0xff] %v10482_v16  ;;  %10547 = vst [vmem:[#allocation13 + $0xa8] sm:$0xff] %v10483_v42  ;;  %v10503_v35 = vmax.f32 %v19143_v48, 0.0  ;;  %v19144_v11 = vld [vmem:[#allocation116_spill] sm:$0xff]  ;;  %v10505_v57 = vmax.f32 %v19145_v44, 0.0  ;;  %v10506_v21 = vmax.f32 %v18099_v38, 0.0 }
 0x7f5   :  { %10548 = vst [vmem:[#allocation13 + $0xb0] sm:$0xff] %v10484_v52  ;;  %10549 = vst [vmem:[#allocation13 + $0xb8] sm:$0xff] %v10485_v22  ;;  %v10504_v60 = vmax.f32 %v19144_v11, 0.0  ;;  %v19146_v46 = vld [vmem:[#allocation125_spill] sm:$0xff]  ;;  %v10508_v33 = vmax.f32 %v19147_v4, 0.0  ;;  %v19148_v23 = vld [vmem:[#allocation124_spill] sm:$0xff] }
 0x7f6   :  { %10550 = vst [vmem:[#allocation13 + $0xc0] sm:$0xff] %v10486_v27  ;;  %10551 = vst [vmem:[#allocation13 + $0xc8] sm:$0xff] %v10487_v62  ;;  %v10507_v37 = vmax.f32 %v19146_v46, 0.0  ;;  %v10509_v20 = vmax.f32 %v19148_v23, 0.0  ;;  %v10510_v51 = vmax.f32 %v18111_v34, 0.0  ;;  %v19149_v7 = vld [vmem:[#allocation127_spill] sm:$0xff] }
 0x7f7   :  { %10552 = vst [vmem:[#allocation13 + $0xd0] sm:$0xff] %v10488_v18  ;;  %10553 = vst [vmem:[#allocation13 + $0xd8] sm:$0xff] %v10489_v6  ;;  %v10511_v8 = vmax.f32 %v19149_v7, 0.0  ;;  %v19150_v15 = vld [vmem:[#allocation28_spill] sm:$0xff]  ;;  %v19151_v49 = vld [vmem:[#allocation126_spill] sm:$0xff]  ;;  %v10514_v47 = vmax.f32 %v18123_v59, 0.0 }
 0x7f8   :  { %10554 = vst [vmem:[#allocation13 + $0xe0] sm:$0xff] %v10490_v41  ;;  %10555 = vst [vmem:[#allocation13 + $0xe8] sm:$0xff] %v10491_v2  ;;  %v10512_v38 = vmax.f32 %v19150_v15, 0.0  ;;  %v10513_v17 = vmax.f32 %v19151_v49, 0.0  ;;  %v10515_v34 = vmax.f32 %v18126_v43, 0.0  ;;  %v19152_v3 = vld [vmem:[#allocation27_spill] sm:$0xff] }
 0x7f9   :  { %10556 = vst [vmem:[#allocation13 + $0xf0] sm:$0xff] %v10492_v1  ;;  %10557 = vst [vmem:[#allocation13 + $0xf8] sm:$0xff] %v10493_v24  ;;  %v10516_v53 = vmax.f32 %v19152_v3, 0.0  ;;  %v19153_v30 = vld [vmem:[#allocation19_spill] sm:$0xff]  ;;  %v10518_v63 = vmax.f32 %v18135_v13, 0.0  ;;  %v10519_v59 = vmax.f32 %v18138_v19, 0.0 }
 0x7fa   :  { %10558 = vst [vmem:[#allocation13 + $0x100] sm:$0xff] %v10494_v28  ;;  %10559 = vst [vmem:[#allocation13 + $0x108] sm:$0xff] %v10495_v58  ;;  %v10517_v9 = vmax.f32 %v19153_v30, 0.0  ;;  %v10520_v54 = vmax.f32 %v18141_v0, 0.0  ;;  %v10521_v26 = vmax.f32 %v18144_v36, 0.0  ;;  %v10522_v5 = vmax.f32 %v18147_v10, 0.0 }
 0x7fb   :  { %10560 = vst [vmem:[#allocation13 + $0x110] sm:$0xff] %v10496_v50  ;;  %10561 = vst [vmem:[#allocation13 + $0x118] sm:$0xff] %v10497_v29  ;;  %v10524_v43 = vmax.f32 %v18150_v61, 0.0  ;;  %v10525_v13 = vmax.f32 %v18153_v25, 0.0 }
 0x7fc   :  { %10562 = vst [vmem:[#allocation13 + $0x120] sm:$0xff] %v10498_v32  ;;  %10563 = vst [vmem:[#allocation13 + $0x128] sm:$0xff] %v10499_v45 }
 0x7fd   :  { %10564 = vst [vmem:[#allocation13 + $0x130] sm:$0xff] %v10500_v12  ;;  %10565 = vst [vmem:[#allocation13 + $0x138] sm:$0xff] %v10501_v14 }
 0x7fe   :  { %10566 = vst [vmem:[#allocation13 + $0x140] sm:$0xff] %v10502_v39  ;;  %10567 = vst [vmem:[#allocation13 + $0x148] sm:$0xff] %v10503_v35 }
 0x7ff   :  { %10568 = vst [vmem:[#allocation13 + $0x150] sm:$0xff] %v10504_v60  ;;  %10569 = vst [vmem:[#allocation13 + $0x158] sm:$0xff] %v10505_v57 }
 0x800   :  { %10570 = vst [vmem:[#allocation13 + $0x160] sm:$0xff] %v10506_v21  ;;  %10571 = vst [vmem:[#allocation13 + $0x168] sm:$0xff] %v10507_v37 }
 0x801   :  { %10572 = vst [vmem:[#allocation13 + $0x170] sm:$0xff] %v10508_v33  ;;  %10573 = vst [vmem:[#allocation13 + $0x178] sm:$0xff] %v10509_v20 }
 0x802   :  { %10574 = vst [vmem:[#allocation13 + $0x180] sm:$0xff] %v10510_v51  ;;  %10575 = vst [vmem:[#allocation13 + $0x188] sm:$0xff] %v10511_v8 }
 0x803   :  { %10576 = vst [vmem:[#allocation13 + $0x190] sm:$0xff] %v10512_v38  ;;  %10577 = vst [vmem:[#allocation13 + $0x198] sm:$0xff] %v10513_v17 }
 0x804   :  { %10578 = vst [vmem:[#allocation13 + $0x1a0] sm:$0xff] %v10514_v47  ;;  %10579 = vst [vmem:[#allocation13 + $0x1a8] sm:$0xff] %v10515_v34 }
 0x805   :  { %10580 = vst [vmem:[#allocation13 + $0x1b0] sm:$0xff] %v10516_v53  ;;  %10581 = vst [vmem:[#allocation13 + $0x1b8] sm:$0xff] %v10517_v9 }
 0x806   :  { %10582 = vst [vmem:[#allocation13 + $0x1c0] sm:$0xff] %v10518_v63  ;;  %10583 = vst [vmem:[#allocation13 + $0x1c8] sm:$0xff] %v10519_v59 }
 0x807   :  { %10584 = vst [vmem:[#allocation13 + $0x1d0] sm:$0xff] %v10520_v54  ;;  %10585 = vst [vmem:[#allocation13 + $0x1d8] sm:$0xff] %v10521_v26 }
 0x808   :  { %10586 = vst [vmem:[#allocation13 + $0x1e0] sm:$0xff] %v10522_v5  ;;  %10588 = vst [vmem:[#allocation13 + $0x1f0] sm:$0xff] %v10524_v43 }
 0x809   :  { %10589 = vst [vmem:[#allocation13 + $0x1f8] sm:$0xff] %v10525_v13 }
 0x80a   :  { %12549 = shalt.err (!%p12546_p2)
}
 0x80b   :  { %s12550_s14 = scalar_lea.hbm %s18243_s13, 8192 }
 0x80c   :  { %p12551_p3 = scmp.ne.s32.totalorder %s18243_s13, %s12550_s14  ;;  %p12554_p4 = scmp.lt.u32.totalorder %s12550_s14, %s18243_s13 }
 0x80e   :  { %p12556_p5 = pnand %p12554_p4, %p12551_p3 }
 0x810   :  { %12559 = shalt.err (!%p12556_p5)
}
 0x811   :  { %s12577_s1 = smov 128   ;;  %s12578_s26 = smov 8  }
 0x812   :  { %10601 = dma.vmem_to_hbm [thread:$0]  %s10596_s9, 8192, %s18243_s13, [#allocation6], %s12577_s1, %s12577_s1, %s12578_s26  }
 0x813   :  { %12566 = dma.done.wait [#allocation6], 8192  }
 0x814   :  { %12567 = vsyncadd [#allocation6], 4294959104 }
 0x815   :  { %10605 = vsyncpa [#allocation5], 1 }
 0x816   :  { %10606 = vsyncpa [#allocation8], 1 }
 0x817   :  { %10607 = vsyncpa [#allocation11], 1 }
 0x818   :  { %10608 = vsyncpa [#allocation6], 1 }

</bundles_post_ra>
